<compile_context>
chip_gen: v5e
topology: v5e:2x2
jax: 0.10.0
libtpu: 0.0.40
codegen_flags: <defaults>
</compile_context>

<pallas_src>
import functools

import numpy as np
import jax
import jax.numpy as jnp
from jax.experimental import pallas as pl
from jax.experimental.pallas import tpu as pltpu

EPS = 1e-5


# ---------------------------------------------------------------------------
# Kernel 1: fused conv stack + maxpool
# ---------------------------------------------------------------------------
def make_features_kernel(kernel_sizes, chans, H, W):
    L = len(kernel_sizes)

    def kernel(*refs):
        x_ref = refs[0]
        m_refs = [refs[1 + 2 * l] for l in range(L)]     # block-Toeplitz conv weights
        e_refs = [refs[2 + 2 * l] for l in range(L)]     # (3, W*Cout): bias/scale/shift
        sel_ref = refs[1 + 2 * L]                        # (2, W*C, (W/2)*C) even/odd select
        o_ref = refs[2 + 2 * L]
        pad_refs = refs[3 + 2 * L:]                      # per-layer padded-input scratch

        act = x_ref[0]                                   # (H, W*C0), lane-dense
        for l in range(L):
            k = kernel_sizes[l]
            p = k // 2
            cin, cout = chans[l], chans[l + 1]
            pad = pad_refs[l]                            # (H+2p, (W+2p)*cin)
            # in-kernel halo padding (borders zero, interior = activation)
            pad[...] = jnp.zeros_like(pad)
            pad[p:p + H, p * cin:(p + W) * cin] = act
            # k row-shifted matmuls against block-Toeplitz weights
            acc = jnp.zeros((H, W * cout), jnp.float32)
            for dy in range(k):
                acc = acc + jnp.dot(pad[dy:dy + H, :], m_refs[l][dy],
                                    preferred_element_type=jnp.float32)
            e = e_refs[l][...]                           # (3, W*cout)
            acc = acc + e[0:1, :]                        # conv bias
            acc = jnp.maximum(acc, 0.0)                  # ReLU (before BN, as in module)
            acc = acc * e[1:2, :] + e[2:3, :]            # folded BatchNorm (inference)
            act = acc                                    # stays in VMEM

        # MaxPool2d(2, 2) on the (H, W*C) slab.
        C = chans[-1]
        r = act.reshape(H // 2, 2, W * C)                # lane dim unchanged
        yh = jnp.maximum(r[:, 0, :], r[:, 1, :])         # pool along H -> (H/2, W*C)
        # pool along W: 0/1 selection matmuls gather even / odd pixel blocks.
        p0 = jnp.dot(yh, sel_ref[0], preferred_element_type=jnp.float32)
        p1 = jnp.dot(yh, sel_ref[1], preferred_element_type=jnp.float32)
        o_ref[...] = jnp.maximum(p0, p1)[None]           # (1, H/2, (W/2)*C)

    return kernel


def features_forward(x2d, prep, kernel_sizes, chans, H, W):
    N = x2d.shape[0]
    L = len(kernel_sizes)
    C_last = chans[-1]

    in_specs = [pl.BlockSpec((1, H, W * chans[0]), lambda n: (n, 0, 0))]
    operands = [x2d]
    for l in range(L):
        M, e = prep["conv"][l]
        in_specs.append(pl.BlockSpec(M.shape, lambda n: (0, 0, 0)))
        in_specs.append(pl.BlockSpec(e.shape, lambda n: (0, 0)))
        operands += [M, e]
    sel = prep["sel"]
    in_specs.append(pl.BlockSpec(sel.shape, lambda n: (0, 0, 0)))
    operands.append(sel)

    scratch = [
        pltpu.VMEM((H + 2 * (k // 2), (W + 2 * (k // 2)) * chans[l]), jnp.float32)
        for l, k in enumerate(kernel_sizes)
    ]

    return pl.pallas_call(
        make_features_kernel(kernel_sizes, chans, H, W),
        out_shape=jax.ShapeDtypeStruct((N, H // 2, (W // 2) * C_last), jnp.float32),
        grid=(N,),
        in_specs=in_specs,
        out_specs=pl.BlockSpec((1, H // 2, (W // 2) * C_last), lambda n: (n, 0, 0)),
        scratch_shapes=scratch,
        compiler_params=pltpu.CompilerParams(dimension_semantics=("parallel",)),
    )(*operands)


# ---------------------------------------------------------------------------
# Kernel 2: fc1 + ReLU + fc2 for the whole batch
# ---------------------------------------------------------------------------
def fc_kernel(x_ref, w1_ref, b1_ref, w2_ref, b2_ref, o_ref):
    h = jnp.dot(x_ref[...], w1_ref[...], preferred_element_type=jnp.float32)
    h = jnp.maximum(h + b1_ref[...], 0.0)
    o_ref[...] = jnp.dot(h, w2_ref[...],
                         preferred_element_type=jnp.float32) + b2_ref[...]


def fc_forward(xf, w1, b1, w2, b2):
    N, K = xf.shape
    F1 = w1.shape[1]
    F2 = w2.shape[1]
    return pl.pallas_call(
        fc_kernel,
        out_shape=jax.ShapeDtypeStruct((N, F2), jnp.float32),
        grid=(1,),
        in_specs=[
            pl.BlockSpec((N, K), lambda i: (0, 0)),
            pl.BlockSpec((K, F1), lambda i: (0, 0)),
            pl.BlockSpec((1, F1), lambda i: (0, 0)),
            pl.BlockSpec((F1, F2), lambda i: (0, 0)),
            pl.BlockSpec((1, F2), lambda i: (0, 0)),
        ],
        out_specs=pl.BlockSpec((N, F2), lambda i: (0, 0)),
    )(xf, w1, b1, w2, b2)


# ---------------------------------------------------------------------------
# Full forward pass
# ---------------------------------------------------------------------------
def cnn_forward(x_nchw, prep, *, kernel_sizes, out_channels):
    N, C0, H, W = x_nchw.shape
    assert H == 32 and W == 32, "classifier hard-codes out_channels[-1]*16*16"
    chans = (C0,) + tuple(out_channels)
    # NCHW -> NHWC -> lane-dense (N, H, W*C) slab (single small XLA transpose)
    x2d = jnp.transpose(x_nchw, (0, 2, 3, 1)).reshape(N, H, W * C0)
    x2d = x2d.astype(jnp.float32)
    pooled = features_forward(x2d, prep, kernel_sizes, chans, H, W)  # (N, 16, 256)
    flat = pooled.reshape(N, -1)             # free HBM reshape; order = (h, w, c)
    return fc_forward(flat, prep["fc1_w"], prep["fc1_b"],
                      prep["fc2_w"], prep["fc2_b"])


# ---------------------------------------------------------------------------
# Host-side, one-time parameter preprocessing (zero runtime cost)
# ---------------------------------------------------------------------------
def preprocess_params(params, kernel_sizes, out_channels, H, W):
    prep = {"conv": []}
    for k, layer in zip(kernel_sizes, params["conv_layers"]):
        w = np.asarray(layer["w"], np.float32)           # (k, k, cin, cout) HWIO
        cin, cout = w.shape[2], w.shape[3]
        p = k // 2
        Wp = W + 2 * p
        # block-Toeplitz weight: M[dy, (j+dx)*cin + ci, j*cout + co] = w[dy,dx,ci,co]
        M = np.zeros((k, Wp * cin, W * cout), np.float32)
        for dy in range(k):
            for dx in range(k):
                blk = w[dy, dx]
                for j in range(W):
                    M[dy, (j + dx) * cin:(j + dx + 1) * cin,
                      j * cout:(j + 1) * cout] = blk
        # fold BatchNorm (inference) into per-channel scale/shift, tile over W
        gamma = np.asarray(layer["gamma"], np.float32).reshape(-1)
        beta = np.asarray(layer["beta"], np.float32).reshape(-1)
        mean = np.asarray(layer["mean"], np.float32).reshape(-1)
        var = np.asarray(layer["var"], np.float32).reshape(-1)
        bias = np.asarray(layer["b"], np.float32).reshape(-1)
        scale = gamma / np.sqrt(var + EPS)
        shift = beta - mean * scale
        e = np.stack([np.tile(bias, W), np.tile(scale, W), np.tile(shift, W)])
        prep["conv"].append((jnp.asarray(M), jnp.asarray(e.astype(np.float32))))

    # even/odd W-pixel selection matrices for the W-direction maxpool
    C = out_channels[-1]
    sel = np.zeros((2, W * C, (W // 2) * C), np.float32)
    for j in range(W // 2):
        for c in range(C):
            sel[0, (2 * j) * C + c, j * C + c] = 1.0
            sel[1, (2 * j + 1) * C + c, j * C + c] = 1.0
    prep["sel"] = jnp.asarray(sel)

    # fc1 weight: permute rows from PyTorch CHW-flatten order to our HWC order
    Hh, Ww = H // 2, W // 2
    w1 = np.asarray(params["fc1_w"], np.float32)         # rows in (c, h, w) order
    w1 = w1.reshape(C, Hh, Ww, w1.shape[1]).transpose(1, 2, 0, 3)
    prep["fc1_w"] = jnp.asarray(w1.reshape(C * Hh * Ww, -1))
    prep["fc1_b"] = jnp.asarray(params["fc1_b"], dtype=jnp.float32)
    prep["fc2_w"] = jnp.asarray(params["fc2_w"], dtype=jnp.float32)
    prep["fc2_b"] = jnp.asarray(params["fc2_b"], dtype=jnp.float32)
    return prep


def init_params(key, input_channels, kernel_sizes, out_channels, num_classes, hw=32):
    n_keys = 2 * len(kernel_sizes) + 4
    keys = jax.random.split(key, n_keys)
    i = 0
    params = {"conv_layers": []}
    in_c = input_channels
    for k, out_c in zip(kernel_sizes, out_channels):
        w = 0.05 * jax.random.normal(keys[i], (k, k, in_c, out_c), jnp.float32); i += 1
        b = 0.05 * jax.random.normal(keys[i], (out_c,), jnp.float32); i += 1
        params["conv_layers"].append(dict(
            w=w, b=b,
            gamma=jnp.ones((out_c,), jnp.float32),
            beta=jnp.zeros((out_c,), jnp.float32),
            mean=jnp.zeros((out_c,), jnp.float32),
            var=jnp.ones((out_c,), jnp.float32),
        ))
        in_c = out_c
    flat = out_channels[-1] * (hw // 2) * (hw // 2)
    params["fc1_w"] = 0.02 * jax.random.normal(keys[i], (flat, 128), jnp.float32); i += 1
    params["fc1_b"] = 0.02 * jax.random.normal(keys[i], (1, 128), jnp.float32); i += 1
    params["fc2_w"] = 0.02 * jax.random.normal(keys[i], (128, num_classes), jnp.float32); i += 1
    params["fc2_b"] = 0.02 * jax.random.normal(keys[i], (1, num_classes), jnp.float32); i += 1
    return params


if __name__ == "__main__":
    input_channels = 3
    num_classes = 10
    kernel_sizes = (3, 5)
    out_channels = (8, 16)
    batch, hw = 2, 32                 # 32x32 spatial -> 16x16 after MaxPool2d(2,2)

    key = jax.random.PRNGKey(0)
    kx, kp = jax.random.split(key)
    x = jax.random.normal(kx, (batch, input_channels, hw, hw), jnp.float32)
    params = init_params(kp, input_channels, kernel_sizes, out_channels,
                         num_classes, hw=hw)
    prep = preprocess_params(params, kernel_sizes, out_channels, hw, hw)

    fwd = jax.jit(functools.partial(cnn_forward, kernel_sizes=kernel_sizes,
                                    out_channels=out_channels))
    out = fwd(x, prep)
    jax.block_until_ready(out)
    assert out.shape == (batch, num_classes), out.shape
    print("KERNEL_OK")
</pallas_src>

<mosaic_0001>
module attributes {stable_mosaic.version = 11 : i64} {
  func.func @kernel(%arg0: i32, %arg1: memref<1x32x96xf32, #tpu.memory_space<vmem>>, %arg2: memref<3x102x256xf32, #tpu.memory_space<vmem>>, %arg3: memref<3x256xf32, #tpu.memory_space<vmem>>, %arg4: memref<5x288x512xf32, #tpu.memory_space<vmem>>, %arg5: memref<3x512xf32, #tpu.memory_space<vmem>>, %arg6: memref<2x512x256xf32, #tpu.memory_space<vmem>>, %arg7: memref<1x16x256xf32, #tpu.memory_space<vmem>>, %arg8: memref<34x102xf32, #tpu.memory_space<vmem>>, %arg9: memref<36x288xf32, #tpu.memory_space<vmem>>) attributes {dimension_semantics = [#tpu.dimension_semantics<parallel>], iteration_bounds = array<i64: 2>, scalar_prefetch = 0 : i64, scratch_operands = 2 : i64, tpu.core_type = #tpu.core_type<tc>, window_params = [{transform_indices = @transform_0, window_bounds = array<i64: 1, 32, 96>}, {pipeline_mode = #tpu.pipeline_mode<synchronous>, transform_indices = @transform_1, window_bounds = array<i64: 3, 102, 256>}, {pipeline_mode = #tpu.pipeline_mode<synchronous>, transform_indices = @transform_2, window_bounds = array<i64: 3, 256>}, {pipeline_mode = #tpu.pipeline_mode<synchronous>, transform_indices = @transform_3, window_bounds = array<i64: 5, 288, 512>}, {pipeline_mode = #tpu.pipeline_mode<synchronous>, transform_indices = @transform_4, window_bounds = array<i64: 3, 512>}, {pipeline_mode = #tpu.pipeline_mode<synchronous>, transform_indices = @transform_5, window_bounds = array<i64: 2, 512, 256>}, {transform_indices = @transform_6, window_bounds = array<i64: 1, 16, 256>}]} {
    %c0 = arith.constant 0 : index
    %c0_0 = arith.constant 0 : index
    %c0_1 = arith.constant 0 : index
    %0 = vector.load %arg1[%c0, %c0_0, %c0_1] : memref<1x32x96xf32, #tpu.memory_space<vmem>>, vector<1x32x96xf32>
    %1 = vector.shape_cast %0 : vector<1x32x96xf32> to vector<32x96xf32>
    %cst = arith.constant 0.000000e+00 : f32
    %2 = vector.broadcast %cst : f32 to vector<34x102xf32>
    %c0_2 = arith.constant 0 : index
    %c0_3 = arith.constant 0 : index
    %3 = vector.load %arg8[%c0_2, %c0_3] : memref<34x102xf32, #tpu.memory_space<vmem>>, vector<34x102xf32>
    tpu.vector_store %arg8[%c0_2, %c0_3], %2 {strides = array<i32>} : memref<34x102xf32, #tpu.memory_space<vmem>>, vector<34x102xf32>,
    %c1 = arith.constant 1 : index
    %c3 = arith.constant 3 : index
    %4 = vector.load %arg8[%c1, %c3] : memref<34x102xf32, #tpu.memory_space<vmem>>, vector<32x96xf32>
    tpu.vector_store %arg8[%c1, %c3], %1 {strides = array<i32>} : memref<34x102xf32, #tpu.memory_space<vmem>>, vector<32x96xf32>,
    %cst_4 = arith.constant 0.000000e+00 : f32
    %5 = vector.broadcast %cst_4 : f32 to vector<32x256xf32>
    %c0_5 = arith.constant 0 : index
    %c0_6 = arith.constant 0 : index
    %6 = vector.load %arg8[%c0_5, %c0_6] : memref<34x102xf32, #tpu.memory_space<vmem>>, vector<32x102xf32>
    %c0_7 = arith.constant 0 : index
    %c0_8 = arith.constant 0 : index
    %c0_9 = arith.constant 0 : index
    %7 = vector.load %arg2[%c0_7, %c0_8, %c0_9] : memref<3x102x256xf32, #tpu.memory_space<vmem>>, vector<1x102x256xf32>
    %8 = vector.shape_cast %7 : vector<1x102x256xf32> to vector<102x256xf32>
    %cst_10 = arith.constant dense<0.000000e+00> : vector<32x256xf32>
    %9 = tpu.matmul %6, %8, %cst_10 {dimension_numbers = #tpu.dot_dimension_numbers<[1], [0], [0], [1], [0, 0, 1, 1], [], []>} : vector<32x102xf32>, vector<102x256xf32>, vector<32x256xf32> -> vector<32x256xf32>
    %10 = arith.addf %5, %9 : vector<32x256xf32>
    %c1_11 = arith.constant 1 : index
    %c0_12 = arith.constant 0 : index
    %11 = vector.load %arg8[%c1_11, %c0_12] : memref<34x102xf32, #tpu.memory_space<vmem>>, vector<32x102xf32>
    %c1_13 = arith.constant 1 : index
    %c0_14 = arith.constant 0 : index
    %c0_15 = arith.constant 0 : index
    %12 = vector.load %arg2[%c1_13, %c0_14, %c0_15] : memref<3x102x256xf32, #tpu.memory_space<vmem>>, vector<1x102x256xf32>
    %13 = vector.shape_cast %12 : vector<1x102x256xf32> to vector<102x256xf32>
    %cst_16 = arith.constant dense<0.000000e+00> : vector<32x256xf32>
    %14 = tpu.matmul %11, %13, %cst_16 {dimension_numbers = #tpu.dot_dimension_numbers<[1], [0], [0], [1], [0, 0, 1, 1], [], []>} : vector<32x102xf32>, vector<102x256xf32>, vector<32x256xf32> -> vector<32x256xf32>
    %15 = arith.addf %10, %14 : vector<32x256xf32>
    %c2 = arith.constant 2 : index
    %c0_17 = arith.constant 0 : index
    %16 = vector.load %arg8[%c2, %c0_17] : memref<34x102xf32, #tpu.memory_space<vmem>>, vector<32x102xf32>
    %c2_18 = arith.constant 2 : index
    %c0_19 = arith.constant 0 : index
    %c0_20 = arith.constant 0 : index
    %17 = vector.load %arg2[%c2_18, %c0_19, %c0_20] : memref<3x102x256xf32, #tpu.memory_space<vmem>>, vector<1x102x256xf32>
    %18 = vector.shape_cast %17 : vector<1x102x256xf32> to vector<102x256xf32>
    %cst_21 = arith.constant dense<0.000000e+00> : vector<32x256xf32>
    %19 = tpu.matmul %16, %18, %cst_21 {dimension_numbers = #tpu.dot_dimension_numbers<[1], [0], [0], [1], [0, 0, 1, 1], [], []>} : vector<32x102xf32>, vector<102x256xf32>, vector<32x256xf32> -> vector<32x256xf32>
    %20 = arith.addf %15, %19 : vector<32x256xf32>
    %c0_22 = arith.constant 0 : index
    %c0_23 = arith.constant 0 : index
    %21 = vector.load %arg3[%c0_22, %c0_23] : memref<3x256xf32, #tpu.memory_space<vmem>>, vector<3x256xf32>
    %22 = vector.extract_strided_slice %21 {offsets = [0, 0], sizes = [1, 256], strides = [1, 1]} : vector<3x256xf32> to vector<1x256xf32>
    %23 = vector.broadcast %22 : vector<1x256xf32> to vector<32x256xf32>
    %24 = arith.addf %20, %23 : vector<32x256xf32>
    %cst_24 = arith.constant 0.000000e+00 : f32
    %25 = vector.broadcast %cst_24 : f32 to vector<32x256xf32>
    %26 = arith.maximumf %24, %25 : vector<32x256xf32>
    %27 = vector.extract_strided_slice %21 {offsets = [1, 0], sizes = [1, 256], strides = [1, 1]} : vector<3x256xf32> to vector<1x256xf32>
    %28 = vector.broadcast %27 : vector<1x256xf32> to vector<32x256xf32>
    %29 = arith.mulf %26, %28 : vector<32x256xf32>
    %30 = vector.extract_strided_slice %21 {offsets = [2, 0], sizes = [1, 256], strides = [1, 1]} : vector<3x256xf32> to vector<1x256xf32>
    %31 = vector.broadcast %30 : vector<1x256xf32> to vector<32x256xf32>
    %32 = arith.addf %29, %31 : vector<32x256xf32>
    %cst_25 = arith.constant 0.000000e+00 : f32
    %33 = vector.broadcast %cst_25 : f32 to vector<36x288xf32>
    %c0_26 = arith.constant 0 : index
    %c0_27 = arith.constant 0 : index
    %34 = vector.load %arg9[%c0_26, %c0_27] : memref<36x288xf32, #tpu.memory_space<vmem>>, vector<36x288xf32>
    tpu.vector_store %arg9[%c0_26, %c0_27], %33 {strides = array<i32>} : memref<36x288xf32, #tpu.memory_space<vmem>>, vector<36x288xf32>,
    %c2_28 = arith.constant 2 : index
    %c16 = arith.constant 16 : index
    %35 = vector.load %arg9[%c2_28, %c16] : memref<36x288xf32, #tpu.memory_space<vmem>>, vector<32x256xf32>
    tpu.vector_store %arg9[%c2_28, %c16], %32 {strides = array<i32>} : memref<36x288xf32, #tpu.memory_space<vmem>>, vector<32x256xf32>,
    %cst_29 = arith.constant 0.000000e+00 : f32
    %36 = vector.broadcast %cst_29 : f32 to vector<32x512xf32>
    %c0_30 = arith.constant 0 : index
    %c0_31 = arith.constant 0 : index
    %37 = vector.load %arg9[%c0_30, %c0_31] : memref<36x288xf32, #tpu.memory_space<vmem>>, vector<32x288xf32>
    %c0_32 = arith.constant 0 : index
    %c0_33 = arith.constant 0 : index
    %c0_34 = arith.constant 0 : index
    %38 = vector.load %arg4[%c0_32, %c0_33, %c0_34] : memref<5x288x512xf32, #tpu.memory_space<vmem>>, vector<1x288x512xf32>
    %39 = vector.shape_cast %38 : vector<1x288x512xf32> to vector<288x512xf32>
    %cst_35 = arith.constant dense<0.000000e+00> : vector<32x512xf32>
    %40 = tpu.matmul %37, %39, %cst_35 {dimension_numbers = #tpu.dot_dimension_numbers<[1], [0], [0], [1], [0, 0, 1, 1], [], []>} : vector<32x288xf32>, vector<288x512xf32>, vector<32x512xf32> -> vector<32x512xf32>
    %41 = arith.addf %36, %40 : vector<32x512xf32>
    %c1_36 = arith.constant 1 : index
    %c0_37 = arith.constant 0 : index
    %42 = vector.load %arg9[%c1_36, %c0_37] : memref<36x288xf32, #tpu.memory_space<vmem>>, vector<32x288xf32>
    %c1_38 = arith.constant 1 : index
    %c0_39 = arith.constant 0 : index
    %c0_40 = arith.constant 0 : index
    %43 = vector.load %arg4[%c1_38, %c0_39, %c0_40] : memref<5x288x512xf32, #tpu.memory_space<vmem>>, vector<1x288x512xf32>
    %44 = vector.shape_cast %43 : vector<1x288x512xf32> to vector<288x512xf32>
    %cst_41 = arith.constant dense<0.000000e+00> : vector<32x512xf32>
    %45 = tpu.matmul %42, %44, %cst_41 {dimension_numbers = #tpu.dot_dimension_numbers<[1], [0], [0], [1], [0, 0, 1, 1], [], []>} : vector<32x288xf32>, vector<288x512xf32>, vector<32x512xf32> -> vector<32x512xf32>
    %46 = arith.addf %41, %45 : vector<32x512xf32>
    %c2_42 = arith.constant 2 : index
    %c0_43 = arith.constant 0 : index
    %47 = vector.load %arg9[%c2_42, %c0_43] : memref<36x288xf32, #tpu.memory_space<vmem>>, vector<32x288xf32>
    %c2_44 = arith.constant 2 : index
    %c0_45 = arith.constant 0 : index
    %c0_46 = arith.constant 0 : index
    %48 = vector.load %arg4[%c2_44, %c0_45, %c0_46] : memref<5x288x512xf32, #tpu.memory_space<vmem>>, vector<1x288x512xf32>
    %49 = vector.shape_cast %48 : vector<1x288x512xf32> to vector<288x512xf32>
    %cst_47 = arith.constant dense<0.000000e+00> : vector<32x512xf32>
    %50 = tpu.matmul %47, %49, %cst_47 {dimension_numbers = #tpu.dot_dimension_numbers<[1], [0], [0], [1], [0, 0, 1, 1], [], []>} : vector<32x288xf32>, vector<288x512xf32>, vector<32x512xf32> -> vector<32x512xf32>
    %51 = arith.addf %46, %50 : vector<32x512xf32>
    %c3_48 = arith.constant 3 : index
    %c0_49 = arith.constant 0 : index
    %52 = vector.load %arg9[%c3_48, %c0_49] : memref<36x288xf32, #tpu.memory_space<vmem>>, vector<32x288xf32>
    %c3_50 = arith.constant 3 : index
    %c0_51 = arith.constant 0 : index
    %c0_52 = arith.constant 0 : index
    %53 = vector.load %arg4[%c3_50, %c0_51, %c0_52] : memref<5x288x512xf32, #tpu.memory_space<vmem>>, vector<1x288x512xf32>
    %54 = vector.shape_cast %53 : vector<1x288x512xf32> to vector<288x512xf32>
    %cst_53 = arith.constant dense<0.000000e+00> : vector<32x512xf32>
    %55 = tpu.matmul %52, %54, %cst_53 {dimension_numbers = #tpu.dot_dimension_numbers<[1], [0], [0], [1], [0, 0, 1, 1], [], []>} : vector<32x288xf32>, vector<288x512xf32>, vector<32x512xf32> -> vector<32x512xf32>
    %56 = arith.addf %51, %55 : vector<32x512xf32>
    %c4 = arith.constant 4 : index
    %c0_54 = arith.constant 0 : index
    %57 = vector.load %arg9[%c4, %c0_54] : memref<36x288xf32, #tpu.memory_space<vmem>>, vector<32x288xf32>
    %c4_55 = arith.constant 4 : index
    %c0_56 = arith.constant 0 : index
    %c0_57 = arith.constant 0 : index
    %58 = vector.load %arg4[%c4_55, %c0_56, %c0_57] : memref<5x288x512xf32, #tpu.memory_space<vmem>>, vector<1x288x512xf32>
    %59 = vector.shape_cast %58 : vector<1x288x512xf32> to vector<288x512xf32>
    %cst_58 = arith.constant dense<0.000000e+00> : vector<32x512xf32>
    %60 = tpu.matmul %57, %59, %cst_58 {dimension_numbers = #tpu.dot_dimension_numbers<[1], [0], [0], [1], [0, 0, 1, 1], [], []>} : vector<32x288xf32>, vector<288x512xf32>, vector<32x512xf32> -> vector<32x512xf32>
    %61 = arith.addf %56, %60 : vector<32x512xf32>
    %c0_59 = arith.constant 0 : index
    %c0_60 = arith.constant 0 : index
    %62 = vector.load %arg5[%c0_59, %c0_60] : memref<3x512xf32, #tpu.memory_space<vmem>>, vector<3x512xf32>
    %63 = vector.extract_strided_slice %62 {offsets = [0, 0], sizes = [1, 512], strides = [1, 1]} : vector<3x512xf32> to vector<1x512xf32>
    %64 = vector.broadcast %63 : vector<1x512xf32> to vector<32x512xf32>
    %65 = arith.addf %61, %64 : vector<32x512xf32>
    %cst_61 = arith.constant 0.000000e+00 : f32
    %66 = vector.broadcast %cst_61 : f32 to vector<32x512xf32>
    %67 = arith.maximumf %65, %66 : vector<32x512xf32>
    %68 = vector.extract_strided_slice %62 {offsets = [1, 0], sizes = [1, 512], strides = [1, 1]} : vector<3x512xf32> to vector<1x512xf32>
    %69 = vector.broadcast %68 : vector<1x512xf32> to vector<32x512xf32>
    %70 = arith.mulf %67, %69 : vector<32x512xf32>
    %71 = vector.extract_strided_slice %62 {offsets = [2, 0], sizes = [1, 512], strides = [1, 1]} : vector<3x512xf32> to vector<1x512xf32>
    %72 = vector.broadcast %71 : vector<1x512xf32> to vector<32x512xf32>
    %73 = arith.addf %70, %72 : vector<32x512xf32>
    %74 = vector.shape_cast %73 : vector<32x512xf32> to vector<16x2x512xf32>
    %75 = vector.extract_strided_slice %74 {offsets = [0, 0, 0], sizes = [16, 1, 512], strides = [1, 1, 1]} : vector<16x2x512xf32> to vector<16x1x512xf32>
    %76 = vector.shape_cast %75 : vector<16x1x512xf32> to vector<16x512xf32>
    %77 = vector.extract_strided_slice %74 {offsets = [0, 1, 0], sizes = [16, 1, 512], strides = [1, 1, 1]} : vector<16x2x512xf32> to vector<16x1x512xf32>
    %78 = vector.shape_cast %77 : vector<16x1x512xf32> to vector<16x512xf32>
    %79 = arith.maximumf %76, %78 : vector<16x512xf32>
    %c0_62 = arith.constant 0 : index
    %c0_63 = arith.constant 0 : index
    %c0_64 = arith.constant 0 : index
    %80 = vector.load %arg6[%c0_62, %c0_63, %c0_64] : memref<2x512x256xf32, #tpu.memory_space<vmem>>, vector<1x512x256xf32>
    %81 = vector.shape_cast %80 : vector<1x512x256xf32> to vector<512x256xf32>
    %cst_65 = arith.constant dense<0.000000e+00> : vector<16x256xf32>
    %82 = tpu.matmul %79, %81, %cst_65 {dimension_numbers = #tpu.dot_dimension_numbers<[1], [0], [0], [1], [0, 0, 1, 1], [], []>} : vector<16x512xf32>, vector<512x256xf32>, vector<16x256xf32> -> vector<16x256xf32>
    %c1_66 = arith.constant 1 : index
    %c0_67 = arith.constant 0 : index
    %c0_68 = arith.constant 0 : index
    %83 = vector.load %arg6[%c1_66, %c0_67, %c0_68] : memref<2x512x256xf32, #tpu.memory_space<vmem>>, vector<1x512x256xf32>
    %84 = vector.shape_cast %83 : vector<1x512x256xf32> to vector<512x256xf32>
    %cst_69 = arith.constant dense<0.000000e+00> : vector<16x256xf32>
    %85 = tpu.matmul %79, %84, %cst_69 {dimension_numbers = #tpu.dot_dimension_numbers<[1], [0], [0], [1], [0, 0, 1, 1], [], []>} : vector<16x512xf32>, vector<512x256xf32>, vector<16x256xf32> -> vector<16x256xf32>
    %86 = arith.maximumf %82, %85 : vector<16x256xf32>
    %87 = vector.shape_cast %86 : vector<16x256xf32> to vector<1x16x256xf32>
    %c0_70 = arith.constant 0 : index
    %c0_71 = arith.constant 0 : index
    %c0_72 = arith.constant 0 : index
    %88 = vector.load %arg7[%c0_70, %c0_71, %c0_72] : memref<1x16x256xf32, #tpu.memory_space<vmem>>, vector<1x16x256xf32>
    tpu.vector_store %arg7[%c0_70, %c0_71, %c0_72], %87 {strides = array<i32>} : memref<1x16x256xf32, #tpu.memory_space<vmem>>, vector<1x16x256xf32>,
    return
  }
  func.func @transform_0(%arg0: i32) -> (i32, i32, i32) {
    %c0_i32 = arith.constant 0 : i32
    %c0_i32_0 = arith.constant 0 : i32
    %c0_i32_1 = arith.constant 0 : i32
    return %arg0, %c0_i32, %c0_i32_0 : i32, i32, i32
  }
  func.func @transform_1(%arg0: i32) -> (i32, i32, i32) {
    %c0_i32 = arith.constant 0 : i32
    %c0_i32_0 = arith.constant 0 : i32
    %c0_i32_1 = arith.constant 0 : i32
    %c0_i32_2 = arith.constant 0 : i32
    return %c0_i32, %c0_i32_0, %c0_i32_1 : i32, i32, i32
  }
  func.func @transform_2(%arg0: i32) -> (i32, i32) {
    %c0_i32 = arith.constant 0 : i32
    %c0_i32_0 = arith.constant 0 : i32
    %c0_i32_1 = arith.constant 0 : i32
    return %c0_i32, %c0_i32_0 : i32, i32
  }
  func.func @transform_3(%arg0: i32) -> (i32, i32, i32) {
    %c0_i32 = arith.constant 0 : i32
    %c0_i32_0 = arith.constant 0 : i32
    %c0_i32_1 = arith.constant 0 : i32
    %c0_i32_2 = arith.constant 0 : i32
    return %c0_i32, %c0_i32_0, %c0_i32_1 : i32, i32, i32
  }
  func.func @transform_4(%arg0: i32) -> (i32, i32) {
    %c0_i32 = arith.constant 0 : i32
    %c0_i32_0 = arith.constant 0 : i32
    %c0_i32_1 = arith.constant 0 : i32
    return %c0_i32, %c0_i32_0 : i32, i32
  }
  func.func @transform_5(%arg0: i32) -> (i32, i32, i32) {
    %c0_i32 = arith.constant 0 : i32
    %c0_i32_0 = arith.constant 0 : i32
    %c0_i32_1 = arith.constant 0 : i32
    %c0_i32_2 = arith.constant 0 : i32
    return %c0_i32, %c0_i32_0, %c0_i32_1 : i32, i32, i32
  }
  func.func @transform_6(%arg0: i32) -> (i32, i32, i32) {
    %c0_i32 = arith.constant 0 : i32
    %c0_i32_0 = arith.constant 0 : i32
    %c0_i32_1 = arith.constant 0 : i32
    return %arg0, %c0_i32, %c0_i32_0 : i32, i32, i32
  }
}

module attributes {stable_mosaic.version = 11 : i64} {
  func.func @fc_kernel(%arg0: i32, %arg1: memref<2x4096xf32, #tpu.memory_space<vmem>>, %arg2: memref<4096x128xf32, #tpu.memory_space<vmem>>, %arg3: memref<1x128xf32, #tpu.memory_space<vmem>>, %arg4: memref<128x10xf32, #tpu.memory_space<vmem>>, %arg5: memref<1x10xf32, #tpu.memory_space<vmem>>, %arg6: memref<2x10xf32, #tpu.memory_space<vmem>>) attributes {dimension_semantics = [#tpu.dimension_semantics<arbitrary>], iteration_bounds = array<i64: 1>, scalar_prefetch = 0 : i64, scratch_operands = 0 : i64, tpu.core_type = #tpu.core_type<tc>, window_params = [{pipeline_mode = #tpu.pipeline_mode<synchronous>, transform_indices = @transform_0, window_bounds = array<i64: 2, 4096>}, {pipeline_mode = #tpu.pipeline_mode<synchronous>, transform_indices = @transform_1, window_bounds = array<i64: 4096, 128>}, {pipeline_mode = #tpu.pipeline_mode<synchronous>, transform_indices = @transform_2, window_bounds = array<i64: 1, 128>}, {pipeline_mode = #tpu.pipeline_mode<synchronous>, transform_indices = @transform_3, window_bounds = array<i64: 128, 10>}, {pipeline_mode = #tpu.pipeline_mode<synchronous>, transform_indices = @transform_4, window_bounds = array<i64: 1, 10>}, {pipeline_mode = #tpu.pipeline_mode<synchronous>, transform_indices = @transform_5, window_bounds = array<i64: 2, 10>}]} {
    %c0 = arith.constant 0 : index
    %c0_0 = arith.constant 0 : index
    %0 = vector.load %arg1[%c0, %c0_0] : memref<2x4096xf32, #tpu.memory_space<vmem>>, vector<2x4096xf32>
    %c0_1 = arith.constant 0 : index
    %c0_2 = arith.constant 0 : index
    %1 = vector.load %arg2[%c0_1, %c0_2] : memref<4096x128xf32, #tpu.memory_space<vmem>>, vector<4096x128xf32>
    %cst = arith.constant dense<0.000000e+00> : vector<2x128xf32>
    %2 = tpu.matmul %0, %1, %cst {dimension_numbers = #tpu.dot_dimension_numbers<[1], [0], [0], [1], [0, 0, 1, 1], [], []>} : vector<2x4096xf32>, vector<4096x128xf32>, vector<2x128xf32> -> vector<2x128xf32>
    %c0_3 = arith.constant 0 : index
    %c0_4 = arith.constant 0 : index
    %3 = vector.load %arg3[%c0_3, %c0_4] : memref<1x128xf32, #tpu.memory_space<vmem>>, vector<1x128xf32>
    %4 = vector.broadcast %3 : vector<1x128xf32> to vector<2x128xf32>
    %5 = arith.addf %2, %4 : vector<2x128xf32>
    %cst_5 = arith.constant 0.000000e+00 : f32
    %6 = vector.broadcast %cst_5 : f32 to vector<2x128xf32>
    %7 = arith.maximumf %5, %6 : vector<2x128xf32>
    %c0_6 = arith.constant 0 : index
    %c0_7 = arith.constant 0 : index
    %8 = vector.load %arg4[%c0_6, %c0_7] : memref<128x10xf32, #tpu.memory_space<vmem>>, vector<128x10xf32>
    %cst_8 = arith.constant dense<0.000000e+00> : vector<2x10xf32>
    %9 = tpu.matmul %7, %8, %cst_8 {dimension_numbers = #tpu.dot_dimension_numbers<[1], [0], [0], [1], [0, 0, 1, 1], [], []>} : vector<2x128xf32>, vector<128x10xf32>, vector<2x10xf32> -> vector<2x10xf32>
    %c0_9 = arith.constant 0 : index
    %c0_10 = arith.constant 0 : index
    %10 = vector.load %arg5[%c0_9, %c0_10] : memref<1x10xf32, #tpu.memory_space<vmem>>, vector<1x10xf32>
    %11 = vector.broadcast %10 : vector<1x10xf32> to vector<2x10xf32>
    %12 = arith.addf %9, %11 : vector<2x10xf32>
    %c0_11 = arith.constant 0 : index
    %c0_12 = arith.constant 0 : index
    %13 = vector.load %arg6[%c0_11, %c0_12] : memref<2x10xf32, #tpu.memory_space<vmem>>, vector<2x10xf32>
    tpu.vector_store %arg6[%c0_11, %c0_12], %12 {strides = array<i32>} : memref<2x10xf32, #tpu.memory_space<vmem>>, vector<2x10xf32>,
    return
  }
  func.func @transform_0(%arg0: i32) -> (i32, i32) {
    %c0_i32 = arith.constant 0 : i32
    %c0_i32_0 = arith.constant 0 : i32
    %c0_i32_1 = arith.constant 0 : i32
    return %c0_i32, %c0_i32_0 : i32, i32
  }
  func.func @transform_1(%arg0: i32) -> (i32, i32) {
    %c0_i32 = arith.constant 0 : i32
    %c0_i32_0 = arith.constant 0 : i32
    %c0_i32_1 = arith.constant 0 : i32
    return %c0_i32, %c0_i32_0 : i32, i32
  }
  func.func @transform_2(%arg0: i32) -> (i32, i32) {
    %c0_i32 = arith.constant 0 : i32
    %c0_i32_0 = arith.constant 0 : i32
    %c0_i32_1 = arith.constant 0 : i32
    return %c0_i32, %c0_i32_0 : i32, i32
  }
  func.func @transform_3(%arg0: i32) -> (i32, i32) {
    %c0_i32 = arith.constant 0 : i32
    %c0_i32_0 = arith.constant 0 : i32
    %c0_i32_1 = arith.constant 0 : i32
    return %c0_i32, %c0_i32_0 : i32, i32
  }
  func.func @transform_4(%arg0: i32) -> (i32, i32) {
    %c0_i32 = arith.constant 0 : i32
    %c0_i32_0 = arith.constant 0 : i32
    %c0_i32_1 = arith.constant 0 : i32
    return %c0_i32, %c0_i32_0 : i32, i32
  }
  func.func @transform_5(%arg0: i32) -> (i32, i32) {
    %c0_i32 = arith.constant 0 : i32
    %c0_i32_0 = arith.constant 0 : i32
    %c0_i32_1 = arith.constant 0 : i32
    return %c0_i32, %c0_i32_0 : i32, i32
  }
}

</mosaic_0001>

<bundles_post_ra>
// kernel: cnn_forward.3
= control target key start
LH: loop header
LB: loop body
LE: loop exit
PB: predicated region body
PF: predicated region fallthrough
CT: control target
= control target key end

     0   :  { %10 = vsyncpa [#allocation3], 0  ;;  %s1642_s0 = inlined_call_operand.vmem [shape: f32[2,4096], index: 0, kind: input, shape index: {}]   ;;  %s1643_s1 = inlined_call_operand.hbm [shape: f32[4096,128], index: 1, kind: input, shape index: {}]   ;;  %s1644_s2 = inlined_call_operand.hbm [shape: f32[1,128], index: 2, kind: input, shape index: {}]   ;;  %s1645_s3 = inlined_call_operand.vmem [shape: f32[128,10], index: 3, kind: input, shape index: {}]   ;;  %s1646_s4 = inlined_call_operand.hbm [shape: f32[1,10], index: 4, kind: input, shape index: {}]   ;;  %s1647_s5 = inlined_call_operand.hbm [shape: f32[2,10], index: 5, kind: output, shape index: {}]  }
   0x1   :  { %11 = vsyncpa [#allocation6], 0  ;;  %s33_s20 = sshll.u32 %s1644_s2, 4  ;;  %s34_s20 = int_to_ptr.hbm [resolvable:$true] %s33_s20 }
   0x2   :  { %12 = vsyncpa [#allocation4], 0  ;;  %s1480_s21 = smov [#allocation5]   ;;  %s19_s25 = sshll.u32 %s1643_s1, 4  ;;  %s20_s25 = int_to_ptr.hbm [resolvable:$true] %s19_s25 }
   0x3   :  { %s35_s22 = sshll.u32 %s1480_s21, 4  ;;  %s1481_s26 = smov [#allocation2]   ;;  %s36_s22 = int_to_ptr.vmem [resolvable:$true] %s35_s22 }
   0x4   :  { %38 = dma.hbm_to_vmem [thread:$0]  %s34_s20, 16, %s36_s22, [#allocation6]  }
   0x5   :  { %s21_s27 = sshll.u32 %s1481_s26, 4  ;;  %s1482_s28 = smov 128   ;;  %s22_s27 = int_to_ptr.vmem [resolvable:$true] %s21_s27 }
   0x6   :  { %s1483_s29 = smov 8   ;;  %s46_s2 = sshll.u32 %s1646_s4, 4  ;;  %s47_s2 = int_to_ptr.hbm [resolvable:$true] %s46_s2 }
   0x7   :  { %27 = dma.hbm_to_vmem [thread:$0]  %s20_s25, 65536, %s22_s27, [#allocation3], %s1482_s28, %s1482_s28, %s1483_s29  }
   0x8   :  { %s1484_s7 = smov [#allocation7]  }
   0x9   :  { %s48_s8 = sshll.u32 %s1484_s7, 4  ;;  %s49_s8 = int_to_ptr.vmem [resolvable:$true] %s48_s8 }
   0xa   :  { %51 = dma.hbm_to_vmem [thread:$0]  %s47_s2, 16, %s49_s8, [#allocation6]  }
   0xb   :  { %1474 = dma.done.wait [#allocation3], 65536  }
   0xc   :  { %1475 = vsyncadd [#allocation3], 4294901760 }
   0xd   :  { %1476 = dma.done.wait [#allocation6], 32  }
   0xe   :  { %1477 = vsyncadd [#allocation6], 4294967264  ;;  %v87_v0 = vld [vmem:[#allocation2 + $0x78] sm:$0xff]  ;;  %v86_v2 = vld [vmem:[#allocation2 + $0x70] sm:$0xff]  ;;  %s1359_s28 = sshll.u32 %s1647_s5, 4  ;;  %vm1350_vm0 = vcmask 74752   ;;  %s1360_s28 = int_to_ptr.hbm [resolvable:$true] %s1359_s28 }
   0xf   :  { %v119_v1 = vld [vmem:[#allocation2 + $0x178] sm:$0xff]  ;;  %669 = vmatpush.msra.mxu0 %v87_v0  ;;  %v118_v4 = vld [vmem:[#allocation2 + $0x170] sm:$0xff]  ;;  %v85_v6 = vld [vmem:[#allocation2 + $0x68] sm:$0xff] }
  0x10   :  { %709 = vmatpush.msra.mxu2 %v119_v1  ;;  %v103_v3 = vld [vmem:[#allocation2 + $0xf8] sm:$0xff]  ;;  %v102_v7 = vld [vmem:[#allocation2 + $0xf0] sm:$0xff]  ;;  %v117_v8 = vld [vmem:[#allocation2 + $0x168] sm:$0xff] }
  0x11   :  { %v135_v5 = vld [vmem:[#allocation2 + $0x1f8] sm:$0xff]  ;;  %689 = vmatpush.msra.mxu1 %v103_v3  ;;  %670 = vmatpush.msra.mxu0 %v86_v2  ;;  %v134_v9 = vld [vmem:[#allocation2 + $0x1f0] sm:$0xff]  ;;  %v101_v10 = vld [vmem:[#allocation2 + $0xe8] sm:$0xff] }
  0x12   :  { %729 = vmatpush.msra.mxu3 %v135_v5  ;;  %710 = vmatpush.msra.mxu2 %v118_v4  ;;  %v84_v11 = vld [vmem:[#allocation2 + $0x60] sm:$0xff]  ;;  %v133_v13 = vld [vmem:[#allocation2 + $0x1e8] sm:$0xff]  ;;  %v83_v16 = vld [vmem:[#allocation2 + $0x58] sm:$0xff] }
  0x13   :  { %690 = vmatpush.msra.mxu1 %v102_v7  ;;  %v116_v12 = vld [vmem:[#allocation2 + $0x160] sm:$0xff]  ;;  %671 = vmatpush.msra.mxu0 %v85_v6  ;;  %v115_v17 = vld [vmem:[#allocation2 + $0x158] sm:$0xff]  ;;  %v82_v20 = vld [vmem:[#allocation2 + $0x50] sm:$0xff] }
  0x14   :  { %730 = vmatpush.msra.mxu3 %v134_v9  ;;  %711 = vmatpush.msra.mxu2 %v117_v8  ;;  %v100_v14 = vld [vmem:[#allocation2 + $0xe0] sm:$0xff]  ;;  %v99_v18 = vld [vmem:[#allocation2 + $0xd8] sm:$0xff]  ;;  %v114_v21 = vld [vmem:[#allocation2 + $0x150] sm:$0xff] }
  0x15   :  { %v132_v15 = vld [vmem:[#allocation2 + $0x1e0] sm:$0xff]  ;;  %691 = vmatpush.msra.mxu1 %v101_v10  ;;  %672 = vmatpush.msra.mxu0 %v84_v11  ;;  %v131_v19 = vld [vmem:[#allocation2 + $0x1d8] sm:$0xff]  ;;  %v98_v22 = vld [vmem:[#allocation2 + $0xd0] sm:$0xff] }
  0x16   :  { %731 = vmatpush.msra.mxu3 %v133_v13  ;;  %712 = vmatpush.msra.mxu2 %v116_v12  ;;  %v130_v23 = vld [vmem:[#allocation2 + $0x1d0] sm:$0xff]  ;;  %v81_v24 = vld [vmem:[#allocation2 + $0x48] sm:$0xff]  ;;  %v80_v28 = vld [vmem:[#allocation2 + $0x40] sm:$0xff] }
  0x17   :  { %692 = vmatpush.msra.mxu1 %v100_v14  ;;  %673 = vmatpush.msra.mxu0 %v83_v16  ;;  %v113_v25 = vld [vmem:[#allocation2 + $0x148] sm:$0xff]  ;;  %v112_v29 = vld [vmem:[#allocation2 + $0x140] sm:$0xff]  ;;  %v79_v32 = vld [vmem:[#allocation2 + $0x38] sm:$0xff] }
  0x18   :  { %732 = vmatpush.msra.mxu3 %v132_v15  ;;  %713 = vmatpush.msra.mxu2 %v115_v17  ;;  %v97_v26 = vld [vmem:[#allocation2 + $0xc8] sm:$0xff]  ;;  %v96_v30 = vld [vmem:[#allocation2 + $0xc0] sm:$0xff]  ;;  %v111_v33 = vld [vmem:[#allocation2 + $0x138] sm:$0xff] }
  0x19   :  { %693 = vmatpush.msra.mxu1 %v99_v18  ;;  %674 = vmatpush.msra.mxu0 %v82_v20  ;;  %v129_v27 = vld [vmem:[#allocation2 + $0x1c8] sm:$0xff]  ;;  %v128_v31 = vld [vmem:[#allocation2 + $0x1c0] sm:$0xff]  ;;  %v95_v34 = vld [vmem:[#allocation2 + $0xb8] sm:$0xff] }
  0x1a   :  { %733 = vmatpush.msra.mxu3 %v131_v19  ;;  %714 = vmatpush.msra.mxu2 %v114_v21  ;;  %v127_v35 = vld [vmem:[#allocation2 + $0x1b8] sm:$0xff]  ;;  %v78_v36 = vld [vmem:[#allocation2 + $0x30] sm:$0xff]  ;;  %v77_v40 = vld [vmem:[#allocation2 + $0x28] sm:$0xff] }
  0x1b   :  { %694 = vmatpush.msra.mxu1 %v98_v22  ;;  %675 = vmatpush.msra.mxu0 %v81_v24  ;;  %v110_v37 = vld [vmem:[#allocation2 + $0x130] sm:$0xff]  ;;  %v109_v41 = vld [vmem:[#allocation2 + $0x128] sm:$0xff]  ;;  %v76_v44 = vld [vmem:[#allocation2 + $0x20] sm:$0xff] }
  0x1c   :  { %734 = vmatpush.msra.mxu3 %v130_v23  ;;  %715 = vmatpush.msra.mxu2 %v113_v25  ;;  %v94_v38 = vld [vmem:[#allocation2 + $0xb0] sm:$0xff]  ;;  %v93_v42 = vld [vmem:[#allocation2 + $0xa8] sm:$0xff]  ;;  %v108_v45 = vld [vmem:[#allocation2 + $0x120] sm:$0xff] }
  0x1d   :  { %695 = vmatpush.msra.mxu1 %v97_v26  ;;  %676 = vmatpush.msra.mxu0 %v80_v28  ;;  %v126_v39 = vld [vmem:[#allocation2 + $0x1b0] sm:$0xff]  ;;  %v125_v43 = vld [vmem:[#allocation2 + $0x1a8] sm:$0xff]  ;;  %v92_v46 = vld [vmem:[#allocation2 + $0xa0] sm:$0xff] }
  0x1e   :  { %735 = vmatpush.msra.mxu3 %v129_v27  ;;  %716 = vmatpush.msra.mxu2 %v112_v29  ;;  %v124_v47 = vld [vmem:[#allocation2 + $0x1a0] sm:$0xff]  ;;  %v75_v48 = vld [vmem:[#allocation2 + $0x18] sm:$0xff]  ;;  %v74_v52 = vld [vmem:[#allocation2 + $0x10] sm:$0xff] }
  0x1f   :  { %696 = vmatpush.msra.mxu1 %v96_v30  ;;  %677 = vmatpush.msra.mxu0 %v79_v32  ;;  %v107_v49 = vld [vmem:[#allocation2 + $0x118] sm:$0xff]  ;;  %v106_v53 = vld [vmem:[#allocation2 + $0x110] sm:$0xff]  ;;  %v73_v56 = vld [vmem:[#allocation2 + $0x8] sm:$0xff] }
  0x20   :  { %736 = vmatpush.msra.mxu3 %v128_v31  ;;  %717 = vmatpush.msra.mxu2 %v111_v33  ;;  %v91_v50 = vld [vmem:[#allocation2 + $0x98] sm:$0xff]  ;;  %v90_v54 = vld [vmem:[#allocation2 + $0x90] sm:$0xff]  ;;  %v105_v57 = vld [vmem:[#allocation2 + $0x108] sm:$0xff] }
  0x21   :  { %697 = vmatpush.msra.mxu1 %v95_v34  ;;  %678 = vmatpush.msra.mxu0 %v78_v36  ;;  %v123_v51 = vld [vmem:[#allocation2 + $0x198] sm:$0xff]  ;;  %v122_v55 = vld [vmem:[#allocation2 + $0x190] sm:$0xff]  ;;  %v89_v58 = vld [vmem:[#allocation2 + $0x88] sm:$0xff] }
  0x22   :  { %737 = vmatpush.msra.mxu3 %v127_v35  ;;  %718 = vmatpush.msra.mxu2 %v110_v37  ;;  %v121_v59 = vld [vmem:[#allocation2 + $0x188] sm:$0xff]  ;;  %v72_v60 = vld [vmem:[#allocation2] sm:$0xff]  ;;  %v151_v62 = vld [vmem:[#allocation2 + $0x278] sm:$0xff] }
  0x23   :  { %698 = vmatpush.msra.mxu1 %v94_v38  ;;  %679 = vmatpush.msra.mxu0 %v77_v40  ;;  %v104_v61 = vld [vmem:[#allocation2 + $0x100] sm:$0xff]  ;;  %v183_v63 = vld [vmem:[#allocation2 + $0x378] sm:$0xff]  ;;  %v150_v2 = vld [vmem:[#allocation2 + $0x270] sm:$0xff] }
  0x24   :  { %738 = vmatpush.msra.mxu3 %v126_v39  ;;  %719 = vmatpush.msra.mxu2 %v109_v41  ;;  %v88_v0 = vld [vmem:[#allocation2 + $0x80] sm:$0xff]  ;;  %v167_v3 = vld [vmem:[#allocation2 + $0x2f8] sm:$0xff]  ;;  %v182_v4 = vld [vmem:[#allocation2 + $0x370] sm:$0xff] }
  0x25   :  { %699 = vmatpush.msra.mxu1 %v93_v42  ;;  %680 = vmatpush.msra.mxu0 %v76_v44  ;;  %v120_v1 = vld [vmem:[#allocation2 + $0x180] sm:$0xff]  ;;  %v199_v5 = vld [vmem:[#allocation2 + $0x3f8] sm:$0xff]  ;;  %v149_v6 = vld [vmem:[#allocation2 + $0x268] sm:$0xff] }
  0x26   :  { %739 = vmatpush.msra.mxu3 %v125_v43  ;;  %720 = vmatpush.msra.mxu2 %v108_v45  ;;  %v166_v7 = vld [vmem:[#allocation2 + $0x2f0] sm:$0xff]  ;;  %v181_v8 = vld [vmem:[#allocation2 + $0x368] sm:$0xff]  ;;  %v148_v10 = vld [vmem:[#allocation2 + $0x260] sm:$0xff] }
  0x27   :  { %700 = vmatpush.msra.mxu1 %v92_v46  ;;  %681 = vmatpush.msra.mxu0 %v75_v48  ;;  %v198_v9 = vld [vmem:[#allocation2 + $0x3f0] sm:$0xff]  ;;  %v165_v11 = vld [vmem:[#allocation2 + $0x2e8] sm:$0xff]  ;;  %v180_v12 = vld [vmem:[#allocation2 + $0x360] sm:$0xff] }
  0x28   :  { %740 = vmatpush.msra.mxu3 %v124_v47  ;;  %721 = vmatpush.msra.mxu2 %v107_v49  ;;  %v197_v13 = vld [vmem:[#allocation2 + $0x3e8] sm:$0xff]  ;;  %v147_v14 = vld [vmem:[#allocation2 + $0x258] sm:$0xff]  ;;  %v164_v15 = vld [vmem:[#allocation2 + $0x2e0] sm:$0xff] }
  0x29   :  { %701 = vmatpush.msra.mxu1 %v91_v50  ;;  %682 = vmatpush.msra.mxu0 %v74_v52  ;;  %v179_v16 = vld [vmem:[#allocation2 + $0x358] sm:$0xff]  ;;  %v196_v17 = vld [vmem:[#allocation2 + $0x3e0] sm:$0xff]  ;;  %v146_v18 = vld [vmem:[#allocation2 + $0x250] sm:$0xff] }
  0x2a   :  { %741 = vmatpush.msra.mxu3 %v123_v51  ;;  %722 = vmatpush.msra.mxu2 %v106_v53  ;;  %v163_v19 = vld [vmem:[#allocation2 + $0x2d8] sm:$0xff]  ;;  %v178_v20 = vld [vmem:[#allocation2 + $0x350] sm:$0xff]  ;;  %v145_v22 = vld [vmem:[#allocation2 + $0x248] sm:$0xff] }
  0x2b   :  { %702 = vmatpush.msra.mxu1 %v90_v54  ;;  %683 = vmatpush.msra.mxu0 %v73_v56  ;;  %v195_v21 = vld [vmem:[#allocation2 + $0x3d8] sm:$0xff]  ;;  %v162_v23 = vld [vmem:[#allocation2 + $0x2d0] sm:$0xff]  ;;  %v177_v24 = vld [vmem:[#allocation2 + $0x348] sm:$0xff] }
  0x2c   :  { %742 = vmatpush.msra.mxu3 %v122_v55  ;;  %723 = vmatpush.msra.mxu2 %v105_v57  ;;  %v194_v25 = vld [vmem:[#allocation2 + $0x3d0] sm:$0xff]  ;;  %v64_v26 = vld [vmem:[%s1642_s0] sm:$0xff]  ;;  %v144_v27 = vld [vmem:[#allocation2 + $0x240] sm:$0xff] }
  0x2d   :  { %703 = vmatpush.msra.mxu1 %v89_v58  ;;  %684 = vmatpush.msra.mxu0 %v72_v60  ;;  %v161_v28 = vld [vmem:[#allocation2 + $0x2c8] sm:$0xff]  ;;  %596 = vst [vmem:[#allocation1] ss:$4 sm:$0xff] %v64_v26  ;;  %v176_v29 = vld [vmem:[#allocation2 + $0x340] sm:$0xff]  ;;  %v143_v31 = vld [vmem:[#allocation2 + $0x238] sm:$0xff] }
  0x2e   :  { %743 = vmatpush.msra.mxu3 %v121_v59  ;;  %724 = vmatpush.msra.mxu2 %v104_v61  ;;  %v193_v30 = vld [vmem:[#allocation2 + $0x3c8] sm:$0xff]  ;;  %v160_v32 = vld [vmem:[#allocation2 + $0x2c0] sm:$0xff]  ;;  %v175_v33 = vld [vmem:[#allocation2 + $0x338] sm:$0xff] }
  0x2f   :  { %749 = vmatpush.msrb.mxu0 %v151_v62  ;;  %704 = vmatpush.msra.mxu1 %v88_v0  ;;  %v192_v34 = vld [vmem:[#allocation2 + $0x3c0] sm:$0xff]  ;;  %v142_v35 = vld [vmem:[#allocation2 + $0x230] sm:$0xff]  ;;  %v159_v36 = vld [vmem:[#allocation2 + $0x2b8] sm:$0xff] }
  0x30   :  { %789 = vmatpush.msrb.mxu2 %v183_v63  ;;  %744 = vmatpush.msra.mxu3 %v120_v1  ;;  %v174_v37 = vld [vmem:[#allocation2 + $0x330] sm:$0xff]  ;;  %v191_v38 = vld [vmem:[#allocation2 + $0x3b8] sm:$0xff]  ;;  %v141_v39 = vld [vmem:[#allocation2 + $0x228] sm:$0xff] }
  0x31   :  { %750 = vmatpush.msrb.mxu0 %v150_v2  ;;  %769 = vmatpush.msrb.mxu1 %v167_v3  ;;  %v158_v40 = vld [vmem:[#allocation2 + $0x2b0] sm:$0xff]  ;;  %v173_v41 = vld [vmem:[#allocation2 + $0x328] sm:$0xff]  ;;  %v65_v43 = vld [vmem:[%s1642_s0 + $0x8] sm:$0xff] }
  0x32   :  { %790 = vmatpush.msrb.mxu2 %v182_v4  ;;  %809 = vmatpush.msrb.mxu3 %v199_v5  ;;  %v190_v42 = vld [vmem:[#allocation2 + $0x3b0] sm:$0xff]  ;;  %v140_v44 = vld [vmem:[#allocation2 + $0x220] sm:$0xff]  ;;  %v157_v45 = vld [vmem:[#allocation2 + $0x2a8] sm:$0xff]  ;;  %598 = vst [vmem:[#allocation1 + $0x20] ss:$4 sm:$0xff] %v65_v43 }
  0x33   :  { %751 = vmatpush.msrb.mxu0 %v149_v6  ;;  %770 = vmatpush.msrb.mxu1 %v166_v7  ;;  %v66_v46 = vld [vmem:[%s1642_s0 + $0x10] sm:$0xff]  ;;  %v172_v47 = vld [vmem:[#allocation2 + $0x320] sm:$0xff]  ;;  %v139_v53 = vld [vmem:[#allocation2 + $0x218] sm:$0xff] }
  0x34   :  { %791 = vmatpush.msrb.mxu2 %v181_v8  ;;  %810 = vmatpush.msrb.mxu3 %v198_v9  ;;  %v599_v48 = vld.sshfl [vmem:[#allocation1] sm:$0xff pattern:$0x73625140]  ;;  %v601_v49 = vld.sshfl [vmem:[#allocation1 + $0x10] sm:$0xff pattern:$0x73625140] }
  0x35   :  { %752 = vmatpush.msrb.mxu0 %v148_v10  ;;  %771 = vmatpush.msrb.mxu1 %v165_v11  ;;  %v1534_v50 = vld.sshfl [vmem:[#allocation1 + $0x8] sm:$0xff pattern:$0x73625140]  ;;  %v1536_v51 = vld.sshfl [vmem:[#allocation1 + $0x18] sm:$0xff pattern:$0x73625140] }
  0x36   :  { %792 = vmatpush.msrb.mxu2 %v180_v12  ;;  %811 = vmatpush.msrb.mxu3 %v197_v13  ;;  %v189_v52 = vld [vmem:[#allocation2 + $0x3a8] sm:$0xff]  ;;  %v156_v54 = vld [vmem:[#allocation2 + $0x2a0] sm:$0xff]  ;;  %607 = vst [vmem:[#allocation1] ss:$4 sm:$0xff] %v66_v46  ;;  %v171_v55 = vld [vmem:[#allocation2 + $0x318] sm:$0xff] }
  0x37   :  { %753 = vmatpush.msrb.mxu0 %v147_v14  ;;  %772 = vmatpush.msrb.mxu1 %v164_v15  ;;  %v188_v56 = vld [vmem:[#allocation2 + $0x3a0] sm:$0xff]  ;;  %v138_v57 = vld [vmem:[#allocation2 + $0x210] sm:$0xff]  ;;  %v155_v58 = vld [vmem:[#allocation2 + $0x298] sm:$0xff] }
  0x38   :  { %793 = vmatpush.msrb.mxu2 %v179_v16  ;;  %812 = vmatpush.msrb.mxu3 %v196_v17  ;;  %v170_v59 = vld [vmem:[#allocation2 + $0x310] sm:$0xff]  ;;  %v187_v60 = vld [vmem:[#allocation2 + $0x398] sm:$0xff]  ;;  %v137_v61 = vld [vmem:[#allocation2 + $0x208] sm:$0xff] }
  0x39   :  { %754 = vmatpush.msrb.mxu0 %v146_v18  ;;  %773 = vmatpush.msrb.mxu1 %v163_v19  ;;  %v154_v62 = vld [vmem:[#allocation2 + $0x290] sm:$0xff]  ;;  %v1541_v0 = vld.sshfl [vmem:[#allocation1 + $0x30] sm:$0xff pattern:$0x73625140]  ;;  %v136_v6 = vld [vmem:[#allocation2 + $0x200] sm:$0xff] }
  0x3a   :  { %794 = vmatpush.msrb.mxu2 %v178_v20  ;;  %813 = vmatpush.msrb.mxu3 %v195_v21  ;;  %v67_v63 = vld [vmem:[%s1642_s0 + $0x18] sm:$0xff]  ;;  %v1543_v1 = vld.sshfl [vmem:[#allocation1 + $0x20] sm:$0xff pattern:$0x73625140]  ;;  %v169_v4 = vld [vmem:[#allocation2 + $0x308] sm:$0xff] }
  0x3b   :  { %755 = vmatpush.msrb.mxu0 %v145_v22  ;;  %774 = vmatpush.msrb.mxu1 %v162_v23  ;;  %v1545_v2 = vld.sshfl [vmem:[#allocation1 + $0x38] sm:$0xff pattern:$0x73625140]  ;;  %v1547_v3 = vld.sshfl [vmem:[#allocation1 + $0x28] sm:$0xff pattern:$0x73625140] }
  0x3c   :  { %795 = vmatpush.msrb.mxu2 %v177_v24  ;;  %814 = vmatpush.msrb.mxu3 %v194_v25  ;;  %v186_v5 = vld [vmem:[#allocation2 + $0x390] sm:$0xff]  ;;  %608 = vst [vmem:[#allocation1 + $0x20] ss:$4 sm:$0xff] %v67_v63  ;;  %v153_v7 = vld [vmem:[#allocation2 + $0x288] sm:$0xff]  ;;  %v168_v8 = vld [vmem:[#allocation2 + $0x300] sm:$0xff] }
  0x3d   :  { %756 = vmatpush.msrb.mxu0 %v144_v27  ;;  %775 = vmatpush.msrb.mxu1 %v161_v28  ;;  %v185_v9 = vld [vmem:[#allocation2 + $0x388] sm:$0xff]  ;;  %v215_v10 = vld [vmem:[#allocation2 + $0x478] sm:$0xff]  ;;  %v152_v12 = vld [vmem:[#allocation2 + $0x280] sm:$0xff] }
  0x3e   :  { %796 = vmatpush.msrb.mxu2 %v176_v29  ;;  %815 = vmatpush.msrb.mxu3 %v193_v30  ;;  %v247_v11 = vld [vmem:[#allocation2 + $0x578] sm:$0xff]  ;;  %v184_v13 = vld [vmem:[#allocation2 + $0x380] sm:$0xff]  ;;  %v214_v14 = vld [vmem:[#allocation2 + $0x470] sm:$0xff] }
  0x3f   :  { %757 = vmatpush.msrb.mxu0 %v143_v31  ;;  %776 = vmatpush.msrb.mxu1 %v160_v32  ;;  %v231_v15 = vld [vmem:[#allocation2 + $0x4f8] sm:$0xff]  ;;  %v246_v16 = vld [vmem:[#allocation2 + $0x570] sm:$0xff]  ;;  %v213_v18 = vld [vmem:[#allocation2 + $0x468] sm:$0xff] }
  0x40   :  { %797 = vmatpush.msrb.mxu2 %v175_v33  ;;  %816 = vmatpush.msrb.mxu3 %v192_v34  ;;  %v263_v17 = vld [vmem:[#allocation2 + $0x5f8] sm:$0xff]  ;;  %v230_v19 = vld [vmem:[#allocation2 + $0x4f0] sm:$0xff]  ;;  %v245_v20 = vld [vmem:[#allocation2 + $0x568] sm:$0xff] }
  0x41   :  { %758 = vmatpush.msrb.mxu0 %v142_v35  ;;  %777 = vmatpush.msrb.mxu1 %v159_v36  ;;  %v262_v21 = vld [vmem:[#allocation2 + $0x5f0] sm:$0xff]  ;;  %v212_v22 = vld [vmem:[#allocation2 + $0x460] sm:$0xff]  ;;  %v229_v23 = vld [vmem:[#allocation2 + $0x4e8] sm:$0xff] }
  0x42   :  { %798 = vmatpush.msrb.mxu2 %v174_v37  ;;  %817 = vmatpush.msrb.mxu3 %v191_v38  ;;  %v244_v24 = vld [vmem:[#allocation2 + $0x560] sm:$0xff]  ;;  %v261_v25 = vld [vmem:[#allocation2 + $0x5e8] sm:$0xff]  ;;  %v1551_v26 = vld.sshfl [vmem:[#allocation1] sm:$0xff pattern:$0x73625140] }
  0x43   :  { %759 = vmatpush.msrb.mxu0 %v141_v39  ;;  %778 = vmatpush.msrb.mxu1 %v158_v40  ;;  %v1553_v27 = vld.sshfl [vmem:[#allocation1 + $0x10] sm:$0xff pattern:$0x73625140]  ;;  %v1555_v28 = vld.sshfl [vmem:[#allocation1 + $0x8] sm:$0xff pattern:$0x73625140] }
  0x44   :  { %799 = vmatpush.msrb.mxu2 %v173_v41  ;;  %818 = vmatpush.msrb.mxu3 %v190_v42  ;;  %v211_v29 = vld [vmem:[#allocation2 + $0x458] sm:$0xff]  ;;  %v1560_v31 = vld.sshfl [vmem:[#allocation1 + $0x18] sm:$0xff pattern:$0x73625140]  ;;  %v228_v32 = vld [vmem:[#allocation2 + $0x4e0] sm:$0xff] }
  0x45   :  { %760 = vmatpush.msrb.mxu0 %v140_v44  ;;  %779 = vmatpush.msrb.mxu1 %v157_v45  ;;  %v68_v30 = vld [vmem:[%s1642_s0 + $0x20] sm:$0xff]  ;;  %v260_v34 = vld [vmem:[#allocation2 + $0x5e0] sm:$0xff]  ;;  %v210_v35 = vld [vmem:[#allocation2 + $0x450] sm:$0xff] }
  0x46   :  { %800 = vmatpush.msrb.mxu2 %v172_v47  ;;  %819 = vmatpush.msrb.mxu3 %v189_v52  ;;  %v243_v33 = vld [vmem:[#allocation2 + $0x558] sm:$0xff]  ;;  %617 = vst [vmem:[#allocation1] ss:$4 sm:$0xff] %v68_v30  ;;  %v242_v37 = vld [vmem:[#allocation2 + $0x550] sm:$0xff]  ;;  %v209_v39 = vld [vmem:[#allocation2 + $0x448] sm:$0xff] }
  0x47   :  { %761 = vmatpush.msrb.mxu0 %v139_v53  ;;  %780 = vmatpush.msrb.mxu1 %v156_v54  ;;  %v227_v36 = vld [vmem:[#allocation2 + $0x4d8] sm:$0xff]  ;;  %v226_v40 = vld [vmem:[#allocation2 + $0x4d0] sm:$0xff]  ;;  %v241_v41 = vld [vmem:[#allocation2 + $0x548] sm:$0xff] }
  0x48   :  { %801 = vmatpush.msrb.mxu2 %v171_v55  ;;  %820 = vmatpush.msrb.mxu3 %v188_v56  ;;  %v259_v38 = vld [vmem:[#allocation2 + $0x5d8] sm:$0xff]  ;;  %v258_v42 = vld [vmem:[#allocation2 + $0x5d0] sm:$0xff]  ;;  %v208_v43 = vld [vmem:[#allocation2 + $0x440] sm:$0xff] }
  0x49   :  { %762 = vmatpush.msrb.mxu0 %v138_v57  ;;  %781 = vmatpush.msrb.mxu1 %v155_v58  ;;  %v225_v44 = vld [vmem:[#allocation2 + $0x4c8] sm:$0xff]  ;;  %v240_v45 = vld [vmem:[#allocation2 + $0x540] sm:$0xff]  ;;  %v207_v47 = vld [vmem:[#allocation2 + $0x438] sm:$0xff] }
  0x4a   :  { %802 = vmatpush.msrb.mxu2 %v170_v59  ;;  %821 = vmatpush.msrb.mxu3 %v187_v60  ;;  %v257_v46 = vld [vmem:[#allocation2 + $0x5c8] sm:$0xff]  ;;  %v223_v52 = vld [vmem:[#allocation2 + $0x4b8] sm:$0xff]  ;;  %v238_v53 = vld [vmem:[#allocation2 + $0x530] sm:$0xff] }
  0x4b   :  { %763 = vmatpush.msrb.mxu0 %v137_v61  ;;  %782 = vmatpush.msrb.mxu1 %v154_v62  ;;  %v255_v54 = vld [vmem:[#allocation2 + $0x5b8] sm:$0xff]  ;;  %v205_v55 = vld [vmem:[#allocation2 + $0x428] sm:$0xff]  ;;  %v222_v56 = vld [vmem:[#allocation2 + $0x4b0] sm:$0xff] }
  0x4c   :  { %803 = vmatpush.msrb.mxu2 %v169_v4  ;;  %822 = vmatpush.msrb.mxu3 %v186_v5  ;;  %v237_v57 = vld [vmem:[#allocation2 + $0x528] sm:$0xff]  ;;  %v254_v58 = vld [vmem:[#allocation2 + $0x5b0] sm:$0xff]  ;;  %v204_v59 = vld [vmem:[#allocation2 + $0x420] sm:$0xff] }
  0x4d   :  { %764 = vmatpush.msrb.mxu0 %v136_v6  ;;  %783 = vmatpush.msrb.mxu1 %v153_v7  ;;  %v221_v60 = vld [vmem:[#allocation2 + $0x4a8] sm:$0xff]  ;;  %v236_v61 = vld [vmem:[#allocation2 + $0x520] sm:$0xff]  ;;  %v203_v63 = vld [vmem:[#allocation2 + $0x418] sm:$0xff] }
  0x4e   :  { %804 = vmatpush.msrb.mxu2 %v168_v8  ;;  %823 = vmatpush.msrb.mxu3 %v185_v9  ;;  %v253_v62 = vld [vmem:[#allocation2 + $0x5a8] sm:$0xff]  ;;  %v219_v4 = vld [vmem:[#allocation2 + $0x498] sm:$0xff]  ;;  %v234_v5 = vld [vmem:[#allocation2 + $0x510] sm:$0xff] }
  0x4f   :  { %685 = vmatmul.f32.vlgmr.msra.gmra.mxu0 %v599_v48  ;;  %725 = vmatmul.f32.vlgmr.msra.gmra.mxu2 %v601_v49  ;;  %v224_v48 = vld [vmem:[#allocation2 + $0x4c0] sm:$0xff]  ;;  %v239_v49 = vld [vmem:[#allocation2 + $0x538] sm:$0xff]  ;;  %v201_v7 = vld [vmem:[#allocation2 + $0x408] sm:$0xff] }
  0x50   :  { %829 = vmatpush.msra.mxu0 %v215_v10  ;;  %869 = vmatpush.msra.mxu2 %v247_v11  ;;  %v251_v6 = vld [vmem:[#allocation2 + $0x598] sm:$0xff]  ;;  %v218_v8 = vld [vmem:[#allocation2 + $0x490] sm:$0xff]  ;;  %v233_v9 = vld [vmem:[#allocation2 + $0x508] sm:$0xff] }
  0x51   :  { %784 = vmatpush.msrb.mxu1 %v152_v12  ;;  %824 = vmatpush.msrb.mxu3 %v184_v13  ;;  %v250_v10 = vld [vmem:[#allocation2 + $0x590] sm:$0xff]  ;;  %v200_v11 = vld [vmem:[#allocation2 + $0x400] sm:$0xff]  ;;  %v217_v12 = vld [vmem:[#allocation2 + $0x488] sm:$0xff] }
  0x52   :  { %705 = vmatmul.f32.vlgmr.msra.gmra.mxu1 %v1534_v50  ;;  %745 = vmatmul.f32.vlgmr.msra.gmra.mxu3 %v1536_v51  ;;  %v256_v50 = vld [vmem:[#allocation2 + $0x5c0] sm:$0xff]  ;;  %v206_v51 = vld [vmem:[#allocation2 + $0x430] sm:$0xff] }
  0x53   :  { %830 = vmatpush.msra.mxu0 %v214_v14  ;;  %849 = vmatpush.msra.mxu1 %v231_v15  ;;  %v232_v13 = vld [vmem:[#allocation2 + $0x500] sm:$0xff]  ;;  %v249_v14 = vld [vmem:[#allocation2 + $0x588] sm:$0xff]  ;;  %v279_v15 = vld [vmem:[#allocation2 + $0x678] sm:$0xff] }
  0x54   :  { %870 = vmatpush.msra.mxu2 %v246_v16  ;;  %889 = vmatpush.msra.mxu3 %v263_v17  ;;  %v311_v16 = vld [vmem:[#allocation2 + $0x778] sm:$0xff]  ;;  %v216_v17 = vld [vmem:[#allocation2 + $0x480] sm:$0xff] }
  0x55   :  { %831 = vmatpush.msra.mxu0 %v213_v18  ;;  %850 = vmatpush.msra.mxu1 %v230_v19  ;;  %v248_v18 = vld [vmem:[#allocation2 + $0x580] sm:$0xff]  ;;  %v278_v19 = vld [vmem:[#allocation2 + $0x670] sm:$0xff] }
  0x56   :  { %871 = vmatpush.msra.mxu2 %v245_v20  ;;  %890 = vmatpush.msra.mxu3 %v262_v21  ;;  %v295_v20 = vld [vmem:[#allocation2 + $0x6f8] sm:$0xff]  ;;  %v310_v21 = vld [vmem:[#allocation2 + $0x770] sm:$0xff]  ;;  %v276_v30 = vld [vmem:[#allocation2 + $0x660] sm:$0xff] }
  0x57   :  { %832 = vmatpush.msra.mxu0 %v212_v22  ;;  %851 = vmatpush.msra.mxu1 %v229_v23  ;;  %v327_v22 = vld [vmem:[#allocation2 + $0x7f8] sm:$0xff]  ;;  %v277_v23 = vld [vmem:[#allocation2 + $0x668] sm:$0xff] }
  0x58   :  { %872 = vmatpush.msra.mxu2 %v244_v24  ;;  %891 = vmatpush.msra.mxu3 %v261_v25  ;;  %v294_v24 = vld [vmem:[#allocation2 + $0x6f0] sm:$0xff]  ;;  %v309_v25 = vld [vmem:[#allocation2 + $0x768] sm:$0xff] }
  0x59   :  { %805 = vmatmul.f32.vlgmr.msrb.gmra.mxu2 %v1541_v0  ;;  %833 = vmatpush.msra.mxu0 %v211_v29  ;;  %v220_v0 = vld [vmem:[#allocation2 + $0x4a0] sm:$0xff]  ;;  %v326_v29 = vld [vmem:[#allocation2 + $0x7f0] sm:$0xff] }
  0x5a   :  { %852 = vmatpush.msra.mxu1 %v228_v32  ;;  %873 = vmatpush.msra.mxu2 %v243_v33  ;;  %v1574_v32 = vld.sshfl [vmem:[#allocation1 + $0x28] sm:$0xff pattern:$0x73625140]  ;;  %v293_v33 = vld [vmem:[#allocation2 + $0x6e8] sm:$0xff] }
  0x5b   :  { %892 = vmatpush.msra.mxu3 %v260_v34  ;;  %765 = vmatmul.f32.vlgmr.msrb.gmra.mxu0 %v1543_v1  ;;  %v235_v1 = vld [vmem:[#allocation2 + $0x518] sm:$0xff]  ;;  %v69_v34 = vld [vmem:[%s1642_s0 + $0x28] sm:$0xff] }
  0x5c   :  { %825 = vmatmul.f32.vlgmr.msrb.gmra.mxu3 %v1545_v2  ;;  %834 = vmatpush.msra.mxu0 %v210_v35  ;;  %v252_v2 = vld [vmem:[#allocation2 + $0x5a0] sm:$0xff]  ;;  %v325_v35 = vld [vmem:[#allocation2 + $0x7e8] sm:$0xff] }
  0x5d   :  { %853 = vmatpush.msra.mxu1 %v227_v36  ;;  %874 = vmatpush.msra.mxu2 %v242_v37  ;;  %v275_v36 = vld [vmem:[#allocation2 + $0x658] sm:$0xff]  ;;  %v292_v37 = vld [vmem:[#allocation2 + $0x6e0] sm:$0xff] }
  0x5e   :  { %893 = vmatpush.msra.mxu3 %v259_v38  ;;  %785 = vmatmul.f32.vlgmr.msrb.gmra.mxu1 %v1547_v3  ;;  %v202_v3 = vld [vmem:[#allocation2 + $0x410] sm:$0xff]  ;;  %v307_v38 = vld [vmem:[#allocation2 + $0x758] sm:$0xff] }
  0x5f   :  { %835 = vmatpush.msra.mxu0 %v209_v39  ;;  %854 = vmatpush.msra.mxu1 %v226_v40  ;;  %v324_v39 = vld [vmem:[#allocation2 + $0x7e0] sm:$0xff]  ;;  %v274_v40 = vld [vmem:[#allocation2 + $0x650] sm:$0xff] }
  0x60   :  { %875 = vmatpush.msra.mxu2 %v241_v41  ;;  %894 = vmatpush.msra.mxu3 %v258_v42  ;;  %v291_v41 = vld [vmem:[#allocation2 + $0x6d8] sm:$0xff]  ;;  %v306_v42 = vld [vmem:[#allocation2 + $0x750] sm:$0xff] }
  0x61   :  { %836 = vmatpush.msra.mxu0 %v208_v43  ;;  %855 = vmatpush.msra.mxu1 %v225_v44  ;;  %v323_v43 = vld [vmem:[#allocation2 + $0x7d8] sm:$0xff]  ;;  %v273_v44 = vld [vmem:[#allocation2 + $0x648] sm:$0xff] }
  0x62   :  { %876 = vmatpush.msra.mxu2 %v240_v45  ;;  %895 = vmatpush.msra.mxu3 %v257_v46  ;;  %v290_v45 = vld [vmem:[#allocation2 + $0x6d0] sm:$0xff]  ;;  %v305_v46 = vld [vmem:[#allocation2 + $0x748] sm:$0xff] }
  0x63   :  { %837 = vmatpush.msra.mxu0 %v207_v47  ;;  %856 = vmatpush.msra.mxu1 %v224_v48  ;;  %v322_v47 = vld [vmem:[#allocation2 + $0x7d0] sm:$0xff]  ;;  %v272_v48 = vld [vmem:[#allocation2 + $0x640] sm:$0xff] }
  0x64   :  { %877 = vmatpush.msra.mxu2 %v239_v49  ;;  %896 = vmatpush.msra.mxu3 %v256_v50  ;;  %v289_v49 = vld [vmem:[#allocation2 + $0x6c8] sm:$0xff]  ;;  %v304_v50 = vld [vmem:[#allocation2 + $0x740] sm:$0xff] }
  0x65   :  { %838 = vmatpush.msra.mxu0 %v206_v51  ;;  %857 = vmatpush.msra.mxu1 %v223_v52  ;;  %v321_v51 = vld [vmem:[#allocation2 + $0x7c8] sm:$0xff]  ;;  %v271_v52 = vld [vmem:[#allocation2 + $0x638] sm:$0xff] }
  0x66   :  { %878 = vmatpush.msra.mxu2 %v238_v53  ;;  %897 = vmatpush.msra.mxu3 %v255_v54  ;;  %v288_v53 = vld [vmem:[#allocation2 + $0x6c0] sm:$0xff]  ;;  %v303_v54 = vld [vmem:[#allocation2 + $0x738] sm:$0xff] }
  0x67   :  { %839 = vmatpush.msra.mxu0 %v205_v55  ;;  %858 = vmatpush.msra.mxu1 %v222_v56  ;;  %v320_v55 = vld [vmem:[#allocation2 + $0x7c0] sm:$0xff]  ;;  %v270_v56 = vld [vmem:[#allocation2 + $0x630] sm:$0xff] }
  0x68   :  { %879 = vmatpush.msra.mxu2 %v237_v57  ;;  %898 = vmatpush.msra.mxu3 %v254_v58  ;;  %v287_v57 = vld [vmem:[#allocation2 + $0x6b8] sm:$0xff]  ;;  %v302_v58 = vld [vmem:[#allocation2 + $0x730] sm:$0xff] }
  0x69   :  { %840 = vmatpush.msra.mxu0 %v204_v59  ;;  %859 = vmatpush.msra.mxu1 %v221_v60  ;;  %v319_v59 = vld [vmem:[#allocation2 + $0x7b8] sm:$0xff]  ;;  %v269_v60 = vld [vmem:[#allocation2 + $0x628] sm:$0xff] }
  0x6a   :  { %880 = vmatpush.msra.mxu2 %v236_v61  ;;  %899 = vmatpush.msra.mxu3 %v253_v62  ;;  %v286_v61 = vld [vmem:[#allocation2 + $0x6b0] sm:$0xff]  ;;  %v301_v62 = vld [vmem:[#allocation2 + $0x728] sm:$0xff] }
  0x6b   :  { %841 = vmatpush.msra.mxu0 %v203_v63  ;;  %860 = vmatpush.msra.mxu1 %v220_v0  ;;  %v318_v63 = vld [vmem:[#allocation2 + $0x7b0] sm:$0xff]  ;;  %v268_v0 = vld [vmem:[#allocation2 + $0x620] sm:$0xff] }
  0x6c   :  { %881 = vmatpush.msra.mxu2 %v235_v1  ;;  %900 = vmatpush.msra.mxu3 %v252_v2  ;;  %v285_v1 = vld [vmem:[#allocation2 + $0x6a8] sm:$0xff]  ;;  %v300_v2 = vld [vmem:[#allocation2 + $0x720] sm:$0xff] }
  0x6d   :  { %842 = vmatpush.msra.mxu0 %v202_v3  ;;  %861 = vmatpush.msra.mxu1 %v219_v4  ;;  %v317_v3 = vld [vmem:[#allocation2 + $0x7a8] sm:$0xff]  ;;  %v267_v4 = vld [vmem:[#allocation2 + $0x618] sm:$0xff] }
  0x6e   :  { %882 = vmatpush.msra.mxu2 %v234_v5  ;;  %901 = vmatpush.msra.mxu3 %v251_v6  ;;  %v284_v5 = vld [vmem:[#allocation2 + $0x6a0] sm:$0xff]  ;;  %v299_v6 = vld [vmem:[#allocation2 + $0x718] sm:$0xff] }
  0x6f   :  { %843 = vmatpush.msra.mxu0 %v201_v7  ;;  %862 = vmatpush.msra.mxu1 %v218_v8  ;;  %v316_v7 = vld [vmem:[#allocation2 + $0x7a0] sm:$0xff]  ;;  %v266_v8 = vld [vmem:[#allocation2 + $0x610] sm:$0xff] }
  0x70   :  { %883 = vmatpush.msra.mxu2 %v233_v9  ;;  %902 = vmatpush.msra.mxu3 %v250_v10  ;;  %v283_v9 = vld [vmem:[#allocation2 + $0x698] sm:$0xff]  ;;  %v298_v10 = vld [vmem:[#allocation2 + $0x710] sm:$0xff] }
  0x71   :  { %844 = vmatpush.msra.mxu0 %v200_v11  ;;  %863 = vmatpush.msra.mxu1 %v217_v12  ;;  %v315_v11 = vld [vmem:[#allocation2 + $0x798] sm:$0xff]  ;;  %v265_v12 = vld [vmem:[#allocation2 + $0x608] sm:$0xff] }
  0x72   :  { %884 = vmatpush.msra.mxu2 %v232_v13  ;;  %903 = vmatpush.msra.mxu3 %v249_v14  ;;  %v282_v13 = vld [vmem:[#allocation2 + $0x690] sm:$0xff]  ;;  %v297_v14 = vld [vmem:[#allocation2 + $0x708] sm:$0xff] }
  0x73   :  { %845 = vmatmul.f32.vlgmr.msra.gmra.mxu0 %v1551_v26  ;;  %885 = vmatmul.f32.vlgmr.msra.gmra.mxu2 %v1553_v27  ;;  %v1570_v26 = vld.sshfl [vmem:[#allocation1 + $0x20] sm:$0xff pattern:$0x73625140]  ;;  %v1572_v27 = vld.sshfl [vmem:[#allocation1 + $0x30] sm:$0xff pattern:$0x73625140] }
  0x74   :  { %909 = vmatpush.msrb.mxu0 %v279_v15  ;;  %949 = vmatpush.msrb.mxu2 %v311_v16  ;;  %v314_v15 = vld [vmem:[#allocation2 + $0x790] sm:$0xff]  ;;  %v264_v16 = vld [vmem:[#allocation2 + $0x600] sm:$0xff] }
  0x75   :  { %864 = vmatpush.msra.mxu1 %v216_v17  ;;  %904 = vmatpush.msra.mxu3 %v248_v18  ;;  %v281_v17 = vld [vmem:[#allocation2 + $0x688] sm:$0xff]  ;;  %v296_v18 = vld [vmem:[#allocation2 + $0x700] sm:$0xff] }
  0x76   :  { %865 = vmatmul.f32.vlgmr.msra.gmra.mxu1 %v1555_v28  ;;  %905 = vmatmul.f32.vlgmr.msra.gmra.mxu3 %v1560_v31  ;;  %v1579_v28 = vld.sshfl [vmem:[#allocation1 + $0x38] sm:$0xff pattern:$0x73625140]  ;;  %v308_v31 = vld [vmem:[#allocation2 + $0x760] sm:$0xff] }
  0x77   :  { %910 = vmatpush.msrb.mxu0 %v278_v19  ;;  %929 = vmatpush.msrb.mxu1 %v295_v20  ;;  %618 = vst [vmem:[#allocation1 + $0x20] ss:$4 sm:$0xff] %v69_v34  ;;  %v313_v19 = vld [vmem:[#allocation2 + $0x788] sm:$0xff]  ;;  %v343_v20 = vld [vmem:[#allocation2 + $0x878] sm:$0xff]  ;;  %v358_v34 = vld [vmem:[#allocation2 + $0x8f0] sm:$0xff] }
  0x78   :  { %950 = vmatpush.msrb.mxu2 %v310_v21  ;;  %969 = vmatpush.msrb.mxu3 %v327_v22  ;;  %v375_v21 = vld [vmem:[#allocation2 + $0x978] sm:$0xff]  ;;  %v280_v22 = vld [vmem:[#allocation2 + $0x680] sm:$0xff] }
  0x79   :  { %911 = vmatpush.msrb.mxu0 %v277_v23  ;;  %930 = vmatpush.msrb.mxu1 %v294_v24  ;;  %v312_v23 = vld [vmem:[#allocation2 + $0x780] sm:$0xff]  ;;  %v342_v24 = vld [vmem:[#allocation2 + $0x870] sm:$0xff] }
  0x7a   :  { %951 = vmatpush.msrb.mxu2 %v309_v25  ;;  %970 = vmatpush.msrb.mxu3 %v326_v29  ;;  %v359_v25 = vld [vmem:[#allocation2 + $0x8f8] sm:$0xff]  ;;  %v374_v29 = vld [vmem:[#allocation2 + $0x970] sm:$0xff] }
  0x7b   :  { %912 = vmatpush.msrb.mxu0 %v276_v30  ;;  %931 = vmatpush.msrb.mxu1 %v293_v33  ;;  %v391_v30 = vld [vmem:[#allocation2 + $0x9f8] sm:$0xff]  ;;  %v341_v33 = vld [vmem:[#allocation2 + $0x868] sm:$0xff] }
  0x7c   :  { %952 = vmatpush.msrb.mxu2 %v308_v31  ;;  %971 = vmatpush.msrb.mxu3 %v325_v35  ;;  %v373_v31 = vld [vmem:[#allocation2 + $0x968] sm:$0xff] }
  0x7d   :  { %913 = vmatpush.msrb.mxu0 %v275_v36  ;;  %932 = vmatpush.msrb.mxu1 %v292_v37  ;;  %v357_v35 = vld [vmem:[#allocation2 + $0x8e8] sm:$0xff]  ;;  %v372_v36 = vld [vmem:[#allocation2 + $0x960] sm:$0xff] }
  0x7e   :  { %953 = vmatpush.msrb.mxu2 %v307_v38  ;;  %972 = vmatpush.msrb.mxu3 %v324_v39  ;;  %v389_v37 = vld [vmem:[#allocation2 + $0x9e8] sm:$0xff]  ;;  %v339_v38 = vld [vmem:[#allocation2 + $0x858] sm:$0xff]  ;;  %v388_v39 = vld [vmem:[#allocation2 + $0x9e0] sm:$0xff] }
  0x7f   :  { %914 = vmatpush.msrb.mxu0 %v274_v40  ;;  %933 = vmatpush.msrb.mxu1 %v291_v41  ;;  %v338_v40 = vld [vmem:[#allocation2 + $0x850] sm:$0xff]  ;;  %v355_v41 = vld [vmem:[#allocation2 + $0x8d8] sm:$0xff] }
  0x80   :  { %954 = vmatpush.msrb.mxu2 %v306_v42  ;;  %973 = vmatpush.msrb.mxu3 %v323_v43  ;;  %v370_v42 = vld [vmem:[#allocation2 + $0x950] sm:$0xff]  ;;  %v387_v43 = vld [vmem:[#allocation2 + $0x9d8] sm:$0xff] }
  0x81   :  { %915 = vmatpush.msrb.mxu0 %v273_v44  ;;  %934 = vmatpush.msrb.mxu1 %v290_v45  ;;  %v337_v44 = vld [vmem:[#allocation2 + $0x848] sm:$0xff]  ;;  %v354_v45 = vld [vmem:[#allocation2 + $0x8d0] sm:$0xff] }
  0x82   :  { %955 = vmatpush.msrb.mxu2 %v305_v46  ;;  %974 = vmatpush.msrb.mxu3 %v322_v47  ;;  %v369_v46 = vld [vmem:[#allocation2 + $0x948] sm:$0xff]  ;;  %v386_v47 = vld [vmem:[#allocation2 + $0x9d0] sm:$0xff] }
  0x83   :  { %916 = vmatpush.msrb.mxu0 %v272_v48  ;;  %935 = vmatpush.msrb.mxu1 %v289_v49  ;;  %v336_v48 = vld [vmem:[#allocation2 + $0x840] sm:$0xff]  ;;  %v353_v49 = vld [vmem:[#allocation2 + $0x8c8] sm:$0xff] }
  0x84   :  { %956 = vmatpush.msrb.mxu2 %v304_v50  ;;  %975 = vmatpush.msrb.mxu3 %v321_v51  ;;  %v368_v50 = vld [vmem:[#allocation2 + $0x940] sm:$0xff]  ;;  %v385_v51 = vld [vmem:[#allocation2 + $0x9c8] sm:$0xff] }
  0x85   :  { %917 = vmatpush.msrb.mxu0 %v271_v52  ;;  %936 = vmatpush.msrb.mxu1 %v288_v53  ;;  %v335_v52 = vld [vmem:[#allocation2 + $0x838] sm:$0xff]  ;;  %v352_v53 = vld [vmem:[#allocation2 + $0x8c0] sm:$0xff] }
  0x86   :  { %957 = vmatpush.msrb.mxu2 %v303_v54  ;;  %976 = vmatpush.msrb.mxu3 %v320_v55  ;;  %v367_v54 = vld [vmem:[#allocation2 + $0x938] sm:$0xff]  ;;  %v384_v55 = vld [vmem:[#allocation2 + $0x9c0] sm:$0xff] }
  0x87   :  { %918 = vmatpush.msrb.mxu0 %v270_v56  ;;  %937 = vmatpush.msrb.mxu1 %v287_v57  ;;  %v334_v56 = vld [vmem:[#allocation2 + $0x830] sm:$0xff]  ;;  %v351_v57 = vld [vmem:[#allocation2 + $0x8b8] sm:$0xff] }
  0x88   :  { %958 = vmatpush.msrb.mxu2 %v302_v58  ;;  %977 = vmatpush.msrb.mxu3 %v319_v59  ;;  %v366_v58 = vld [vmem:[#allocation2 + $0x930] sm:$0xff]  ;;  %v383_v59 = vld [vmem:[#allocation2 + $0x9b8] sm:$0xff] }
  0x89   :  { %919 = vmatpush.msrb.mxu0 %v269_v60  ;;  %938 = vmatpush.msrb.mxu1 %v286_v61  ;;  %v333_v60 = vld [vmem:[#allocation2 + $0x828] sm:$0xff]  ;;  %v350_v61 = vld [vmem:[#allocation2 + $0x8b0] sm:$0xff] }
  0x8a   :  { %959 = vmatpush.msrb.mxu2 %v301_v62  ;;  %978 = vmatpush.msrb.mxu3 %v318_v63  ;;  %v365_v62 = vld [vmem:[#allocation2 + $0x928] sm:$0xff]  ;;  %v382_v63 = vld [vmem:[#allocation2 + $0x9b0] sm:$0xff] }
  0x8b   :  { %920 = vmatpush.msrb.mxu0 %v268_v0  ;;  %939 = vmatpush.msrb.mxu1 %v285_v1  ;;  %v332_v0 = vld [vmem:[#allocation2 + $0x820] sm:$0xff]  ;;  %v349_v1 = vld [vmem:[#allocation2 + $0x8a8] sm:$0xff] }
  0x8c   :  { %960 = vmatpush.msrb.mxu2 %v300_v2  ;;  %979 = vmatpush.msrb.mxu3 %v317_v3  ;;  %v364_v2 = vld [vmem:[#allocation2 + $0x920] sm:$0xff]  ;;  %v381_v3 = vld [vmem:[#allocation2 + $0x9a8] sm:$0xff] }
  0x8d   :  { %921 = vmatpush.msrb.mxu0 %v267_v4  ;;  %940 = vmatpush.msrb.mxu1 %v284_v5  ;;  %v331_v4 = vld [vmem:[#allocation2 + $0x818] sm:$0xff]  ;;  %v348_v5 = vld [vmem:[#allocation2 + $0x8a0] sm:$0xff] }
  0x8e   :  { %961 = vmatpush.msrb.mxu2 %v299_v6  ;;  %980 = vmatpush.msrb.mxu3 %v316_v7  ;;  %v363_v6 = vld [vmem:[#allocation2 + $0x918] sm:$0xff]  ;;  %v380_v7 = vld [vmem:[#allocation2 + $0x9a0] sm:$0xff] }
  0x8f   :  { %922 = vmatpush.msrb.mxu0 %v266_v8  ;;  %941 = vmatpush.msrb.mxu1 %v283_v9  ;;  %v330_v8 = vld [vmem:[#allocation2 + $0x810] sm:$0xff]  ;;  %v347_v9 = vld [vmem:[#allocation2 + $0x898] sm:$0xff] }
  0x90   :  { %962 = vmatpush.msrb.mxu2 %v298_v10  ;;  %981 = vmatpush.msrb.mxu3 %v315_v11  ;;  %v362_v10 = vld [vmem:[#allocation2 + $0x910] sm:$0xff]  ;;  %v379_v11 = vld [vmem:[#allocation2 + $0x998] sm:$0xff] }
  0x91   :  { %923 = vmatpush.msrb.mxu0 %v265_v12  ;;  %942 = vmatpush.msrb.mxu1 %v282_v13  ;;  %v329_v12 = vld [vmem:[#allocation2 + $0x808] sm:$0xff]  ;;  %v346_v13 = vld [vmem:[#allocation2 + $0x890] sm:$0xff] }
  0x92   :  { %963 = vmatpush.msrb.mxu2 %v297_v14  ;;  %982 = vmatpush.msrb.mxu3 %v314_v15  ;;  %v361_v14 = vld [vmem:[#allocation2 + $0x908] sm:$0xff]  ;;  %v378_v15 = vld [vmem:[#allocation2 + $0x990] sm:$0xff] }
  0x93   :  { %924 = vmatpush.msrb.mxu0 %v264_v16  ;;  %943 = vmatpush.msrb.mxu1 %v281_v17  ;;  %v328_v16 = vld [vmem:[#allocation2 + $0x800] sm:$0xff]  ;;  %v345_v17 = vld [vmem:[#allocation2 + $0x888] sm:$0xff] }
  0x94   :  { %964 = vmatpush.msrb.mxu2 %v296_v18  ;;  %983 = vmatpush.msrb.mxu3 %v313_v19  ;;  %v360_v18 = vld [vmem:[#allocation2 + $0x900] sm:$0xff]  ;;  %v377_v19 = vld [vmem:[#allocation2 + $0x988] sm:$0xff] }
  0x95   :  { %925 = vmatmul.f32.vlgmr.msrb.gmra.mxu0 %v1570_v26  ;;  %965 = vmatmul.f32.vlgmr.msrb.gmra.mxu2 %v1572_v27  ;;  %v390_v26 = vld [vmem:[#allocation2 + $0x9f0] sm:$0xff]  ;;  %v340_v27 = vld [vmem:[#allocation2 + $0x860] sm:$0xff] }
  0x96   :  { %989 = vmatpush.msra.mxu0 %v343_v20  ;;  %1029 = vmatpush.msra.mxu2 %v375_v21  ;;  %v619_v20 = vld.sshfl [vmem:[#allocation1] sm:$0xff pattern:$0x73625140]  ;;  %v621_v21 = vld.sshfl [vmem:[#allocation1 + $0x10] sm:$0xff pattern:$0x73625140] }
  0x97   :  { %944 = vmatpush.msrb.mxu1 %v280_v22  ;;  %984 = vmatpush.msrb.mxu3 %v312_v23  ;;  %v407_v22 = vld [vmem:[#allocation2 + $0xa78] sm:$0xff] }
  0x98   :  { %945 = vmatmul.f32.vlgmr.msrb.gmra.mxu1 %v1574_v32  ;;  %985 = vmatmul.f32.vlgmr.msrb.gmra.mxu3 %v1579_v28  ;;  %v356_v32 = vld [vmem:[#allocation2 + $0x8e0] sm:$0xff]  ;;  %v371_v28 = vld [vmem:[#allocation2 + $0x958] sm:$0xff] }
  0x99   :  { %990 = vmatpush.msra.mxu0 %v342_v24  ;;  %1009 = vmatpush.msra.mxu1 %v359_v25  ;;  %v439_v23 = vld [vmem:[#allocation2 + $0xb78] sm:$0xff]  ;;  %v344_v24 = vld [vmem:[#allocation2 + $0x880] sm:$0xff] }
  0x9a   :  { %1030 = vmatpush.msra.mxu2 %v374_v29  ;;  %1049 = vmatpush.msra.mxu3 %v391_v30  ;;  %v376_v25 = vld [vmem:[#allocation2 + $0x980] sm:$0xff]  ;;  %v622_v30 = vld.sshfl [vmem:[#allocation1 + $0x18] sm:$0xff pattern:$0x73625140] }
  0x9b   :  { %991 = vmatpush.msra.mxu0 %v341_v33  ;;  %1010 = vmatpush.msra.mxu1 %v358_v34  ;;  %v620_v29 = vld.sshfl [vmem:[#allocation1 + $0x8] sm:$0xff pattern:$0x73625140]  ;;  %v406_v33 = vld [vmem:[#allocation2 + $0xa70] sm:$0xff]  ;;  %v423_v34 = vld [vmem:[#allocation2 + $0xaf8] sm:$0xff] }
  0x9c   :  { %1031 = vmatpush.msra.mxu2 %v373_v31  ;;  %1050 = vmatpush.msra.mxu3 %v390_v26  ;;  %v438_v31 = vld [vmem:[#allocation2 + $0xb70] sm:$0xff]  ;;  %v455_v26 = vld [vmem:[#allocation2 + $0xbf8] sm:$0xff] }
  0x9d   :  { %992 = vmatpush.msra.mxu0 %v340_v27  ;;  %1011 = vmatpush.msra.mxu1 %v357_v35  ;;  %v405_v27 = vld [vmem:[#allocation2 + $0xa68] sm:$0xff]  ;;  %v422_v35 = vld [vmem:[#allocation2 + $0xaf0] sm:$0xff] }
  0x9e   :  { %1032 = vmatpush.msra.mxu2 %v372_v36  ;;  %1051 = vmatpush.msra.mxu3 %v389_v37  ;;  %v437_v36 = vld [vmem:[#allocation2 + $0xb68] sm:$0xff]  ;;  %v454_v37 = vld [vmem:[#allocation2 + $0xbf0] sm:$0xff] }
  0x9f   :  { %993 = vmatpush.msra.mxu0 %v339_v38  ;;  %1012 = vmatpush.msra.mxu1 %v356_v32  ;;  %v404_v38 = vld [vmem:[#allocation2 + $0xa60] sm:$0xff]  ;;  %v421_v32 = vld [vmem:[#allocation2 + $0xae8] sm:$0xff] }
  0xa0   :  { %1033 = vmatpush.msra.mxu2 %v371_v28  ;;  %1052 = vmatpush.msra.mxu3 %v388_v39  ;;  %v436_v28 = vld [vmem:[#allocation2 + $0xb60] sm:$0xff]  ;;  %v453_v39 = vld [vmem:[#allocation2 + $0xbe8] sm:$0xff] }
  0xa1   :  { %994 = vmatpush.msra.mxu0 %v338_v40  ;;  %1013 = vmatpush.msra.mxu1 %v355_v41  ;;  %v403_v40 = vld [vmem:[#allocation2 + $0xa58] sm:$0xff]  ;;  %v420_v41 = vld [vmem:[#allocation2 + $0xae0] sm:$0xff] }
  0xa2   :  { %1034 = vmatpush.msra.mxu2 %v370_v42  ;;  %1053 = vmatpush.msra.mxu3 %v387_v43  ;;  %v435_v42 = vld [vmem:[#allocation2 + $0xb58] sm:$0xff]  ;;  %v452_v43 = vld [vmem:[#allocation2 + $0xbe0] sm:$0xff] }
  0xa3   :  { %995 = vmatpush.msra.mxu0 %v337_v44  ;;  %1014 = vmatpush.msra.mxu1 %v354_v45  ;;  %v402_v44 = vld [vmem:[#allocation2 + $0xa50] sm:$0xff]  ;;  %v419_v45 = vld [vmem:[#allocation2 + $0xad8] sm:$0xff] }
  0xa4   :  { %1035 = vmatpush.msra.mxu2 %v369_v46  ;;  %1054 = vmatpush.msra.mxu3 %v386_v47  ;;  %v434_v46 = vld [vmem:[#allocation2 + $0xb50] sm:$0xff]  ;;  %v451_v47 = vld [vmem:[#allocation2 + $0xbd8] sm:$0xff] }
  0xa5   :  { %996 = vmatpush.msra.mxu0 %v336_v48  ;;  %1015 = vmatpush.msra.mxu1 %v353_v49  ;;  %v401_v48 = vld [vmem:[#allocation2 + $0xa48] sm:$0xff]  ;;  %v418_v49 = vld [vmem:[#allocation2 + $0xad0] sm:$0xff] }
  0xa6   :  { %1036 = vmatpush.msra.mxu2 %v368_v50  ;;  %1055 = vmatpush.msra.mxu3 %v385_v51  ;;  %v433_v50 = vld [vmem:[#allocation2 + $0xb48] sm:$0xff]  ;;  %v450_v51 = vld [vmem:[#allocation2 + $0xbd0] sm:$0xff] }
  0xa7   :  { %997 = vmatpush.msra.mxu0 %v335_v52  ;;  %1016 = vmatpush.msra.mxu1 %v352_v53  ;;  %v400_v52 = vld [vmem:[#allocation2 + $0xa40] sm:$0xff]  ;;  %v417_v53 = vld [vmem:[#allocation2 + $0xac8] sm:$0xff] }
  0xa8   :  { %1037 = vmatpush.msra.mxu2 %v367_v54  ;;  %1056 = vmatpush.msra.mxu3 %v384_v55  ;;  %v432_v54 = vld [vmem:[#allocation2 + $0xb40] sm:$0xff]  ;;  %v449_v55 = vld [vmem:[#allocation2 + $0xbc8] sm:$0xff] }
  0xa9   :  { %998 = vmatpush.msra.mxu0 %v334_v56  ;;  %1017 = vmatpush.msra.mxu1 %v351_v57  ;;  %v399_v56 = vld [vmem:[#allocation2 + $0xa38] sm:$0xff]  ;;  %v416_v57 = vld [vmem:[#allocation2 + $0xac0] sm:$0xff] }
  0xaa   :  { %1038 = vmatpush.msra.mxu2 %v366_v58  ;;  %1057 = vmatpush.msra.mxu3 %v383_v59  ;;  %v431_v58 = vld [vmem:[#allocation2 + $0xb38] sm:$0xff]  ;;  %v448_v59 = vld [vmem:[#allocation2 + $0xbc0] sm:$0xff] }
  0xab   :  { %999 = vmatpush.msra.mxu0 %v333_v60  ;;  %1018 = vmatpush.msra.mxu1 %v350_v61  ;;  %v398_v60 = vld [vmem:[#allocation2 + $0xa30] sm:$0xff]  ;;  %v415_v61 = vld [vmem:[#allocation2 + $0xab8] sm:$0xff] }
  0xac   :  { %1039 = vmatpush.msra.mxu2 %v365_v62  ;;  %1058 = vmatpush.msra.mxu3 %v382_v63  ;;  %v430_v62 = vld [vmem:[#allocation2 + $0xb30] sm:$0xff]  ;;  %v447_v63 = vld [vmem:[#allocation2 + $0xbb8] sm:$0xff] }
  0xad   :  { %1000 = vmatpush.msra.mxu0 %v332_v0  ;;  %1019 = vmatpush.msra.mxu1 %v349_v1  ;;  %v397_v0 = vld [vmem:[#allocation2 + $0xa28] sm:$0xff]  ;;  %v414_v1 = vld [vmem:[#allocation2 + $0xab0] sm:$0xff] }
  0xae   :  { %1040 = vmatpush.msra.mxu2 %v364_v2  ;;  %1059 = vmatpush.msra.mxu3 %v381_v3  ;;  %v429_v2 = vld [vmem:[#allocation2 + $0xb28] sm:$0xff]  ;;  %v446_v3 = vld [vmem:[#allocation2 + $0xbb0] sm:$0xff] }
  0xaf   :  { %1001 = vmatpush.msra.mxu0 %v331_v4  ;;  %1020 = vmatpush.msra.mxu1 %v348_v5  ;;  %v396_v4 = vld [vmem:[#allocation2 + $0xa20] sm:$0xff]  ;;  %v413_v5 = vld [vmem:[#allocation2 + $0xaa8] sm:$0xff] }
  0xb0   :  { %1041 = vmatpush.msra.mxu2 %v363_v6  ;;  %1060 = vmatpush.msra.mxu3 %v380_v7  ;;  %v428_v6 = vld [vmem:[#allocation2 + $0xb20] sm:$0xff]  ;;  %v445_v7 = vld [vmem:[#allocation2 + $0xba8] sm:$0xff] }
  0xb1   :  { %1002 = vmatpush.msra.mxu0 %v330_v8  ;;  %1021 = vmatpush.msra.mxu1 %v347_v9  ;;  %v395_v8 = vld [vmem:[#allocation2 + $0xa18] sm:$0xff]  ;;  %v412_v9 = vld [vmem:[#allocation2 + $0xaa0] sm:$0xff] }
  0xb2   :  { %1042 = vmatpush.msra.mxu2 %v362_v10  ;;  %1061 = vmatpush.msra.mxu3 %v379_v11  ;;  %v427_v10 = vld [vmem:[#allocation2 + $0xb18] sm:$0xff]  ;;  %v444_v11 = vld [vmem:[#allocation2 + $0xba0] sm:$0xff] }
  0xb3   :  { %1003 = vmatpush.msra.mxu0 %v329_v12  ;;  %1022 = vmatpush.msra.mxu1 %v346_v13  ;;  %v394_v12 = vld [vmem:[#allocation2 + $0xa10] sm:$0xff]  ;;  %v411_v13 = vld [vmem:[#allocation2 + $0xa98] sm:$0xff] }
  0xb4   :  { %1043 = vmatpush.msra.mxu2 %v361_v14  ;;  %1062 = vmatpush.msra.mxu3 %v378_v15  ;;  %v426_v14 = vld [vmem:[#allocation2 + $0xb10] sm:$0xff]  ;;  %v443_v15 = vld [vmem:[#allocation2 + $0xb98] sm:$0xff] }
  0xb5   :  { %1004 = vmatpush.msra.mxu0 %v328_v16  ;;  %1023 = vmatpush.msra.mxu1 %v345_v17  ;;  %v393_v16 = vld [vmem:[#allocation2 + $0xa08] sm:$0xff]  ;;  %v410_v17 = vld [vmem:[#allocation2 + $0xa90] sm:$0xff] }
  0xb6   :  { %1044 = vmatpush.msra.mxu2 %v360_v18  ;;  %1063 = vmatpush.msra.mxu3 %v377_v19  ;;  %v70_v18 = vld [vmem:[%s1642_s0 + $0x30] sm:$0xff] }
  0xb7   :  { %1005 = vmatmul.f32.vlgmr.msra.gmra.mxu0 %v619_v20  ;;  %1045 = vmatmul.f32.vlgmr.msra.gmra.mxu2 %v621_v21  ;;  %v425_v19 = vld [vmem:[#allocation2 + $0xb08] sm:$0xff]  ;;  %v442_v20 = vld [vmem:[#allocation2 + $0xb90] sm:$0xff]  ;;  %627 = vst [vmem:[#allocation1] ss:$4 sm:$0xff] %v70_v18  ;;  %v392_v21 = vld [vmem:[#allocation2 + $0xa00] sm:$0xff] }
  0xb8   :  { %1069 = vmatpush.msrb.mxu0 %v407_v22  ;;  %1109 = vmatpush.msrb.mxu2 %v439_v23  ;;  %v409_v22 = vld [vmem:[#allocation2 + $0xa88] sm:$0xff]  ;;  %v424_v23 = vld [vmem:[#allocation2 + $0xb00] sm:$0xff]  ;;  %v475_v18 = vld [vmem:[#allocation2 + $0xc98] sm:$0xff] }
  0xb9   :  { %1024 = vmatpush.msra.mxu1 %v344_v24  ;;  %1064 = vmatpush.msra.mxu3 %v376_v25  ;;  %v441_v24 = vld [vmem:[#allocation2 + $0xb88] sm:$0xff]  ;;  %v623_v25 = vld.sshfl [vmem:[#allocation1 + $0x20] sm:$0xff pattern:$0x73625140] }
  0xba   :  { %1025 = vmatmul.f32.vlgmr.msra.gmra.mxu1 %v620_v29  ;;  %1065 = vmatmul.f32.vlgmr.msra.gmra.mxu3 %v622_v30  ;;  %v625_v29 = vld.sshfl [vmem:[#allocation1 + $0x30] sm:$0xff pattern:$0x73625140]  ;;  %v471_v30 = vld [vmem:[#allocation2 + $0xc78] sm:$0xff] }
  0xbb   :  { %1070 = vmatpush.msrb.mxu0 %v406_v33  ;;  %1089 = vmatpush.msrb.mxu1 %v423_v34  ;;  %v503_v33 = vld [vmem:[#allocation2 + $0xd78] sm:$0xff]  ;;  %v408_v34 = vld [vmem:[#allocation2 + $0xa80] sm:$0xff] }
  0xbc   :  { %1110 = vmatpush.msrb.mxu2 %v438_v31  ;;  %1129 = vmatpush.msrb.mxu3 %v455_v26  ;;  %v440_v31 = vld [vmem:[#allocation2 + $0xb80] sm:$0xff] }
  0xbd   :  { %1071 = vmatpush.msrb.mxu0 %v405_v27  ;;  %1090 = vmatpush.msrb.mxu1 %v422_v35  ;;  %v624_v26 = vld.sshfl [vmem:[#allocation1 + $0x28] sm:$0xff pattern:$0x73625140]  ;;  %v626_v27 = vld.sshfl [vmem:[#allocation1 + $0x38] sm:$0xff pattern:$0x73625140] }
  0xbe   :  { %1111 = vmatpush.msrb.mxu2 %v437_v36  ;;  %1130 = vmatpush.msrb.mxu3 %v454_v37  ;;  %v470_v35 = vld [vmem:[#allocation2 + $0xc70] sm:$0xff]  ;;  %v487_v36 = vld [vmem:[#allocation2 + $0xcf8] sm:$0xff] }
  0xbf   :  { %1072 = vmatpush.msrb.mxu0 %v404_v38  ;;  %1091 = vmatpush.msrb.mxu1 %v421_v32  ;;  %v502_v37 = vld [vmem:[#allocation2 + $0xd70] sm:$0xff]  ;;  %v519_v38 = vld [vmem:[#allocation2 + $0xdf8] sm:$0xff]  ;;  %v469_v32 = vld [vmem:[#allocation2 + $0xc68] sm:$0xff] }
  0xc0   :  { %1112 = vmatpush.msrb.mxu2 %v436_v28  ;;  %1131 = vmatpush.msrb.mxu3 %v453_v39  ;;  %v486_v28 = vld [vmem:[#allocation2 + $0xcf0] sm:$0xff]  ;;  %v501_v39 = vld [vmem:[#allocation2 + $0xd68] sm:$0xff] }
  0xc1   :  { %1073 = vmatpush.msrb.mxu0 %v403_v40  ;;  %1092 = vmatpush.msrb.mxu1 %v420_v41  ;;  %v518_v40 = vld [vmem:[#allocation2 + $0xdf0] sm:$0xff]  ;;  %v468_v41 = vld [vmem:[#allocation2 + $0xc60] sm:$0xff] }
  0xc2   :  { %1113 = vmatpush.msrb.mxu2 %v435_v42  ;;  %1132 = vmatpush.msrb.mxu3 %v452_v43  ;;  %v485_v42 = vld [vmem:[#allocation2 + $0xce8] sm:$0xff]  ;;  %v500_v43 = vld [vmem:[#allocation2 + $0xd60] sm:$0xff] }
  0xc3   :  { %1074 = vmatpush.msrb.mxu0 %v402_v44  ;;  %1093 = vmatpush.msrb.mxu1 %v419_v45  ;;  %v517_v44 = vld [vmem:[#allocation2 + $0xde8] sm:$0xff]  ;;  %v467_v45 = vld [vmem:[#allocation2 + $0xc58] sm:$0xff] }
  0xc4   :  { %1114 = vmatpush.msrb.mxu2 %v434_v46  ;;  %1133 = vmatpush.msrb.mxu3 %v451_v47  ;;  %v484_v46 = vld [vmem:[#allocation2 + $0xce0] sm:$0xff]  ;;  %v499_v47 = vld [vmem:[#allocation2 + $0xd58] sm:$0xff] }
  0xc5   :  { %1075 = vmatpush.msrb.mxu0 %v401_v48  ;;  %1094 = vmatpush.msrb.mxu1 %v418_v49  ;;  %v516_v48 = vld [vmem:[#allocation2 + $0xde0] sm:$0xff]  ;;  %v466_v49 = vld [vmem:[#allocation2 + $0xc50] sm:$0xff] }
  0xc6   :  { %1115 = vmatpush.msrb.mxu2 %v433_v50  ;;  %1134 = vmatpush.msrb.mxu3 %v450_v51  ;;  %v483_v50 = vld [vmem:[#allocation2 + $0xcd8] sm:$0xff]  ;;  %v498_v51 = vld [vmem:[#allocation2 + $0xd50] sm:$0xff] }
  0xc7   :  { %1076 = vmatpush.msrb.mxu0 %v400_v52  ;;  %1095 = vmatpush.msrb.mxu1 %v417_v53  ;;  %v515_v52 = vld [vmem:[#allocation2 + $0xdd8] sm:$0xff]  ;;  %v465_v53 = vld [vmem:[#allocation2 + $0xc48] sm:$0xff] }
  0xc8   :  { %1116 = vmatpush.msrb.mxu2 %v432_v54  ;;  %1135 = vmatpush.msrb.mxu3 %v449_v55  ;;  %v482_v54 = vld [vmem:[#allocation2 + $0xcd0] sm:$0xff]  ;;  %v497_v55 = vld [vmem:[#allocation2 + $0xd48] sm:$0xff] }
  0xc9   :  { %1077 = vmatpush.msrb.mxu0 %v399_v56  ;;  %1096 = vmatpush.msrb.mxu1 %v416_v57  ;;  %v514_v56 = vld [vmem:[#allocation2 + $0xdd0] sm:$0xff]  ;;  %v464_v57 = vld [vmem:[#allocation2 + $0xc40] sm:$0xff] }
  0xca   :  { %1117 = vmatpush.msrb.mxu2 %v431_v58  ;;  %1136 = vmatpush.msrb.mxu3 %v448_v59  ;;  %v481_v58 = vld [vmem:[#allocation2 + $0xcc8] sm:$0xff]  ;;  %v496_v59 = vld [vmem:[#allocation2 + $0xd40] sm:$0xff] }
  0xcb   :  { %1078 = vmatpush.msrb.mxu0 %v398_v60  ;;  %1097 = vmatpush.msrb.mxu1 %v415_v61  ;;  %v513_v60 = vld [vmem:[#allocation2 + $0xdc8] sm:$0xff]  ;;  %v463_v61 = vld [vmem:[#allocation2 + $0xc38] sm:$0xff] }
  0xcc   :  { %1118 = vmatpush.msrb.mxu2 %v430_v62  ;;  %1137 = vmatpush.msrb.mxu3 %v447_v63  ;;  %v480_v62 = vld [vmem:[#allocation2 + $0xcc0] sm:$0xff]  ;;  %v495_v63 = vld [vmem:[#allocation2 + $0xd38] sm:$0xff] }
  0xcd   :  { %1079 = vmatpush.msrb.mxu0 %v397_v0  ;;  %1098 = vmatpush.msrb.mxu1 %v414_v1  ;;  %v512_v0 = vld [vmem:[#allocation2 + $0xdc0] sm:$0xff]  ;;  %v462_v1 = vld [vmem:[#allocation2 + $0xc30] sm:$0xff] }
  0xce   :  { %1119 = vmatpush.msrb.mxu2 %v429_v2  ;;  %1138 = vmatpush.msrb.mxu3 %v446_v3  ;;  %v479_v2 = vld [vmem:[#allocation2 + $0xcb8] sm:$0xff]  ;;  %v494_v3 = vld [vmem:[#allocation2 + $0xd30] sm:$0xff] }
  0xcf   :  { %1080 = vmatpush.msrb.mxu0 %v396_v4  ;;  %1099 = vmatpush.msrb.mxu1 %v413_v5  ;;  %v511_v4 = vld [vmem:[#allocation2 + $0xdb8] sm:$0xff]  ;;  %v461_v5 = vld [vmem:[#allocation2 + $0xc28] sm:$0xff] }
  0xd0   :  { %1120 = vmatpush.msrb.mxu2 %v428_v6  ;;  %1139 = vmatpush.msrb.mxu3 %v445_v7  ;;  %v478_v6 = vld [vmem:[#allocation2 + $0xcb0] sm:$0xff]  ;;  %v493_v7 = vld [vmem:[#allocation2 + $0xd28] sm:$0xff] }
  0xd1   :  { %1081 = vmatpush.msrb.mxu0 %v395_v8  ;;  %1100 = vmatpush.msrb.mxu1 %v412_v9  ;;  %v510_v8 = vld [vmem:[#allocation2 + $0xdb0] sm:$0xff]  ;;  %v460_v9 = vld [vmem:[#allocation2 + $0xc20] sm:$0xff] }
  0xd2   :  { %1121 = vmatpush.msrb.mxu2 %v427_v10  ;;  %1140 = vmatpush.msrb.mxu3 %v444_v11  ;;  %v477_v10 = vld [vmem:[#allocation2 + $0xca8] sm:$0xff]  ;;  %v492_v11 = vld [vmem:[#allocation2 + $0xd20] sm:$0xff] }
  0xd3   :  { %1082 = vmatpush.msrb.mxu0 %v394_v12  ;;  %1101 = vmatpush.msrb.mxu1 %v411_v13  ;;  %v509_v12 = vld [vmem:[#allocation2 + $0xda8] sm:$0xff]  ;;  %v459_v13 = vld [vmem:[#allocation2 + $0xc18] sm:$0xff] }
  0xd4   :  { %1122 = vmatpush.msrb.mxu2 %v426_v14  ;;  %1141 = vmatpush.msrb.mxu3 %v443_v15  ;;  %v476_v14 = vld [vmem:[#allocation2 + $0xca0] sm:$0xff]  ;;  %v491_v15 = vld [vmem:[#allocation2 + $0xd18] sm:$0xff] }
  0xd5   :  { %1083 = vmatpush.msrb.mxu0 %v393_v16  ;;  %1102 = vmatpush.msrb.mxu1 %v410_v17  ;;  %v508_v16 = vld [vmem:[#allocation2 + $0xda0] sm:$0xff]  ;;  %v458_v17 = vld [vmem:[#allocation2 + $0xc10] sm:$0xff] }
  0xd6   :  { %1123 = vmatpush.msrb.mxu2 %v425_v19  ;;  %1142 = vmatpush.msrb.mxu3 %v442_v20  ;;  %v490_v19 = vld [vmem:[#allocation2 + $0xd10] sm:$0xff]  ;;  %v507_v20 = vld [vmem:[#allocation2 + $0xd98] sm:$0xff] }
  0xd7   :  { %1084 = vmatpush.msrb.mxu0 %v392_v21  ;;  %1103 = vmatpush.msrb.mxu1 %v409_v22  ;;  %v457_v21 = vld [vmem:[#allocation2 + $0xc08] sm:$0xff]  ;;  %v474_v22 = vld [vmem:[#allocation2 + $0xc90] sm:$0xff] }
  0xd8   :  { %1124 = vmatpush.msrb.mxu2 %v424_v23  ;;  %1143 = vmatpush.msrb.mxu3 %v441_v24  ;;  %v71_v23 = vld [vmem:[%s1642_s0 + $0x38] sm:$0xff]  ;;  %v489_v24 = vld [vmem:[#allocation2 + $0xd08] sm:$0xff] }
  0xd9   :  { %1085 = vmatmul.f32.vlgmr.msrb.gmra.mxu0 %v623_v25  ;;  %1125 = vmatmul.f32.vlgmr.msrb.gmra.mxu2 %v625_v29  ;;  %v506_v25 = vld [vmem:[#allocation2 + $0xd90] sm:$0xff]  ;;  %628 = vst [vmem:[#allocation1 + $0x20] ss:$4 sm:$0xff] %v71_v23  ;;  %v456_v29 = vld [vmem:[#allocation2 + $0xc00] sm:$0xff]  ;;  %v539_v23 = vld [vmem:[#allocation2 + $0xe98] sm:$0xff] }
  0xda   :  { %1149 = vmatpush.msra.mxu0 %v471_v30  ;;  %1189 = vmatpush.msra.mxu2 %v503_v33  ;;  %v473_v30 = vld [vmem:[#allocation2 + $0xc88] sm:$0xff]  ;;  %v488_v33 = vld [vmem:[#allocation2 + $0xd00] sm:$0xff] }
  0xdb   :  { %1104 = vmatpush.msrb.mxu1 %v408_v34  ;;  %1144 = vmatpush.msrb.mxu3 %v440_v31  ;;  %v505_v34 = vld [vmem:[#allocation2 + $0xd88] sm:$0xff]  ;;  %v629_v31 = vld.sshfl [vmem:[#allocation1] sm:$0xff pattern:$0x73625140] }
  0xdc   :  { %1105 = vmatmul.f32.vlgmr.msrb.gmra.mxu1 %v624_v26  ;;  %1145 = vmatmul.f32.vlgmr.msrb.gmra.mxu3 %v626_v27  ;;  %v631_v26 = vld.sshfl [vmem:[#allocation1 + $0x10] sm:$0xff pattern:$0x73625140]  ;;  %v535_v27 = vld [vmem:[#allocation2 + $0xe78] sm:$0xff] }
  0xdd   :  { %1150 = vmatpush.msra.mxu0 %v470_v35  ;;  %1169 = vmatpush.msra.mxu1 %v487_v36  ;;  %v567_v35 = vld [vmem:[#allocation2 + $0xf78] sm:$0xff]  ;;  %v472_v36 = vld [vmem:[#allocation2 + $0xc80] sm:$0xff] }
  0xde   :  { %1190 = vmatpush.msra.mxu2 %v502_v37  ;;  %1209 = vmatpush.msra.mxu3 %v519_v38  ;;  %v504_v37 = vld [vmem:[#allocation2 + $0xd80] sm:$0xff] }
  0xdf   :  { %1151 = vmatpush.msra.mxu0 %v469_v32  ;;  %1170 = vmatpush.msra.mxu1 %v486_v28  ;;  %v630_v38 = vld.sshfl [vmem:[#allocation1 + $0x8] sm:$0xff pattern:$0x73625140]  ;;  %v632_v32 = vld.sshfl [vmem:[#allocation1 + $0x18] sm:$0xff pattern:$0x73625140] }
  0xe0   :  { %1191 = vmatpush.msra.mxu2 %v501_v39  ;;  %1210 = vmatpush.msra.mxu3 %v518_v40  ;;  %v534_v28 = vld [vmem:[#allocation2 + $0xe70] sm:$0xff]  ;;  %v551_v39 = vld [vmem:[#allocation2 + $0xef8] sm:$0xff] }
  0xe1   :  { %1152 = vmatpush.msra.mxu0 %v468_v41  ;;  %1171 = vmatpush.msra.mxu1 %v485_v42  ;;  %v566_v40 = vld [vmem:[#allocation2 + $0xf70] sm:$0xff]  ;;  %v583_v41 = vld [vmem:[#allocation2 + $0xff8] sm:$0xff]  ;;  %v533_v42 = vld [vmem:[#allocation2 + $0xe68] sm:$0xff] }
  0xe2   :  { %1192 = vmatpush.msra.mxu2 %v500_v43  ;;  %1211 = vmatpush.msra.mxu3 %v517_v44  ;;  %v550_v43 = vld [vmem:[#allocation2 + $0xef0] sm:$0xff]  ;;  %v565_v44 = vld [vmem:[#allocation2 + $0xf68] sm:$0xff] }
  0xe3   :  { %1153 = vmatpush.msra.mxu0 %v467_v45  ;;  %1172 = vmatpush.msra.mxu1 %v484_v46  ;;  %v582_v45 = vld [vmem:[#allocation2 + $0xff0] sm:$0xff]  ;;  %v532_v46 = vld [vmem:[#allocation2 + $0xe60] sm:$0xff] }
  0xe4   :  { %1193 = vmatpush.msra.mxu2 %v499_v47  ;;  %1212 = vmatpush.msra.mxu3 %v516_v48  ;;  %v549_v47 = vld [vmem:[#allocation2 + $0xee8] sm:$0xff]  ;;  %v564_v48 = vld [vmem:[#allocation2 + $0xf60] sm:$0xff] }
  0xe5   :  { %1154 = vmatpush.msra.mxu0 %v466_v49  ;;  %1173 = vmatpush.msra.mxu1 %v483_v50  ;;  %v581_v49 = vld [vmem:[#allocation2 + $0xfe8] sm:$0xff]  ;;  %v531_v50 = vld [vmem:[#allocation2 + $0xe58] sm:$0xff] }
  0xe6   :  { %1194 = vmatpush.msra.mxu2 %v498_v51  ;;  %1213 = vmatpush.msra.mxu3 %v515_v52  ;;  %v548_v51 = vld [vmem:[#allocation2 + $0xee0] sm:$0xff]  ;;  %v563_v52 = vld [vmem:[#allocation2 + $0xf58] sm:$0xff] }
  0xe7   :  { %1155 = vmatpush.msra.mxu0 %v465_v53  ;;  %1174 = vmatpush.msra.mxu1 %v482_v54  ;;  %v580_v53 = vld [vmem:[#allocation2 + $0xfe0] sm:$0xff]  ;;  %v530_v54 = vld [vmem:[#allocation2 + $0xe50] sm:$0xff] }
  0xe8   :  { %1195 = vmatpush.msra.mxu2 %v497_v55  ;;  %1214 = vmatpush.msra.mxu3 %v514_v56  ;;  %v547_v55 = vld [vmem:[#allocation2 + $0xed8] sm:$0xff]  ;;  %v562_v56 = vld [vmem:[#allocation2 + $0xf50] sm:$0xff] }
  0xe9   :  { %1156 = vmatpush.msra.mxu0 %v464_v57  ;;  %1175 = vmatpush.msra.mxu1 %v481_v58  ;;  %v579_v57 = vld [vmem:[#allocation2 + $0xfd8] sm:$0xff]  ;;  %v529_v58 = vld [vmem:[#allocation2 + $0xe48] sm:$0xff] }
  0xea   :  { %1196 = vmatpush.msra.mxu2 %v496_v59  ;;  %1215 = vmatpush.msra.mxu3 %v513_v60  ;;  %v546_v59 = vld [vmem:[#allocation2 + $0xed0] sm:$0xff]  ;;  %v561_v60 = vld [vmem:[#allocation2 + $0xf48] sm:$0xff] }
  0xeb   :  { %1157 = vmatpush.msra.mxu0 %v463_v61  ;;  %1176 = vmatpush.msra.mxu1 %v480_v62  ;;  %v578_v61 = vld [vmem:[#allocation2 + $0xfd0] sm:$0xff]  ;;  %v528_v62 = vld [vmem:[#allocation2 + $0xe40] sm:$0xff] }
  0xec   :  { %1197 = vmatpush.msra.mxu2 %v495_v63  ;;  %1216 = vmatpush.msra.mxu3 %v512_v0  ;;  %v545_v63 = vld [vmem:[#allocation2 + $0xec8] sm:$0xff]  ;;  %v560_v0 = vld [vmem:[#allocation2 + $0xf40] sm:$0xff] }
  0xed   :  { %1158 = vmatpush.msra.mxu0 %v462_v1  ;;  %1177 = vmatpush.msra.mxu1 %v479_v2  ;;  %v577_v1 = vld [vmem:[#allocation2 + $0xfc8] sm:$0xff]  ;;  %v527_v2 = vld [vmem:[#allocation2 + $0xe38] sm:$0xff] }
  0xee   :  { %1198 = vmatpush.msra.mxu2 %v494_v3  ;;  %1217 = vmatpush.msra.mxu3 %v511_v4  ;;  %v544_v3 = vld [vmem:[#allocation2 + $0xec0] sm:$0xff]  ;;  %v559_v4 = vld [vmem:[#allocation2 + $0xf38] sm:$0xff] }
  0xef   :  { %1159 = vmatpush.msra.mxu0 %v461_v5  ;;  %1178 = vmatpush.msra.mxu1 %v478_v6  ;;  %v576_v5 = vld [vmem:[#allocation2 + $0xfc0] sm:$0xff]  ;;  %v526_v6 = vld [vmem:[#allocation2 + $0xe30] sm:$0xff] }
  0xf0   :  { %1199 = vmatpush.msra.mxu2 %v493_v7  ;;  %1218 = vmatpush.msra.mxu3 %v510_v8  ;;  %v543_v7 = vld [vmem:[#allocation2 + $0xeb8] sm:$0xff]  ;;  %v558_v8 = vld [vmem:[#allocation2 + $0xf30] sm:$0xff] }
  0xf1   :  { %1160 = vmatpush.msra.mxu0 %v460_v9  ;;  %1179 = vmatpush.msra.mxu1 %v477_v10  ;;  %v575_v9 = vld [vmem:[#allocation2 + $0xfb8] sm:$0xff]  ;;  %v525_v10 = vld [vmem:[#allocation2 + $0xe28] sm:$0xff] }
  0xf2   :  { %1200 = vmatpush.msra.mxu2 %v492_v11  ;;  %1219 = vmatpush.msra.mxu3 %v509_v12  ;;  %v542_v11 = vld [vmem:[#allocation2 + $0xeb0] sm:$0xff]  ;;  %v557_v12 = vld [vmem:[#allocation2 + $0xf28] sm:$0xff] }
  0xf3   :  { %1161 = vmatpush.msra.mxu0 %v459_v13  ;;  %1180 = vmatpush.msra.mxu1 %v476_v14  ;;  %v574_v13 = vld [vmem:[#allocation2 + $0xfb0] sm:$0xff]  ;;  %v524_v14 = vld [vmem:[#allocation2 + $0xe20] sm:$0xff] }
  0xf4   :  { %1201 = vmatpush.msra.mxu2 %v491_v15  ;;  %1220 = vmatpush.msra.mxu3 %v508_v16  ;;  %v541_v15 = vld [vmem:[#allocation2 + $0xea8] sm:$0xff]  ;;  %v556_v16 = vld [vmem:[#allocation2 + $0xf20] sm:$0xff] }
  0xf5   :  { %1162 = vmatpush.msra.mxu0 %v458_v17  ;;  %1181 = vmatpush.msra.mxu1 %v475_v18  ;;  %v573_v17 = vld [vmem:[#allocation2 + $0xfa8] sm:$0xff]  ;;  %v523_v18 = vld [vmem:[#allocation2 + $0xe18] sm:$0xff] }
  0xf6   :  { %1202 = vmatpush.msra.mxu2 %v490_v19  ;;  %1221 = vmatpush.msra.mxu3 %v507_v20  ;;  %v540_v19 = vld [vmem:[#allocation2 + $0xea0] sm:$0xff]  ;;  %v555_v20 = vld [vmem:[#allocation2 + $0xf18] sm:$0xff] }
  0xf7   :  { %1163 = vmatpush.msra.mxu0 %v457_v21  ;;  %1182 = vmatpush.msra.mxu1 %v474_v22  ;;  %v572_v21 = vld [vmem:[#allocation2 + $0xfa0] sm:$0xff]  ;;  %v522_v22 = vld [vmem:[#allocation2 + $0xe10] sm:$0xff] }
  0xf8   :  { %1203 = vmatpush.msra.mxu2 %v489_v24  ;;  %1222 = vmatpush.msra.mxu3 %v506_v25  ;;  %v554_v24 = vld [vmem:[#allocation2 + $0xf10] sm:$0xff]  ;;  %v571_v25 = vld [vmem:[#allocation2 + $0xf98] sm:$0xff] }
  0xf9   :  { %1164 = vmatpush.msra.mxu0 %v456_v29  ;;  %1183 = vmatpush.msra.mxu1 %v473_v30  ;;  %v521_v29 = vld [vmem:[#allocation2 + $0xe08] sm:$0xff]  ;;  %v538_v30 = vld [vmem:[#allocation2 + $0xe90] sm:$0xff] }
  0xfa   :  { %1204 = vmatpush.msra.mxu2 %v488_v33  ;;  %1223 = vmatpush.msra.mxu3 %v505_v34  ;;  %v553_v33 = vld [vmem:[#allocation2 + $0xf08] sm:$0xff]  ;;  %v570_v34 = vld [vmem:[#allocation2 + $0xf90] sm:$0xff] }
  0xfb   :  { %1165 = vmatmul.f32.vlgmr.msra.gmra.mxu0 %v629_v31  ;;  %1205 = vmatmul.f32.vlgmr.msra.gmra.mxu2 %v631_v26  ;;  %v520_v31 = vld [vmem:[#allocation2 + $0xe00] sm:$0xff]  ;;  %v537_v26 = vld [vmem:[#allocation2 + $0xe88] sm:$0xff] }
  0xfc   :  { %1229 = vmatpush.msrb.mxu0 %v535_v27  ;;  %1269 = vmatpush.msrb.mxu2 %v567_v35  ;;  %v552_v27 = vld [vmem:[#allocation2 + $0xf00] sm:$0xff]  ;;  %v569_v35 = vld [vmem:[#allocation2 + $0xf88] sm:$0xff] }
  0xfd   :  { %1184 = vmatpush.msra.mxu1 %v472_v36  ;;  %1224 = vmatpush.msra.mxu3 %v504_v37  ;;  %v633_v36 = vld.sshfl [vmem:[#allocation1 + $0x20] sm:$0xff pattern:$0x73625140]  ;;  %v635_v37 = vld.sshfl [vmem:[#allocation1 + $0x30] sm:$0xff pattern:$0x73625140] }
  0xfe   :  { %1185 = vmatmul.f32.vlgmr.msra.gmra.mxu1 %v630_v38  ;;  %1225 = vmatmul.f32.vlgmr.msra.gmra.mxu3 %v632_v32  ;;  %v536_v38 = vld [vmem:[#allocation2 + $0xe80] sm:$0xff] }
  0xff   :  { %1230 = vmatpush.msrb.mxu0 %v534_v28  ;;  %1249 = vmatpush.msrb.mxu1 %v551_v39  ;;  %v568_v32 = vld [vmem:[#allocation2 + $0xf80] sm:$0xff]  ;;  %v636_v39 = vld.sshfl [vmem:[#allocation1 + $0x38] sm:$0xff pattern:$0x73625140] }
 0x100   :  { %1270 = vmatpush.msrb.mxu2 %v566_v40  ;;  %1289 = vmatpush.msrb.mxu3 %v583_v41  ;;  %v634_v28 = vld.sshfl [vmem:[#allocation1 + $0x28] sm:$0xff pattern:$0x73625140]  ;;  %v686_v41 = vpop.f32.mrf.mxu0 }
 0x101   :  { %1231 = vmatpush.msrb.mxu0 %v533_v42  ;;  %1250 = vmatpush.msrb.mxu1 %v550_v43  ;;  %v1376_v40 = vld [vmem:[#allocation5] ss:$0 sm:$0xff]  ;;  %v706_v43 = vpop.f32.mrf.mxu1 }
 0x102   :  { %1271 = vmatpush.msrb.mxu2 %v565_v44  ;;  %1290 = vmatpush.msrb.mxu3 %v582_v45  ;;  %v687_v42 = vadd.f32 %v1376_v40, %v686_v41  ;;  %v726_v45 = vpop.f32.mrf.mxu2 }
 0x103   :  { %1232 = vmatpush.msrb.mxu0 %v532_v46  ;;  %1251 = vmatpush.msrb.mxu1 %v549_v47  ;;  %v746_v47 = vpop.f32.mrf.mxu3 }
 0x104   :  { %1272 = vmatpush.msrb.mxu2 %v564_v48  ;;  %1291 = vmatpush.msrb.mxu3 %v581_v49  ;;  %v707_v44 = vadd.f32 %v706_v43, %v687_v42 }
 0x105   :  { %1233 = vmatpush.msrb.mxu0 %v531_v50  ;;  %1252 = vmatpush.msrb.mxu1 %v548_v51 }
 0x106   :  { %1273 = vmatpush.msrb.mxu2 %v563_v52  ;;  %1292 = vmatpush.msrb.mxu3 %v580_v53  ;;  %v727_v46 = vadd.f32 %v726_v45, %v707_v44 }
 0x107   :  { %1234 = vmatpush.msrb.mxu0 %v530_v54  ;;  %1253 = vmatpush.msrb.mxu1 %v547_v55 }
 0x108   :  { %1274 = vmatpush.msrb.mxu2 %v562_v56  ;;  %1293 = vmatpush.msrb.mxu3 %v579_v57  ;;  %v747_v48 = vadd.f32 %v746_v47, %v727_v46  ;;  %v766_v49 = vpop.f32.mrf.mxu0 }
 0x109   :  { %1235 = vmatpush.msrb.mxu0 %v529_v58  ;;  %1254 = vmatpush.msrb.mxu1 %v546_v59  ;;  %v786_v51 = vpop.f32.mrf.mxu1 }
 0x10a   :  { %1275 = vmatpush.msrb.mxu2 %v561_v60  ;;  %1294 = vmatpush.msrb.mxu3 %v578_v61  ;;  %v767_v50 = vadd.f32 %v766_v49, %v747_v48  ;;  %v806_v53 = vpop.f32.mrf.mxu2  ;;  %v1325_v61 = vld [vmem:[%s1645_s3 + $0x78] sm:$0xff] }
 0x10b   :  { %1236 = vmatpush.msrb.mxu0 %v528_v62  ;;  %1255 = vmatpush.msrb.mxu1 %v545_v63  ;;  %v826_v55 = vpop.f32.mrf.mxu3  ;;  %v1324_v62 = vld [vmem:[%s1645_s3 + $0x70] sm:$0xff] }
 0x10c   :  { %1276 = vmatpush.msrb.mxu2 %v560_v0  ;;  %1295 = vmatpush.msrb.mxu3 %v577_v1  ;;  %v787_v52 = vadd.f32 %v786_v51, %v767_v50  ;;  %v1323_v0 = vld [vmem:[%s1645_s3 + $0x68] sm:$0xff] }
 0x10d   :  { %1237 = vmatpush.msrb.mxu0 %v527_v2  ;;  %1256 = vmatpush.msrb.mxu1 %v544_v3  ;;  %v1322_v3 = vld [vmem:[%s1645_s3 + $0x60] sm:$0xff] }
 0x10e   :  { %1277 = vmatpush.msrb.mxu2 %v559_v4  ;;  %1296 = vmatpush.msrb.mxu3 %v576_v5  ;;  %v807_v54 = vadd.f32 %v806_v53, %v787_v52  ;;  %v1321_v5 = vld [vmem:[%s1645_s3 + $0x58] sm:$0xff] }
 0x10f   :  { %1238 = vmatpush.msrb.mxu0 %v526_v6  ;;  %1257 = vmatpush.msrb.mxu1 %v543_v7  ;;  %v1320_v7 = vld [vmem:[%s1645_s3 + $0x50] sm:$0xff] }
 0x110   :  { %1278 = vmatpush.msrb.mxu2 %v558_v8  ;;  %1297 = vmatpush.msrb.mxu3 %v575_v9  ;;  %v846_v56 = vpop.f32.mrf.mxu0  ;;  %v827_v57 = vadd.f32 %v826_v55, %v807_v54 }
 0x111   :  { %1239 = vmatpush.msrb.mxu0 %v525_v10  ;;  %1258 = vmatpush.msrb.mxu1 %v542_v11  ;;  %v866_v59 = vpop.f32.mrf.mxu1  ;;  %v1319_v10 = vld [vmem:[%s1645_s3 + $0x48] sm:$0xff] }
 0x112   :  { %1279 = vmatpush.msrb.mxu2 %v557_v12  ;;  %1298 = vmatpush.msrb.mxu3 %v574_v13  ;;  %v847_v58 = vadd.f32 %v846_v56, %v827_v57  ;;  %v886_v60 = vpop.f32.mrf.mxu2  ;;  %v1318_v12 = vld [vmem:[%s1645_s3 + $0x40] sm:$0xff] }
 0x113   :  { %1240 = vmatpush.msrb.mxu0 %v524_v14  ;;  %1259 = vmatpush.msrb.mxu1 %v541_v15  ;;  %v906_v2 = vpop.f32.mrf.mxu3  ;;  %v1317_v14 = vld [vmem:[%s1645_s3 + $0x38] sm:$0xff] }
 0x114   :  { %1280 = vmatpush.msrb.mxu2 %v556_v16  ;;  %1299 = vmatpush.msrb.mxu3 %v573_v17  ;;  %v867_v63 = vadd.f32 %v866_v59, %v847_v58  ;;  %v1377_v58 = vld [vmem:[#allocation7] ss:$0 sm:$0xff] }
 0x115   :  { %1241 = vmatpush.msrb.mxu0 %v523_v18  ;;  %1260 = vmatpush.msrb.mxu1 %v540_v19 }
 0x116   :  { %1281 = vmatpush.msrb.mxu2 %v555_v20  ;;  %1300 = vmatpush.msrb.mxu3 %v572_v21  ;;  %v887_v1 = vadd.f32 %v886_v60, %v867_v63  ;;  %v1316_v21 = vld [vmem:[%s1645_s3 + $0x30] sm:$0xff] }
 0x117   :  { %1242 = vmatpush.msrb.mxu0 %v522_v22  ;;  %1261 = vmatpush.msrb.mxu1 %v539_v23 }
 0x118   :  { %1282 = vmatpush.msrb.mxu2 %v554_v24  ;;  %1301 = vmatpush.msrb.mxu3 %v571_v25  ;;  %v926_v4 = vpop.f32.mrf.mxu0  ;;  %v907_v6 = vadd.f32 %v906_v2, %v887_v1  ;;  %v1315_v24 = vld [vmem:[%s1645_s3 + $0x28] sm:$0xff] }
 0x119   :  { %1243 = vmatpush.msrb.mxu0 %v521_v29  ;;  %1262 = vmatpush.msrb.mxu1 %v538_v30  ;;  %v946_v9 = vpop.f32.mrf.mxu1  ;;  %v1314_v29 = vld [vmem:[%s1645_s3 + $0x20] sm:$0xff] }
 0x11a   :  { %1283 = vmatpush.msrb.mxu2 %v553_v33  ;;  %1302 = vmatpush.msrb.mxu3 %v570_v34  ;;  %v927_v8 = vadd.f32 %v926_v4, %v907_v6  ;;  %v966_v11 = vpop.f32.mrf.mxu2  ;;  %v1313_v33 = vld [vmem:[%s1645_s3 + $0x18] sm:$0xff] }
 0x11b   :  { %1244 = vmatpush.msrb.mxu0 %v520_v31  ;;  %1263 = vmatpush.msrb.mxu1 %v537_v26  ;;  %v986_v16 = vpop.f32.mrf.mxu3  ;;  %v1312_v26 = vld [vmem:[%s1645_s3 + $0x10] sm:$0xff] }
 0x11c   :  { %1284 = vmatpush.msrb.mxu2 %v552_v27  ;;  %1303 = vmatpush.msrb.mxu3 %v569_v35  ;;  %v947_v13 = vadd.f32 %v946_v9, %v927_v8  ;;  %v1311_v35 = vld [vmem:[%s1645_s3 + $0x8] sm:$0xff] }
 0x11d   :  { %1245 = vmatmul.f32.vlgmr.msrb.gmra.mxu0 %v633_v36  ;;  %1285 = vmatmul.f32.vlgmr.msrb.gmra.mxu2 %v635_v37  ;;  %v1310_v37 = vld [vmem:[%s1645_s3] sm:$0xff]  ;;  %s1485_s3 = smov [#allocation8]  }
 0x11e   :  { %1264 = vmatpush.msrb.mxu1 %v536_v38  ;;  %1304 = vmatpush.msrb.mxu3 %v568_v32  ;;  %v967_v15 = vadd.f32 %v966_v11, %v947_v13  ;;  %s1357_s25 = sshll.u32 %s1485_s3, 4  ;;  %s1358_s25 = int_to_ptr.vmem [resolvable:$true] %s1357_s25 }
 0x11f   :  { %1265 = vmatmul.f32.vlgmr.msrb.gmra.mxu1 %v634_v28  ;;  %1305 = vmatmul.f32.vlgmr.msrb.gmra.mxu3 %v636_v39 }
 0x120   :  { %1330 = vmatpush.msra.mxu0 %v1325_v61  ;;  %v987_v18 = vadd.f32 %v986_v16, %v967_v15 }
 0x122   :  { %1331 = vmatpush.msra.mxu0 %v1324_v62 }
 0x124   :  { %1332 = vmatpush.msra.mxu0 %v1323_v0 }
 0x126   :  { %1333 = vmatpush.msra.mxu0 %v1322_v3 }
 0x128   :  { %1334 = vmatpush.msra.mxu0 %v1321_v5 }
 0x12a   :  { %1335 = vmatpush.msra.mxu0 %v1320_v7 }
 0x12c   :  { %1336 = vmatpush.msra.mxu0 %v1319_v10 }
 0x12e   :  { %1337 = vmatpush.msra.mxu0 %v1318_v12 }
 0x130   :  { %1338 = vmatpush.msra.mxu0 %v1317_v14 }
 0x132   :  { %1339 = vmatpush.msra.mxu0 %v1316_v21 }
 0x134   :  { %v1006_v17 = vpop.f32.mrf.mxu0  ;;  %1340 = vmatpush.msra.mxu0 %v1315_v24 }
 0x135   :  { %v1007_v19 = vadd.f32 %v1006_v17, %v987_v18 }
 0x136   :  { %1341 = vmatpush.msra.mxu0 %v1314_v29 }
 0x137   :  { %v1026_v20 = vpop.f32.mrf.mxu1 }
 0x138   :  { %v1027_v23 = vadd.f32 %v1026_v20, %v1007_v19  ;;  %1342 = vmatpush.msra.mxu0 %v1313_v33 }
 0x13a   :  { %v1046_v22 = vpop.f32.mrf.mxu2  ;;  %1343 = vmatpush.msra.mxu0 %v1312_v26 }
 0x13b   :  { %v1047_v25 = vadd.f32 %v1046_v22, %v1027_v23 }
 0x13c   :  { %1344 = vmatpush.msra.mxu0 %v1311_v35 }
 0x13d   :  { %v1066_v30 = vpop.f32.mrf.mxu3 }
 0x13e   :  { %v1067_v31 = vadd.f32 %v1066_v30, %v1047_v25  ;;  %1345 = vmatpush.msra.mxu0 %v1310_v37 }
 0x156   :  { %v1086_v34 = vpop.f32.mrf.mxu0 }
 0x157   :  { %v1087_v27 = vadd.f32 %v1086_v34, %v1067_v31 }
 0x159   :  { %v1106_v36 = vpop.f32.mrf.mxu1 }
 0x15a   :  { %v1107_v32 = vadd.f32 %v1106_v36, %v1087_v27 }
 0x15c   :  { %v1126_v38 = vpop.f32.mrf.mxu2 }
 0x15d   :  { %v1127_v28 = vadd.f32 %v1126_v38, %v1107_v32 }
 0x15f   :  { %v1146_v39 = vpop.f32.mrf.mxu3 }
 0x160   :  { %v1147_v41 = vadd.f32 %v1146_v39, %v1127_v28 }
 0x178   :  { %v1166_v40 = vpop.f32.mrf.mxu0 }
 0x179   :  { %v1167_v42 = vadd.f32 %v1166_v40, %v1147_v41 }
 0x17b   :  { %v1186_v43 = vpop.f32.mrf.mxu1 }
 0x17c   :  { %v1187_v45 = vadd.f32 %v1186_v43, %v1167_v42 }
 0x17e   :  { %v1206_v44 = vpop.f32.mrf.mxu2 }
 0x17f   :  { %v1207_v46 = vadd.f32 %v1206_v44, %v1187_v45 }
 0x181   :  { %v1226_v47 = vpop.f32.mrf.mxu3 }
 0x182   :  { %v1227_v48 = vadd.f32 %v1226_v47, %v1207_v46 }
 0x19a   :  { %v1246_v49 = vpop.f32.mrf.mxu0 }
 0x19b   :  { %v1247_v50 = vadd.f32 %v1246_v49, %v1227_v48 }
 0x19c   :  { %v1266_v51 = vpop.f32.mrf.mxu1 }
 0x19d   :  { %v1267_v52 = vadd.f32 %v1266_v51, %v1247_v50 }
 0x1a0   :  { %v1286_v53 = vpop.f32.mrf.mxu2 }
 0x1a1   :  { %v1287_v54 = vadd.f32 %v1286_v53, %v1267_v52 }
 0x1a2   :  { %v1306_v55 = vpop.f32.mrf.mxu3 }
 0x1a3   :  { %v1307_v56 = vadd.f32 %v1306_v55, %v1287_v54 }
 0x1a5   :  { %v1309_v57 = vmax.f32 %v1307_v56, 0.0 }
 0x1a7   :  { %1346 = vmatmul.f32.vlgmr.msra.gmra.mxu0 %v1309_v57 }
 0x224   :  { %v1347_v59 = vpop.f32.mrf.mxu0 }
 0x225   :  { %v1348_v60 = vadd.f32 %v1377_v58, %v1347_v59 }
 0x227   :  { %1351 = vst.msk [vmem:[#allocation8] sm:$0x3] %vm1350_vm0, %v1348_v60 }
 0x228   :  { %1362 = dma.vmem_to_hbm [thread:$0]  %s1358_s25, 32, %s1360_s28, [#allocation4]  }
 0x229   :  { %1478 = dma.done.wait [#allocation4], 32  }
 0x22a   :  { %1479 = vsyncadd [#allocation4], 4294967264 }
 0x22b   :  { %1367 = vsyncpa [#allocation3], 1 }
 0x22c   :  { %1368 = vsyncpa [#allocation6], 1 }
 0x22d   :  { %1369 = vsyncpa [#allocation4], 1 }

// kernel: cnn_forward.2
= control target key start
LH: loop header
LB: loop body
LE: loop exit
PB: predicated region body
PF: predicated region fallthrough
CT: control target
= control target key end

     0   :  { %11 = vsyncpa [#allocation5], 0  ;;  %s7039_s0 = inlined_call_operand.vmem [shape: f32[2,32,96], index: 0, kind: input, shape index: {}]   ;;  %s7040_s1 = inlined_call_operand.hbm [shape: f32[3,102,256], index: 1, kind: input, shape index: {}]   ;;  %s7041_s2 = inlined_call_operand.hbm [shape: f32[3,256], index: 2, kind: input, shape index: {}]   ;;  %s7042_s3 = inlined_call_operand.hbm [shape: f32[5,288,512], index: 3, kind: input, shape index: {}]   ;;  %s7043_s4 = inlined_call_operand.hbm [shape: f32[3,512], index: 4, kind: input, shape index: {}]   ;;  %s7044_s5 = inlined_call_operand.hbm [shape: f32[2,512,256], index: 5, kind: input, shape index: {}]   ;;  %s7045_s6 = inlined_call_operand.vmem [shape: f32[2,16,256], index: 6, kind: output, shape index: {}]  }
   0x1   :  { %12 = vsyncpa [#allocation7], 0 }
   0x2   :  { %13 = vsyncpa [#allocation10], 0  ;;  %s5256_s21 = smov 0  }
   0x3 LB: > { %s207_s24 = sshll.u32 %s7041_s2, 4  ;;  %s5265_s25 = sadd.s32 4294967295, %s5207_s21   ;;  %s5207_s21 = sphi %s5256_s21, %s19_s21   ;;  %s208_s24 = int_to_ptr.hbm [resolvable:$true] %s207_s24 }
   0x4   : > { %p4776_p0 = scmp.ge.s32.totalorder %s5207_s21, 1  ;;  %p181_p1 = scmp.lt.s32.totalorder %s5207_s21, 3 }
   0x5   : > { %p4991_p2 = scmp.eq.s32.totalorder %s5265_s25, 0  ;;  %s5209_s27 = smov [#allocation6]  }
   0x6   : > { %p5270_p3 = pnand %p4776_p0, %p181_p1  ;;  %s209_s28 = sshll.u32 %s5209_s27, 4  ;;  %s210_s28 = int_to_ptr.vmem [resolvable:$true] %s209_s28 }
   0x7   : > { %s233_s7 = sshll.u32 %s7043_s4, 4  ;;  %s192_s10 = sshll.u32 %s7040_s1, 4  ;;  %s234_s7 = int_to_ptr.hbm [resolvable:$true] %s233_s7  ;;  %s193_s10 = int_to_ptr.hbm [resolvable:$true] %s192_s10 }
   0x8   : > { %p4975_p4 = pneg %p5270_p3  ;;  %s5210_s12 = smov [#allocation9]  }
   0x9   : > { %s235_s13 = sshll.u32 %s5210_s12, 4  ;;  %s5211_s14 = smov [#allocation4]   ;;  %s236_s13 = int_to_ptr.vmem [resolvable:$true] %s235_s13 }
   0xa   : > { %p5284_p5 = pnand %p4991_p2, %p4975_p4  ;;  %s194_s15 = sshll.u32 %s5211_s14, 4  ;;  %s195_s15 = int_to_ptr.vmem [resolvable:$true] %s194_s15 }
   0xb   : > { %s5212_s16 = smov 256   ;;  %s5213_s17 = smov 16  }
   0xc   : > { %4981 = dma.hbm_to_vmem [thread:$0]  (!%p5284_p5), %s208_s24, 128, %s210_s28, [#allocation7]  }
   0xd   : > { %4987 = dma.hbm_to_vmem [thread:$0]  (!%p5284_p5), %s234_s7, 256, %s236_s13, [#allocation10]  }
   0xe   : > { %4978 = dma.hbm_to_vmem [thread:$0]  (!%p5284_p5), %s193_s10, 9984, %s195_s15, [#allocation5], %s5212_s16, %s5212_s16, %s5213_s17  }
   0xf   : > { %s218_s20 = sshll.u32 %s7042_s3, 4  ;;  %s5214_s22 = smov [#allocation8]   ;;  %s219_s20 = int_to_ptr.hbm [resolvable:$true] %s218_s20 }
  0x10   : > { %s220_s23 = sshll.u32 %s5214_s22, 4  ;;  %s244_s28 = sshll.u32 %s7044_s5, 4  ;;  %s221_s23 = int_to_ptr.vmem [resolvable:$true] %s220_s23  ;;  %s245_s28 = int_to_ptr.hbm [resolvable:$true] %s244_s28 }
  0x11   : > { %s5215_s29 = smov 512   ;;  %s5216_s30 = smov 32  }
  0x12   : > { %4984 = dma.hbm_to_vmem [thread:$0]  (!%p5284_p5), %s219_s20, 92160, %s221_s23, [#allocation7], %s5215_s29, %s5215_s29, %s5216_s30  }
  0x13   : > { %s5217_s7 = smov [#allocation11]   ;;  %270 = sbr.rel (%p5270_p3) target bundleno = 1345 (0x541), region = 44 }
  0x14   : > { %s246_s8 = sshll.u32 %s5217_s7, 4  ;;  %s247_s8 = int_to_ptr.vmem [resolvable:$true] %s246_s8 }
  0x15   : > { %4990 = dma.hbm_to_vmem [thread:$0]  (!%p5284_p5), %s245_s28, 32768, %s247_s8, [#allocation10], %s5212_s16, %s5212_s16, %s5213_s17  }
  0x18   : > { %5194 = dma.done.wait (%p4991_p2), [#allocation5], 9984  }
  0x19   : > { %5196 = vsyncadd (%p4991_p2), [#allocation5], 4294957312 }
  0x1a   : > { %5198 = dma.done.wait (%p4991_p2), [#allocation7], 92288  }
  0x1b   : > { %5200 = vsyncadd (%p4991_p2), [#allocation7], 4294875008 }
  0x1c   : > { %5202 = dma.done.wait (%p4991_p2), [#allocation10], 33024  }
  0x1d   : > { %5204 = vsyncadd (%p4991_p2), [#allocation10], 4294934272  ;;  %p321_p6 = scmp.lt.s32.totalorder %s5265_s25, 1  ;;  %vm335_vm0 = vcmask 834560   ;;  %v5218_v0 = vmov 0.0   ;;  %vm436_vm1 = vcmask 1045504  }
  0x1e   : > { %336 = vst.msk [vmem:[#allocation2] sm:$0xff] %vm335_vm0, %v5218_v0  ;;  %s5219_s12 = smov 3   ;;  %v422_v3 = vld [vmem:[#allocation4 + $0x190] sm:$0x3f]  ;;  %v423_v4 = vld [vmem:[#allocation4 + $0x198] sm:$0x3f] }
  0x1f   : > { %s7057_s25 = smov (!%p321_p6, %s5265_s25), 1  ;;  %337 = vst.msk [vmem:[#allocation2 + $0x8] sm:$0xff] %vm335_vm0, %v5218_v0  ;;  %4793 = vmatpush.msk.msra.mxu0 %vm436_vm1, %v422_v3  ;;  %4798 = vmatpush.msk.msra.mxu1 %vm436_vm1, %v423_v4  ;;  %v391_v5 = vld [vmem:[#allocation4 + $0xc0] sm:$0x3f]  ;;  %v392_v6 = vld [vmem:[#allocation4 + $0xc8] sm:$0x3f] }
  0x20   : > { %s4921_s26 = sshll.u32 %s7057_s25, 5  ;;  %338 = vst.msk [vmem:[#allocation2 + $0x10] sm:$0xff] %vm335_vm0, %v5218_v0  ;;  %v420_v7 = vld [vmem:[#allocation4 + $0x180] sm:$0xff]  ;;  %4803 = vmatpush.msk.msra.mxu2 %vm436_vm1, %v391_v5  ;;  %4808 = vmatpush.msk.msra.mxu3 %vm436_vm1, %v392_v6  ;;  %v421_v8 = vld [vmem:[#allocation4 + $0x188] sm:$0xff]  ;;  %v389_v9 = vld [vmem:[#allocation4 + $0xb0] sm:$0xff]  ;;  %vm340_vm2 = vcmask 828416  }
  0x21   : > { %s5334_s11 = scalar_lea.vmem %s7039_s0, %s4921_s26  ;;  %339 = vst.msk [vmem:[#allocation2 + $0x18] sm:$0xff] %vm335_vm0, %v5218_v0  ;;  %v390_v10 = vld [vmem:[#allocation4 + $0xb8] sm:$0xff]  ;;  %447 = vmatpush.msra.mxu0 %v420_v7  ;;  %476 = vmatpush.msra.mxu1 %v421_v8  ;;  %v418_v11 = vld [vmem:[#allocation4 + $0x170] sm:$0xff]  ;;  %v387_v13 = vld [vmem:[#allocation4 + $0xa0] sm:$0xff]  ;;  %vm358_vm3 = vcmask 810008   ;;  %s5220_s13 = smov 16  }
  0x22   : > { %744 = vst [vmem:[#allocation3] sm:$0xff] %v5218_v0  ;;  %v331_v1 = vld [vmem:[%s5334_s11] sm:$0xff]  ;;  %v333_v2 = vld [vmem:[%s5334_s11 + $0x10] sm:$0xff]  ;;  %v419_v12 = vld [vmem:[#allocation4 + $0x178] sm:$0xff]  ;;  %523 = vmatpush.msra.mxu2 %v389_v9  ;;  %552 = vmatpush.msra.mxu3 %v390_v10  ;;  %vm769_vm4 = vcmask 1041408   ;;  %vm746_vm5 = vcmask 261120   ;;  %s7030_s16 = scalar_lea.vmem %s7045_s6, %s4921_s26 }
  0x23   : > { %745 = vst [vmem:[#allocation3 + $0x8] sm:$0xff] %v5218_v0  ;;  %346 = vrot.lane.b32.xlu0 %v331_v1, %s5219_s12  ;;  %350 = vrot.lane.b32.xlu1 %v333_v2, %s5219_s12  ;;  %v388_v14 = vld [vmem:[#allocation4 + $0xa8] sm:$0xff]  ;;  %v416_v15 = vld [vmem:[#allocation4 + $0x160] sm:$0xff]  ;;  %v334_v18 = vld [vmem:[%s5334_s11 + $0x18] sm:$0xff]  ;;  %vm825_vm6 = vcmask 1047682   ;;  %vm804_vm7 = vcmask 130048  }
  0x24   : > { %748 = vst [vmem:[#allocation3 + $0x18] sm:$0xff] %v5218_v0  ;;  %v417_v16 = vld [vmem:[#allocation4 + $0x168] sm:$0xff]  ;;  %448 = vmatpush.msra.mxu0 %v418_v11  ;;  %477 = vmatpush.msra.mxu1 %v419_v12  ;;  %v385_v19 = vld [vmem:[#allocation4 + $0x90] sm:$0xff]  ;;  %v386_v20 = vld [vmem:[#allocation4 + $0x98] sm:$0xff]  ;;  %vm828_vm8 = vcmask 130050   ;;  %vm830_vm9 = vcmask 1047680  }
  0x25   : > { %751 = vst [vmem:[#allocation3 + $0x30] sm:$0xff] %v5218_v0  ;;  %v332_v17 = vld [vmem:[%s5334_s11 + $0x8] sm:$0xff]  ;;  %524 = vmatpush.msra.mxu2 %v387_v13  ;;  %553 = vmatpush.msra.mxu3 %v388_v14  ;;  %v414_v21 = vld [vmem:[#allocation4 + $0x150] sm:$0xff]  ;;  %v415_v22 = vld [vmem:[#allocation4 + $0x158] sm:$0xff]  ;;  %vm759_vm10 = vcmask 257024   ;;  %vm1167_vm11 = vcmask 1046528  }
  0x26   : > { %754 = vst [vmem:[#allocation3 + $0x48] sm:$0xff] %v5218_v0  ;;  %449 = vmatpush.msra.mxu0 %v416_v15  ;;  %478 = vmatpush.msra.mxu1 %v417_v16  ;;  %v383_v23 = vld [vmem:[#allocation4 + $0x80] sm:$0xff]  ;;  %v384_v24 = vld [vmem:[#allocation4 + $0x88] sm:$0xff]  ;;  %v381_v27 = vld [vmem:[#allocation4 + $0x70] sm:$0xff]  ;;  %vm840_vm12 = vcmask 1041536   ;;  %vm843_vm13 = vcmask 123904  }
  0x27   : > { %757 = vst [vmem:[#allocation3 + $0x60] sm:$0xf] %v5218_v0  ;;  %525 = vmatpush.msra.mxu2 %v385_v19  ;;  %554 = vmatpush.msra.mxu3 %v386_v20  ;;  %v412_v25 = vld [vmem:[#allocation4 + $0x140] sm:$0xff]  ;;  %v413_v26 = vld [vmem:[#allocation4 + $0x148] sm:$0xff]  ;;  %v382_v28 = vld [vmem:[#allocation4 + $0x78] sm:$0xff]  ;;  %vm2637_vm14 = vcmask 1044480  }
  0x28   : > { %758 = vst [vmem:[#allocation3 + $0x68] sm:$0xf] %v5218_v0  ;;  %450 = vmatpush.msra.mxu0 %v414_v21  ;;  %479 = vmatpush.msra.mxu1 %v415_v22  ;;  %v410_v29 = vld [vmem:[#allocation4 + $0x130] sm:$0xff]  ;;  %v411_v30 = vld [vmem:[#allocation4 + $0x138] sm:$0xff]  ;;  %v379_v31 = vld [vmem:[#allocation4 + $0x60] sm:$0xff]  ;;  %vm3202_vm15 = vcmask 1043456  }
  0x29   : > { %526 = vmatpush.msra.mxu2 %v383_v23  ;;  %555 = vmatpush.msra.mxu3 %v384_v24  ;;  %v380_v32 = vld [vmem:[#allocation4 + $0x68] sm:$0xff]  ;;  %v408_v33 = vld [vmem:[#allocation4 + $0x120] sm:$0xff]  ;;  %v377_v35 = vld [vmem:[#allocation4 + $0x50] sm:$0xff]  ;;  %341 = vst.msk [vmem:[#allocation2 + $0x20] sm:$0x3] %vm340_vm2, %v5218_v0  ;;  %vm3746_vm2 = vcmask 1043458  }
  0x2a   : > { %451 = vmatpush.msra.mxu0 %v412_v25  ;;  %480 = vmatpush.msra.mxu1 %v413_v26  ;;  %v409_v34 = vld [vmem:[#allocation4 + $0x128] sm:$0xff]  ;;  %v378_v36 = vld [vmem:[#allocation4 + $0x58] sm:$0xff]  ;;  %v406_v37 = vld [vmem:[#allocation4 + $0x110] sm:$0xff]  ;;  %747 = vst.msk [vmem:[#allocation3 + $0x10] sm:$0xff] %vm746_vm5, %v5218_v0 }
  0x2b   : > { %348 = vrot.lane.b32.xlu0 %v332_v17, %s5219_s12  ;;  %352 = vrot.lane.b32.xlu1 %v334_v18, %s5219_s12  ;;  %v407_v38 = vld [vmem:[#allocation4 + $0x118] sm:$0xff]  ;;  %v375_v39 = vld [vmem:[#allocation4 + $0x40] sm:$0xff]  ;;  %v376_v40 = vld [vmem:[#allocation4 + $0x48] sm:$0xff]  ;;  %750 = vst.msk [vmem:[#allocation3 + $0x28] sm:$0xff] %vm746_vm5, %v5218_v0 }
  0x2c   : > { %527 = vmatpush.msra.mxu2 %v381_v27  ;;  %556 = vmatpush.msra.mxu3 %v382_v28  ;;  %v404_v41 = vld [vmem:[#allocation4 + $0x100] sm:$0xff]  ;;  %v405_v42 = vld [vmem:[#allocation4 + $0x108] sm:$0xff]  ;;  %v373_v43 = vld [vmem:[#allocation4 + $0x30] sm:$0xff]  ;;  %753 = vst.msk [vmem:[#allocation3 + $0x40] sm:$0xff] %vm746_vm5, %v5218_v0 }
  0x2d   : > { %452 = vmatpush.msra.mxu0 %v410_v29  ;;  %481 = vmatpush.msra.mxu1 %v411_v30  ;;  %v374_v44 = vld [vmem:[#allocation4 + $0x38] sm:$0xff]  ;;  %v402_v45 = vld [vmem:[#allocation4 + $0xf0] sm:$0xff]  ;;  %v371_v47 = vld [vmem:[#allocation4 + $0x20] sm:$0xff]  ;;  %756 = vst.msk [vmem:[#allocation3 + $0x58] sm:$0xff] %vm746_vm5, %v5218_v0 }
  0x2e   : > { %528 = vmatpush.msra.mxu2 %v379_v31  ;;  %557 = vmatpush.msra.mxu3 %v380_v32  ;;  %v403_v46 = vld [vmem:[#allocation4 + $0xf8] sm:$0xff]  ;;  %v372_v48 = vld [vmem:[#allocation4 + $0x28] sm:$0xff]  ;;  %v400_v49 = vld [vmem:[#allocation4 + $0xe0] sm:$0xff]  ;;  %760 = vst.msk [vmem:[#allocation3 + $0x70] sm:$0xf] %vm759_vm10, %v5218_v0  ;;  %vm4103_vm10 = vcmask 1046534  }
  0x2f   : > { %453 = vmatpush.msra.mxu0 %v408_v33  ;;  %482 = vmatpush.msra.mxu1 %v409_v34  ;;  %v401_v50 = vld [vmem:[#allocation4 + $0xe8] sm:$0xff]  ;;  %v369_v51 = vld [vmem:[#allocation4 + $0x10] sm:$0xff]  ;;  %v370_v52 = vld [vmem:[#allocation4 + $0x18] sm:$0xff] }
  0x30   : > { %529 = vmatpush.msra.mxu2 %v377_v35  ;;  %558 = vmatpush.msra.mxu3 %v378_v36  ;;  %v398_v53 = vld [vmem:[#allocation4 + $0xd0] sm:$0xff]  ;;  %v399_v54 = vld [vmem:[#allocation4 + $0xd8] sm:$0xff]  ;;  %v367_v55 = vld [vmem:[#allocation4] sm:$0xff] }
  0x31   : > { %454 = vmatpush.msra.mxu0 %v406_v37  ;;  %483 = vmatpush.msra.mxu1 %v407_v38  ;;  %v368_v56 = vld [vmem:[#allocation4 + $0x8] sm:$0xff]  ;;  %v606_v57 = vld [vmem:[#allocation4 + $0x260] sm:$0x3f]  ;;  %v604_v59 = vld [vmem:[#allocation4 + $0x250] sm:$0xff] }
  0x32   : > { %530 = vmatpush.msra.mxu2 %v375_v39  ;;  %559 = vmatpush.msra.mxu3 %v376_v40  ;;  %v607_v58 = vld [vmem:[#allocation4 + $0x268] sm:$0x3f]  ;;  %v605_v60 = vld [vmem:[#allocation4 + $0x258] sm:$0xff]  ;;  %v602_v61 = vld [vmem:[#allocation4 + $0x240] sm:$0xff] }
  0x33   : > { %455 = vmatpush.msra.mxu0 %v404_v41  ;;  %484 = vmatpush.msra.mxu1 %v405_v42  ;;  %v603_v62 = vld [vmem:[#allocation4 + $0x248] sm:$0xff]  ;;  %v600_v63 = vld [vmem:[#allocation4 + $0x230] sm:$0xff]  ;;  %v601_v1 = vld [vmem:[#allocation4 + $0x238] sm:$0xff] }
  0x34   : > { %531 = vmatpush.msra.mxu2 %v373_v43  ;;  %560 = vmatpush.msra.mxu3 %v374_v44  ;;  %v598_v2 = vld [vmem:[#allocation4 + $0x220] sm:$0xff]  ;;  %v599_v3 = vld [vmem:[#allocation4 + $0x228] sm:$0xff]  ;;  %v596_v4 = vld [vmem:[#allocation4 + $0x210] sm:$0xff] }
  0x35   : > { %456 = vmatpush.msra.mxu0 %v402_v45  ;;  %485 = vmatpush.msra.mxu1 %v403_v46  ;;  %v597_v5 = vld [vmem:[#allocation4 + $0x218] sm:$0xff]  ;;  %v594_v6 = vld [vmem:[#allocation4 + $0x200] sm:$0xff]  ;;  %v595_v7 = vld [vmem:[#allocation4 + $0x208] sm:$0xff] }
  0x36   : > { %532 = vmatpush.msra.mxu2 %v371_v47  ;;  %561 = vmatpush.msra.mxu3 %v372_v48  ;;  %v592_v8 = vld [vmem:[#allocation4 + $0x1f0] sm:$0xff]  ;;  %v593_v9 = vld [vmem:[#allocation4 + $0x1f8] sm:$0xff]  ;;  %v590_v10 = vld [vmem:[#allocation4 + $0x1e0] sm:$0xff] }
  0x37   : > { %457 = vmatpush.msra.mxu0 %v400_v49  ;;  %486 = vmatpush.msra.mxu1 %v401_v50  ;;  %v591_v11 = vld [vmem:[#allocation4 + $0x1e8] sm:$0xff]  ;;  %v588_v14 = vld [vmem:[#allocation4 + $0x1d0] sm:$0xff]  ;;  %v589_v15 = vld [vmem:[#allocation4 + $0x1d8] sm:$0xff] }
  0x38   : > { %533 = vmatpush.msra.mxu2 %v369_v51  ;;  %562 = vmatpush.msra.mxu3 %v370_v52  ;;  %v586_v16 = vld [vmem:[#allocation4 + $0x1c0] sm:$0xff]  ;;  %v587_v17 = vld [vmem:[#allocation4 + $0x1c8] sm:$0xff]  ;;  %v584_v18 = vld [vmem:[#allocation4 + $0x1b0] sm:$0xff] }
  0x39   : > { %458 = vmatpush.msra.mxu0 %v398_v53  ;;  %487 = vmatpush.msra.mxu1 %v399_v54  ;;  %v585_v19 = vld [vmem:[#allocation4 + $0x1b8] sm:$0xff]  ;;  %v582_v20 = vld [vmem:[#allocation4 + $0x1a0] sm:$0xff]  ;;  %v583_v25 = vld [vmem:[#allocation4 + $0x1a8] sm:$0xff] }
  0x3a   : > { %534 = vmatpush.msra.mxu2 %v367_v55  ;;  %563 = vmatpush.msra.mxu3 %v368_v56  ;;  %v692_v44 = vld [vmem:[#allocation6] sm:$0x77]  ;;  %v1106_v0 = vld [vmem:[#allocation8 + $0x790] sm:$0xff] }
  0x3b   : > { %4813 = vmatpush.msk.msrb.mxu0 %vm436_vm1, %v606_v57  ;;  %4818 = vmatpush.msk.msrb.mxu1 %vm436_vm1, %v607_v58  ;;  %v694_v47 = vperm.slane %v692_v44, 0  ;;  %v695_v48 = vperm.slane %v692_v44, 4  ;;  %v716_v55 = vperm.slane %v692_v44, 1 }
  0x3d   : > { %630 = vmatpush.msrb.mxu0 %v604_v59  ;;  %659 = vmatpush.msrb.mxu1 %v605_v60  ;;  %v5392_v49 = vperm.slane %v694_v47, 0  ;;  %v5394_v54 = vperm.slane %v695_v48, 0  ;;  %v730_v60 = vperm.slane %v692_v44, 2 }
  0x3f   : > { %631 = vmatpush.msrb.mxu0 %v602_v61  ;;  %660 = vmatpush.msrb.mxu1 %v603_v62  ;;  %v717_v61 = vperm.slane %v692_v44, 5 }
  0x41   : > { %632 = vmatpush.msrb.mxu0 %v600_v63  ;;  %661 = vmatpush.msrb.mxu1 %v601_v1  ;;  %v5398_v1 = vperm.slane %v716_v55, 1 }
  0x43   : > { %633 = vmatpush.msrb.mxu0 %v598_v2  ;;  %662 = vmatpush.msrb.mxu1 %v599_v3  ;;  %v5400_v3 = vperm.slane %v730_v60, 2 }
  0x45   : > { %634 = vmatpush.msrb.mxu0 %v596_v4  ;;  %663 = vmatpush.msrb.mxu1 %v597_v5  ;;  %v5402_v5 = vperm.slane %v717_v61, 1 }
  0x47   : > { %635 = vmatpush.msrb.mxu0 %v594_v6  ;;  %664 = vmatpush.msrb.mxu1 %v595_v7  ;;  %v731_v6 = vperm.slane %v692_v44, 6 }
  0x49   : > { %636 = vmatpush.msrb.mxu0 %v592_v8  ;;  %665 = vmatpush.msrb.mxu1 %v593_v9 }
  0x4b   : > { %637 = vmatpush.msrb.mxu0 %v590_v10  ;;  %666 = vmatpush.msrb.mxu1 %v591_v11 }
  0x4d   : > { %638 = vmatpush.msrb.mxu0 %v588_v14  ;;  %667 = vmatpush.msrb.mxu1 %v589_v15 }
  0x4f   : > { %639 = vmatpush.msrb.mxu0 %v586_v16  ;;  %668 = vmatpush.msrb.mxu1 %v587_v17 }
  0x51   : > { %640 = vmatpush.msrb.mxu0 %v584_v18  ;;  %669 = vmatpush.msrb.mxu1 %v585_v19  ;;  %v735_v18 = vperm.slane %v731_v6, 2 }
  0x53   : > { %641 = vmatpush.msrb.mxu0 %v582_v20  ;;  %670 = vmatpush.msrb.mxu1 %v583_v25 }
  0x95   : > { %v347_v12 = vpop.permute.xlu0 %346  ;;  %v351_v13 = vpop.permute.xlu1 %350 }
  0x96   : > { %359 = vst.msk [vmem:[#allocation2 + $0x1] sm:$0xff] %vm358_vm3, %v347_v12 }
  0x97   : > { %361 = vst.msk [vmem:[#allocation2 + $0x11] sm:$0xff] %vm358_vm3, %v351_v13 }
  0x9d   : > { %v349_v21 = vpop.permute.xlu0 %348  ;;  %v393_v22 = vld [vmem:[#allocation2 + $0x1] sm:$0xff]  ;;  %v353_v24 = vpop.permute.xlu1 %352 }
  0x9e   : > { %v363_v23 = vld [vmem:[#allocation2] sm:$0xff]  ;;  %360 = vst.msk [vmem:[#allocation2 + $0x9] sm:$0xff] %vm358_vm3, %v349_v21  ;;  %4794 = vmatmul.msk.f32.vlgmr.msra.gmra.mxu0 %vm335_vm0, %v393_v22  ;;  %4799 = vmatmul.msk.f32.vlgmr.msra.gmra.mxu1 %vm335_vm0, %v393_v22  ;;  %v395_v28 = vld [vmem:[#allocation2 + $0x11] sm:$0xff] }
  0x9f   : > { %4804 = vmatmul.msk.f32.vlgmr.msra.gmra.mxu2 %vm335_vm0, %v363_v23  ;;  %4809 = vmatmul.msk.f32.vlgmr.msra.gmra.mxu3 %vm335_vm0, %v363_v23  ;;  %362 = vst.msk [vmem:[#allocation2 + $0x19] sm:$0xff] %vm358_vm3, %v353_v24  ;;  %vm3749_vm3 = vcmask 1045506  }
  0xa5   : > { %v394_v26 = vld [vmem:[#allocation2 + $0x9] sm:$0xff] }
  0xa6   : > { %v364_v27 = vld [vmem:[#allocation2 + $0x8] sm:$0xff]  ;;  %4795 = vmatmul.msk.f32.gmra.mxu0 %vm335_vm0, %v394_v26  ;;  %4800 = vmatmul.msk.f32.gmra.mxu1 %vm335_vm0, %v394_v26  ;;  %v365_v29 = vld [vmem:[#allocation2 + $0x10] sm:$0xff]  ;;  %v396_v30 = vld [vmem:[#allocation2 + $0x19] sm:$0xff] }
  0xa7   : > { %4805 = vmatmul.msk.f32.gmra.mxu2 %vm335_vm0, %v364_v27  ;;  %4810 = vmatmul.msk.f32.gmra.mxu3 %vm335_vm0, %v364_v27  ;;  %v366_v31 = vld [vmem:[#allocation2 + $0x18] sm:$0xff]  ;;  %v577_v32 = vld [vmem:[#allocation2 + $0x2] sm:$0xff]  ;;  %v578_v33 = vld [vmem:[#allocation2 + $0xa] sm:$0xff] }
  0xa8   : > { %v579_v34 = vld [vmem:[#allocation2 + $0x12] sm:$0xff]  ;;  %v580_v35 = vld [vmem:[#allocation2 + $0x1a] sm:$0xff] }
  0xae   : > { %4796 = vmatmul.msk.f32.gmra.mxu0 %vm335_vm0, %v395_v28  ;;  %4801 = vmatmul.msk.f32.gmra.mxu1 %vm335_vm0, %v395_v28 }
  0xaf   : > { %4806 = vmatmul.msk.f32.gmra.mxu2 %vm335_vm0, %v365_v29  ;;  %4811 = vmatmul.msk.f32.gmra.mxu3 %vm335_vm0, %v365_v29 }
  0xb6   : > { %4797 = vmatmul.msk.f32.gmra.mxu0 %vm335_vm0, %v396_v30  ;;  %4802 = vmatmul.msk.f32.gmra.mxu1 %vm335_vm0, %v396_v30 }
  0xb7   : > { %4807 = vmatmul.msk.f32.gmra.mxu2 %vm335_vm0, %v366_v31  ;;  %4812 = vmatmul.msk.f32.gmra.mxu3 %vm335_vm0, %v366_v31 }
  0xbe   : > { %4814 = vmatmul.msk.f32.vlgmr.msrb.gmra.mxu0 %vm335_vm0, %v577_v32  ;;  %4819 = vmatmul.msk.f32.vlgmr.msrb.gmra.mxu1 %vm335_vm0, %v577_v32 }
  0xc6   : > { %4815 = vmatmul.msk.f32.gmra.mxu0 %vm335_vm0, %v578_v33  ;;  %4820 = vmatmul.msk.f32.gmra.mxu1 %vm335_vm0, %v578_v33 }
  0xce   : > { %4816 = vmatmul.msk.f32.gmra.mxu0 %vm335_vm0, %v579_v34  ;;  %4821 = vmatmul.msk.f32.gmra.mxu1 %vm335_vm0, %v579_v34 }
  0xd6   : > { %4817 = vmatmul.msk.f32.gmra.mxu0 %vm335_vm0, %v580_v35  ;;  %4822 = vmatmul.msk.f32.gmra.mxu1 %vm335_vm0, %v580_v35  ;;  %vm3743_vm0 = vcmask 1045508  }
 0x11b   : > { %v460_v36 = vpop.f32.mrf.mxu0  ;;  %v489_v37 = vpop.f32.mrf.mxu1 }
 0x122   : > { %v536_v42 = vpop.f32.mrf.mxu2  ;;  %v565_v43 = vpop.f32.mrf.mxu3 }
 0x123   : > { %v463_v38 = vpop.f32.mrf.mxu0  ;;  %v492_v39 = vpop.f32.mrf.mxu1  ;;  %v537_v50 = vadd.f32 %v536_v42, %v460_v36  ;;  %v566_v51 = vadd.f32 %v565_v43, %v489_v37 }
 0x12a   : > { %v539_v52 = vpop.f32.mrf.mxu2  ;;  %v568_v53 = vpop.f32.mrf.mxu3 }
 0x12b   : > { %v466_v40 = vpop.f32.mrf.mxu0  ;;  %v495_v41 = vpop.f32.mrf.mxu1  ;;  %v540_v7 = vadd.f32 %v539_v52, %v463_v38  ;;  %v569_v8 = vadd.f32 %v568_v53, %v492_v39 }
 0x132   : > { %v542_v15 = vpop.f32.mrf.mxu2  ;;  %v571_v16 = vpop.f32.mrf.mxu3 }
 0x133   : > { %v5388_v45 = vpop.f32.mrf.mxu0  ;;  %v5390_v46 = vpop.f32.mrf.mxu1  ;;  %v543_v25 = vadd.f32 %v542_v15, %v466_v40  ;;  %v572_v26 = vadd.f32 %v571_v16, %v495_v41  ;;  %v1124_v15 = vld [vmem:[#allocation8 + $0x820] sm:$0xff] }
 0x134   : > { %v1120_v16 = vld [vmem:[#allocation8 + $0x800] sm:$0xff] }
 0x13a   : > { %v545_v40 = vpop.f32.mrf.mxu2  ;;  %v574_v41 = vpop.f32.mrf.mxu3 }
 0x13b   : > { %v643_v56 = vpop.f32.mrf.mxu0  ;;  %v672_v57 = vpop.f32.mrf.mxu1  ;;  %v546_v48 = vadd.f32 %v545_v40, %v5388_v45  ;;  %v1088_v40 = vld [vmem:[#allocation8 + $0x700] sm:$0xff] }
 0x13c   : > { %v684_v58 = vadd.f32 %v643_v56, %v537_v50  ;;  %v685_v59 = vadd.f32 %v672_v57, %v566_v51  ;;  %v575_v50 = vadd.f32 %v574_v41, %v5390_v46 }
 0x13e   : > { %v700_v62 = vadd.f32 %v5392_v49, %v684_v58  ;;  %v701_v63 = vadd.f32 %v5394_v54, %v685_v59 }
 0x140   : > { %v708_v2 = vmax.f32 %v700_v62, 0.0  ;;  %v709_v4 = vmax.f32 %v701_v63, 0.0 }
 0x142   : > { %v722_v9 = vmul.f32 %v5398_v1, %v708_v2  ;;  %v723_v17 = vmul.f32 %v5402_v5, %v709_v4 }
 0x143   : > { %v646_v10 = vpop.f32.mrf.mxu0  ;;  %v675_v11 = vpop.f32.mrf.mxu1 }
 0x144   : > { %v686_v12 = vadd.f32 %v646_v10, %v540_v7  ;;  %v687_v13 = vadd.f32 %v675_v11, %v569_v8  ;;  %v736_v14 = vadd.f32 %v5400_v3, %v722_v9  ;;  %v737_v24 = vadd.f32 %v735_v18, %v723_v17  ;;  %v1116_v17 = vld [vmem:[#allocation8 + $0x7e0] sm:$0xff] }
 0x146   : > { %v702_v19 = vadd.f32 %v5392_v49, %v686_v12  ;;  %v703_v20 = vadd.f32 %v5394_v54, %v687_v13  ;;  %v770_v21 = vrot.slane %v736_v14, 6  ;;  %v771_v35 = vrot.slane %v737_v24, 6  ;;  %v1064_v12 = vld [vmem:[#allocation8 + $0x640] sm:$0xff]  ;;  %v1065_v13 = vld [vmem:[#allocation8 + $0x648] sm:$0xff] }
 0x147   : > { %v1128_v14 = vld [vmem:[#allocation8 + $0x840] sm:$0xff] }
 0x148   : > { %v710_v22 = vmax.f32 %v702_v19, 0.0  ;;  %v711_v23 = vmax.f32 %v703_v20, 0.0  ;;  %784 = vrot.lane.b32.xlu2 %v770_v21, %s5220_s13  ;;  %v1061_v19 = vld [vmem:[#allocation8 + $0x628] sm:$0xff]  ;;  %v1056_v20 = vld [vmem:[#allocation8 + $0x600] sm:$0xff] }
 0x149   : > { %v1112_v24 = vld [vmem:[#allocation8 + $0x7c0] sm:$0xff] }
 0x14a   : > { %v724_v27 = vmul.f32 %v5398_v1, %v710_v22  ;;  %v725_v28 = vmul.f32 %v5402_v5, %v711_v23  ;;  %v1052_v22 = vld [vmem:[#allocation8 + $0x5e0] sm:$0xff]  ;;  %v1053_v23 = vld [vmem:[#allocation8 + $0x5e8] sm:$0xff] }
 0x14b   : > { %v649_v29 = vpop.f32.mrf.mxu0  ;;  %v678_v30 = vpop.f32.mrf.mxu1 }
 0x14c   : > { %v688_v31 = vadd.f32 %v649_v29, %v543_v25  ;;  %v689_v32 = vadd.f32 %v678_v30, %v572_v26  ;;  %v739_v33 = vadd.f32 %v735_v18, %v725_v28  ;;  %v738_v34 = vadd.f32 %v5400_v3, %v724_v27  ;;  %v1108_v25 = vld [vmem:[#allocation8 + $0x7a0] sm:$0xff]  ;;  %v1049_v27 = vld [vmem:[#allocation8 + $0x5c8] sm:$0xff] }
 0x14d   : > { %v1048_v26 = vld [vmem:[#allocation8 + $0x5c0] sm:$0xff] }
 0x14e   : > { %v704_v36 = vadd.f32 %v5392_v49, %v688_v31  ;;  %v705_v37 = vadd.f32 %v5394_v54, %v689_v32  ;;  %v774_v38 = vrot.slane %v739_v33, 6  ;;  %v772_v39 = vrot.slane %v738_v34, 6  ;;  %v1104_v28 = vld [vmem:[#allocation8 + $0x780] sm:$0xff]  ;;  %v1045_v31 = vld [vmem:[#allocation8 + $0x5a8] sm:$0xff] }
 0x14f   : > { %v1100_v29 = vld [vmem:[#allocation8 + $0x760] sm:$0xff]  ;;  %v1041_v33 = vld [vmem:[#allocation8 + $0x588] sm:$0xff] }
 0x150   : > { %v712_v42 = vmax.f32 %v704_v36, 0.0  ;;  %v713_v43 = vmax.f32 %v705_v37, 0.0  ;;  %786 = vrot.lane.b32.xlu2 %v771_v35, %s5220_s13  ;;  %v775_v44 = vsel %vm769_vm4, %v771_v35, %v774_v38  ;;  %v773_v47 = vsel %vm769_vm4, %v770_v21, %v772_v39  ;;  %v1057_v21 = vld [vmem:[#allocation8 + $0x608] sm:$0xff]  ;;  %v1044_v30 = vld [vmem:[#allocation8 + $0x5a0] sm:$0xff] }
 0x151   : > { %790 = vrot.lane.b32.xlu1 %v775_v44, %s5220_s13  ;;  %788 = vrot.lane.b32.xlu0 %v773_v47, %s5220_s13  ;;  %v1040_v32 = vld [vmem:[#allocation8 + $0x580] sm:$0xff]  ;;  %v1037_v35 = vld [vmem:[#allocation8 + $0x568] sm:$0xff] }
 0x152   : > { %v726_v51 = vmul.f32 %v5398_v1, %v712_v42  ;;  %v727_v52 = vmul.f32 %v5402_v5, %v713_v43  ;;  %v1036_v34 = vld [vmem:[#allocation8 + $0x560] sm:$0xff]  ;;  %v1029_v44 = vld [vmem:[#allocation8 + $0x528] sm:$0xff] }
 0x153   : > { %v652_v53 = vpop.f32.mrf.mxu0  ;;  %v681_v55 = vpop.f32.mrf.mxu1  ;;  %v1096_v36 = vld [vmem:[#allocation8 + $0x740] sm:$0xff] }
 0x154   : > { %v690_v56 = vadd.f32 %v652_v53, %v546_v48  ;;  %v691_v57 = vadd.f32 %v681_v55, %v575_v50  ;;  %v740_v58 = vadd.f32 %v5400_v3, %v726_v51  ;;  %v741_v59 = vadd.f32 %v735_v18, %v727_v52  ;;  %v1092_v37 = vld [vmem:[#allocation8 + $0x720] sm:$0xff]  ;;  %v1025_v48 = vld [vmem:[#allocation8 + $0x508] sm:$0xff] }
 0x155   : > { %v1084_v42 = vld [vmem:[#allocation8 + $0x6e0] sm:$0xff]  ;;  %v1021_v53 = vld [vmem:[#allocation8 + $0x4e8] sm:$0xff] }
 0x156   : > { %v706_v60 = vadd.f32 %v5392_v49, %v690_v56  ;;  %v707_v61 = vadd.f32 %v5394_v54, %v691_v57  ;;  %v776_v62 = vrot.slane %v740_v58, 6  ;;  %v778_v63 = vrot.slane %v741_v59, 6  ;;  %v1028_v43 = vld [vmem:[#allocation8 + $0x520] sm:$0xff]  ;;  %v1017_v58 = vld [vmem:[#allocation8 + $0x4c8] sm:$0xff] }
 0x157   : > { %v1024_v47 = vld [vmem:[#allocation8 + $0x500] sm:$0xff] }
 0x158   : > { %v714_v45 = vmax.f32 %v706_v60, 0.0  ;;  %v715_v2 = vmax.f32 %v707_v61, 0.0  ;;  %v777_v46 = vsel %vm769_vm4, %v772_v39, %v776_v62  ;;  %v779_v4 = vsel %vm769_vm4, %v774_v38, %v778_v63  ;;  %v1032_v38 = vld [vmem:[#allocation8 + $0x540] sm:$0xff]  ;;  %v1033_v39 = vld [vmem:[#allocation8 + $0x548] sm:$0xff] }
 0x159   : > { %792 = vrot.lane.b32.xlu2 %v777_v46, %s5220_s13  ;;  %794 = vrot.lane.b32.xlu0 %v779_v4, %s5220_s13  ;;  %v1080_v50 = vld [vmem:[#allocation8 + $0x6c0] sm:$0xff]  ;;  %v1009_v4 = vld [vmem:[#allocation8 + $0x488] sm:$0xff] }
 0x15a   : > { %v728_v6 = vmul.f32 %v5398_v1, %v714_v45  ;;  %v729_v7 = vmul.f32 %v5402_v5, %v715_v2  ;;  %v1132_v1 = vld [vmem:[#allocation8 + $0x860] sm:$0xff]  ;;  %v1069_v5 = vld [vmem:[#allocation8 + $0x668] sm:$0xff] }
 0x15b   : > { %1240 = vmatpush.msrb.mxu3 %v1132_v1  ;;  %1298 = vmatpush.msra.mxu1 %v1069_v5  ;;  %v1020_v51 = vld [vmem:[#allocation8 + $0x4e0] sm:$0xff]  ;;  %v1013_v45 = vld [vmem:[#allocation8 + $0x4a8] sm:$0xff]  ;;  %v1062_v1 = vld [vmem:[#allocation8 + $0x630] sm:$0xff] }
 0x15c   : > { %v742_v49 = vadd.f32 %v5400_v3, %v728_v6  ;;  %v743_v8 = vadd.f32 %v735_v18, %v729_v7  ;;  %v1068_v3 = vld [vmem:[#allocation8 + $0x660] sm:$0xff]  ;;  %v1133_v6 = vld [vmem:[#allocation8 + $0x868] sm:$0xff]  ;;  %v1070_v7 = vld [vmem:[#allocation8 + $0x670] sm:$0xff] }
 0x15d   : > { %1211 = vmatpush.msrb.mxu2 %v1068_v3  ;;  %1241 = vmatpush.msrb.mxu3 %v1128_v14  ;;  %v1060_v18 = vld [vmem:[#allocation8 + $0x620] sm:$0xff]  ;;  %v1126_v3 = vld [vmem:[#allocation8 + $0x830] sm:$0xff]  ;;  %v1121_v5 = vld [vmem:[#allocation8 + $0x808] sm:$0xff] }
 0x15e   : > { %v780_v54 = vrot.slane %v742_v49, 6  ;;  %v782_v9 = vrot.slane %v743_v8, 6  ;;  %1299 = vmatpush.msra.mxu1 %v1065_v13  ;;  %v1148_v52 = vld [vmem:[#allocation8 + $0x8e0] sm:$0xff]  ;;  %v1134_v49 = vld [vmem:[#allocation8 + $0x870] sm:$0xff]  ;;  %v1129_v8 = vld [vmem:[#allocation8 + $0x848] sm:$0xff] }
 0x15f   : > { %1212 = vmatpush.msrb.mxu2 %v1064_v12  ;;  %1242 = vmatpush.msrb.mxu3 %v1124_v15  ;;  %v1144_v55 = vld [vmem:[#allocation8 + $0x8c0] sm:$0xff]  ;;  %v1058_v12 = vld [vmem:[#allocation8 + $0x610] sm:$0xff]  ;;  %v1117_v14 = vld [vmem:[#allocation8 + $0x7e8] sm:$0xff] }
 0x160   : > { %v781_v10 = vsel %vm769_vm4, %v776_v62, %v780_v54  ;;  %v783_v11 = vsel %vm769_vm4, %v778_v63, %v782_v9  ;;  %1300 = vmatpush.msra.mxu1 %v1061_v19  ;;  %v1076_v56 = vld [vmem:[#allocation8 + $0x6a0] sm:$0xff]  ;;  %1281 = vmatpush.msra.mxu0 %v1148_v52  ;;  %v1122_v13 = vld [vmem:[#allocation8 + $0x810] sm:$0xff] }
 0x161   : > { %796 = vrot.lane.b32.xlu1 %v781_v10, %s5220_s13  ;;  %798 = vrot.lane.b32.xlu2 %v783_v11, %s5220_s13  ;;  %v1016_v57 = vld [vmem:[#allocation8 + $0x4c0] sm:$0xff]  ;;  %v1125_v11 = vld [vmem:[#allocation8 + $0x828] sm:$0xff]  ;;  %v1054_v15 = vld [vmem:[#allocation8 + $0x5f0] sm:$0xff] }
 0x162   : > { %800 = vrot.lane.b32.xlu0 %v780_v54, %s5220_s13  ;;  %1243 = vmatpush.msrb.mxu3 %v1120_v16  ;;  %v1072_v60 = vld [vmem:[#allocation8 + $0x680] sm:$0xff]  ;;  %v1066_v54 = vld [vmem:[#allocation8 + $0x650] sm:$0xff] }
 0x163   : > { %1213 = vmatpush.msrb.mxu2 %v1060_v18  ;;  %1301 = vmatpush.msra.mxu1 %v1057_v21  ;;  %v1012_v62 = vld [vmem:[#allocation8 + $0x4a0] sm:$0xff]  ;;  %v1118_v16 = vld [vmem:[#allocation8 + $0x7f0] sm:$0xff]  ;;  %v1109_v21 = vld [vmem:[#allocation8 + $0x7a8] sm:$0xff] }
 0x164   : > { %1244 = vmatpush.msrb.mxu3 %v1116_v17  ;;  %1282 = vmatpush.msra.mxu0 %v1144_v55  ;;  %v1140_v63 = vld [vmem:[#allocation8 + $0x8a0] sm:$0xff]  ;;  %v1113_v17 = vld [vmem:[#allocation8 + $0x7c8] sm:$0xff]  ;;  %v1050_v18 = vld [vmem:[#allocation8 + $0x5d0] sm:$0xff] }
 0x165   : > { %1214 = vmatpush.msrb.mxu2 %v1056_v20  ;;  %1302 = vmatpush.msra.mxu1 %v1053_v23  ;;  %v1008_v2 = vld [vmem:[#allocation8 + $0x480] sm:$0xff]  ;;  %v1114_v19 = vld [vmem:[#allocation8 + $0x7d0] sm:$0xff]  ;;  %v1081_v55 = vld [vmem:[#allocation8 + $0x6c8] sm:$0xff] }
 0x166   : > { %1245 = vmatpush.msrb.mxu3 %v1112_v24  ;;  %1283 = vmatpush.msra.mxu0 %v1140_v63  ;;  %v1136_v46 = vld [vmem:[#allocation8 + $0x880] sm:$0xff]  ;;  %v1110_v23 = vld [vmem:[#allocation8 + $0x7b0] sm:$0xff]  ;;  %v1105_v24 = vld [vmem:[#allocation8 + $0x788] sm:$0xff] }
 0x167   : > { %1215 = vmatpush.msrb.mxu2 %v1052_v22  ;;  %1303 = vmatpush.msra.mxu1 %v1049_v27  ;;  %v1046_v22 = vld [vmem:[#allocation8 + $0x5b0] sm:$0xff] }
 0x168   : > { %1246 = vmatpush.msrb.mxu3 %v1108_v25  ;;  %1284 = vmatpush.msra.mxu0 %v1136_v46  ;;  %v1042_v25 = vld [vmem:[#allocation8 + $0x590] sm:$0xff] }
 0x169   : > { %802 = vrot.lane.b32.xlu1 %v782_v9, %s5220_s13  ;;  %1216 = vmatpush.msrb.mxu2 %v1048_v26  ;;  %v1130_v9 = vld [vmem:[#allocation8 + $0x850] sm:$0xff]  ;;  %v1101_v26 = vld [vmem:[#allocation8 + $0x768] sm:$0xff] }
 0x16a   : > { %1247 = vmatpush.msrb.mxu3 %v1104_v28  ;;  %1304 = vmatpush.msra.mxu1 %v1045_v31  ;;  %v1038_v27 = vld [vmem:[#allocation8 + $0x570] sm:$0xff] }
 0x16b   : > { %1217 = vmatpush.msrb.mxu2 %v1044_v30  ;;  %1385 = vmatpush.msrb.mxu0 %v1070_v7  ;;  %v1102_v28 = vld [vmem:[#allocation8 + $0x770] sm:$0xff] }
 0x16c   : > { %1248 = vmatpush.msrb.mxu3 %v1100_v29  ;;  %1305 = vmatpush.msra.mxu1 %v1041_v33  ;;  %v1097_v29 = vld [vmem:[#allocation8 + $0x748] sm:$0xff]  ;;  %v1034_v30 = vld [vmem:[#allocation8 + $0x550] sm:$0xff] }
 0x16d   : > { %1218 = vmatpush.msrb.mxu2 %v1040_v32  ;;  %1386 = vmatpush.msrb.mxu0 %v1066_v54  ;;  %v1098_v32 = vld [vmem:[#allocation8 + $0x750] sm:$0xff] }
 0x16e   : > { %1249 = vmatpush.msrb.mxu3 %v1096_v36  ;;  %1306 = vmatpush.msra.mxu1 %v1037_v35  ;;  %v1093_v35 = vld [vmem:[#allocation8 + $0x728] sm:$0xff]  ;;  %v1030_v36 = vld [vmem:[#allocation8 + $0x530] sm:$0xff] }
 0x16f   : > { %1219 = vmatpush.msrb.mxu2 %v1036_v34  ;;  %1387 = vmatpush.msrb.mxu0 %v1062_v1  ;;  %v1022_v52 = vld [vmem:[#allocation8 + $0x4f0] sm:$0xff] }
 0x170   : > { %1250 = vmatpush.msrb.mxu3 %v1092_v37  ;;  %1307 = vmatpush.msra.mxu1 %v1033_v39  ;;  %v1149_v37 = vld [vmem:[#allocation8 + $0x8e8] sm:$0xff]  ;;  %v1094_v39 = vld [vmem:[#allocation8 + $0x730] sm:$0xff] }
 0x171   : > { %1220 = vmatpush.msrb.mxu2 %v1032_v38  ;;  %1388 = vmatpush.msrb.mxu0 %v1058_v12  ;;  %v1078_v46 = vld [vmem:[#allocation8 + $0x6b0] sm:$0xff]  ;;  %v1135_v12 = vld [vmem:[#allocation8 + $0x878] sm:$0xff] }
 0x172   : > { %1251 = vmatpush.msrb.mxu3 %v1088_v40  ;;  %1308 = vmatpush.msra.mxu1 %v1029_v44  ;;  %v1090_v44 = vld [vmem:[#allocation8 + $0x710] sm:$0xff] }
 0x173   : > { %1221 = vmatpush.msrb.mxu2 %v1028_v43  ;;  %1389 = vmatpush.msrb.mxu0 %v1054_v15  ;;  %v1026_v43 = vld [vmem:[#allocation8 + $0x510] sm:$0xff] }
 0x174   : > { %1252 = vmatpush.msrb.mxu3 %v1084_v42  ;;  %1309 = vmatpush.msra.mxu1 %v1025_v48  ;;  %v1089_v42 = vld [vmem:[#allocation8 + $0x708] sm:$0xff]  ;;  %v1014_v54 = vld [vmem:[#allocation8 + $0x4b0] sm:$0xff] }
 0x175   : > { %1222 = vmatpush.msrb.mxu2 %v1024_v47  ;;  %1390 = vmatpush.msrb.mxu0 %v1050_v18  ;;  %v1074_v1 = vld [vmem:[#allocation8 + $0x690] sm:$0xff]  ;;  %v1067_v18 = vld [vmem:[#allocation8 + $0x658] sm:$0xff] }
 0x176   : > { %1253 = vmatpush.msrb.mxu3 %v1080_v50  ;;  %1310 = vmatpush.msra.mxu1 %v1021_v53  ;;  %v1086_v53 = vld [vmem:[#allocation8 + $0x6f0] sm:$0xff] }
 0x177   : > { %1223 = vmatpush.msrb.mxu2 %v1020_v51  ;;  %1391 = vmatpush.msrb.mxu0 %v1046_v22  ;;  %v1085_v51 = vld [vmem:[#allocation8 + $0x6e8] sm:$0xff] }
 0x178   : > { %1254 = vmatpush.msrb.mxu3 %v1076_v56  ;;  %1311 = vmatpush.msra.mxu1 %v1017_v58  ;;  %v1018_v56 = vld [vmem:[#allocation8 + $0x4d0] sm:$0xff] }
 0x179   : > { %1224 = vmatpush.msrb.mxu2 %v1016_v57  ;;  %1392 = vmatpush.msrb.mxu0 %v1042_v25  ;;  %v1082_v57 = vld [vmem:[#allocation8 + $0x6d0] sm:$0xff] }
 0x17a   : > { %1255 = vmatpush.msrb.mxu3 %v1072_v60  ;;  %1312 = vmatpush.msra.mxu1 %v1013_v45  ;;  %v1145_v60 = vld [vmem:[#allocation8 + $0x8c8] sm:$0xff] }
 0x17b   : > { %1225 = vmatpush.msrb.mxu2 %v1012_v62  ;;  %1393 = vmatpush.msrb.mxu0 %v1038_v27  ;;  %v1063_v27 = vld [vmem:[#allocation8 + $0x638] sm:$0xff] }
 0x17c   : > { %1313 = vmatpush.msra.mxu1 %v1009_v4  ;;  %1368 = vmatpush.msra.mxu3 %v1149_v37 }
 0x17d   : > { %1226 = vmatpush.msrb.mxu2 %v1008_v2  ;;  %1394 = vmatpush.msrb.mxu0 %v1034_v30  ;;  %v1059_v30 = vld [vmem:[#allocation8 + $0x618] sm:$0xff] }
 0x17e   : > { %1414 = vmatpush.msrb.mxu1 %v1134_v49  ;;  %1369 = vmatpush.msra.mxu3 %v1145_v60  ;;  %v1141_v49 = vld [vmem:[#allocation8 + $0x8a8] sm:$0xff] }
 0x17f   : > { %1327 = vmatpush.msra.mxu2 %v1133_v6  ;;  %1395 = vmatpush.msrb.mxu0 %v1030_v36 }
 0x180   : > { %1415 = vmatpush.msrb.mxu1 %v1130_v9  ;;  %1370 = vmatpush.msra.mxu3 %v1141_v49  ;;  %v1151_v49 = vld [vmem:[#allocation8 + $0x8f8] sm:$0xff] }
 0x181   : > { %1328 = vmatpush.msra.mxu2 %v1129_v8  ;;  %1396 = vmatpush.msrb.mxu0 %v1026_v43 }
 0x182   : > { %1416 = vmatpush.msrb.mxu1 %v1126_v3  ;;  %v1010_v3 = vld [vmem:[#allocation8 + $0x490] sm:$0xff] }
 0x183   : > { %1329 = vmatpush.msra.mxu2 %v1125_v11  ;;  %1397 = vmatpush.msrb.mxu0 %v1022_v52  ;;  %v1073_v11 = vld [vmem:[#allocation8 + $0x688] sm:$0xff] }
 0x184   : > { %1417 = vmatpush.msrb.mxu1 %v1122_v13  ;;  %v1071_v13 = vld [vmem:[#allocation8 + $0x678] sm:$0xff] }
 0x185   : > { %1330 = vmatpush.msra.mxu2 %v1121_v5  ;;  %1398 = vmatpush.msrb.mxu0 %v1018_v56  ;;  %v1137_v5 = vld [vmem:[#allocation8 + $0x888] sm:$0xff] }
 0x186   : > { %1418 = vmatpush.msrb.mxu1 %v1118_v16  ;;  %1371 = vmatpush.msra.mxu3 %v1137_v5  ;;  %v1142_v5 = vld [vmem:[#allocation8 + $0x8b0] sm:$0xff] }
 0x187   : > { %1331 = vmatpush.msra.mxu2 %v1117_v14  ;;  %1399 = vmatpush.msrb.mxu0 %v1014_v54  ;;  %v1095_v54 = vld [vmem:[#allocation8 + $0x738] sm:$0xff] }
 0x188   : > { %1419 = vmatpush.msrb.mxu1 %v1114_v19 }
 0x189   : > { %1332 = vmatpush.msra.mxu2 %v1113_v17  ;;  %1400 = vmatpush.msrb.mxu0 %v1010_v3  ;;  %v1131_v17 = vld [vmem:[#allocation8 + $0x858] sm:$0xff] }
 0x18a   : > { %1420 = vmatpush.msrb.mxu1 %v1110_v23  ;;  %v1027_v3 = vld [vmem:[#allocation8 + $0x518] sm:$0xff] }
 0x18b   : > { %1333 = vmatpush.msra.mxu2 %v1109_v21 }
 0x18c   : > { %1421 = vmatpush.msrb.mxu1 %v1106_v0 }
 0x18d   : > { %1334 = vmatpush.msra.mxu2 %v1105_v24 }
 0x18e   : > { %1422 = vmatpush.msrb.mxu1 %v1102_v28  ;;  %v1123_v28 = vld [vmem:[#allocation8 + $0x818] sm:$0xff] }
 0x18f   : > { %1335 = vmatpush.msra.mxu2 %v1101_v26 }
 0x190   : > { %1423 = vmatpush.msrb.mxu1 %v1098_v32 }
 0x191   : > { %1336 = vmatpush.msra.mxu2 %v1097_v29 }
 0x192   : > { %1424 = vmatpush.msrb.mxu1 %v1094_v39 }
 0x193   : > { %1337 = vmatpush.msra.mxu2 %v1093_v35 }
 0x194   : > { %1425 = vmatpush.msrb.mxu1 %v1090_v44  ;;  %v1111_v44 = vld [vmem:[#allocation8 + $0x7b8] sm:$0xff] }
 0x195   : > { %1338 = vmatpush.msra.mxu2 %v1089_v42  ;;  %v1051_v42 = vld [vmem:[#allocation8 + $0x5d8] sm:$0xff] }
 0x196   : > { %1426 = vmatpush.msrb.mxu1 %v1086_v53 }
 0x197   : > { %1339 = vmatpush.msra.mxu2 %v1085_v51  ;;  %v1043_v51 = vld [vmem:[#allocation8 + $0x598] sm:$0xff] }
 0x198   : > { %1427 = vmatpush.msrb.mxu1 %v1082_v57  ;;  %v1039_v57 = vld [vmem:[#allocation8 + $0x578] sm:$0xff] }
 0x199   : > { %1340 = vmatpush.msra.mxu2 %v1081_v55 }
 0x19a   : > { %1428 = vmatpush.msrb.mxu1 %v1078_v46  ;;  %v1035_v46 = vld [vmem:[#allocation8 + $0x558] sm:$0xff] }
 0x19c   : > { %1429 = vmatpush.msrb.mxu1 %v1074_v1  ;;  %v1147_v1 = vld [vmem:[#allocation8 + $0x8d8] sm:$0xff] }
 0x1a2   : > { %v785_v41 = vpop.permute.xlu2 %784 }
 0x1a3   : > { %826 = vst.msk [vmem:[#allocation3] sm:$0xfc] %vm825_vm6, %v785_v41  ;;  %vm4095_vm6 = vcmask 1042434  }
 0x1aa   : > { %v787_v59 = vpop.permute.xlu2 %786  ;;  %v1001_v48 = vld [vmem:[#allocation3] sm:$0xfe] }
 0x1ab   : > { %v805_v61 = vsel %vm804_vm7, %v785_v41, %v787_v59  ;;  %829 = vst.msk [vmem:[#allocation3 + $0x10] sm:$0xfc] %vm828_vm8, %v787_v59  ;;  %v1168_v4 = vrot.slane %v1001_v48, 1  ;;  %v1047_v48 = vld [vmem:[#allocation8 + $0x5b8] sm:$0xff]  ;;  %vm4099_vm8 = vcmask 1044484  }
 0x1ac   : > { %827 = vst [vmem:[#allocation3 + $0x8] sm:$0xfc] %v805_v61  ;;  %v1077_v61 = vld [vmem:[#allocation8 + $0x6a8] sm:$0xff] }
 0x1ad   : > { %1341 = vmatpush.msra.mxu2 %v1077_v61  ;;  %v1103_v61 = vld [vmem:[#allocation8 + $0x778] sm:$0xff] }
 0x1af   : > { %1342 = vmatpush.msra.mxu2 %v1073_v11  ;;  %v1146_v11 = vld [vmem:[#allocation8 + $0x8d0] sm:$0xff] }
 0x1b2   : > { %v1003_v50 = vld [vmem:[#allocation3 + $0x10] sm:$0xfe] }
 0x1b3   : > { %v5449_v10 = vpop.permute.xlu2 %792  ;;  %v1002_v31 = vld [vmem:[#allocation3 + $0x8] sm:$0xfe]  ;;  %v1174_v45 = vrot.slane %v1003_v50, 1 }
 0x1b4   : > { %834 = vst.msk [vmem:[#allocation3 + $0x30] sm:$0xff] %vm830_vm9, %v5449_v10  ;;  %v1171_v40 = vrot.slane %v1002_v31, 1  ;;  %v1119_v31 = vld [vmem:[#allocation8 + $0x7f8] sm:$0xff] }
 0x1b5   : > { %v1107_v50 = vld [vmem:[#allocation8 + $0x798] sm:$0xff] }
 0x1bb   : > { %v5454_v20 = vpop.permute.xlu2 %798  ;;  %v5496_v14 = vld [vmem:[#allocation3 + $0x30] sm:$0xff] }
 0x1bc   : > { %839 = vst.msk [vmem:[#allocation3 + $0x58] sm:$0xff] %vm804_vm7, %v5454_v20  ;;  %v1177_v23 = vrot.slane %v5496_v14, 1 }
 0x1c3   : > { %v791_v33 = vpop.permute.xlu1 %790  ;;  %v789_v34 = vpop.permute.xlu0 %788  ;;  %v5522_v29 = vld [vmem:[#allocation3 + $0x58] sm:$0xff] }
 0x1c4   : > { %833 = vst.msk [vmem:[#allocation3 + $0x28] sm:$0xff] %vm804_vm7, %v791_v33  ;;  %v5460_v38 = vsel %vm804_vm7, %v789_v34, %v791_v33  ;;  %v1187_v37 = vrot.slane %v5522_v29, 1 }
 0x1c5   : > { %831 = vst.msk [vmem:[#allocation3 + $0x18] sm:$0xff] %vm830_vm9, %v789_v34  ;;  %v1172_v41 = vrot.slane %v5460_v38, 1  ;;  %v1055_v34 = vld [vmem:[#allocation8 + $0x5f8] sm:$0xff] }
 0x1c6   : > { %832 = vst [vmem:[#allocation3 + $0x20] sm:$0xff] %v5460_v38 }
 0x1c7   : > { %v5466_v47 = vsel %vm1167_vm11, %v1171_v40, %v1172_v41 }
 0x1c8   : > { %1256 = vmatmul.f32.vlgmr.msrb.gmra.mxu3 %v5466_v47 }
 0x1c9   : > { %1472 = vmatpush.msrb.mxu3 %v1071_v13  ;;  %v1091_v13 = vld [vmem:[#allocation8 + $0x718] sm:$0xff] }
 0x1cb   : > { %v795_v58 = vpop.permute.xlu0 %794  ;;  %v5469_v59 = vld [vmem:[#allocation3 + $0x28] sm:$0xff]  ;;  %1473 = vmatpush.msrb.mxu3 %v1067_v18 }
 0x1cc   : > { %v5473_v62 = vsel %vm804_vm7, %v5449_v10, %v795_v58  ;;  %836 = vst.msk [vmem:[#allocation3 + $0x40] sm:$0xff] %vm804_vm7, %v795_v58  ;;  %v5476_v63 = vld [vmem:[#allocation3 + $0x18] sm:$0xff]  ;;  %v1175_v2 = vrot.slane %v5469_v59, 1  ;;  %v1087_v18 = vld [vmem:[#allocation8 + $0x6f8] sm:$0xff] }
 0x1cd   : > { %835 = vst [vmem:[#allocation3 + $0x38] sm:$0xff] %v5473_v62  ;;  %v1169_v6 = vrot.slane %v5476_v63, 1  ;;  %v1179_v7 = vrot.slane %v5473_v62, 1  ;;  %1474 = vmatpush.msrb.mxu3 %v1063_v27  ;;  %v1015_v27 = vld [vmem:[#allocation8 + $0x4b8] sm:$0xff] }
 0x1ce   : > { %v5483_v8 = vsel %vm1167_vm11, %v1174_v45, %v1175_v2 }
 0x1cf   : > { %v5486_v9 = vsel %vm1167_vm11, %v1168_v4, %v1169_v6  ;;  %4823 = vmatmul.msk.f32.vlgmr.msra.gmra.mxu0 %vm746_vm5, %v5483_v8  ;;  %v5491_v10 = vsel %vm1167_vm11, %v1172_v41, %v1179_v7  ;;  %v5513_v0 = vsel %vm1167_vm11, %v1169_v6, %v1177_v23  ;;  %1475 = vmatpush.msrb.mxu3 %v1059_v30  ;;  %v1115_v41 = vld [vmem:[#allocation8 + $0x7d8] sm:$0xff]  ;;  %v1150_v6 = vld [vmem:[#allocation8 + $0x8f0] sm:$0xff]  ;;  %v914_v30 = vld [vmem:[#allocation8 + $0x1c8] sm:$0xff] }
 0x1d0   : > { %1227 = vmatmul.f32.vlgmr.msrb.gmra.mxu2 %v5486_v9  ;;  %1314 = vmatmul.f32.vlgmr.msra.gmra.mxu1 %v5486_v9  ;;  %v1099_v4 = vld [vmem:[#allocation8 + $0x758] sm:$0xff] }
 0x1d1   : > { %1259 = vmatmul.f32.gmra.mxu3 %v5491_v10  ;;  %1501 = vmatpush.msra.mxu0 %v1135_v12  ;;  %v1143_v12 = vld [vmem:[#allocation8 + $0x8b8] sm:$0xff] }
 0x1d2   : > { %1476 = vmatpush.msrb.mxu3 %v1055_v34  ;;  %1455 = vmatpush.msrb.mxu2 %v1150_v6  ;;  %v909_v34 = vld [vmem:[#allocation8 + $0x1a0] sm:$0xff] }
 0x1d3   : > { %v797_v15 = vpop.permute.xlu1 %796  ;;  %v5498_v16 = vld [vmem:[#allocation3 + $0x40] sm:$0xff]  ;;  %1502 = vmatpush.msra.mxu0 %v1131_v17  ;;  %1542 = vmatpush.msra.mxu1 %v1151_v49  ;;  %v957_v6 = vld [vmem:[#allocation8 + $0x320] sm:$0xff] }
 0x1d4   : > { %v5502_v19 = vsel %vm804_vm7, %v797_v15, %v5454_v20  ;;  %837 = vst.msk [vmem:[#allocation3 + $0x48] sm:$0xff] %vm830_vm9, %v797_v15  ;;  %v801_v21 = vpop.permute.xlu0 %800  ;;  %v1181_v22 = vrot.slane %v5498_v16, 1  ;;  %v1127_v20 = vld [vmem:[#allocation8 + $0x838] sm:$0xff]  ;;  %1477 = vmatpush.msrb.mxu3 %v1051_v42  ;;  %1456 = vmatpush.msrb.mxu2 %v1146_v11  ;;  %v1138_v17 = vld [vmem:[#allocation8 + $0x890] sm:$0xff]  ;;  %v977_v42 = vld [vmem:[#allocation8 + $0x3c0] sm:$0xff]  ;;  %vm4101_vm9 = vcmask 1045509  }
 0x1d5   : > { %838 = vst [vmem:[#allocation3 + $0x50] sm:$0xff] %v5502_v19  ;;  %v1185_v24 = vrot.slane %v5502_v19, 1  ;;  %1503 = vmatpush.msra.mxu0 %v1127_v20  ;;  %1543 = vmatpush.msra.mxu1 %v1147_v1  ;;  %v1023_v15 = vld [vmem:[#allocation8 + $0x4f8] sm:$0xff]  ;;  %v918_v20 = vld [vmem:[#allocation8 + $0x1e8] sm:$0xff]  ;;  %v881_v49 = vld [vmem:[#allocation8 + $0xc0] sm:$0xff] }
 0x1d6   : > { %841 = vst.msk [vmem:[#allocation3 + $0x60] sm:$0x3] %vm840_vm12, %v801_v21  ;;  %v5510_v25 = vsel %vm1167_vm11, %v1175_v2, %v1181_v22  ;;  %v5534_v40 = vsel %vm1167_vm11, %v1181_v22, %v1187_v37  ;;  %1478 = vmatpush.msrb.mxu3 %v1047_v48  ;;  %1457 = vmatpush.msrb.mxu2 %v1142_v5  ;;  %v1019_v22 = vld [vmem:[#allocation8 + $0x4d8] sm:$0xff]  ;;  %v973_v48 = vld [vmem:[#allocation8 + $0x3a0] sm:$0xff]  ;;  %v882_v11 = vld [vmem:[#allocation8 + $0xc8] sm:$0xff] }
 0x1d7   : > { %4824 = vmatmul.msk.f32.gmra.mxu0 %vm746_vm5, %v5510_v25  ;;  %v5518_v26 = vsel %vm1167_vm11, %v1179_v7, %v1185_v24  ;;  %v1031_v7 = vld [vmem:[#allocation8 + $0x538] sm:$0xff]  ;;  %1544 = vmatpush.msra.mxu1 %v1143_v12  ;;  %v997_v1 = vld [vmem:[#allocation8 + $0x460] sm:$0xff] }
 0x1d8   : > { %1230 = vmatmul.f32.gmra.mxu2 %v5513_v0  ;;  %1317 = vmatmul.f32.gmra.mxu1 %v5513_v0  ;;  %v993_v5 = vld [vmem:[#allocation8 + $0x440] sm:$0xff] }
 0x1d9   : > { %1262 = vmatmul.f32.gmra.mxu3 %v5518_v26  ;;  %1504 = vmatpush.msra.mxu0 %v1123_v28  ;;  %v913_v28 = vld [vmem:[#allocation8 + $0x1c0] sm:$0xff] }
 0x1da   : > { %1479 = vmatpush.msrb.mxu3 %v1043_v51  ;;  %1458 = vmatpush.msrb.mxu2 %v1138_v17  ;;  %v969_v51 = vld [vmem:[#allocation8 + $0x380] sm:$0xff]  ;;  %v874_v17 = vld [vmem:[#allocation8 + $0x88] sm:$0xff] }
 0x1db   : > { %v803_v32 = vpop.permute.xlu1 %802  ;;  %v5525_v33 = vld [vmem:[#allocation3 + $0x48] sm:$0xff]  ;;  %1505 = vmatpush.msra.mxu0 %v1119_v31  ;;  %v949_v12 = vld [vmem:[#allocation8 + $0x2e0] sm:$0xff] }
 0x1dc   : > { %v809_v35 = vsel %vm804_vm7, %v801_v21, %v803_v32  ;;  %844 = vst.msk [vmem:[#allocation3 + $0x70] sm:$0x3] %vm843_vm13, %v803_v32  ;;  %v1183_v36 = vrot.slane %v5525_v33, 1  ;;  %1480 = vmatpush.msrb.mxu3 %v1039_v57  ;;  %v1139_v21 = vld [vmem:[#allocation8 + $0x898] sm:$0xff]  ;;  %v894_v57 = vld [vmem:[#allocation8 + $0x128] sm:$0xff]  ;;  %vm4097_vm7 = vcmask 1043459  }
 0x1dd   : > { %842 = vst [vmem:[#allocation3 + $0x68] sm:$0x3] %v809_v35  ;;  %v1004_v43 = vld [vmem:[#allocation3 + $0x60] sm:$0x1]  ;;  %1506 = vmatpush.msra.mxu0 %v1115_v41  ;;  %1545 = vmatpush.msra.mxu1 %v1139_v21  ;;  %v1079_v31 = vld [vmem:[#allocation8 + $0x6b8] sm:$0xff]  ;;  %v905_v41 = vld [vmem:[#allocation8 + $0x180] sm:$0xff] }
 0x1de   : > { %v5531_v39 = vsel %vm1167_vm11, %v1177_v23, %v1183_v36  ;;  %v1189_v52 = vrot.slane %v1004_v43, 1  ;;  %1481 = vmatpush.msrb.mxu3 %v1035_v46  ;;  %v917_v23 = vld [vmem:[#allocation8 + $0x1e0] sm:$0xff]  ;;  %v1011_v32 = vld [vmem:[#allocation8 + $0x498] sm:$0xff]  ;;  %v906_v43 = vld [vmem:[#allocation8 + $0x188] sm:$0xff] }
 0x1df   : > { %4825 = vmatmul.msk.f32.gmra.mxu0 %vm746_vm5, %v5534_v40  ;;  %v1075_v35 = vld [vmem:[#allocation8 + $0x698] sm:$0xff]  ;;  %v890_v46 = vld [vmem:[#allocation8 + $0x108] sm:$0xff]  ;;  %v869_v21 = vld [vmem:[#allocation8 + $0x60] sm:$0xff] }
 0x1e0   : > { %1233 = vmatmul.f32.gmra.mxu2 %v5531_v39  ;;  %1320 = vmatmul.f32.gmra.mxu1 %v5531_v39  ;;  %v5544_v45 = vsel %vm1167_vm11, %v1183_v36, %v1189_v52  ;;  %v981_v36 = vld [vmem:[#allocation8 + $0x3e0] sm:$0xff] }
 0x1e1   : > { %1507 = vmatpush.msra.mxu0 %v1111_v44  ;;  %1482 = vmatpush.msrb.mxu3 %v1031_v7  ;;  %v901_v44 = vld [vmem:[#allocation8 + $0x160] sm:$0xff]  ;;  %v886_v7 = vld [vmem:[#allocation8 + $0xe8] sm:$0xff] }
 0x1e2   : > { %v897_v52 = vld [vmem:[#allocation8 + $0x140] sm:$0xff] }
 0x1e3   : > { %v1006_v53 = vld [vmem:[#allocation3 + $0x70] sm:$0x1]  ;;  %1508 = vmatpush.msra.mxu0 %v1107_v50  ;;  %1483 = vmatpush.msrb.mxu3 %v1027_v3  ;;  %v902_v50 = vld [vmem:[#allocation8 + $0x168] sm:$0xff] }
 0x1e4   : > { %v1193_v55 = vrot.slane %v1006_v53, 1  ;;  %v1005_v56 = vld [vmem:[#allocation3 + $0x68] sm:$0x1]  ;;  %v898_v53 = vld [vmem:[#allocation8 + $0x148] sm:$0xff]  ;;  %v877_v3 = vld [vmem:[#allocation8 + $0xa0] sm:$0xff] }
 0x1e5   : > { %v1191_v58 = vrot.slane %v1005_v56, 1  ;;  %1509 = vmatpush.msra.mxu0 %v1103_v61  ;;  %1484 = vmatpush.msrb.mxu3 %v1023_v15  ;;  %v893_v56 = vld [vmem:[#allocation8 + $0x120] sm:$0xff] }
 0x1e6   : > { %v5541_v60 = vsel %vm1167_vm11, %v1187_v37, %v1193_v55  ;;  %v910_v37 = vld [vmem:[#allocation8 + $0x1a8] sm:$0xff]  ;;  %v965_v55 = vld [vmem:[#allocation8 + $0x360] sm:$0xff] }
 0x1e7   : > { %4826 = vmatmul.msk.f32.gmra.mxu0 %vm746_vm5, %v5541_v60  ;;  %v5549_v2 = vsel %vm1167_vm11, %v1185_v24, %v1191_v58  ;;  %v1083_v24 = vld [vmem:[#allocation8 + $0x6d8] sm:$0xff]  ;;  %1485 = vmatpush.msrb.mxu3 %v1019_v22  ;;  %v961_v58 = vld [vmem:[#allocation8 + $0x340] sm:$0xff]  ;;  %v870_v22 = vld [vmem:[#allocation8 + $0x68] sm:$0xff]  ;;  %vm4105_vm11 = vcmask 1047559  }
 0x1e8   : > { %1236 = vmatmul.f32.gmra.mxu2 %v5544_v45  ;;  %1323 = vmatmul.f32.gmra.mxu1 %v5544_v45  ;;  %v889_v61 = vld [vmem:[#allocation8 + $0x100] sm:$0xff] }
 0x1e9   : > { %1265 = vmatmul.f32.gmra.mxu3 %v5549_v2  ;;  %1510 = vmatpush.msra.mxu0 %v1099_v4  ;;  %v885_v4 = vld [vmem:[#allocation8 + $0xe0] sm:$0xff] }
 0x1ea   : > { %1486 = vmatpush.msrb.mxu3 %v1015_v27  ;;  %v873_v15 = vld [vmem:[#allocation8 + $0x80] sm:$0xff]  ;;  %v866_v27 = vld [vmem:[#allocation8 + $0x48] sm:$0xff] }
 0x1eb   : > { %1511 = vmatpush.msra.mxu0 %v1095_v54  ;;  %v953_v54 = vld [vmem:[#allocation8 + $0x300] sm:$0xff] }
 0x1ec   : > { %1487 = vmatpush.msrb.mxu3 %v1011_v32  ;;  %v858_v32 = vld [vmem:[#allocation8 + $0x8] sm:$0xff] }
 0x1ed   : > { %1512 = vmatpush.msra.mxu0 %v1091_v13  ;;  %v878_v13 = vld [vmem:[#allocation8 + $0xa8] sm:$0xff] }
 0x1ef   : > { %1401 = vmatmul.f32.vlgmr.msrb.gmra.mxu0 %v5486_v9 }
 0x1f0   : > { %1343 = vmatmul.f32.vlgmr.msra.gmra.mxu2 %v5466_v47  ;;  %1430 = vmatmul.f32.vlgmr.msrb.gmra.mxu1 %v5466_v47 }
 0x1f1   : > { %4827 = vmatmul.msk.f32.vlgmr.msra.gmra.mxu3 %vm746_vm5, %v5483_v8  ;;  %1513 = vmatpush.msra.mxu0 %v1087_v18  ;;  %v945_v18 = vld [vmem:[#allocation8 + $0x2c0] sm:$0xff] }
 0x1f2   : > { %1568 = vmatpush.msra.mxu2 %v917_v23  ;;  %1655 = vmatpush.msrb.mxu1 %v918_v20  ;;  %v989_v23 = vld [vmem:[#allocation8 + $0x420] sm:$0xff] }
 0x1f3   : > { %1514 = vmatpush.msra.mxu0 %v1083_v24  ;;  %1597 = vmatpush.msra.mxu3 %v981_v36  ;;  %v941_v24 = vld [vmem:[#allocation8 + $0x2a0] sm:$0xff] }
 0x1f4   : > { %1569 = vmatpush.msra.mxu2 %v913_v28  ;;  %1656 = vmatpush.msrb.mxu1 %v914_v30  ;;  %v865_v20 = vld [vmem:[#allocation8 + $0x40] sm:$0xff] }
 0x1f5   : > { %1515 = vmatpush.msra.mxu0 %v1079_v31  ;;  %1598 = vmatpush.msra.mxu3 %v977_v42  ;;  %v937_v28 = vld [vmem:[#allocation8 + $0x280] sm:$0xff]  ;;  %v862_v31 = vld [vmem:[#allocation8 + $0x28] sm:$0xff] }
 0x1f6   : > { %1570 = vmatpush.msra.mxu2 %v909_v34  ;;  %1657 = vmatpush.msrb.mxu1 %v910_v37  ;;  %v861_v30 = vld [vmem:[#allocation8 + $0x20] sm:$0xff]  ;;  %v982_v34 = vld [vmem:[#allocation8 + $0x3e8] sm:$0xff]  ;;  %v983_v37 = vld [vmem:[#allocation8 + $0x3f0] sm:$0xff] }
 0x1f7   : > { %1404 = vmatmul.f32.gmra.mxu0 %v5513_v0  ;;  %1599 = vmatpush.msra.mxu3 %v973_v48  ;;  %v929_v36 = vld [vmem:[#allocation8 + $0x240] sm:$0xff]  ;;  %v975_v48 = vld [vmem:[#allocation8 + $0x3b0] sm:$0xff] }
 0x1f8   : > { %1346 = vmatmul.f32.gmra.mxu2 %v5491_v10  ;;  %1433 = vmatmul.f32.gmra.mxu1 %v5491_v10  ;;  %v925_v42 = vld [vmem:[#allocation8 + $0x220] sm:$0xff] }
 0x1f9   : > { %4828 = vmatmul.msk.f32.gmra.mxu3 %vm746_vm5, %v5510_v25  ;;  %1516 = vmatpush.msra.mxu0 %v1075_v35  ;;  %v919_v35 = vld [vmem:[#allocation8 + $0x1f0] sm:$0xff] }
 0x1fa   : > { %1571 = vmatpush.msra.mxu2 %v905_v41  ;;  %1658 = vmatpush.msrb.mxu1 %v906_v43  ;;  %v978_v41 = vld [vmem:[#allocation8 + $0x3c8] sm:$0xff]  ;;  %v979_v43 = vld [vmem:[#allocation8 + $0x3d0] sm:$0xff] }
 0x1fb   : > { %1600 = vmatpush.msra.mxu3 %v969_v51  ;;  %1638 = vmatpush.msrb.mxu0 %v997_v1  ;;  %v907_v51 = vld [vmem:[#allocation8 + $0x190] sm:$0xff] }
 0x1fc   : > { %1572 = vmatpush.msra.mxu2 %v901_v44  ;;  %1659 = vmatpush.msrb.mxu1 %v902_v50  ;;  %v974_v44 = vld [vmem:[#allocation8 + $0x3a8] sm:$0xff]  ;;  %v951_v1 = vld [vmem:[#allocation8 + $0x2f0] sm:$0xff] }
 0x1fd   : > { %1601 = vmatpush.msra.mxu3 %v965_v55  ;;  %1639 = vmatpush.msrb.mxu0 %v993_v5  ;;  %v970_v50 = vld [vmem:[#allocation8 + $0x388] sm:$0xff]  ;;  %v903_v55 = vld [vmem:[#allocation8 + $0x170] sm:$0xff]  ;;  %v5606_v5 = vld [vmem:[#allocation3 + $0x8] sm:$0xff] }
 0x1fe   : > { %1573 = vmatpush.msra.mxu2 %v897_v52  ;;  %1660 = vmatpush.msrb.mxu1 %v898_v53  ;;  %v971_v52 = vld [vmem:[#allocation8 + $0x390] sm:$0xff]  ;;  %v966_v53 = vld [vmem:[#allocation8 + $0x368] sm:$0xff] }
 0x1ff   : > { %1407 = vmatmul.f32.gmra.mxu0 %v5531_v39  ;;  %1602 = vmatpush.msra.mxu3 %v961_v58  ;;  %v958_v58 = vld [vmem:[#allocation8 + $0x328] sm:$0xff] }
 0x200   : > { %1349 = vmatmul.f32.gmra.mxu2 %v5518_v26  ;;  %1436 = vmatmul.f32.gmra.mxu1 %v5518_v26 }
 0x201   : > { %4829 = vmatmul.msk.f32.gmra.mxu3 %vm746_vm5, %v5534_v40  ;;  %1574 = vmatpush.msra.mxu2 %v893_v56  ;;  %v962_v56 = vld [vmem:[#allocation8 + $0x348] sm:$0xff] }
 0x202   : > { %1661 = vmatpush.msrb.mxu1 %v894_v57  ;;  %1603 = vmatpush.msra.mxu3 %v957_v6  ;;  %v998_v57 = vld [vmem:[#allocation8 + $0x468] sm:$0xff]  ;;  %v891_v6 = vld [vmem:[#allocation8 + $0x110] sm:$0xff] }
 0x203   : > { %1575 = vmatpush.msra.mxu2 %v889_v61  ;;  %1640 = vmatpush.msrb.mxu0 %v989_v23  ;;  %v895_v61 = vld [vmem:[#allocation8 + $0x130] sm:$0xff]  ;;  %v938_v23 = vld [vmem:[#allocation8 + $0x288] sm:$0xff] }
 0x204   : > { %1662 = vmatpush.msrb.mxu1 %v890_v46  ;;  %1604 = vmatpush.msra.mxu3 %v953_v54  ;;  %v959_v46 = vld [vmem:[#allocation8 + $0x330] sm:$0xff]  ;;  %v5598_v54 = vld [vmem:[#allocation3 + $0x10] sm:$0xff] }
 0x205   : > { %1576 = vmatpush.msra.mxu2 %v885_v4  ;;  %v954_v4 = vld [vmem:[#allocation8 + $0x308] sm:$0xff] }
 0x206   : > { %1663 = vmatpush.msrb.mxu1 %v886_v7  ;;  %1605 = vmatpush.msra.mxu3 %v949_v12  ;;  %v950_v7 = vld [vmem:[#allocation8 + $0x2e8] sm:$0xff]  ;;  %v883_v12 = vld [vmem:[#allocation8 + $0xd0] sm:$0xff] }
 0x207   : > { %1410 = vmatmul.f32.gmra.mxu0 %v5544_v45  ;;  %1577 = vmatpush.msra.mxu2 %v881_v49  ;;  %v994_v49 = vld [vmem:[#allocation8 + $0x448] sm:$0xff] }
 0x208   : > { %1352 = vmatmul.f32.gmra.mxu2 %v5549_v2  ;;  %1439 = vmatmul.f32.gmra.mxu1 %v5549_v2 }
 0x209   : > { %4830 = vmatmul.msk.f32.gmra.mxu3 %vm746_vm5, %v5541_v60  ;;  %1664 = vmatpush.msrb.mxu1 %v882_v11  ;;  %v5600_v11 = vld [vmem:[#allocation3] sm:$0xff] }
 0x20a   : > { %1578 = vmatpush.msra.mxu2 %v877_v3  ;;  %1606 = vmatpush.msra.mxu3 %v945_v18  ;;  %v946_v3 = vld [vmem:[#allocation8 + $0x2c8] sm:$0xff]  ;;  %v879_v18 = vld [vmem:[#allocation8 + $0xb0] sm:$0xff] }
 0x20b   : > { %1665 = vmatpush.msrb.mxu1 %v878_v13  ;;  %v986_v13 = vld [vmem:[#allocation8 + $0x408] sm:$0xff] }
 0x20c   : > { %1579 = vmatpush.msra.mxu2 %v873_v15  ;;  %1607 = vmatpush.msra.mxu3 %v941_v24  ;;  %v947_v15 = vld [vmem:[#allocation8 + $0x2d0] sm:$0xff]  ;;  %v916_v24 = vld [vmem:[#allocation8 + $0x1d8] sm:$0xff] }
 0x20d   : > { %1666 = vmatpush.msrb.mxu1 %v874_v17  ;;  %v942_v17 = vld [vmem:[#allocation8 + $0x2a8] sm:$0xff] }
 0x20e   : > { %1580 = vmatpush.msra.mxu2 %v869_v21  ;;  %1608 = vmatpush.msra.mxu3 %v937_v28  ;;  %v920_v21 = vld [vmem:[#allocation8 + $0x1f8] sm:$0xff]  ;;  %v871_v28 = vld [vmem:[#allocation8 + $0x70] sm:$0xff] }
 0x20f   : > { %1517 = vmatmul.f32.vlgmr.msra.gmra.mxu0 %v5466_v47  ;;  %v985_v47 = vld [vmem:[#allocation8 + $0x400] sm:$0xff]  ;;  %1667 = vmatpush.msrb.mxu1 %v870_v22  ;;  %v943_v22 = vld [vmem:[#allocation8 + $0x2b0] sm:$0xff] }
 0x210   : > { %4831 = vmatmul.msk.f32.vlgmr.msrb.gmra.mxu2 %vm746_vm5, %v5483_v8  ;;  %4835 = vmatmul.msk.f32.vlgmr.msra.gmra.mxu1 %vm746_vm5, %v5483_v8  ;;  %v857_v8 = vld [vmem:[#allocation8] sm:$0xff] }
 0x211   : > { %1488 = vmatmul.f32.vlgmr.msrb.gmra.mxu3 %v5486_v9  ;;  %1581 = vmatpush.msra.mxu2 %v865_v20  ;;  %v933_v9 = vld [vmem:[#allocation8 + $0x260] sm:$0xff]  ;;  %v875_v20 = vld [vmem:[#allocation8 + $0x90] sm:$0xff] }
 0x212   : > { %1668 = vmatpush.msrb.mxu1 %v866_v27  ;;  %1641 = vmatpush.msrb.mxu0 %v985_v47  ;;  %v939_v27 = vld [vmem:[#allocation8 + $0x290] sm:$0xff]  ;;  %v934_v47 = vld [vmem:[#allocation8 + $0x268] sm:$0xff] }
 0x213   : > { %1582 = vmatpush.msra.mxu2 %v861_v30  ;;  %1609 = vmatpush.msra.mxu3 %v933_v9  ;;  %v912_v30 = vld [vmem:[#allocation8 + $0x1b8] sm:$0xff]  ;;  %v867_v9 = vld [vmem:[#allocation8 + $0x50] sm:$0xff] }
 0x214   : > { %1669 = vmatpush.msrb.mxu1 %v862_v31  ;;  %1742 = vmatpush.msra.mxu0 %v919_v35  ;;  %v935_v31 = vld [vmem:[#allocation8 + $0x270] sm:$0xff]  ;;  %v904_v35 = vld [vmem:[#allocation8 + $0x178] sm:$0xff] }
 0x215   : > { %1583 = vmatpush.msra.mxu2 %v857_v8  ;;  %1610 = vmatpush.msra.mxu3 %v929_v36  ;;  %v930_v8 = vld [vmem:[#allocation8 + $0x248] sm:$0xff]  ;;  %v863_v36 = vld [vmem:[#allocation8 + $0x30] sm:$0xff] }
 0x216   : > { %1670 = vmatpush.msrb.mxu1 %v858_v32  ;;  %v908_v32 = vld [vmem:[#allocation8 + $0x198] sm:$0xff] }
 0x217   : > { %1520 = vmatmul.f32.gmra.mxu0 %v5491_v10  ;;  %v915_v10 = vld [vmem:[#allocation8 + $0x1d0] sm:$0xff]  ;;  %1684 = vmatpush.msrb.mxu2 %v982_v34  ;;  %v926_v34 = vld [vmem:[#allocation8 + $0x228] sm:$0xff] }
 0x218   : > { %4832 = vmatmul.msk.f32.gmra.mxu2 %vm746_vm5, %v5510_v25  ;;  %4836 = vmatmul.msk.f32.gmra.mxu1 %vm746_vm5, %v5510_v25  ;;  %v911_v25 = vld [vmem:[#allocation8 + $0x1b0] sm:$0xff] }
 0x219   : > { %1491 = vmatmul.f32.gmra.mxu3 %v5513_v0  ;;  %1771 = vmatpush.msra.mxu1 %v983_v37  ;;  %v921_v0 = vld [vmem:[#allocation8 + $0x200] sm:$0xff]  ;;  %v922_v37 = vld [vmem:[#allocation8 + $0x208] sm:$0xff] }
 0x21a   : > { %1685 = vmatpush.msrb.mxu2 %v978_v41  ;;  %1743 = vmatpush.msra.mxu0 %v915_v10  ;;  %v859_v41 = vld [vmem:[#allocation8 + $0x10] sm:$0xff]  ;;  %v900_v10 = vld [vmem:[#allocation8 + $0x158] sm:$0xff] }
 0x21b   : > { %1611 = vmatpush.msra.mxu3 %v925_v42  ;;  %1772 = vmatpush.msra.mxu1 %v979_v43  ;;  %v923_v42 = vld [vmem:[#allocation8 + $0x210] sm:$0xff]  ;;  %v984_v43 = vld [vmem:[#allocation8 + $0x3f8] sm:$0xff] }
 0x21c   : > { %1686 = vmatpush.msrb.mxu2 %v974_v44  ;;  %1744 = vmatpush.msra.mxu0 %v911_v25  ;;  %v896_v44 = vld [vmem:[#allocation8 + $0x138] sm:$0xff] }
 0x21d   : > { %1612 = vmatpush.msra.mxu3 %v921_v0  ;;  %1773 = vmatpush.msra.mxu1 %v975_v48  ;;  %v980_v25 = vld [vmem:[#allocation8 + $0x3d8] sm:$0xff] }
 0x21e   : > { %1687 = vmatpush.msrb.mxu2 %v970_v50  ;;  %1745 = vmatpush.msra.mxu0 %v907_v51  ;;  %v892_v0 = vld [vmem:[#allocation8 + $0x118] sm:$0xff]  ;;  %v999_v51 = vld [vmem:[#allocation8 + $0x470] sm:$0xff] }
 0x21f   : > { %1523 = vmatmul.f32.gmra.mxu0 %v5518_v26  ;;  %v967_v26 = vld [vmem:[#allocation8 + $0x370] sm:$0xff]  ;;  %1774 = vmatpush.msra.mxu1 %v971_v52  ;;  %v976_v48 = vld [vmem:[#allocation8 + $0x3b8] sm:$0xff] }
 0x220   : > { %4833 = vmatmul.msk.f32.gmra.mxu2 %vm746_vm5, %v5534_v40  ;;  %4837 = vmatmul.msk.f32.gmra.mxu1 %vm746_vm5, %v5534_v40  ;;  %v899_v40 = vld [vmem:[#allocation8 + $0x150] sm:$0xff]  ;;  %v972_v50 = vld [vmem:[#allocation8 + $0x398] sm:$0xff] }
 0x221   : > { %1494 = vmatmul.f32.gmra.mxu3 %v5531_v39  ;;  %1688 = vmatpush.msrb.mxu2 %v966_v53  ;;  %v963_v39 = vld [vmem:[#allocation8 + $0x350] sm:$0xff]  ;;  %v884_v52 = vld [vmem:[#allocation8 + $0xd8] sm:$0xff] }
 0x222   : > { %1746 = vmatpush.msra.mxu0 %v903_v55  ;;  %1775 = vmatpush.msra.mxu1 %v967_v26  ;;  %v1000_v53 = vld [vmem:[#allocation8 + $0x478] sm:$0xff] }
 0x223   : > { %1725 = vmatpush.msrb.mxu3 %v998_v57  ;;  %1689 = vmatpush.msrb.mxu2 %v962_v56  ;;  %v968_v55 = vld [vmem:[#allocation8 + $0x378] sm:$0xff]  ;;  %v995_v56 = vld [vmem:[#allocation8 + $0x450] sm:$0xff] }
 0x224   : > { %1747 = vmatpush.msra.mxu0 %v899_v40  ;;  %1776 = vmatpush.msra.mxu1 %v963_v39  ;;  %v880_v26 = vld [vmem:[#allocation8 + $0xb8] sm:$0xff] }
 0x225   : > { %1690 = vmatpush.msrb.mxu2 %v958_v58  ;;  %1726 = vmatpush.msrb.mxu3 %v994_v49  ;;  %v996_v57 = vld [vmem:[#allocation8 + $0x458] sm:$0xff]  ;;  %v991_v58 = vld [vmem:[#allocation8 + $0x430] sm:$0xff] }
 0x226   : > { %1748 = vmatpush.msra.mxu0 %v895_v61  ;;  %1777 = vmatpush.msra.mxu1 %v959_v46  ;;  %v964_v61 = vld [vmem:[#allocation8 + $0x358] sm:$0xff] }
 0x227   : > { %1526 = vmatmul.f32.gmra.mxu0 %v5549_v2  ;;  %v955_v2 = vld [vmem:[#allocation8 + $0x310] sm:$0xff]  ;;  %1691 = vmatpush.msrb.mxu2 %v954_v4  ;;  %v876_v4 = vld [vmem:[#allocation8 + $0x98] sm:$0xff] }
 0x228   : > { %4834 = vmatmul.msk.f32.gmra.mxu2 %vm746_vm5, %v5541_v60  ;;  %4838 = vmatmul.msk.f32.gmra.mxu1 %vm746_vm5, %v5541_v60  ;;  %v887_v60 = vld [vmem:[#allocation8 + $0xf0] sm:$0xff]  ;;  %v872_v49 = vld [vmem:[#allocation8 + $0x78] sm:$0xff] }
 0x229   : > { %1497 = vmatmul.f32.gmra.mxu3 %v5544_v45  ;;  %1749 = vmatpush.msra.mxu0 %v891_v6  ;;  %v990_v45 = vld [vmem:[#allocation8 + $0x428] sm:$0xff]  ;;  %v987_v6 = vld [vmem:[#allocation8 + $0x410] sm:$0xff] }
 0x22a   : > { %1778 = vmatpush.msra.mxu1 %v955_v2  ;;  %1692 = vmatpush.msrb.mxu2 %v950_v7  ;;  %v960_v2 = vld [vmem:[#allocation8 + $0x338] sm:$0xff] }
 0x22b   : > { %1727 = vmatpush.msrb.mxu3 %v990_v45  ;;  %1750 = vmatpush.msra.mxu0 %v887_v60  ;;  %v988_v7 = vld [vmem:[#allocation8 + $0x418] sm:$0xff]  ;;  %v1983_v60 = vld [vmem:[#allocation8 + $0xae0] sm:$0xff] }
 0x22c   : > { %1779 = vmatpush.msra.mxu1 %v951_v1  ;;  %1693 = vmatpush.msrb.mxu2 %v946_v3  ;;  %v956_v45 = vld [vmem:[#allocation8 + $0x318] sm:$0xff]  ;;  %v1984_v1 = vld [vmem:[#allocation8 + $0xae8] sm:$0xff] }
 0x22d   : > { %1751 = vmatpush.msra.mxu0 %v883_v12  ;;  %1728 = vmatpush.msrb.mxu3 %v986_v13  ;;  %v868_v12 = vld [vmem:[#allocation8 + $0x58] sm:$0xff]  ;;  %v1979_v13 = vld [vmem:[#allocation8 + $0xac0] sm:$0xff] }
 0x22e   : > { %1780 = vmatpush.msra.mxu1 %v947_v15  ;;  %1694 = vmatpush.msrb.mxu2 %v942_v17 }
 0x22f   : > { %4839 = vmatmul.msk.f32.vlgmr.msrb.gmra.mxu0 %vm746_vm5, %v5598_v54 }
 0x230   : > { %1584 = vmatmul.f32.vlgmr.msra.gmra.mxu2 %v5600_v11  ;;  %1671 = vmatmul.f32.vlgmr.msrb.gmra.mxu1 %v5600_v11 }
 0x231   : > { %1613 = vmatmul.f32.vlgmr.msra.gmra.mxu3 %v5606_v5  ;;  %1752 = vmatpush.msra.mxu0 %v879_v18  ;;  %v1980_v18 = vld [vmem:[#allocation8 + $0xac8] sm:$0xff] }
 0x232   : > { %1829 = vmatpush.msra.mxu3 %v920_v21  ;;  %1781 = vmatpush.msra.mxu1 %v943_v22  ;;  %v952_v22 = vld [vmem:[#allocation8 + $0x2f8] sm:$0xff] }
 0x233   : > { %1695 = vmatpush.msrb.mxu2 %v938_v23  ;;  %1753 = vmatpush.msra.mxu0 %v875_v20  ;;  %v1975_v20 = vld [vmem:[#allocation8 + $0xaa0] sm:$0xff] }
 0x234   : > { %1830 = vmatpush.msra.mxu3 %v916_v24  ;;  %1782 = vmatpush.msra.mxu1 %v939_v27  ;;  %v864_v24 = vld [vmem:[#allocation8 + $0x38] sm:$0xff]  ;;  %v5636_v27 = vld [vmem:[#allocation3 + $0x20] sm:$0xff] }
 0x235   : > { %1696 = vmatpush.msrb.mxu2 %v934_v47  ;;  %1754 = vmatpush.msra.mxu0 %v871_v28  ;;  %v948_v47 = vld [vmem:[#allocation8 + $0x2d8] sm:$0xff]  ;;  %v1976_v28 = vld [vmem:[#allocation8 + $0xaa8] sm:$0xff] }
 0x236   : > { %1831 = vmatpush.msra.mxu3 %v912_v30  ;;  %1783 = vmatpush.msra.mxu1 %v935_v31  ;;  %v5640_v30 = vld [vmem:[#allocation3 + $0x28] sm:$0xff] }
 0x237   : > { %4840 = vmatmul.msk.f32.gmra.mxu0 %vm746_vm5, %v5469_v59  ;;  %v931_v59 = vld [vmem:[#allocation8 + $0x250] sm:$0xff]  ;;  %1697 = vmatpush.msrb.mxu2 %v930_v8  ;;  %v860_v8 = vld [vmem:[#allocation8 + $0x18] sm:$0xff] }
 0x238   : > { %1587 = vmatmul.f32.gmra.mxu2 %v5476_v63  ;;  %1674 = vmatmul.f32.gmra.mxu1 %v5476_v63 }
 0x239   : > { %1616 = vmatmul.f32.gmra.mxu3 %v5460_v38  ;;  %1755 = vmatpush.msra.mxu0 %v867_v9  ;;  %v927_v38 = vld [vmem:[#allocation8 + $0x230] sm:$0xff]  ;;  %v944_v9 = vld [vmem:[#allocation8 + $0x2b8] sm:$0xff] }
 0x23a   : > { %1832 = vmatpush.msra.mxu3 %v908_v32  ;;  %1784 = vmatpush.msra.mxu1 %v931_v59  ;;  %v2047_v32 = vld [vmem:[#allocation8 + $0xce0] sm:$0xff] }
 0x23b   : > { %1698 = vmatpush.msrb.mxu2 %v926_v34  ;;  %1756 = vmatpush.msra.mxu0 %v863_v36  ;;  %v1972_v34 = vld [vmem:[#allocation8 + $0xa88] sm:$0xff] }
 0x23c   : > { %1833 = vmatpush.msra.mxu3 %v904_v35  ;;  %1785 = vmatpush.msra.mxu1 %v927_v38  ;;  %v1967_v35 = vld [vmem:[#allocation8 + $0xa60] sm:$0xff] }
 0x23d   : > { %1699 = vmatpush.msrb.mxu2 %v922_v37  ;;  %1757 = vmatpush.msra.mxu0 %v859_v41  ;;  %v2043_v37 = vld [vmem:[#allocation8 + $0xcc0] sm:$0xff] }
 0x23e   : > { %1834 = vmatpush.msra.mxu3 %v900_v10  ;;  %1786 = vmatpush.msra.mxu1 %v923_v42  ;;  %v940_v10 = vld [vmem:[#allocation8 + $0x298] sm:$0xff] }
 0x23f   : > { %4841 = vmatmul.msk.f32.gmra.mxu0 %vm746_vm5, %v5498_v16  ;;  %1812 = vmatpush.msra.mxu2 %v999_v51  ;;  %v932_v51 = vld [vmem:[#allocation8 + $0x258] sm:$0xff] }
 0x240   : > { %1590 = vmatmul.f32.gmra.mxu2 %v5496_v14  ;;  %1677 = vmatmul.f32.gmra.mxu1 %v5496_v14 }
 0x241   : > { %1619 = vmatmul.f32.gmra.mxu3 %v5473_v62  ;;  %1858 = vmatpush.msrb.mxu0 %v984_v43  ;;  %v888_v62 = vld [vmem:[#allocation8 + $0xf8] sm:$0xff]  ;;  %v2039_v43 = vld [vmem:[#allocation8 + $0xca0] sm:$0xff] }
 0x242   : > { %1835 = vmatpush.msra.mxu3 %v896_v44  ;;  %1899 = vmatpush.msrb.mxu1 %v1000_v53  ;;  %v1968_v44 = vld [vmem:[#allocation8 + $0xa68] sm:$0xff] }
 0x243   : > { %1859 = vmatpush.msrb.mxu0 %v980_v25  ;;  %1813 = vmatpush.msra.mxu2 %v995_v56  ;;  %v5649_v25 = vld [vmem:[#allocation3 + $0x38] sm:$0xff] }
 0x244   : > { %1836 = vmatpush.msra.mxu3 %v892_v0  ;;  %1900 = vmatpush.msrb.mxu1 %v996_v57  ;;  %v936_v0 = vld [vmem:[#allocation8 + $0x278] sm:$0xff] }
 0x245   : > { %1860 = vmatpush.msrb.mxu0 %v976_v48  ;;  %1814 = vmatpush.msra.mxu2 %v991_v58  ;;  %v1963_v48 = vld [vmem:[#allocation8 + $0xa40] sm:$0xff] }
 0x246   : > { %1837 = vmatpush.msra.mxu3 %v888_v62  ;;  %v2035_v62 = vld [vmem:[#allocation8 + $0xc80] sm:$0xff] }
 0x247   : > { %4842 = vmatmul.msk.f32.gmra.mxu0 %vm746_vm5, %v5522_v29  ;;  %1815 = vmatpush.msra.mxu2 %v987_v6  ;;  %v924_v6 = vld [vmem:[#allocation8 + $0x218] sm:$0xff] }
 0x248   : > { %1593 = vmatmul.f32.gmra.mxu2 %v5525_v33  ;;  %1680 = vmatmul.f32.gmra.mxu1 %v5525_v33 }
 0x249   : > { %1622 = vmatmul.f32.gmra.mxu3 %v5502_v19  ;;  %1861 = vmatpush.msrb.mxu0 %v972_v50  ;;  %v992_v19 = vld [vmem:[#allocation8 + $0x438] sm:$0xff]  ;;  %v1964_v50 = vld [vmem:[#allocation8 + $0xa48] sm:$0xff] }
 0x24a   : > { %1838 = vmatpush.msra.mxu3 %v884_v52  ;;  %1901 = vmatpush.msrb.mxu1 %v992_v19 }
 0x24b   : > { %1862 = vmatpush.msrb.mxu0 %v968_v55  ;;  %v1257_v46 = vpop.f32.mrf.mxu3  ;;  %v2031_v55 = vld [vmem:[#allocation8 + $0xc60] sm:$0xff] }
 0x24c   : > { %v1286_v40 = vpop.f32.mrf.mxu0  ;;  %1839 = vmatpush.msra.mxu3 %v880_v26  ;;  %1902 = vmatpush.msrb.mxu1 %v988_v7  ;;  %v1960_v26 = vld [vmem:[#allocation8 + $0xa28] sm:$0xff]  ;;  %v2023_v7 = vld [vmem:[#allocation8 + $0xc20] sm:$0xff] }
 0x24d   : > { %v5624_v39 = vpop.f32.mrf.mxu1  ;;  %1863 = vmatpush.msrb.mxu0 %v964_v61  ;;  %v2027_v61 = vld [vmem:[#allocation8 + $0xc40] sm:$0xff] }
 0x24e   : > { %1840 = vmatpush.msra.mxu3 %v876_v4  ;;  %v5660_v4 = vld [vmem:[#allocation3 + $0x50] sm:$0xff] }
 0x24f   : > { %1758 = vmatmul.f32.vlgmr.msra.gmra.mxu0 %v5600_v11 }
 0x250   : > { %1700 = vmatmul.f32.vlgmr.msrb.gmra.mxu2 %v5606_v5  ;;  %1787 = vmatmul.f32.vlgmr.msra.gmra.mxu1 %v5606_v5 }
 0x251   : > { %4843 = vmatmul.msk.f32.vlgmr.msrb.gmra.mxu3 %vm746_vm5, %v5598_v54  ;;  %1864 = vmatpush.msrb.mxu0 %v960_v2  ;;  %v1951_v2 = vld [vmem:[#allocation8 + $0x9e0] sm:$0xff] }
 0x252   : > { %1841 = vmatpush.msra.mxu3 %v872_v49  ;;  %2116 = vmatpush.msrb.mxu2 %v1983_v60  ;;  %v1952_v49 = vld [vmem:[#allocation8 + $0x9e8] sm:$0xff]  ;;  %v2063_v60 = vld [vmem:[#allocation8 + $0xd60] sm:$0xff] }
 0x253   : > { %v1228_v3 = vpop.f32.mrf.mxu2  ;;  %1865 = vmatpush.msrb.mxu0 %v956_v45  ;;  %2203 = vmatpush.msra.mxu1 %v1984_v1  ;;  %v2019_v1 = vld [vmem:[#allocation8 + $0xc00] sm:$0xff] }
 0x254   : > { %v1258_v15 = vadd.f32 %v1257_v46, %v1228_v3  ;;  %v1289_v17 = vpop.f32.mrf.mxu0  ;;  %1842 = vmatpush.msra.mxu3 %v868_v12  ;;  %2117 = vmatpush.msrb.mxu2 %v1979_v13  ;;  %v1260_v31 = vpop.f32.mrf.mxu3  ;;  %v1956_v46 = vld [vmem:[#allocation8 + $0xa08] sm:$0xff] }
 0x255   : > { %v5631_v21 = vpop.f32.mrf.mxu1  ;;  %2204 = vmatpush.msra.mxu1 %v1980_v18  ;;  %1866 = vmatpush.msrb.mxu0 %v952_v22  ;;  %v1948_v3 = vld [vmem:[#allocation8 + $0x9c8] sm:$0xff]  ;;  %v2015_v22 = vld [vmem:[#allocation8 + $0xbe0] sm:$0xff] }
 0x256   : > { %v5633_v23 = vadd.f32 %v1286_v40, %v1258_v15  ;;  %1843 = vmatpush.msra.mxu3 %v864_v24  ;;  %2118 = vmatpush.msrb.mxu2 %v1975_v20  ;;  %v1955_v40 = vld [vmem:[#allocation8 + $0xa00] sm:$0xff]  ;;  %v1944_v18 = vld [vmem:[#allocation8 + $0x9a8] sm:$0xff] }
 0x257   : > { %1761 = vmatmul.f32.gmra.mxu0 %v5476_v63  ;;  %v1971_v63 = vld [vmem:[#allocation8 + $0xa80] sm:$0xff]  ;;  %2205 = vmatpush.msra.mxu1 %v1976_v28 }
 0x258   : > { %1703 = vmatmul.f32.gmra.mxu2 %v5636_v27  ;;  %1790 = vmatmul.f32.gmra.mxu1 %v5636_v27  ;;  %v1943_v15 = vld [vmem:[#allocation8 + $0x9a0] sm:$0xff] }
 0x259   : > { %4844 = vmatmul.msk.f32.gmra.mxu3 %vm746_vm5, %v5640_v30  ;;  %1867 = vmatpush.msrb.mxu0 %v948_v47  ;;  %v1939_v24 = vld [vmem:[#allocation8 + $0x980] sm:$0xff]  ;;  %v1940_v47 = vld [vmem:[#allocation8 + $0x988] sm:$0xff] }
 0x25a   : > { %1844 = vmatpush.msra.mxu3 %v860_v8  ;;  %2119 = vmatpush.msrb.mxu2 %v1971_v63  ;;  %v2059_v28 = vld [vmem:[#allocation8 + $0xd40] sm:$0xff] }
 0x25b   : > { %v1231_v59 = vpop.f32.mrf.mxu2  ;;  %1868 = vmatpush.msrb.mxu0 %v944_v9  ;;  %2206 = vmatpush.msra.mxu1 %v1972_v34  ;;  %v1935_v8 = vld [vmem:[#allocation8 + $0x960] sm:$0xff] }
 0x25c   : > { %v1261_v36 = vadd.f32 %v1260_v31, %v1231_v59  ;;  %v1292_v38 = vpop.f32.mrf.mxu0  ;;  %2145 = vmatpush.msrb.mxu3 %v2047_v32  ;;  %2120 = vmatpush.msrb.mxu2 %v1967_v35  ;;  %v1263_v53 = vpop.f32.mrf.mxu3  ;;  %v2011_v31 = vld [vmem:[#allocation8 + $0xbc0] sm:$0xff] }
 0x25d   : > { %v5644_v41 = vpop.f32.mrf.mxu1  ;;  %1869 = vmatpush.msrb.mxu0 %v940_v10  ;;  %2207 = vmatpush.msra.mxu1 %v1968_v44  ;;  %v2055_v63 = vld [vmem:[#allocation8 + $0xd20] sm:$0xff] }
 0x25e   : > { %v5646_v42 = vadd.f32 %v1289_v17, %v1261_v36  ;;  %2146 = vmatpush.msrb.mxu3 %v2043_v37  ;;  %2121 = vmatpush.msrb.mxu2 %v1963_v48  ;;  %v2007_v32 = vld [vmem:[#allocation8 + $0xba0] sm:$0xff] }
 0x25f   : > { %1764 = vmatmul.f32.gmra.mxu0 %v5496_v14  ;;  %v1959_v14 = vld [vmem:[#allocation8 + $0xa20] sm:$0xff]  ;;  %2208 = vmatpush.msra.mxu1 %v1964_v50  ;;  %v2048_v50 = vld [vmem:[#allocation8 + $0xce8] sm:$0xff] }
 0x260   : > { %1706 = vmatmul.f32.gmra.mxu2 %v5649_v25  ;;  %1793 = vmatmul.f32.gmra.mxu1 %v5649_v25  ;;  %v1931_v59 = vld [vmem:[#allocation8 + $0x940] sm:$0xff] }
 0x261   : > { %4845 = vmatmul.msk.f32.gmra.mxu3 %vm746_vm5, %v5498_v16  ;;  %1870 = vmatpush.msrb.mxu0 %v936_v0  ;;  %v928_v16 = vld [vmem:[#allocation8 + $0x238] sm:$0xff]  ;;  %v1927_v37 = vld [vmem:[#allocation8 + $0x920] sm:$0xff]  ;;  %v5690_v0 = vld [vmem:[#allocation3 + $0x18] sm:$0xff] }
 0x262   : > { %2147 = vmatpush.msrb.mxu3 %v2039_v43  ;;  %2122 = vmatpush.msrb.mxu2 %v1959_v14  ;;  %v2003_v10 = vld [vmem:[#allocation8 + $0xb80] sm:$0xff] }
 0x263   : > { %v1234_v52 = vpop.f32.mrf.mxu2  ;;  %1871 = vmatpush.msrb.mxu0 %v932_v51  ;;  %2209 = vmatpush.msra.mxu1 %v1960_v26  ;;  %v1923_v43 = vld [vmem:[#allocation8 + $0x900] sm:$0xff]  ;;  %v1985_v51 = vld [vmem:[#allocation8 + $0xaf0] sm:$0xff] }
 0x264   : > { %v1264_v56 = vadd.f32 %v1263_v53, %v1234_v52  ;;  %v1295_v57 = vpop.f32.mrf.mxu0  ;;  %2148 = vmatpush.msrb.mxu3 %v2035_v62  ;;  %2123 = vmatpush.msrb.mxu2 %v1955_v40  ;;  %v2051_v44 = vld [vmem:[#allocation8 + $0xd00] sm:$0xff]  ;;  %v1924_v62 = vld [vmem:[#allocation8 + $0x908] sm:$0xff]  ;;  %v2049_v53 = vld [vmem:[#allocation8 + $0xcf0] sm:$0xff] }
 0x265   : > { %v5655_v58 = vpop.f32.mrf.mxu1  ;;  %1872 = vmatpush.msrb.mxu0 %v928_v16  ;;  %2210 = vmatpush.msra.mxu1 %v1956_v46  ;;  %v1999_v48 = vld [vmem:[#allocation8 + $0xb60] sm:$0xff] }
 0x266   : > { %2149 = vmatpush.msrb.mxu3 %v2031_v55  ;;  %v5657_v19 = vadd.f32 %v1292_v38, %v1264_v56  ;;  %2124 = vmatpush.msrb.mxu2 %v1951_v2  ;;  %v1995_v52 = vld [vmem:[#allocation8 + $0xb40] sm:$0xff]  ;;  %v2040_v2 = vld [vmem:[#allocation8 + $0xca8] sm:$0xff] }
 0x267   : > { %1767 = vmatmul.f32.gmra.mxu0 %v5525_v33  ;;  %v1947_v33 = vld [vmem:[#allocation8 + $0x9c0] sm:$0xff]  ;;  %2211 = vmatpush.msra.mxu1 %v1952_v49 }
 0x268   : > { %1709 = vmatmul.f32.gmra.mxu2 %v5660_v4  ;;  %1796 = vmatmul.f32.gmra.mxu1 %v5660_v4  ;;  %v1991_v46 = vld [vmem:[#allocation8 + $0xb20] sm:$0xff] }
 0x269   : > { %4846 = vmatmul.msk.f32.gmra.mxu3 %vm746_vm5, %v5522_v29  ;;  %1873 = vmatpush.msrb.mxu0 %v924_v6  ;;  %v5701_v6 = vld [vmem:[#allocation3 + $0x40] sm:$0xff]  ;;  %v5707_v49 = vld [vmem:[#allocation3 + $0x30] sm:$0xff] }
 0x26a   : > { %2150 = vmatpush.msrb.mxu3 %v2027_v61  ;;  %2125 = vmatpush.msrb.mxu2 %v1947_v33  ;;  %v1981_v61 = vld [vmem:[#allocation8 + $0xad0] sm:$0xff]  ;;  %v1987_v33 = vld [vmem:[#allocation8 + $0xb00] sm:$0xff] }
 0x26b   : > { %v1237_v45 = vpop.f32.mrf.mxu2  ;;  %2186 = vmatpush.msra.mxu0 %v2063_v60  ;;  %2212 = vmatpush.msra.mxu1 %v1948_v3  ;;  %v2041_v60 = vld [vmem:[#allocation8 + $0xcb0] sm:$0xff] }
 0x26c   : > { %v1266_v12 = vpop.f32.mrf.mxu3  ;;  %v5666_v13 = vpop.f32.mrf.mxu0  ;;  %2151 = vmatpush.msrb.mxu3 %v2023_v7  ;;  %2126 = vmatpush.msrb.mxu2 %v1943_v15  ;;  %v1977_v7 = vld [vmem:[#allocation8 + $0xab0] sm:$0xff] }
 0x26d   : > { %v1267_v17 = vadd.f32 %v1266_v12, %v1237_v45  ;;  %v5668_v29 = vpop.f32.mrf.mxu1  ;;  %2213 = vmatpush.msra.mxu1 %v1944_v18  ;;  %2187 = vmatpush.msra.mxu0 %v2059_v28  ;;  %v2036_v45 = vld [vmem:[#allocation8 + $0xc88] sm:$0xff]  ;;  %v2037_v12 = vld [vmem:[#allocation8 + $0xc90] sm:$0xff] }
 0x26e   : > { %2152 = vmatpush.msrb.mxu3 %v2019_v1  ;;  %2127 = vmatpush.msrb.mxu2 %v1939_v24  ;;  %v1973_v1 = vld [vmem:[#allocation8 + $0xa90] sm:$0xff] }
 0x26f   : > { %1874 = vmatmul.f32.vlgmr.msrb.gmra.mxu0 %v5606_v5  ;;  %v5671_v20 = vadd.f32 %v1295_v57, %v1267_v17  ;;  %v1936_v5 = vld [vmem:[#allocation8 + $0x968] sm:$0xff]  ;;  %2214 = vmatpush.msra.mxu1 %v1940_v47  ;;  %v1969_v28 = vld [vmem:[#allocation8 + $0xa70] sm:$0xff] }
 0x270   : > { %4847 = vmatmul.msk.f32.vlgmr.msra.gmra.mxu2 %vm746_vm5, %v5598_v54  ;;  %4851 = vmatmul.msk.f32.vlgmr.msrb.gmra.mxu1 %vm746_vm5, %v5598_v54  ;;  %v2044_v57 = vld [vmem:[#allocation8 + $0xcc8] sm:$0xff] }
 0x271   : > { %1845 = vmatmul.f32.vlgmr.msra.gmra.mxu3 %v5600_v11  ;;  %2128 = vmatpush.msrb.mxu2 %v1935_v8  ;;  %v1932_v11 = vld [vmem:[#allocation8 + $0x948] sm:$0xff] }
 0x272   : > { %2153 = vmatpush.msrb.mxu3 %v2015_v22  ;;  %2215 = vmatpush.msra.mxu1 %v1936_v5  ;;  %v2032_v22 = vld [vmem:[#allocation8 + $0xc68] sm:$0xff]  ;;  %v1965_v5 = vld [vmem:[#allocation8 + $0xa50] sm:$0xff] }
 0x273   : > { %v1344_v9 = vpop.f32.mrf.mxu2  ;;  %2188 = vmatpush.msra.mxu0 %v2055_v63  ;;  %2129 = vmatpush.msrb.mxu2 %v1931_v59  ;;  %v2028_v8 = vld [vmem:[#allocation8 + $0xc48] sm:$0xff]  ;;  %v2029_v59 = vld [vmem:[#allocation8 + $0xc50] sm:$0xff] }
 0x274   : > { %v1345_v34 = vadd.f32 %v1344_v9, %v5624_v39  ;;  %v1373_v35 = vpop.f32.mrf.mxu3  ;;  %v5679_v54 = vpop.f32.mrf.mxu0  ;;  %2154 = vmatpush.msrb.mxu3 %v2011_v31  ;;  %2216 = vmatpush.msra.mxu1 %v1932_v11  ;;  %v1928_v39 = vld [vmem:[#allocation8 + $0x928] sm:$0xff]  ;;  %v2033_v31 = vld [vmem:[#allocation8 + $0xc70] sm:$0xff]  ;;  %v5724_v9 = vld [vmem:[#allocation3 + $0x48] sm:$0xff]  ;;  %v2080_v11 = vrot.slane %v5640_v30, 2 }
 0x275   : > { %v5681_v36 = vpop.f32.mrf.mxu1  ;;  %2130 = vmatpush.msrb.mxu2 %v1927_v37  ;;  %2189 = vmatpush.msra.mxu0 %v2051_v44  ;;  %v2064_v63 = vld [vmem:[#allocation8 + $0xd68] sm:$0xff]  ;;  %v1961_v37 = vld [vmem:[#allocation8 + $0xa30] sm:$0xff] }
 0x276   : > { %v5683_v38 = vadd.f32 %v1373_v35, %v1345_v34  ;;  %2155 = vmatpush.msrb.mxu3 %v2007_v32  ;;  %2217 = vmatpush.msra.mxu1 %v1928_v39  ;;  %v1918_v32 = vld [vmem:[#allocation3 + $0x10] sm:$0xfc]  ;;  %v2024_v34 = vld [vmem:[#allocation8 + $0xc28] sm:$0xff]  ;;  %v1916_v35 = vld [vmem:[#allocation3] sm:$0xfc]  ;;  %v2074_v39 = vrot.slane %v5690_v0, 2 }
 0x277   : > { %1877 = vmatmul.f32.gmra.mxu0 %v5636_v27  ;;  %2131 = vmatpush.msrb.mxu2 %v1923_v43  ;;  %v1917_v43 = vld [vmem:[#allocation3 + $0x8] sm:$0xfc]  ;;  %v2025_v44 = vld [vmem:[#allocation8 + $0xc30] sm:$0xff] }
 0x278   : > { %4848 = vmatmul.msk.f32.gmra.mxu2 %vm746_vm5, %v5640_v30  ;;  %4852 = vmatmul.msk.f32.gmra.mxu1 %vm746_vm5, %v5640_v30 }
 0x279   : > { %1848 = vmatmul.f32.gmra.mxu3 %v5690_v0  ;;  %2218 = vmatpush.msra.mxu1 %v1924_v62  ;;  %v1941_v0 = vld [vmem:[#allocation8 + $0x990] sm:$0xff] }
 0x27a   : > { %2156 = vmatpush.msrb.mxu3 %v2003_v10  ;;  %2232 = vmatpush.msra.mxu2 %v2048_v50 }
 0x27b   : > { %v1347_v14 = vpop.f32.mrf.mxu2  ;;  %2290 = vmatpush.msrb.mxu0 %v1985_v51  ;;  %2319 = vmatpush.msrb.mxu1 %v2049_v53  ;;  %v2060_v53 = vld [vmem:[#allocation8 + $0xd48] sm:$0xff] }
 0x27c   : > { %v1348_v55 = vadd.f32 %v1347_v14, %v5631_v21  ;;  %v1376_v26 = vpop.f32.mrf.mxu3  ;;  %v5694_v56 = vpop.f32.mrf.mxu0  ;;  %2157 = vmatpush.msrb.mxu3 %v1999_v48  ;;  %2233 = vmatpush.msra.mxu2 %v2044_v57  ;;  %v2045_v21 = vld [vmem:[#allocation8 + $0xcd0] sm:$0xff]  ;;  %v2020_v48 = vld [vmem:[#allocation8 + $0xc08] sm:$0xff]  ;;  %v2079_v14 = vrot.slane %v1918_v32, 2  ;;  %v2084_v32 = vrot.slane %v5649_v25, 2 }
 0x27d   : > { %v5696_v40 = vpop.f32.mrf.mxu1  ;;  %2291 = vmatpush.msrb.mxu0 %v1981_v61  ;;  %2320 = vmatpush.msrb.mxu1 %v2045_v21  ;;  %v2056_v21 = vld [vmem:[#allocation8 + $0xd28] sm:$0xff] }
 0x27e   : > { %v5698_v16 = vadd.f32 %v1376_v26, %v1348_v55  ;;  %2158 = vmatpush.msrb.mxu3 %v1995_v52  ;;  %2234 = vmatpush.msra.mxu2 %v2040_v2  ;;  %v2077_v52 = vrot.slane %v5636_v27, 2  ;;  %v2073_v26 = vrot.slane %v1916_v35, 2  ;;  %v5736_v61 = vsel %vm436_vm1, %v2079_v14, %v2080_v11  ;;  %v2001_v27 = vld [vmem:[#allocation8 + $0xb70] sm:$0xff] }
 0x27f   : > { %1880 = vmatmul.f32.gmra.mxu0 %v5649_v25  ;;  %2321 = vmatpush.msrb.mxu1 %v2041_v60 }
 0x280   : > { %4849 = vmatmul.msk.f32.gmra.mxu2 %vm746_vm5, %v5701_v6  ;;  %4853 = vmatmul.msk.f32.gmra.mxu1 %vm746_vm5, %v5701_v6  ;;  %v5741_v2 = vsel %vm436_vm1, %v2073_v26, %v2074_v39  ;;  %v5779_v30 = vsel %vm436_vm1, %v2077_v52, %v2084_v32 }
 0x281   : > { %1851 = vmatmul.f32.gmra.mxu3 %v5707_v49  ;;  %2292 = vmatpush.msrb.mxu0 %v1977_v7  ;;  %v2021_v7 = vld [vmem:[#allocation8 + $0xc10] sm:$0xff] }
 0x282   : > { %2159 = vmatpush.msrb.mxu3 %v1991_v46  ;;  %2235 = vmatpush.msra.mxu2 %v2036_v45  ;;  %v1957_v46 = vld [vmem:[#allocation8 + $0xa10] sm:$0xff] }
 0x283   : > { %v1350_v3 = vpop.f32.mrf.mxu2  ;;  %2293 = vmatpush.msrb.mxu0 %v1973_v1  ;;  %2322 = vmatpush.msrb.mxu1 %v2037_v12  ;;  %v1953_v45 = vld [vmem:[#allocation8 + $0x9f0] sm:$0xff]  ;;  %v2052_v1 = vld [vmem:[#allocation8 + $0xd08] sm:$0xff] }
 0x284   : > { %v1351_v15 = vadd.f32 %v1350_v3, %v5644_v41  ;;  %v1379_v17 = vpop.f32.mrf.mxu3  ;;  %v5711_v18 = vpop.f32.mrf.mxu0  ;;  %2160 = vmatpush.msrb.mxu3 %v1987_v33  ;;  %2236 = vmatpush.msra.mxu2 %v2032_v22  ;;  %v5718_v41 = vld [vmem:[#allocation3 + $0x58] sm:$0xff]  ;;  %v2017_v3 = vld [vmem:[#allocation8 + $0xbf0] sm:$0xff]  ;;  %v1986_v22 = vld [vmem:[#allocation8 + $0xaf8] sm:$0xff] }
 0x285   : > { %v5713_v24 = vpop.f32.mrf.mxu1  ;;  %2294 = vmatpush.msrb.mxu0 %v1969_v28  ;;  %2323 = vmatpush.msrb.mxu1 %v2033_v31  ;;  %v2016_v33 = vld [vmem:[#allocation8 + $0xbe8] sm:$0xff]  ;;  %v2013_v31 = vld [vmem:[#allocation8 + $0xbd0] sm:$0xff] }
 0x286   : > { %v5715_v47 = vadd.f32 %v1379_v17, %v1351_v15  ;;  %2237 = vmatpush.msra.mxu2 %v2028_v8  ;;  %2273 = vmatpush.msra.mxu3 %v2064_v63  ;;  %v2012_v12 = vld [vmem:[#allocation8 + $0xbc8] sm:$0xff]  ;;  %v2086_v15 = vrot.slane %v5701_v6, 2  ;;  %v1949_v17 = vld [vmem:[#allocation8 + $0x9d0] sm:$0xff]  ;;  %v2082_v6 = vrot.slane %v5707_v49, 2 }
 0x287   : > { %1883 = vmatmul.f32.gmra.mxu0 %v5660_v4  ;;  %2324 = vmatpush.msrb.mxu1 %v2029_v59  ;;  %v2008_v8 = vld [vmem:[#allocation8 + $0xba8] sm:$0xff]  ;;  %v1982_v59 = vld [vmem:[#allocation8 + $0xad8] sm:$0xff] }
 0x288   : > { %4850 = vmatmul.msk.f32.gmra.mxu2 %vm746_vm5, %v5718_v41  ;;  %4854 = vmatmul.msk.f32.gmra.mxu1 %vm746_vm5, %v5718_v41  ;;  %v2004_v49 = vld [vmem:[#allocation8 + $0xb88] sm:$0xff] }
 0x289   : > { %1854 = vmatmul.f32.gmra.mxu3 %v5724_v9  ;;  %2295 = vmatpush.msrb.mxu0 %v1965_v5 }
 0x28a   : > { %2238 = vmatpush.msra.mxu2 %v2024_v34  ;;  %2274 = vmatpush.msra.mxu3 %v2060_v53  ;;  %v2088_v53 = vrot.slane %v5724_v9, 2  ;;  %v2042_v9 = vld [vmem:[#allocation8 + $0xcb8] sm:$0xff] }
 0x28b   : > { %v1353_v10 = vpop.f32.mrf.mxu2  ;;  %2296 = vmatpush.msrb.mxu0 %v1961_v37  ;;  %2325 = vmatpush.msrb.mxu1 %v2025_v44  ;;  %v5761_v37 = vsel %vm436_vm1, %v2080_v11, %v2086_v15  ;;  %v2009_v44 = vld [vmem:[#allocation8 + $0xbb0] sm:$0xff]  ;;  %v1978_v11 = vld [vmem:[#allocation8 + $0xab8] sm:$0xff] }
 0x28c   : > { %v1354_v62 = vadd.f32 %v1353_v10, %v5655_v58  ;;  %v1382_v50 = vpop.f32.mrf.mxu3  ;;  %v1518_v51 = vpop.f32.mrf.mxu0  ;;  %v2076_v58 = vrot.slane %v1917_v43, 2  ;;  %2239 = vmatpush.msra.mxu2 %v2020_v48  ;;  %2275 = vmatpush.msra.mxu3 %v2056_v21  ;;  %v1945_v10 = vld [vmem:[#allocation8 + $0x9b0] sm:$0xff]  ;;  %v5766_v43 = vsel %vm436_vm1, %v2074_v39, %v2082_v6  ;;  %v1970_v21 = vld [vmem:[#allocation8 + $0xa78] sm:$0xff] }
 0x28d   : > { %v1547_v55 = vpop.f32.mrf.mxu1  ;;  %2297 = vmatpush.msrb.mxu0 %v1957_v46  ;;  %2326 = vmatpush.msrb.mxu1 %v2021_v7  ;;  %v2005_v39 = vld [vmem:[#allocation8 + $0xb90] sm:$0xff]  ;;  %v2090_v46 = vrot.slane %v5660_v4, 2  ;;  %v2062_v4 = vld [vmem:[#allocation8 + $0xd58] sm:$0xff] }
 0x28e   : > { %v5731_v57 = vadd.f32 %v1382_v50, %v1354_v62  ;;  %v5750_v60 = vsel %vm436_vm1, %v2076_v58, %v2077_v52  ;;  %2240 = vmatpush.msra.mxu2 %v2016_v33  ;;  %2276 = vmatpush.msra.mxu3 %v2052_v1  ;;  %v2000_v62 = vld [vmem:[#allocation8 + $0xb68] sm:$0xff]  ;;  %v1937_v50 = vld [vmem:[#allocation8 + $0x970] sm:$0xff]  ;;  %v2092_v58 = vrot.slane %v5718_v41, 2  ;;  %v1921_v41 = vld [vmem:[#allocation3 + $0x70] sm:$0x3] }
 0x28f   : > { %4855 = vmatmul.msk.f32.vlgmr.msra.gmra.mxu0 %vm746_vm5, %v5736_v61  ;;  %2327 = vmatpush.msrb.mxu1 %v2017_v3  ;;  %v1933_v1 = vld [vmem:[#allocation8 + $0x950] sm:$0xff]  ;;  %v5793_v3 = vsel %vm436_vm1, %v2082_v6, %v2088_v53 }
 0x290   : > { %2132 = vmatmul.f32.vlgmr.msrb.gmra.mxu2 %v5741_v2  ;;  %2219 = vmatmul.f32.vlgmr.msra.gmra.mxu1 %v5741_v2  ;;  %v1925_v6 = vld [vmem:[#allocation8 + $0x910] sm:$0xff] }
 0x291   : > { %2161 = vmatmul.f32.vlgmr.msrb.gmra.mxu3 %v5750_v60  ;;  %2298 = vmatpush.msrb.mxu0 %v1953_v45  ;;  %v5788_v45 = vsel %vm436_vm1, %v2086_v15, %v2092_v58  ;;  %v5806_v15 = vsel %vm436_vm1, %v2084_v32, %v2090_v46  ;;  %v1989_v32 = vld [vmem:[#allocation8 + $0xb10] sm:$0xff] }
 0x292   : > { %2241 = vmatpush.msra.mxu2 %v2012_v12  ;;  %2377 = vmatpush.msrb.mxu3 %v1986_v22  ;;  %v1997_v12 = vld [vmem:[#allocation8 + $0xb50] sm:$0xff] }
 0x293   : > { %v5754_v28 = vpop.f32.mrf.mxu2  ;;  %2299 = vmatpush.msrb.mxu0 %v1949_v17  ;;  %2328 = vmatpush.msrb.mxu1 %v2013_v31  ;;  %v1992_v17 = vld [vmem:[#allocation8 + $0xb28] sm:$0xff]  ;;  %v1919_v31 = vld [vmem:[#allocation3 + $0x60] sm:$0x3] }
 0x294   : > { %v1489_v5 = vpop.f32.mrf.mxu3  ;;  %v1521_v63 = vpop.f32.mrf.mxu0  ;;  %2242 = vmatpush.msra.mxu2 %v2008_v8  ;;  %2378 = vmatpush.msrb.mxu3 %v1982_v59  ;;  %v1929_v8 = vld [vmem:[#allocation8 + $0x930] sm:$0xff]  ;;  %v2094_v25 = vrot.slane %v1919_v31, 2 }
 0x295   : > { %v1519_v34 = vadd.f32 %v1518_v51, %v1489_v5  ;;  %v1550_v35 = vpop.f32.mrf.mxu1  ;;  %2300 = vmatpush.msrb.mxu0 %v1945_v10  ;;  %2329 = vmatpush.msrb.mxu1 %v2009_v44  ;;  %v1974_v51 = vld [vmem:[#allocation8 + $0xa98] sm:$0xff]  ;;  %v1993_v59 = vld [vmem:[#allocation8 + $0xb30] sm:$0xff] }
 0x296   : > { %2243 = vmatpush.msra.mxu2 %v2004_v49  ;;  %2379 = vmatpush.msrb.mxu3 %v1978_v11  ;;  %v1966_v5 = vld [vmem:[#allocation8 + $0xa58] sm:$0xff] }
 0x297   : > { %4856 = vmatmul.msk.f32.gmra.mxu0 %vm746_vm5, %v5761_v37  ;;  %v5770_v48 = vadd.f32 %v1547_v55, %v1519_v34  ;;  %v1996_v55 = vld [vmem:[#allocation8 + $0xb48] sm:$0xff]  ;;  %2330 = vmatpush.msrb.mxu1 %v2005_v39  ;;  %v1962_v10 = vld [vmem:[#allocation8 + $0xa38] sm:$0xff] }
 0x298   : > { %2135 = vmatmul.f32.gmra.mxu2 %v5766_v43  ;;  %2222 = vmatmul.f32.gmra.mxu1 %v5766_v43  ;;  %v1988_v34 = vld [vmem:[#allocation8 + $0xb08] sm:$0xff]  ;;  %v2050_v49 = vld [vmem:[#allocation8 + $0xcf8] sm:$0xff] }
 0x299   : > { %2164 = vmatmul.f32.gmra.mxu3 %v5779_v30  ;;  %2301 = vmatpush.msrb.mxu0 %v1941_v0 }
 0x29a   : > { %2244 = vmatpush.msra.mxu2 %v2000_v62  ;;  %2380 = vmatpush.msrb.mxu3 %v1974_v51  ;;  %v1958_v62 = vld [vmem:[#allocation8 + $0xa18] sm:$0xff] }
 0x29b   : > { %v5782_v14 = vpop.f32.mrf.mxu2  ;;  %2302 = vmatpush.msrb.mxu0 %v1937_v50  ;;  %2331 = vmatpush.msrb.mxu1 %v2001_v27 }
 0x29c   : > { %v1492_v52 = vpop.f32.mrf.mxu3  ;;  %v1524_v26 = vpop.f32.mrf.mxu0  ;;  %2245 = vmatpush.msra.mxu2 %v1996_v55  ;;  %2381 = vmatpush.msrb.mxu3 %v1970_v21  ;;  %v2046_v55 = vld [vmem:[#allocation8 + $0xcd8] sm:$0xff] }
 0x29d   : > { %v1522_v7 = vadd.f32 %v1521_v63, %v1492_v52  ;;  %v1553_v33 = vpop.f32.mrf.mxu1  ;;  %v1920_v63 = vld [vmem:[#allocation3 + $0x68] sm:$0x3]  ;;  %2303 = vmatpush.msrb.mxu0 %v1933_v1  ;;  %2332 = vmatpush.msrb.mxu1 %v1997_v12  ;;  %v5817_v52 = vsel %vm436_vm1, %v2088_v53, %v2094_v25 }
 0x29e   : > { %2246 = vmatpush.msra.mxu2 %v1992_v17  ;;  %2382 = vmatpush.msrb.mxu3 %v1966_v5  ;;  %v2096_v39 = vrot.slane %v1920_v63, 2  ;;  %v1954_v21 = vld [vmem:[#allocation8 + $0x9f8] sm:$0xff]  ;;  %v2061_v17 = vld [vmem:[#allocation8 + $0xd50] sm:$0xff] }
 0x29f   : > { %4857 = vmatmul.msk.f32.gmra.mxu0 %vm746_vm5, %v5788_v45  ;;  %v5797_v22 = vadd.f32 %v1550_v35, %v1522_v7  ;;  %v2098_v35 = vrot.slane %v1921_v41, 2  ;;  %2333 = vmatpush.msrb.mxu1 %v1993_v59  ;;  %v2065_v7 = vld [vmem:[#allocation8 + $0xd70] sm:$0xff]  ;;  %v1950_v53 = vld [vmem:[#allocation8 + $0x9d8] sm:$0xff] }
 0x2a0   : > { %2138 = vmatmul.f32.gmra.mxu2 %v5793_v3  ;;  %2225 = vmatmul.f32.gmra.mxu1 %v5793_v3  ;;  %v2066_v1 = vld [vmem:[#allocation8 + $0xd78] sm:$0xff]  ;;  %v2057_v63 = vld [vmem:[#allocation8 + $0xd30] sm:$0xff] }
 0x2a1   : > { %2167 = vmatmul.f32.gmra.mxu3 %v5806_v15  ;;  %2304 = vmatpush.msrb.mxu0 %v1929_v8  ;;  %v5812_v27 = vsel %vm436_vm1, %v2092_v58, %v2098_v35  ;;  %v5828_v58 = vsel %vm436_vm1, %v2090_v46, %v2096_v39  ;;  %v2038_v41 = vld [vmem:[#allocation8 + $0xc98] sm:$0xff]  ;;  %v2548_v39 = vld [vmem:[#allocation8 + $0xf68] sm:$0xff] }
 0x2a2   : > { %2247 = vmatpush.msra.mxu2 %v1988_v34  ;;  %2383 = vmatpush.msrb.mxu3 %v1962_v10  ;;  %v1946_v12 = vld [vmem:[#allocation8 + $0x9b8] sm:$0xff] }
 0x2a3   : > { %v5809_v44 = vpop.f32.mrf.mxu2  ;;  %2305 = vmatpush.msrb.mxu0 %v1925_v6  ;;  %2334 = vmatpush.msrb.mxu1 %v1989_v32  ;;  %v2058_v59 = vld [vmem:[#allocation8 + $0xd38] sm:$0xff]  ;;  %v2053_v6 = vld [vmem:[#allocation8 + $0xd10] sm:$0xff] }
 0x2a4   : > { %v1495_v0 = vpop.f32.mrf.mxu3  ;;  %v1527_v11 = vpop.f32.mrf.mxu0  ;;  %2384 = vmatpush.msrb.mxu3 %v1958_v62  ;;  %2360 = vmatpush.msrb.mxu2 %v2065_v7  ;;  %v2034_v34 = vld [vmem:[#allocation8 + $0xc78] sm:$0xff]  ;;  %v2544_v7 = vld [vmem:[#allocation8 + $0xf48] sm:$0xff] }
 0x2a5   : > { %v1525_v50 = vadd.f32 %v1524_v26, %v1495_v0  ;;  %v1556_v51 = vpop.f32.mrf.mxu1  ;;  %2406 = vmatpush.msra.mxu0 %v2050_v49  ;;  %2447 = vmatpush.msra.mxu1 %v2066_v1  ;;  %v1942_v35 = vld [vmem:[#allocation8 + $0x998] sm:$0xff]  ;;  %v2547_v0 = vld [vmem:[#allocation8 + $0xf60] sm:$0xff] }
 0x2a6   : > { %2385 = vmatpush.msrb.mxu3 %v1954_v21  ;;  %2361 = vmatpush.msrb.mxu2 %v2061_v17  ;;  %v2030_v25 = vld [vmem:[#allocation8 + $0xc58] sm:$0xff]  ;;  %v2539_v17 = vld [vmem:[#allocation8 + $0xf20] sm:$0xff] }
 0x2a7   : > { %4858 = vmatmul.msk.f32.gmra.mxu0 %vm746_vm5, %v5812_v27  ;;  %v5821_v26 = vadd.f32 %v1553_v33, %v1525_v50  ;;  %2448 = vmatpush.msra.mxu1 %v2062_v4  ;;  %v2054_v32 = vld [vmem:[#allocation8 + $0xd18] sm:$0xff] }
 0x2a8   : > { %2141 = vmatmul.f32.gmra.mxu2 %v5817_v52  ;;  %2228 = vmatmul.f32.gmra.mxu1 %v5817_v52  ;;  %v1938_v49 = vld [vmem:[#allocation8 + $0x978] sm:$0xff] }
 0x2a9   : > { %2170 = vmatmul.f32.gmra.mxu3 %v5828_v58  ;;  %2407 = vmatpush.msra.mxu0 %v2046_v55  ;;  %v1934_v50 = vld [vmem:[#allocation8 + $0x958] sm:$0xff] }
 0x2aa   : > { %2386 = vmatpush.msrb.mxu3 %v1950_v53  ;;  %2362 = vmatpush.msrb.mxu2 %v2057_v63  ;;  %v2535_v63 = vld [vmem:[#allocation8 + $0xf00] sm:$0xff] }
 0x2ab   : > { %v5831_v33 = vpop.f32.mrf.mxu2  ;;  %2408 = vmatpush.msra.mxu0 %v2042_v9  ;;  %2449 = vmatpush.msra.mxu1 %v2058_v59  ;;  %v2014_v59 = vld [vmem:[#allocation8 + $0xbd8] sm:$0xff] }
 0x2ac   : > { %v1498_v31 = vpop.f32.mrf.mxu3  ;;  %v1643_v46 = vpop.f32.mrf.mxu0  ;;  %2387 = vmatpush.msrb.mxu3 %v1946_v12  ;;  %2363 = vmatpush.msrb.mxu2 %v2053_v6  ;;  %v1930_v12 = vld [vmem:[#allocation8 + $0x938] sm:$0xff]  ;;  %v2531_v6 = vld [vmem:[#allocation8 + $0xee0] sm:$0xff] }
 0x2ad   : > { %v1528_v8 = vadd.f32 %v1527_v11, %v1498_v31  ;;  %v5833_v5 = vpop.f32.mrf.mxu1  ;;  %2409 = vmatpush.msra.mxu0 %v2038_v41  ;;  %v2026_v11 = vld [vmem:[#allocation8 + $0xc38] sm:$0xff]  ;;  %2450 = vmatpush.msra.mxu1 %v2054_v32  ;;  %v2540_v31 = vld [vmem:[#allocation8 + $0xf28] sm:$0xff] }
 0x2ae   : > { %2388 = vmatpush.msrb.mxu3 %v1942_v35  ;;  %v2022_v41 = vld [vmem:[#allocation8 + $0xc18] sm:$0xff] }
 0x2af   : > { %2306 = vmatmul.f32.vlgmr.msrb.gmra.mxu0 %v5741_v2  ;;  %v5836_v10 = vadd.f32 %v1556_v51, %v1528_v8  ;;  %v2543_v51 = vld [vmem:[#allocation8 + $0xf40] sm:$0xff]  ;;  %v1926_v8 = vld [vmem:[#allocation8 + $0x918] sm:$0xff] }
 0x2b0   : > { %2248 = vmatmul.f32.vlgmr.msra.gmra.mxu2 %v5750_v60  ;;  %2335 = vmatmul.f32.vlgmr.msrb.gmra.mxu1 %v5750_v60 }
 0x2b1   : > { %4859 = vmatmul.msk.f32.vlgmr.msra.gmra.mxu3 %vm746_vm5, %v5736_v61  ;;  %2410 = vmatpush.msra.mxu0 %v2034_v34  ;;  %v2611_v34 = vld [vmem:[#allocation8 + $0x1160] sm:$0xff] }
 0x2b2   : > { %2389 = vmatpush.msrb.mxu3 %v1938_v49  ;;  %2681 = vmatpush.msra.mxu2 %v2547_v0  ;;  %v2607_v0 = vld [vmem:[#allocation8 + $0x1140] sm:$0xff] }
 0x2b3   : > { %v1585_v62 = vpop.f32.mrf.mxu2  ;;  %2411 = vmatpush.msra.mxu0 %v2030_v25  ;;  %2768 = vmatpush.msrb.mxu1 %v2548_v39 }
 0x2b4   : > { %v1586_v55 = vadd.f32 %v1585_v62, %v5633_v23  ;;  %v1614_v21 = vpop.f32.mrf.mxu3  ;;  %v1646_v9 = vpop.f32.mrf.mxu0  ;;  %2390 = vmatpush.msrb.mxu3 %v1934_v50  ;;  %2682 = vmatpush.msra.mxu2 %v2543_v51  ;;  %v2018_v23 = vld [vmem:[#allocation8 + $0xbf8] sm:$0xff]  ;;  %v2603_v50 = vld [vmem:[#allocation8 + $0x1120] sm:$0xff]  ;;  %v2532_v51 = vld [vmem:[#allocation8 + $0xee8] sm:$0xff] }
 0x2b5   : > { %v5843_v53 = vpop.f32.mrf.mxu1  ;;  %2412 = vmatpush.msra.mxu0 %v2026_v11  ;;  %2769 = vmatpush.msrb.mxu1 %v2544_v7  ;;  %v2010_v62 = vld [vmem:[#allocation8 + $0xbb8] sm:$0xff]  ;;  %v2599_v7 = vld [vmem:[#allocation8 + $0x1100] sm:$0xff] }
 0x2b6   : > { %v1615_v1 = vadd.f32 %v1614_v21, %v1586_v55  ;;  %2391 = vmatpush.msrb.mxu3 %v1930_v12  ;;  %2683 = vmatpush.msra.mxu2 %v2539_v17  ;;  %v2527_v21 = vld [vmem:[#allocation8 + $0xec0] sm:$0xff] }
 0x2b7   : > { %2309 = vmatmul.f32.gmra.mxu0 %v5766_v43  ;;  %2770 = vmatpush.msrb.mxu1 %v2540_v31  ;;  %v2523_v12 = vld [vmem:[#allocation8 + $0xea0] sm:$0xff] }
 0x2b8   : > { %v5846_v4 = vadd.f32 %v1643_v46, %v1615_v1  ;;  %2251 = vmatmul.f32.gmra.mxu2 %v5779_v30  ;;  %2338 = vmatmul.f32.gmra.mxu1 %v5779_v30  ;;  %v2536_v46 = vld [vmem:[#allocation8 + $0xf08] sm:$0xff] }
 0x2b9   : > { %4860 = vmatmul.msk.f32.gmra.mxu3 %vm746_vm5, %v5761_v37  ;;  %2413 = vmatpush.msra.mxu0 %v2022_v41  ;;  %v2528_v1 = vld [vmem:[#allocation8 + $0xec8] sm:$0xff]  ;;  %v2002_v41 = vld [vmem:[#allocation8 + $0xb78] sm:$0xff] }
 0x2ba   : > { %2392 = vmatpush.msrb.mxu3 %v1926_v8  ;;  %2684 = vmatpush.msra.mxu2 %v2535_v63 }
 0x2bb   : > { %v1588_v35 = vpop.f32.mrf.mxu2  ;;  %2414 = vmatpush.msra.mxu0 %v2018_v23  ;;  %2771 = vmatpush.msrb.mxu1 %v2536_v46  ;;  %v2524_v23 = vld [vmem:[#allocation8 + $0xea8] sm:$0xff]  ;;  %v1998_v46 = vld [vmem:[#allocation8 + $0xb58] sm:$0xff] }
 0x2bc   : > { %v1589_v25 = vadd.f32 %v1588_v35, %v5646_v42  ;;  %v1617_v32 = vpop.f32.mrf.mxu3  ;;  %v1649_v49 = vpop.f32.mrf.mxu0  ;;  %2710 = vmatpush.msra.mxu3 %v2611_v34  ;;  %2685 = vmatpush.msra.mxu2 %v2531_v6  ;;  %v2006_v42 = vld [vmem:[#allocation8 + $0xb98] sm:$0xff]  ;;  %v2591_v6 = vld [vmem:[#allocation8 + $0x10c0] sm:$0xff] }
 0x2bd   : > { %v5853_v11 = vpop.f32.mrf.mxu1  ;;  %2415 = vmatpush.msra.mxu0 %v2014_v59  ;;  %2772 = vmatpush.msrb.mxu1 %v2532_v51  ;;  %v2519_v59 = vld [vmem:[#allocation8 + $0xe80] sm:$0xff] }
 0x2be   : > { %v1618_v39 = vadd.f32 %v1617_v32, %v1589_v25  ;;  %2711 = vmatpush.msra.mxu3 %v2607_v0  ;;  %2686 = vmatpush.msra.mxu2 %v2527_v21  ;;  %v2520_v25 = vld [vmem:[#allocation8 + $0xe88] sm:$0xff]  ;;  %v2515_v0 = vld [vmem:[#allocation8 + $0xe60] sm:$0xff] }
 0x2bf   : > { %2312 = vmatmul.f32.gmra.mxu0 %v5793_v3  ;;  %2773 = vmatpush.msrb.mxu1 %v2528_v1  ;;  %v2511_v51 = vld [vmem:[#allocation8 + $0xe40] sm:$0xff]  ;;  %v2512_v21 = vld [vmem:[#allocation8 + $0xe48] sm:$0xff] }
 0x2c0   : > { %v5856_v55 = vadd.f32 %v1646_v9, %v1618_v39  ;;  %2254 = vmatmul.f32.gmra.mxu2 %v5806_v15  ;;  %2341 = vmatmul.f32.gmra.mxu1 %v5806_v15  ;;  %v2595_v9 = vld [vmem:[#allocation8 + $0x10e0] sm:$0xff] }
 0x2c1   : > { %4861 = vmatmul.msk.f32.gmra.mxu3 %vm746_vm5, %v5788_v45  ;;  %2416 = vmatpush.msra.mxu0 %v2010_v62  ;;  %v2587_v39 = vld [vmem:[#allocation8 + $0x10a0] sm:$0xff]  ;;  %v2516_v62 = vld [vmem:[#allocation8 + $0xe68] sm:$0xff] }
 0x2c2   : > { %2712 = vmatpush.msra.mxu3 %v2603_v50  ;;  %2687 = vmatpush.msra.mxu2 %v2523_v12  ;;  %v1990_v50 = vld [vmem:[#allocation8 + $0xb18] sm:$0xff]  ;;  %v2507_v12 = vld [vmem:[#allocation8 + $0xe20] sm:$0xff] }
 0x2c3   : > { %v1591_v17 = vpop.f32.mrf.mxu2  ;;  %2417 = vmatpush.msra.mxu0 %v2006_v42  ;;  %2774 = vmatpush.msrb.mxu1 %v2524_v23  ;;  %v2508_v23 = vld [vmem:[#allocation8 + $0xe28] sm:$0xff] }
 0x2c4   : > { %v1592_v31 = vadd.f32 %v1591_v17, %v5657_v19  ;;  %v1620_v8 = vpop.f32.mrf.mxu3  ;;  %v1652_v63 = vpop.f32.mrf.mxu0  ;;  %2713 = vmatpush.msra.mxu3 %v2599_v7  ;;  %2688 = vmatpush.msra.mxu2 %v2519_v59  ;;  %v1994_v19 = vld [vmem:[#allocation8 + $0xb38] sm:$0xff]  ;;  %v2504_v59 = vld [vmem:[#allocation8 + $0xe08] sm:$0xff] }
 0x2c5   : > { %v5863_v34 = vpop.f32.mrf.mxu1  ;;  %2418 = vmatpush.msra.mxu0 %v2002_v41  ;;  %2775 = vmatpush.msrb.mxu1 %v2520_v25  ;;  %v2623_v25 = vld [vmem:[#allocation8 + $0x11c0] sm:$0xff] }
 0x2c6   : > { %v1621_v35 = vadd.f32 %v1620_v8, %v1592_v31  ;;  %2714 = vmatpush.msra.mxu3 %v2595_v9  ;;  %2689 = vmatpush.msra.mxu2 %v2515_v0  ;;  %v2579_v31 = vld [vmem:[#allocation8 + $0x1060] sm:$0xff] }
 0x2c7   : > { %2315 = vmatmul.f32.gmra.mxu0 %v5817_v52  ;;  %2776 = vmatpush.msrb.mxu1 %v2516_v62  ;;  %v2503_v8 = vld [vmem:[#allocation8 + $0xe00] sm:$0xff] }
 0x2c8   : > { %v5866_v32 = vadd.f32 %v1649_v49, %v1621_v35  ;;  %2257 = vmatmul.f32.gmra.mxu2 %v5828_v58  ;;  %2344 = vmatmul.f32.gmra.mxu1 %v5828_v58  ;;  %v2583_v49 = vld [vmem:[#allocation8 + $0x1080] sm:$0xff] }
 0x2c9   : > { %4862 = vmatmul.msk.f32.gmra.mxu3 %vm746_vm5, %v5812_v27  ;;  %2419 = vmatpush.msra.mxu0 %v1998_v46  ;;  %v2627_v35 = vld [vmem:[#allocation8 + $0x11e0] sm:$0xff] }
 0x2ca   : > { %2715 = vmatpush.msra.mxu3 %v2591_v6  ;;  %2690 = vmatpush.msra.mxu2 %v2511_v51  ;;  %v2575_v46 = vld [vmem:[#allocation8 + $0x1040] sm:$0xff] }
 0x2cb   : > { %v1594_v42 = vpop.f32.mrf.mxu2  ;;  %2420 = vmatpush.msra.mxu0 %v1994_v19  ;;  %2777 = vmatpush.msrb.mxu1 %v2512_v21  ;;  %v2499_v6 = vld [vmem:[#allocation8 + $0xde0] sm:$0xff]  ;;  %v2492_v21 = vld [vmem:[#allocation8 + $0xda8] sm:$0xff] }
 0x2cc   : > { %v1595_v7 = vadd.f32 %v1594_v42, %v5671_v20  ;;  %v1623_v1 = vpop.f32.mrf.mxu3  ;;  %v5873_v41 = vpop.f32.mrf.mxu0  ;;  %2716 = vmatpush.msra.mxu3 %v2587_v39  ;;  %2691 = vmatpush.msra.mxu2 %v2507_v12  ;;  %v2571_v0 = vld [vmem:[#allocation8 + $0x1020] sm:$0xff] }
 0x2cd   : > { %v5875_v17 = vpop.f32.mrf.mxu1  ;;  %2421 = vmatpush.msra.mxu0 %v1990_v50  ;;  %2778 = vmatpush.msrb.mxu1 %v2508_v23  ;;  %v2495_v39 = vld [vmem:[#allocation8 + $0xdc0] sm:$0xff]  ;;  %v2612_v23 = vld [vmem:[#allocation8 + $0x1168] sm:$0xff] }
 0x2ce   : > { %v1624_v9 = vadd.f32 %v1623_v1, %v1595_v7  ;;  %2717 = vmatpush.msra.mxu3 %v2583_v49  ;;  %2692 = vmatpush.msra.mxu2 %v2503_v8  ;;  %v2567_v42 = vld [vmem:[#allocation8 + $0x1000] sm:$0xff] }
 0x2cf   : > { %2422 = vmatmul.f32.vlgmr.msra.gmra.mxu0 %v5750_v60  ;;  %v1673_v60 = vadd.f32 %v5833_v5, %v5683_v38  ;;  %2779 = vmatpush.msrb.mxu1 %v2504_v59  ;;  %v2491_v5 = vld [vmem:[#allocation8 + $0xda0] sm:$0xff]  ;;  %v2549_v59 = vld [vmem:[#allocation8 + $0xf70] sm:$0xff] }
 0x2d0   : > { %v5878_v20 = vadd.f32 %v1652_v63, %v1624_v9  ;;  %4863 = vmatmul.msk.f32.vlgmr.msrb.gmra.mxu2 %vm746_vm5, %v5736_v61  ;;  %4867 = vmatmul.msk.f32.vlgmr.msra.gmra.mxu1 %vm746_vm5, %v5736_v61  ;;  %v2500_v63 = vld [vmem:[#allocation8 + $0xde8] sm:$0xff]  ;;  %v2619_v49 = vld [vmem:[#allocation8 + $0x11a0] sm:$0xff]  ;;  %v1676_v9 = vadd.f32 %v5843_v53, %v5698_v16 }
 0x2d1   : > { %2393 = vmatmul.f32.vlgmr.msrb.gmra.mxu3 %v5741_v2  ;;  %2751 = vmatpush.msrb.mxu0 %v2627_v35  ;;  %v2496_v2 = vld [vmem:[#allocation8 + $0xdc8] sm:$0xff]  ;;  %v2487_v7 = vld [vmem:[#allocation8 + $0xd80] sm:$0xff] }
 0x2d2   : > { %2718 = vmatpush.msra.mxu3 %v2579_v31  ;;  %2693 = vmatpush.msra.mxu2 %v2499_v6  ;;  %v2563_v1 = vld [vmem:[#allocation8 + $0xfe0] sm:$0xff]  ;;  %v2608_v53 = vld [vmem:[#allocation8 + $0x1148] sm:$0xff] }
 0x2d3   : > { %v1701_v19 = vpop.f32.mrf.mxu2  ;;  %2780 = vmatpush.msrb.mxu1 %v2500_v63  ;;  %2752 = vmatpush.msrb.mxu0 %v2623_v25  ;;  %v2615_v12 = vld [vmem:[#allocation8 + $0x1180] sm:$0xff]  ;;  %v2545_v63 = vld [vmem:[#allocation8 + $0xf50] sm:$0xff] }
 0x2d4   : > { %v1702_v61 = vadd.f32 %v1701_v19, %v1673_v60  ;;  %v1730_v62 = vpop.f32.mrf.mxu3  ;;  %v5887_v50 = vpop.f32.mrf.mxu0  ;;  %2719 = vmatpush.msra.mxu3 %v2575_v46  ;;  %2694 = vmatpush.msra.mxu2 %v2495_v39  ;;  %v2559_v8 = vld [vmem:[#allocation8 + $0xfc0] sm:$0xff]  ;;  %v2609_v25 = vld [vmem:[#allocation8 + $0x1150] sm:$0xff]  ;;  %v2604_v19 = vld [vmem:[#allocation8 + $0x1128] sm:$0xff] }
 0x2d5   : > { %v5889_v51 = vpop.f32.mrf.mxu1  ;;  %2781 = vmatpush.msrb.mxu1 %v2496_v2  ;;  %2753 = vmatpush.msrb.mxu0 %v2619_v49  ;;  %v2555_v60 = vld [vmem:[#allocation8 + $0xfa0] sm:$0xff]  ;;  %v2541_v39 = vld [vmem:[#allocation8 + $0xf30] sm:$0xff] }
 0x2d6   : > { %v5891_v38 = vadd.f32 %v1730_v62, %v1702_v61  ;;  %2720 = vmatpush.msra.mxu3 %v2571_v0  ;;  %2695 = vmatpush.msra.mxu2 %v2491_v5  ;;  %v2551_v0 = vld [vmem:[#allocation8 + $0xf80] sm:$0xff]  ;;  %v1679_v61 = vadd.f32 %v5853_v11, %v5715_v47  ;;  %v2600_v62 = vld [vmem:[#allocation8 + $0x1108] sm:$0xff]  ;;  %v2537_v5 = vld [vmem:[#allocation8 + $0xf10] sm:$0xff] }
 0x2d7   : > { %2425 = vmatmul.f32.gmra.mxu0 %v5779_v30  ;;  %v2488_v30 = vld [vmem:[#allocation8 + $0xd88] sm:$0xff]  ;;  %2782 = vmatpush.msrb.mxu1 %v2492_v21 }
 0x2d8   : > { %4864 = vmatmul.msk.f32.gmra.mxu2 %vm746_vm5, %v5761_v37  ;;  %4868 = vmatmul.msk.f32.gmra.mxu1 %vm746_vm5, %v5761_v37  ;;  %v2596_v11 = vld [vmem:[#allocation8 + $0x10e8] sm:$0xff] }
 0x2d9   : > { %2396 = vmatmul.f32.gmra.mxu3 %v5766_v43  ;;  %2696 = vmatpush.msra.mxu2 %v2487_v7  ;;  %v2613_v43 = vld [vmem:[#allocation8 + $0x1170] sm:$0xff] }
 0x2da   : > { %2721 = vmatpush.msra.mxu3 %v2567_v42  ;;  %2754 = vmatpush.msrb.mxu0 %v2615_v12  ;;  %v2533_v7 = vld [vmem:[#allocation8 + $0xef0] sm:$0xff]  ;;  %v2482_v12 = vld [vmem:[#allocation3 + $0x10] sm:$0xf8] }
 0x2db   : > { %v1704_v31 = vpop.f32.mrf.mxu2  ;;  %2783 = vmatpush.msrb.mxu1 %v2488_v30  ;;  %2797 = vmatpush.msrb.mxu2 %v2612_v23  ;;  %v2529_v30 = vld [vmem:[#allocation8 + $0xed0] sm:$0xff] }
 0x2dc   : > { %v1705_v37 = vadd.f32 %v1704_v31, %v1676_v9  ;;  %v1733_v35 = vpop.f32.mrf.mxu3  ;;  %v5901_v46 = vpop.f32.mrf.mxu0  ;;  %2722 = vmatpush.msra.mxu3 %v2563_v1  ;;  %2855 = vmatpush.msra.mxu0 %v2549_v59  ;;  %v2597_v1 = vld [vmem:[#allocation8 + $0x10f0] sm:$0xff]  ;;  %v2592_v9 = vld [vmem:[#allocation8 + $0x10c8] sm:$0xff] }
 0x2dd   : > { %v5903_v6 = vpop.f32.mrf.mxu1  ;;  %2884 = vmatpush.msra.mxu1 %v2613_v43  ;;  %2798 = vmatpush.msrb.mxu2 %v2608_v53  ;;  %v2593_v23 = vld [vmem:[#allocation8 + $0x10d0] sm:$0xff]  ;;  %v2628_v31 = vld [vmem:[#allocation8 + $0x11e8] sm:$0xff] }
 0x2de   : > { %v5905_v16 = vadd.f32 %v1733_v35, %v1705_v37  ;;  %2723 = vmatpush.msra.mxu3 %v2559_v8  ;;  %2856 = vmatpush.msra.mxu0 %v2545_v63  ;;  %v1682_v8 = vadd.f32 %v5863_v34, %v5731_v57  ;;  %v2480_v59 = vld [vmem:[#allocation3] sm:$0xf8]  ;;  %v5931_v37 = vld [vmem:[#allocation3 + $0x28] sm:$0xff] }
 0x2df   : > { %2428 = vmatmul.f32.gmra.mxu0 %v5806_v15  ;;  %v2605_v15 = vld [vmem:[#allocation8 + $0x1130] sm:$0xff]  ;;  %2885 = vmatpush.msra.mxu1 %v2609_v25  ;;  %v2645_v35 = vrot.slane %v5931_v37, 3 }
 0x2e0   : > { %4865 = vmatmul.msk.f32.gmra.mxu2 %vm746_vm5, %v5788_v45  ;;  %4869 = vmatmul.msk.f32.gmra.mxu1 %vm746_vm5, %v5788_v45  ;;  %v2525_v63 = vld [vmem:[#allocation8 + $0xeb0] sm:$0xff] }
 0x2e1   : > { %2399 = vmatmul.f32.gmra.mxu3 %v5793_v3  ;;  %2799 = vmatpush.msrb.mxu2 %v2604_v19  ;;  %v2601_v3 = vld [vmem:[#allocation8 + $0x1110] sm:$0xff]  ;;  %v2644_v19 = vrot.slane %v2482_v12, 3  ;;  %v2624_v12 = vld [vmem:[#allocation8 + $0x11c8] sm:$0xff] }
 0x2e2   : > { %2724 = vmatpush.msra.mxu3 %v2555_v60  ;;  %2857 = vmatpush.msra.mxu0 %v2541_v39  ;;  %v2481_v60 = vld [vmem:[#allocation3 + $0x8] sm:$0xf8] }
 0x2e3   : > { %v1707_v2 = vpop.f32.mrf.mxu2  ;;  %2886 = vmatpush.msra.mxu1 %v2605_v15  ;;  %2800 = vmatpush.msrb.mxu2 %v2600_v62  ;;  %v2638_v62 = vrot.slane %v2480_v59, 3  ;;  %v2513_v59 = vld [vmem:[#allocation8 + $0xe50] sm:$0xff] }
 0x2e4   : > { %v1708_v42 = vadd.f32 %v1707_v2, %v1679_v61  ;;  %v1736_v45 = vpop.f32.mrf.mxu3  ;;  %v5915_v49 = vpop.f32.mrf.mxu0  ;;  %2725 = vmatpush.msra.mxu3 %v2551_v0  ;;  %2858 = vmatpush.msra.mxu0 %v2537_v5  ;;  %v5940_v0 = vld [vmem:[#allocation3 + $0x20] sm:$0xff]  ;;  %v2584_v61 = vld [vmem:[#allocation8 + $0x1088] sm:$0xff]  ;;  %v5951_v5 = vsel %vm2637_vm14, %v2644_v19, %v2645_v35 }
 0x2e5   : > { %v5917_v21 = vpop.f32.mrf.mxu1  ;;  %2887 = vmatpush.msra.mxu1 %v2601_v3  ;;  %2801 = vmatpush.msrb.mxu2 %v2596_v11  ;;  %v2642_v39 = vrot.slane %v5940_v0, 3  ;;  %v2580_v11 = vld [vmem:[#allocation8 + $0x1068] sm:$0xff] }
 0x2e6   : > { %v5919_v47 = vadd.f32 %v1736_v45, %v1708_v42  ;;  %2859 = vmatpush.msra.mxu0 %v2533_v7  ;;  %2838 = vmatpush.msrb.mxu3 %v2628_v31  ;;  %v2641_v42 = vrot.slane %v2481_v60, 3  ;;  %v2521_v45 = vld [vmem:[#allocation8 + $0xe90] sm:$0xff] }
 0x2e7   : > { %2431 = vmatmul.f32.gmra.mxu0 %v5828_v58  ;;  %v1432_v58 = vadd.f32 %v5668_v29, %v5666_v13  ;;  %2888 = vmatpush.msra.mxu1 %v2597_v1  ;;  %v2589_v13 = vld [vmem:[#allocation8 + $0x10b0] sm:$0xff] }
 0x2e8   : > { %4866 = vmatmul.msk.f32.gmra.mxu2 %vm746_vm5, %v5812_v27  ;;  %4870 = vmatmul.msk.f32.gmra.mxu1 %vm746_vm5, %v5812_v27  ;;  %v2588_v27 = vld [vmem:[#allocation8 + $0x10a8] sm:$0xff]  ;;  %v5965_v7 = vsel %vm2637_vm14, %v2641_v42, %v2642_v39  ;;  %v2517_v1 = vld [vmem:[#allocation8 + $0xe70] sm:$0xff] }
 0x2e9   : > { %2402 = vmatmul.f32.gmra.mxu3 %v5817_v52  ;;  %v5934_v52 = vld [vmem:[#allocation3 + $0x18] sm:$0xff]  ;;  %2802 = vmatpush.msrb.mxu2 %v2592_v9  ;;  %v1461_v29 = vadd.f32 %v5754_v28, %v1432_v58  ;;  %v2581_v9 = vld [vmem:[#allocation8 + $0x1070] sm:$0xff] }
 0x2ea   : > { %v2639_v53 = vrot.slane %v5934_v52, 3  ;;  %2860 = vmatpush.msra.mxu0 %v2529_v30  ;;  %2889 = vmatpush.msra.mxu1 %v2593_v23  ;;  %v2576_v30 = vld [vmem:[#allocation8 + $0x1048] sm:$0xff]  ;;  %v1435_v23 = vadd.f32 %v5681_v36, %v5679_v54  ;;  %v5971_v58 = vld [vmem:[#allocation3 + $0x40] sm:$0xff] }
 0x2eb   : > { %v1710_v43 = vpop.f32.mrf.mxu2  ;;  %2803 = vmatpush.msrb.mxu2 %v2588_v27  ;;  %v1760_v2 = vadd.f32 %v5873_v41, %v1461_v29  ;;  %v2585_v41 = vld [vmem:[#allocation8 + $0x1090] sm:$0xff]  ;;  %v2620_v27 = vld [vmem:[#allocation8 + $0x11a8] sm:$0xff]  ;;  %2839 = vmatpush.msrb.mxu3 %v2624_v12 }
 0x2ec   : > { %v1711_v57 = vadd.f32 %v1710_v43, %v1682_v8  ;;  %v1739_v34 = vpop.f32.mrf.mxu3  ;;  %v5938_v25 = vpop.f32.mrf.mxu0  ;;  %2861 = vmatpush.msra.mxu0 %v2525_v63  ;;  %2890 = vmatpush.msra.mxu1 %v2589_v13  ;;  %v5956_v3 = vsel %vm2637_vm14, %v2638_v62, %v2639_v53  ;;  %v2651_v8 = vrot.slane %v5971_v58, 3  ;;  %v2577_v60 = vld [vmem:[#allocation8 + $0x1050] sm:$0xff]  ;;  %v2572_v63 = vld [vmem:[#allocation8 + $0x1028] sm:$0xff]  ;;  %v1464_v13 = vadd.f32 %v5782_v14, %v1435_v23  ;;  %v5985_v62 = vld [vmem:[#allocation3 + $0x30] sm:$0xff] }
 0x2ed   : > { %v5943_v15 = vpop.f32.mrf.mxu1  ;;  %2804 = vmatpush.msrb.mxu2 %v2584_v61  ;;  %v1789_v31 = vadd.f32 %v5875_v17, %v1760_v2  ;;  %v5979_v17 = vld [vmem:[#allocation3 + $0x38] sm:$0xff]  ;;  %v2647_v14 = vrot.slane %v5985_v62, 3  ;;  %2840 = vmatpush.msrb.mxu3 %v2620_v27  ;;  %v2569_v12 = vld [vmem:[#allocation8 + $0x1010] sm:$0xff]  ;;  %v6020_v27 = vld [vmem:[#allocation3 + $0x48] sm:$0xff] }
 0x2ee   : > { %v5946_v28 = vadd.f32 %v1739_v34, %v1711_v57  ;;  %2862 = vmatpush.msra.mxu0 %v2521_v45  ;;  %2891 = vmatpush.msra.mxu1 %v2585_v41  ;;  %v2649_v57 = vrot.slane %v5979_v17, 3  ;;  %v2616_v34 = vld [vmem:[#allocation8 + $0x1188] sm:$0xff]  ;;  %v1763_v2 = vadd.f32 %v5887_v50, %v1464_v13  ;;  %v5994_v42 = vsel %vm2637_vm14, %v2645_v35, %v2651_v8  ;;  %v2573_v50 = vld [vmem:[#allocation8 + $0x1030] sm:$0xff] }
 0x2ef   : > { %4871 = vmatmul.msk.f32.vlgmr.msrb.gmra.mxu0 %vm746_vm5, %v5951_v5  ;;  %2805 = vmatpush.msrb.mxu2 %v2580_v11  ;;  %v6000_v41 = vsel %vm2637_vm14, %v2639_v53, %v2647_v14  ;;  %v2568_v11 = vld [vmem:[#allocation8 + $0x1008] sm:$0xff]  ;;  %v2550_v53 = vld [vmem:[#allocation8 + $0xf78] sm:$0xff] }
 0x2f0   : > { %2697 = vmatmul.f32.vlgmr.msra.gmra.mxu2 %v5956_v3  ;;  %2784 = vmatmul.f32.vlgmr.msrb.gmra.mxu1 %v5956_v3  ;;  %v6011_v35 = vsel %vm2637_vm14, %v2642_v39, %v2649_v57  ;;  %v1792_v23 = vadd.f32 %v5889_v51, %v1763_v2  ;;  %v2546_v39 = vld [vmem:[#allocation8 + $0xf58] sm:$0xff]  ;;  %v6028_v51 = vld [vmem:[#allocation3 + $0x58] sm:$0xff] }
 0x2f1   : > { %2726 = vmatmul.f32.vlgmr.msra.gmra.mxu3 %v5965_v7  ;;  %2863 = vmatpush.msra.mxu0 %v2517_v1  ;;  %v2542_v2 = vld [vmem:[#allocation8 + $0xf38] sm:$0xff] }
 0x2f2   : > { %2892 = vmatpush.msra.mxu1 %v2581_v9  ;;  %2806 = vmatpush.msrb.mxu2 %v2576_v30  ;;  %v2564_v9 = vld [vmem:[#allocation8 + $0xfe8] sm:$0xff]  ;;  %v1438_v30 = vadd.f32 %v5696_v40, %v5694_v56 }
 0x2f3   : > { %v1817_v43 = vpop.f32.mrf.mxu2  ;;  %2864 = vmatpush.msra.mxu0 %v2513_v59  ;;  %2841 = vmatpush.msrb.mxu3 %v2616_v34  ;;  %v6031_v34 = vld [vmem:[#allocation3 + $0x50] sm:$0xff] }
 0x2f4   : > { %v5975_v29 = vadd.f32 %v1817_v43, %v1789_v31  ;;  %v1846_v54 = vpop.f32.mrf.mxu3  ;;  %v5977_v36 = vpop.f32.mrf.mxu0  ;;  %2893 = vmatpush.msra.mxu1 %v2577_v60  ;;  %2807 = vmatpush.msrb.mxu2 %v2572_v63  ;;  %v2501_v31 = vld [vmem:[#allocation8 + $0xdf0] sm:$0xff]  ;;  %v2560_v60 = vld [vmem:[#allocation8 + $0xfc8] sm:$0xff]  ;;  %v1467_v63 = vadd.f32 %v5809_v44, %v1438_v30 }
 0x2f5   : > { %v1847_v19 = vadd.f32 %v1846_v54, %v5770_v48  ;;  %v5983_v61 = vpop.f32.mrf.mxu1  ;;  %v2509_v48 = vld [vmem:[#allocation8 + $0xe30] sm:$0xff]  ;;  %2942 = vmatpush.msra.mxu3 %v2550_v53  ;;  %v2657_v54 = vrot.slane %v6028_v51, 3  ;;  %v2485_v53 = vld [vmem:[#allocation3 + $0x70] sm:$0x7] }
 0x2f6   : > { %2865 = vmatpush.msra.mxu0 %v2509_v48  ;;  %2894 = vmatpush.msra.mxu1 %v2573_v50  ;;  %v2565_v43 = vld [vmem:[#allocation8 + $0xff0] sm:$0xff]  ;;  %v1766_v44 = vadd.f32 %v5901_v46, %v1467_v63  ;;  %v2534_v63 = vld [vmem:[#allocation8 + $0xef8] sm:$0xff] }
 0x2f7   : > { %v1876_v45 = vadd.f32 %v5938_v25, %v1847_v19  ;;  %4872 = vmatmul.msk.f32.gmra.mxu0 %vm746_vm5, %v5994_v42  ;;  %v2505_v25 = vld [vmem:[#allocation8 + $0xe10] sm:$0xff]  ;;  %2808 = vmatpush.msrb.mxu2 %v2568_v11  ;;  %v7046_v19 = vrot.slane %v6031_v34, 3  ;;  %v6041_v50 = vsel %vm2637_vm14, %v2651_v8, %v2657_v54 }
 0x2f8   : > { %2700 = vmatmul.f32.gmra.mxu2 %v6000_v41  ;;  %2787 = vmatmul.f32.gmra.mxu1 %v6000_v41  ;;  %v2497_v11 = vld [vmem:[#allocation8 + $0xdd0] sm:$0xff] }
 0x2f9   : > { %v6014_v1 = vadd.f32 %v5943_v15, %v1876_v45  ;;  %2729 = vmatmul.f32.gmra.mxu3 %v6011_v35  ;;  %v7047_v15 = vrot.slane %v6020_v27, 3  ;;  %2866 = vmatpush.msra.mxu0 %v2505_v25  ;;  %v2561_v46 = vld [vmem:[#allocation8 + $0xfd0] sm:$0xff]  ;;  %v6058_v8 = vsel %vm2637_vm14, %v2649_v57, %v7046_v19 }
 0x2fa   : > { %2895 = vmatpush.msra.mxu1 %v2569_v12  ;;  %2809 = vmatpush.msrb.mxu2 %v2564_v9  ;;  %v2556_v12 = vld [vmem:[#allocation8 + $0xfa8] sm:$0xff]  ;;  %v2538_v9 = vld [vmem:[#allocation8 + $0xf18] sm:$0xff]  ;;  %v2489_v57 = vld [vmem:[#allocation8 + $0xd90] sm:$0xff] }
 0x2fb   : > { %v1820_v59 = vpop.f32.mrf.mxu2  ;;  %2867 = vmatpush.msra.mxu0 %v2501_v31  ;;  %2943 = vmatpush.msra.mxu3 %v2546_v39  ;;  %v2557_v31 = vld [vmem:[#allocation8 + $0xfb0] sm:$0xff]  ;;  %v2552_v39 = vld [vmem:[#allocation8 + $0xf88] sm:$0xff] }
 0x2fc   : > { %v6024_v13 = vadd.f32 %v1820_v59, %v1792_v23  ;;  %v1849_v56 = vpop.f32.mrf.mxu3  ;;  %v6026_v40 = vpop.f32.mrf.mxu0  ;;  %2896 = vmatpush.msra.mxu1 %v2565_v43  ;;  %2810 = vmatpush.msrb.mxu2 %v2560_v60  ;;  %v2484_v23 = vld [vmem:[#allocation3 + $0x68] sm:$0x7]  ;;  %v1441_v59 = vadd.f32 %v5713_v24, %v5711_v18  ;;  %v1795_v43 = vadd.f32 %v5903_v6, %v1766_v44  ;;  %v2663_v60 = vrot.slane %v2485_v53, 3 }
 0x2fd   : > { %v1850_v48 = vadd.f32 %v1849_v56, %v5797_v22  ;;  %v6035_v45 = vpop.f32.mrf.mxu1  ;;  %v6047_v22 = vsel %vm2637_vm14, %v2647_v14, %v7047_v15  ;;  %2944 = vmatpush.msra.mxu3 %v2542_v2  ;;  %v2493_v14 = vld [vmem:[#allocation8 + $0xdb0] sm:$0xff]  ;;  %2868 = vmatpush.msra.mxu0 %v2497_v11  ;;  %v2661_v18 = vrot.slane %v2484_v23, 3  ;;  %v2530_v24 = vld [vmem:[#allocation8 + $0xed8] sm:$0xff] }
 0x2fe   : > { %2897 = vmatpush.msra.mxu1 %v2561_v46  ;;  %2811 = vmatpush.msrb.mxu2 %v2556_v12  ;;  %v1470_v11 = vadd.f32 %v5831_v33, %v1441_v59  ;;  %v6073_v46 = vsel %vm2637_vm14, %v2657_v54, %v2663_v60  ;;  %v2610_v33 = vld [vmem:[#allocation8 + $0x1158] sm:$0xff]  ;;  %v2629_v23 = vld [vmem:[#allocation8 + $0x11f0] sm:$0xff] }
 0x2ff   : > { %v1879_v25 = vadd.f32 %v5977_v36, %v1850_v48  ;;  %4873 = vmatmul.msk.f32.gmra.mxu0 %vm746_vm5, %v6041_v50  ;;  %v2483_v36 = vld [vmem:[#allocation3 + $0x60] sm:$0x7]  ;;  %v2614_v48 = vld [vmem:[#allocation8 + $0x1178] sm:$0xff]  ;;  %2945 = vmatpush.msra.mxu3 %v2538_v9 }
 0x300   : > { %2703 = vmatmul.f32.gmra.mxu2 %v6047_v22  ;;  %2790 = vmatmul.f32.gmra.mxu1 %v6047_v22  ;;  %v2659_v2 = vrot.slane %v2483_v36, 3  ;;  %v1769_v53 = vadd.f32 %v5915_v49, %v1470_v11  ;;  %v7050_v36 = vrot.slane %v6020_v27, 3  ;;  %v7051_v49 = vrot.slane %v6031_v34, 3  ;;  %v2522_v9 = vld [vmem:[#allocation8 + $0xe98] sm:$0xff] }
 0x301   : > { %v6061_v30 = vadd.f32 %v5983_v61, %v1879_v25  ;;  %2732 = vmatmul.f32.gmra.mxu3 %v6058_v8  ;;  %2869 = vmatpush.msra.mxu0 %v2493_v14  ;;  %v2553_v61 = vld [vmem:[#allocation8 + $0xf90] sm:$0xff]  ;;  %v2630_v59 = vld [vmem:[#allocation8 + $0x11f8] sm:$0xff] }
 0x302   : > { %2898 = vmatpush.msra.mxu1 %v2557_v31  ;;  %2812 = vmatpush.msrb.mxu2 %v2552_v39  ;;  %v6079_v14 = vsel %vm2637_vm14, %v7050_v36, %v2659_v2  ;;  %v6088_v54 = vsel %vm2637_vm14, %v7051_v49, %v2661_v18  ;;  %v1798_v31 = vadd.f32 %v5917_v21, %v1769_v53  ;;  %v2602_v39 = vld [vmem:[#allocation8 + $0x1118] sm:$0xff] }
 0x303   : > { %v1823_v56 = vpop.f32.mrf.mxu2  ;;  %2870 = vmatpush.msra.mxu0 %v2489_v57  ;;  %2946 = vmatpush.msra.mxu3 %v2534_v63  ;;  %v2518_v60 = vld [vmem:[#allocation8 + $0xe78] sm:$0xff]  ;;  %v2625_v57 = vld [vmem:[#allocation8 + $0x11d0] sm:$0xff] }
 0x304   : > { %v6068_v25 = vadd.f32 %v1823_v56, %v1795_v43  ;;  %v1852_v19 = vpop.f32.mrf.mxu3  ;;  %v1884_v15 = vpop.f32.mrf.mxu0  ;;  %2899 = vmatpush.msra.mxu1 %v2553_v61  ;;  %2925 = vmatpush.msra.mxu2 %v2629_v23  ;;  %v2626_v63 = vld [vmem:[#allocation8 + $0x11d8] sm:$0xff] }
 0x305   : > { %v1853_v6 = vadd.f32 %v1852_v19, %v5821_v26  ;;  %v1913_v44 = vpop.f32.mrf.mxu1  ;;  %2971 = vmatpush.msrb.mxu0 %v2614_v48  ;;  %2947 = vmatpush.msra.mxu3 %v2530_v24  ;;  %v2526_v26 = vld [vmem:[#allocation8 + $0xeb8] sm:$0xff]  ;;  %v2621_v24 = vld [vmem:[#allocation8 + $0x11b0] sm:$0xff] }
 0x306   : > { %3012 = vmatpush.msrb.mxu1 %v2630_v59  ;;  %2926 = vmatpush.msra.mxu2 %v2625_v57  ;;  %v2598_v21 = vld [vmem:[#allocation8 + $0x10f8] sm:$0xff]  ;;  %v3108_v57 = vld [vmem:[#allocation8 + $0x13c0] sm:$0xff] }
 0x307   : > { %v1882_v12 = vadd.f32 %v6026_v40, %v1853_v6  ;;  %4874 = vmatmul.msk.f32.gmra.mxu0 %vm746_vm5, %v6073_v46  ;;  %v2606_v40 = vld [vmem:[#allocation8 + $0x1138] sm:$0xff]  ;;  %2948 = vmatpush.msra.mxu3 %v2526_v26 }
 0x308   : > { %2706 = vmatmul.f32.gmra.mxu2 %v6079_v14  ;;  %2793 = vmatmul.f32.gmra.mxu1 %v6079_v14  ;;  %v2514_v18 = vld [vmem:[#allocation8 + $0xe58] sm:$0xff] }
 0x309   : > { %v6091_v19 = vadd.f32 %v6035_v45, %v1882_v12  ;;  %2735 = vmatmul.f32.gmra.mxu3 %v6088_v54  ;;  %2972 = vmatpush.msrb.mxu0 %v2610_v33  ;;  %v2594_v6 = vld [vmem:[#allocation8 + $0x10d8] sm:$0xff]  ;;  %v2617_v12 = vld [vmem:[#allocation8 + $0x1190] sm:$0xff] }
 0x30a   : > { %2949 = vmatpush.msra.mxu3 %v2522_v9  ;;  %3013 = vmatpush.msrb.mxu1 %v2626_v63  ;;  %v2622_v53 = vld [vmem:[#allocation8 + $0x11b8] sm:$0xff] }
 0x30b   : > { %v1826_v43 = vpop.f32.mrf.mxu2  ;;  %2973 = vmatpush.msrb.mxu0 %v2606_v40  ;;  %v2590_v36 = vld [vmem:[#allocation8 + $0x10b8] sm:$0xff]  ;;  %2927 = vmatpush.msra.mxu2 %v2621_v24  ;;  %v3112_v40 = vld [vmem:[#allocation8 + $0x13e0] sm:$0xff] }
 0x30c   : > { %v6095_v56 = vadd.f32 %v1826_v43, %v1798_v31  ;;  %v1855_v45 = vpop.f32.mrf.mxu3  ;;  %v2191_v2 = vpop.f32.mrf.mxu0  ;;  %2950 = vmatpush.msra.mxu3 %v2518_v60  ;;  %v2506_v49 = vld [vmem:[#allocation8 + $0xe18] sm:$0xff]  ;;  %3014 = vmatpush.msrb.mxu1 %v2622_v53  ;;  %v3100_v53 = vld [vmem:[#allocation8 + $0x1380] sm:$0xff] }
 0x30d   : > { %v1856_v61 = vadd.f32 %v1855_v45, %v5836_v10  ;;  %v6098_v48 = vpop.f32.mrf.mxu1  ;;  %2974 = vmatpush.msrb.mxu0 %v2602_v39  ;;  %v2510_v10 = vld [vmem:[#allocation8 + $0xe38] sm:$0xff]  ;;  %2928 = vmatpush.msra.mxu2 %v2617_v12  ;;  %v3109_v45 = vld [vmem:[#allocation8 + $0x13c8] sm:$0xff] }
 0x30e   : > { %2951 = vmatpush.msra.mxu3 %v2514_v18  ;;  %v2586_v59 = vld [vmem:[#allocation8 + $0x1098] sm:$0xff]  ;;  %v3105_v18 = vld [vmem:[#allocation8 + $0x13a8] sm:$0xff] }
 0x30f   : > { %v1885_v11 = vadd.f32 %v1884_v15, %v1856_v61  ;;  %2871 = vmatmul.f32.vlgmr.msra.gmra.mxu0 %v5956_v3  ;;  %v2618_v15 = vld [vmem:[#allocation8 + $0x1198] sm:$0xff] }
 0x310   : > { %2813 = vmatmul.f32.vlgmr.msrb.gmra.mxu2 %v5965_v7  ;;  %2900 = vmatmul.f32.vlgmr.msra.gmra.mxu1 %v5965_v7  ;;  %v2502_v60 = vld [vmem:[#allocation8 + $0xdf8] sm:$0xff] }
 0x311   : > { %v6103_v33 = vadd.f32 %v1913_v44, %v1885_v11  ;;  %4875 = vmatmul.msk.f32.vlgmr.msrb.gmra.mxu3 %vm746_vm5, %v5951_v5  ;;  %2975 = vmatpush.msrb.mxu0 %v2598_v21  ;;  %v3113_v44 = vld [vmem:[#allocation8 + $0x13e8] sm:$0xff]  ;;  %v2582_v63 = vld [vmem:[#allocation8 + $0x1078] sm:$0xff] }
 0x312   : > { %2952 = vmatpush.msra.mxu3 %v2510_v10  ;;  %3015 = vmatpush.msrb.mxu1 %v2618_v15  ;;  %v2498_v21 = vld [vmem:[#allocation8 + $0xdd8] sm:$0xff] }
 0x313   : > { %v2133_v26 = vpop.f32.mrf.mxu2  ;;  %2976 = vmatpush.msrb.mxu0 %v2594_v6  ;;  %3246 = vmatpush.msrb.mxu2 %v3112_v40  ;;  %v2578_v11 = vld [vmem:[#allocation8 + $0x1058] sm:$0xff] }
 0x314   : > { %v2162_v9 = vpop.f32.mrf.mxu3  ;;  %v2194_v23 = vpop.f32.mrf.mxu0  ;;  %2953 = vmatpush.msra.mxu3 %v2506_v49  ;;  %3333 = vmatpush.msra.mxu1 %v3113_v44  ;;  %v2494_v6 = vld [vmem:[#allocation8 + $0xdb8] sm:$0xff] }
 0x315   : > { %v2163_v31 = vadd.f32 %v2162_v9, %v2133_v26  ;;  %v6107_v39 = vpop.f32.mrf.mxu1  ;;  %2977 = vmatpush.msrb.mxu0 %v2590_v36  ;;  %3247 = vmatpush.msrb.mxu2 %v3108_v57  ;;  %v2574_v26 = vld [vmem:[#allocation8 + $0x1038] sm:$0xff]  ;;  %v3096_v9 = vld [vmem:[#allocation8 + $0x1360] sm:$0xff] }
 0x316   : > { %2954 = vmatpush.msra.mxu3 %v2502_v60  ;;  %3334 = vmatpush.msra.mxu1 %v3109_v45  ;;  %v2490_v40 = vld [vmem:[#allocation8 + $0xd98] sm:$0xff]  ;;  %v3172_v57 = vld [vmem:[#allocation8 + $0x15c0] sm:$0xff]  ;;  %v3093_v45 = vld [vmem:[#allocation8 + $0x1348] sm:$0xff] }
 0x317   : > { %v2192_v43 = vadd.f32 %v2191_v2, %v2163_v31  ;;  %2874 = vmatmul.f32.gmra.mxu0 %v6000_v41  ;;  %v3104_v2 = vld [vmem:[#allocation8 + $0x13a0] sm:$0xff]  ;;  %v2570_v44 = vld [vmem:[#allocation8 + $0x1018] sm:$0xff] }
 0x318   : > { %2816 = vmatmul.f32.gmra.mxu2 %v6011_v35  ;;  %2903 = vmatmul.f32.gmra.mxu1 %v6011_v35  ;;  %v3176_v31 = vld [vmem:[#allocation8 + $0x15e0] sm:$0xff]  ;;  %v2566_v60 = vld [vmem:[#allocation8 + $0xff8] sm:$0xff] }
 0x319   : > { %v6113_v61 = vadd.f32 %v2192_v43, %v5846_v4  ;;  %4876 = vmatmul.msk.f32.gmra.mxu3 %vm746_vm5, %v5994_v42  ;;  %2978 = vmatpush.msrb.mxu0 %v2586_v59  ;;  %v3101_v4 = vld [vmem:[#allocation8 + $0x1388] sm:$0xff] }
 0x31a   : > { %2955 = vmatpush.msra.mxu3 %v2498_v21  ;;  %3248 = vmatpush.msrb.mxu2 %v3104_v2  ;;  %v3097_v43 = vld [vmem:[#allocation8 + $0x1368] sm:$0xff]  ;;  %v3088_v21 = vld [vmem:[#allocation8 + $0x1320] sm:$0xff] }
 0x31b   : > { %v2136_v24 = vpop.f32.mrf.mxu2  ;;  %2979 = vmatpush.msrb.mxu0 %v2582_v63  ;;  %3335 = vmatpush.msra.mxu1 %v3105_v18  ;;  %v3168_v18 = vld [vmem:[#allocation8 + $0x15a0] sm:$0xff] }
 0x31c   : > { %v2165_v10 = vpop.f32.mrf.mxu3  ;;  %v2197_v12 = vpop.f32.mrf.mxu0  ;;  %2956 = vmatpush.msra.mxu3 %v2494_v6  ;;  %3249 = vmatpush.msrb.mxu2 %v3100_v53  ;;  %v2562_v6 = vld [vmem:[#allocation8 + $0xfd8] sm:$0xff] }
 0x31d   : > { %v2166_v36 = vadd.f32 %v2165_v10, %v2136_v24  ;;  %v6117_v15 = vpop.f32.mrf.mxu1  ;;  %2980 = vmatpush.msrb.mxu0 %v2578_v11  ;;  %3336 = vmatpush.msra.mxu1 %v3101_v4  ;;  %v3164_v10 = vld [vmem:[#allocation8 + $0x1580] sm:$0xff]  ;;  %v3089_v4 = vld [vmem:[#allocation8 + $0x1328] sm:$0xff] }
 0x31e   : > { %2957 = vmatpush.msra.mxu3 %v2490_v40  ;;  %3250 = vmatpush.msrb.mxu2 %v3096_v9  ;;  %v3160_v40 = vld [vmem:[#allocation8 + $0x1560] sm:$0xff]  ;;  %v2554_v9 = vld [vmem:[#allocation8 + $0xf98] sm:$0xff] }
 0x31f   : > { %v2195_v49 = vadd.f32 %v2194_v23, %v2166_v36  ;;  %2877 = vmatmul.f32.gmra.mxu0 %v6047_v22  ;;  %v3092_v23 = vld [vmem:[#allocation8 + $0x1340] sm:$0xff]  ;;  %3337 = vmatpush.msra.mxu1 %v3097_v43  ;;  %v2558_v36 = vld [vmem:[#allocation8 + $0xfb8] sm:$0xff] }
 0x320   : > { %2819 = vmatmul.f32.gmra.mxu2 %v6058_v8  ;;  %2906 = vmatmul.f32.gmra.mxu1 %v6058_v8  ;;  %v3156_v43 = vld [vmem:[#allocation8 + $0x1540] sm:$0xff] }
 0x321   : > { %v6123_v59 = vadd.f32 %v2195_v49, %v5856_v55  ;;  %4877 = vmatmul.msk.f32.gmra.mxu3 %vm746_vm5, %v6041_v50  ;;  %2981 = vmatpush.msrb.mxu0 %v2574_v26  ;;  %v3084_v26 = vld [vmem:[#allocation8 + $0x1300] sm:$0xff] }
 0x322   : > { %3275 = vmatpush.msrb.mxu3 %v3176_v31  ;;  %3251 = vmatpush.msrb.mxu2 %v3092_v23  ;;  %v3081_v23 = vld [vmem:[#allocation8 + $0x12e8] sm:$0xff] }
 0x323   : > { %v2139_v63 = vpop.f32.mrf.mxu2  ;;  %2982 = vmatpush.msrb.mxu0 %v2570_v44  ;;  %3338 = vmatpush.msra.mxu1 %v3093_v45  ;;  %v3080_v44 = vld [vmem:[#allocation8 + $0x12e0] sm:$0xff] }
 0x324   : > { %v2168_v2 = vpop.f32.mrf.mxu3  ;;  %v2200_v11 = vpop.f32.mrf.mxu0  ;;  %3276 = vmatpush.msrb.mxu3 %v3172_v57  ;;  %3252 = vmatpush.msrb.mxu2 %v3088_v21  ;;  %v3077_v21 = vld [vmem:[#allocation8 + $0x12c8] sm:$0xff] }
 0x325   : > { %v2169_v55 = vadd.f32 %v2168_v2, %v2139_v63  ;;  %v6127_v24 = vpop.f32.mrf.mxu1  ;;  %2983 = vmatpush.msrb.mxu0 %v2566_v60  ;;  %3339 = vmatpush.msra.mxu1 %v3089_v4  ;;  %v3148_v4 = vld [vmem:[#allocation8 + $0x1500] sm:$0xff] }
 0x326   : > { %3277 = vmatpush.msrb.mxu3 %v3168_v18  ;;  %3253 = vmatpush.msrb.mxu2 %v3084_v26  ;;  %v3152_v18 = vld [vmem:[#allocation8 + $0x1520] sm:$0xff] }
 0x327   : > { %v2198_v53 = vadd.f32 %v2197_v12, %v2169_v55  ;;  %2880 = vmatmul.f32.gmra.mxu0 %v6079_v14  ;;  %v3085_v12 = vld [vmem:[#allocation8 + $0x1308] sm:$0xff]  ;;  %v3072_v55 = vld [vmem:[#allocation8 + $0x12a0] sm:$0xff] }
 0x328   : > { %2822 = vmatmul.f32.gmra.mxu2 %v6088_v54  ;;  %2909 = vmatmul.f32.gmra.mxu1 %v6088_v54 }
 0x329   : > { %v6133_v49 = vadd.f32 %v2198_v53, %v5866_v32  ;;  %4878 = vmatmul.msk.f32.gmra.mxu3 %vm746_vm5, %v6073_v46  ;;  %2984 = vmatpush.msrb.mxu0 %v2562_v6  ;;  %v3076_v32 = vld [vmem:[#allocation8 + $0x12c0] sm:$0xff]  ;;  %v3073_v6 = vld [vmem:[#allocation8 + $0x12a8] sm:$0xff] }
 0x32a   : > { %3278 = vmatpush.msrb.mxu3 %v3164_v10  ;;  %3340 = vmatpush.msra.mxu1 %v3085_v12  ;;  %v3192_v53 = vld [vmem:[#allocation8 + $0x1660] sm:$0xff] }
 0x32b   : > { %v2142_v31 = vpop.f32.mrf.mxu2  ;;  %2985 = vmatpush.msrb.mxu0 %v2558_v36  ;;  %3254 = vmatpush.msrb.mxu2 %v3080_v44  ;;  %v3188_v36 = vld [vmem:[#allocation8 + $0x1640] sm:$0xff] }
 0x32c   : > { %v2171_v60 = vpop.f32.mrf.mxu3  ;;  %v6137_v57 = vpop.f32.mrf.mxu0  ;;  %3279 = vmatpush.msrb.mxu3 %v3160_v40  ;;  %3341 = vmatpush.msra.mxu1 %v3081_v23  ;;  %v3144_v40 = vld [vmem:[#allocation8 + $0x14e0] sm:$0xff] }
 0x32d   : > { %v2172_v63 = vadd.f32 %v2171_v60, %v2142_v31  ;;  %v6139_v45 = vpop.f32.mrf.mxu1  ;;  %2986 = vmatpush.msrb.mxu0 %v2554_v9  ;;  %3255 = vmatpush.msrb.mxu2 %v3076_v32  ;;  %v3064_v12 = vld [vmem:[#allocation8 + $0x1260] sm:$0xff]  ;;  %v3061_v60 = vld [vmem:[#allocation8 + $0x1248] sm:$0xff] }
 0x32e   : > { %3280 = vmatpush.msrb.mxu3 %v3156_v43  ;;  %3342 = vmatpush.msra.mxu1 %v3077_v21  ;;  %v3060_v43 = vld [vmem:[#allocation8 + $0x1240] sm:$0xff] }
 0x32f   : > { %v2201_v2 = vadd.f32 %v2200_v11, %v2172_v63  ;;  %2987 = vmatmul.f32.vlgmr.msrb.gmra.mxu0 %v5965_v7  ;;  %v3068_v11 = vld [vmem:[#allocation8 + $0x1280] sm:$0xff]  ;;  %3256 = vmatpush.msrb.mxu2 %v3072_v55  ;;  %v3069_v7 = vld [vmem:[#allocation8 + $0x1288] sm:$0xff] }
 0x330   : > { %4879 = vmatmul.msk.f32.vlgmr.msra.gmra.mxu2 %vm746_vm5, %v5951_v5  ;;  %4883 = vmatmul.msk.f32.vlgmr.msrb.gmra.mxu1 %vm746_vm5, %v5951_v5  ;;  %v3140_v23 = vld [vmem:[#allocation8 + $0x14c0] sm:$0xff] }
 0x331   : > { %v6147_v10 = vadd.f32 %v2201_v2, %v5878_v20  ;;  %2958 = vmatmul.f32.vlgmr.msra.gmra.mxu3 %v5956_v3  ;;  %3343 = vmatpush.msra.mxu1 %v3073_v6  ;;  %v3065_v20 = vld [vmem:[#allocation8 + $0x1268] sm:$0xff]  ;;  %v3056_v32 = vld [vmem:[#allocation8 + $0x1220] sm:$0xff] }
 0x332   : > { %3281 = vmatpush.msrb.mxu3 %v3152_v18  ;;  %3316 = vmatpush.msra.mxu0 %v3192_v53  ;;  %v3184_v63 = vld [vmem:[#allocation8 + $0x1620] sm:$0xff]  ;;  %v3057_v2 = vld [vmem:[#allocation8 + $0x1228] sm:$0xff] }
 0x333   : > { %v2249_v26 = vpop.f32.mrf.mxu2  ;;  %3257 = vmatpush.msrb.mxu2 %v3068_v11  ;;  %3344 = vmatpush.msra.mxu1 %v3069_v7  ;;  %v3136_v21 = vld [vmem:[#allocation8 + $0x14a0] sm:$0xff]  ;;  %v3053_v6 = vld [vmem:[#allocation8 + $0x1208] sm:$0xff] }
 0x334   : > { %v2250_v5 = vadd.f32 %v2249_v26, %v6098_v48  ;;  %v2278_v9 = vpop.f32.mrf.mxu3  ;;  %v6151_v44 = vpop.f32.mrf.mxu0  ;;  %3282 = vmatpush.msrb.mxu3 %v3148_v4  ;;  %3317 = vmatpush.msra.mxu0 %v3188_v36  ;;  %v3180_v18 = vld [vmem:[#allocation8 + $0x1600] sm:$0xff]  ;;  %v3114_v36 = vld [vmem:[#allocation8 + $0x13f0] sm:$0xff] }
 0x335   : > { %v6153_v3 = vpop.f32.mrf.mxu1  ;;  %3258 = vmatpush.msrb.mxu2 %v3064_v12  ;;  %3345 = vmatpush.msra.mxu1 %v3065_v20  ;;  %v3128_v26 = vld [vmem:[#allocation8 + $0x1460] sm:$0xff]  ;;  %v3173_v12 = vld [vmem:[#allocation8 + $0x15c8] sm:$0xff]  ;;  %v3174_v20 = vld [vmem:[#allocation8 + $0x15d0] sm:$0xff] }
 0x336   : > { %v2279_v31 = vadd.f32 %v2278_v9, %v2250_v5  ;;  %3283 = vmatpush.msrb.mxu3 %v3144_v40  ;;  %3318 = vmatpush.msra.mxu0 %v3184_v63  ;;  %v3178_v40 = vld [vmem:[#allocation8 + $0x15f0] sm:$0xff]  ;;  %v3124_v9 = vld [vmem:[#allocation8 + $0x1440] sm:$0xff] }
 0x337   : > { %2990 = vmatmul.f32.gmra.mxu0 %v6011_v35  ;;  %3259 = vmatpush.msrb.mxu2 %v3060_v43  ;;  %v3052_v35 = vld [vmem:[#allocation8 + $0x1200] sm:$0xff]  ;;  %v3110_v5 = vld [vmem:[#allocation8 + $0x13d0] sm:$0xff] }
 0x338   : > { %v6157_v48 = vadd.f32 %v2279_v31, %v5891_v38  ;;  %4880 = vmatmul.msk.f32.gmra.mxu2 %vm746_vm5, %v5994_v42  ;;  %4884 = vmatmul.msk.f32.gmra.mxu1 %vm746_vm5, %v5994_v42  ;;  %v3132_v38 = vld [vmem:[#allocation8 + $0x1480] sm:$0xff]  ;;  %v3106_v31 = vld [vmem:[#allocation8 + $0x13b0] sm:$0xff] }
 0x339   : > { %2961 = vmatmul.f32.gmra.mxu3 %v6000_v41  ;;  %3346 = vmatpush.msra.mxu1 %v3061_v60  ;;  %v3177_v41 = vld [vmem:[#allocation8 + $0x15e8] sm:$0xff] }
 0x33a   : > { %3284 = vmatpush.msrb.mxu3 %v3140_v23  ;;  %3260 = vmatpush.msrb.mxu2 %v3056_v32  ;;  %v3170_v23 = vld [vmem:[#allocation8 + $0x15b0] sm:$0xff] }
 0x33b   : > { %v2252_v55 = vpop.f32.mrf.mxu2  ;;  %3347 = vmatpush.msra.mxu1 %v3057_v2  ;;  %3319 = vmatpush.msra.mxu0 %v3180_v18  ;;  %v3102_v2 = vld [vmem:[#allocation8 + $0x1390] sm:$0xff] }
 0x33c   : > { %v2253_v53 = vadd.f32 %v2252_v55, %v6107_v39  ;;  %v2281_v4 = vpop.f32.mrf.mxu3  ;;  %v6165_v42 = vpop.f32.mrf.mxu0  ;;  %3285 = vmatpush.msrb.mxu3 %v3136_v21  ;;  %3261 = vmatpush.msrb.mxu2 %v3052_v35  ;;  %v3116_v35 = vld [vmem:[#allocation8 + $0x1400] sm:$0xff]  ;;  %v3166_v18 = vld [vmem:[#allocation8 + $0x1590] sm:$0xff]  ;;  %v3161_v55 = vld [vmem:[#allocation8 + $0x1568] sm:$0xff] }
 0x33d   : > { %v6167_v11 = vpop.f32.mrf.mxu1  ;;  %3348 = vmatpush.msra.mxu1 %v3053_v6  ;;  %3420 = vmatpush.msrb.mxu0 %v3114_v36  ;;  %v3045_v6 = vld [vmem:[#allocation3] sm:$0xf0] }
 0x33e   : > { %v2282_v7 = vadd.f32 %v2281_v4, %v2253_v53  ;;  %3286 = vmatpush.msrb.mxu3 %v3132_v38  ;;  %3362 = vmatpush.msra.mxu2 %v3177_v41  ;;  %v3098_v38 = vld [vmem:[#allocation8 + $0x1370] sm:$0xff]  ;;  %v3047_v53 = vld [vmem:[#allocation3 + $0x10] sm:$0xf0]  ;;  %v3210_v4 = vrot.slane %v5931_v37, 4 }
 0x33f   : > { %2993 = vmatmul.f32.gmra.mxu0 %v6058_v8  ;;  %3449 = vmatpush.msrb.mxu1 %v3178_v40  ;;  %v3169_v8 = vld [vmem:[#allocation8 + $0x15a8] sm:$0xff]  ;;  %v3094_v41 = vld [vmem:[#allocation8 + $0x1350] sm:$0xff]  ;;  %v3046_v40 = vld [vmem:[#allocation3 + $0x8] sm:$0xf0] }
 0x340   : > { %v6171_v39 = vadd.f32 %v2282_v7, %v5905_v16  ;;  %4881 = vmatmul.msk.f32.gmra.mxu2 %vm746_vm5, %v6041_v50  ;;  %4885 = vmatmul.msk.f32.gmra.mxu1 %vm746_vm5, %v6041_v50  ;;  %v3120_v16 = vld [vmem:[#allocation8 + $0x1420] sm:$0xff]  ;;  %v3193_v7 = vld [vmem:[#allocation8 + $0x1668] sm:$0xff] }
 0x341   : > { %2964 = vmatmul.f32.gmra.mxu3 %v6047_v22  ;;  %3363 = vmatpush.msra.mxu2 %v3173_v12  ;;  %v3165_v22 = vld [vmem:[#allocation8 + $0x1588] sm:$0xff] }
 0x342   : > { %3287 = vmatpush.msrb.mxu3 %v3128_v26  ;;  %3421 = vmatpush.msrb.mxu0 %v3110_v5  ;;  %v3204_v26 = vrot.slane %v5934_v52, 4  ;;  %v3074_v52 = vld [vmem:[#allocation8 + $0x12b0] sm:$0xff] }
 0x343   : > { %v2255_v43 = vpop.f32.mrf.mxu2  ;;  %3450 = vmatpush.msrb.mxu1 %v3174_v20  ;;  %3364 = vmatpush.msra.mxu2 %v3169_v8  ;;  %v3207_v20 = vrot.slane %v5940_v0, 4  ;;  %v3153_v8 = vld [vmem:[#allocation8 + $0x1528] sm:$0xff]  ;;  %v3111_v0 = vld [vmem:[#allocation8 + $0x13d8] sm:$0xff] }
 0x344   : > { %v2256_v60 = vadd.f32 %v2255_v43, %v6117_v15  ;;  %v2284_v32 = vpop.f32.mrf.mxu3  ;;  %v6179_v50 = vpop.f32.mrf.mxu0  ;;  %3288 = vmatpush.msrb.mxu3 %v3124_v9  ;;  %3422 = vmatpush.msrb.mxu0 %v3106_v31  ;;  %v3209_v9 = vrot.slane %v3047_v53, 4  ;;  %v3203_v43 = vrot.slane %v3045_v6, 4  ;;  %v3189_v6 = vld [vmem:[#allocation8 + $0x1648] sm:$0xff]  ;;  %v3216_v53 = vrot.slane %v5971_v58, 4 }
 0x345   : > { %v6181_v63 = vpop.f32.mrf.mxu1  ;;  %3451 = vmatpush.msrb.mxu1 %v3170_v23  ;;  %3365 = vmatpush.msra.mxu2 %v3165_v22  ;;  %v3154_v22 = vld [vmem:[#allocation8 + $0x1530] sm:$0xff] }
 0x346   : > { %v2285_v21 = vadd.f32 %v2284_v32, %v2256_v60  ;;  %3289 = vmatpush.msrb.mxu3 %v3120_v16  ;;  %3423 = vmatpush.msrb.mxu0 %v3102_v2  ;;  %v6199_v23 = vsel %vm3202_vm15, %v3209_v9, %v3210_v4  ;;  %v3090_v60 = vld [vmem:[#allocation8 + $0x1330] sm:$0xff]  ;;  %v6204_v32 = vsel %vm3202_vm15, %v3203_v43, %v3204_v26  ;;  %v3181_v9 = vld [vmem:[#allocation8 + $0x1608] sm:$0xff] }
 0x347   : > { %2996 = vmatmul.f32.gmra.mxu0 %v6088_v54  ;;  %v3162_v54 = vld [vmem:[#allocation8 + $0x1570] sm:$0xff]  ;;  %3452 = vmatpush.msrb.mxu1 %v3166_v18 }
 0x348   : > { %v6185_v15 = vadd.f32 %v2285_v21, %v5919_v47  ;;  %4882 = vmatmul.msk.f32.gmra.mxu2 %vm746_vm5, %v6073_v46  ;;  %4886 = vmatmul.msk.f32.gmra.mxu1 %vm746_vm5, %v6073_v46  ;;  %v3157_v47 = vld [vmem:[#allocation8 + $0x1548] sm:$0xff]  ;;  %v3158_v46 = vld [vmem:[#allocation8 + $0x1550] sm:$0xff] }
 0x349   : > { %2967 = vmatmul.f32.gmra.mxu3 %v6079_v14  ;;  %3366 = vmatpush.msra.mxu2 %v3161_v55  ;;  %v3149_v21 = vld [vmem:[#allocation8 + $0x1508] sm:$0xff]  ;;  %v3086_v18 = vld [vmem:[#allocation8 + $0x1310] sm:$0xff] }
 0x34a   : > { %3290 = vmatpush.msrb.mxu3 %v3116_v35  ;;  %3424 = vmatpush.msrb.mxu0 %v3098_v38  ;;  %v3150_v55 = vld [vmem:[#allocation8 + $0x1510] sm:$0xff]  ;;  %v3145_v38 = vld [vmem:[#allocation8 + $0x14e8] sm:$0xff] }
 0x34b   : > { %v2258_v36 = vpop.f32.mrf.mxu2  ;;  %3453 = vmatpush.msrb.mxu1 %v3162_v54  ;;  %3367 = vmatpush.msra.mxu2 %v3157_v47  ;;  %v3082_v54 = vld [vmem:[#allocation8 + $0x12f0] sm:$0xff]  ;;  %v3185_v47 = vld [vmem:[#allocation8 + $0x1628] sm:$0xff] }
 0x34c   : > { %v2259_v14 = vadd.f32 %v2258_v36, %v6127_v24  ;;  %v2287_v12 = vpop.f32.mrf.mxu3  ;;  %v2423_v5 = vpop.f32.mrf.mxu0  ;;  %3403 = vmatpush.msra.mxu3 %v3193_v7  ;;  %3425 = vmatpush.msrb.mxu0 %v3094_v41  ;;  %v3206_v24 = vrot.slane %v3046_v40, 4  ;;  %v3146_v7 = vld [vmem:[#allocation8 + $0x14f0] sm:$0xff]  ;;  %v3141_v36 = vld [vmem:[#allocation8 + $0x14c8] sm:$0xff] }
 0x34d   : > { %v2452_v31 = vpop.f32.mrf.mxu1  ;;  %3454 = vmatpush.msrb.mxu1 %v3158_v46  ;;  %3368 = vmatpush.msra.mxu2 %v3153_v8  ;;  %v3212_v8 = vrot.slane %v5985_v62, 4 }
 0x34e   : > { %v2288_v16 = vadd.f32 %v2287_v12, %v2259_v14  ;;  %v6216_v35 = vsel %vm3202_vm15, %v3206_v24, %v3207_v20  ;;  %3426 = vmatpush.msrb.mxu0 %v3090_v60  ;;  %3404 = vmatpush.msra.mxu3 %v3189_v6  ;;  %v3214_v12 = vrot.slane %v5979_v17, 4  ;;  %v3078_v24 = vld [vmem:[#allocation8 + $0x12d0] sm:$0xff]  ;;  %v3129_v6 = vld [vmem:[#allocation8 + $0x1468] sm:$0xff] }
 0x34f   : > { %4887 = vmatmul.msk.f32.vlgmr.msra.gmra.mxu0 %vm746_vm5, %v6199_v23  ;;  %3455 = vmatpush.msrb.mxu1 %v3154_v22  ;;  %v6237_v62 = vsel %vm3202_vm15, %v3204_v26, %v3212_v8  ;;  %v3133_v22 = vld [vmem:[#allocation8 + $0x1488] sm:$0xff]  ;;  %v3058_v17 = vld [vmem:[#allocation8 + $0x1230] sm:$0xff] }
 0x350   : > { %v6209_v2 = vadd.f32 %v2288_v16, %v5946_v28  ;;  %3262 = vmatmul.f32.vlgmr.msrb.gmra.mxu2 %v6204_v32  ;;  %3349 = vmatmul.f32.vlgmr.msra.gmra.mxu1 %v6204_v32  ;;  %v2337_v28 = vadd.f32 %v6139_v45, %v6137_v57  ;;  %v6232_v16 = vsel %vm3202_vm15, %v3210_v4, %v3216_v53  ;;  %v3115_v4 = vld [vmem:[#allocation8 + $0x13f8] sm:$0xff] }
 0x351   : > { %3291 = vmatmul.f32.vlgmr.msrb.gmra.mxu3 %v6216_v35  ;;  %3369 = vmatpush.msra.mxu2 %v3149_v21  ;;  %v6248_v37 = vsel %vm3202_vm15, %v3207_v20, %v3214_v12  ;;  %v2340_v21 = vadd.f32 %v6153_v3, %v6151_v44  ;;  %v3218_v20 = vrot.slane %v6020_v27, 4  ;;  %v3107_v44 = vld [vmem:[#allocation8 + $0x13b8] sm:$0xff] }
 0x352   : > { %3427 = vmatpush.msrb.mxu0 %v3086_v18  ;;  %3456 = vmatpush.msrb.mxu1 %v3150_v55  ;;  %v3070_v18 = vld [vmem:[#allocation8 + $0x1290] sm:$0xff] }
 0x353   : > { %v2365_v41 = vpop.f32.mrf.mxu2  ;;  %3370 = vmatpush.msra.mxu2 %v3145_v38  ;;  %3405 = vmatpush.msra.mxu3 %v3185_v47  ;;  %v3134_v38 = vld [vmem:[#allocation8 + $0x1490] sm:$0xff]  ;;  %v3222_v47 = vrot.slane %v6028_v51, 4 }
 0x354   : > { %v2366_v40 = vadd.f32 %v2365_v41, %v2337_v28  ;;  %v2394_v46 = vpop.f32.mrf.mxu3  ;;  %v2426_v14 = vpop.f32.mrf.mxu0  ;;  %3428 = vmatpush.msrb.mxu0 %v3082_v54  ;;  %3457 = vmatpush.msrb.mxu1 %v3146_v7  ;;  %v3220_v41 = vrot.slane %v6031_v34, 4  ;;  %v3066_v51 = vld [vmem:[#allocation8 + $0x1270] sm:$0xff]  ;;  %v3171_v34 = vld [vmem:[#allocation8 + $0x15b8] sm:$0xff] }
 0x355   : > { %v2424_v57 = vadd.f32 %v2423_v5, %v2394_v46  ;;  %v2455_v45 = vpop.f32.mrf.mxu1  ;;  %3371 = vmatpush.msra.mxu2 %v3141_v36  ;;  %v3137_v5 = vld [vmem:[#allocation8 + $0x14a8] sm:$0xff]  ;;  %3406 = vmatpush.msra.mxu3 %v3181_v9  ;;  %v6270_v9 = vsel %vm3202_vm15, %v3212_v8, %v3218_v20  ;;  %v3103_v8 = vld [vmem:[#allocation8 + $0x1398] sm:$0xff] }
 0x356   : > { %v6225_v43 = vadd.f32 %v2366_v40, %v5975_v29  ;;  %v3142_v29 = vld [vmem:[#allocation8 + $0x14d0] sm:$0xff]  ;;  %3429 = vmatpush.msrb.mxu0 %v3078_v24  ;;  %v6265_v40 = vsel %vm3202_vm15, %v3216_v53, %v3222_v47  ;;  %v6281_v58 = vsel %vm3202_vm15, %v3214_v12, %v3220_v41  ;;  %v3099_v12 = vld [vmem:[#allocation8 + $0x1378] sm:$0xff] }
 0x357   : > { %v2453_v60 = vadd.f32 %v2452_v31, %v2424_v57  ;;  %4888 = vmatmul.msk.f32.gmra.mxu0 %vm746_vm5, %v6232_v16  ;;  %v3138_v31 = vld [vmem:[#allocation8 + $0x14b0] sm:$0xff]  ;;  %3458 = vmatpush.msrb.mxu1 %v3142_v29  ;;  %v3125_v57 = vld [vmem:[#allocation8 + $0x1448] sm:$0xff] }
 0x358   : > { %7052 = vst [vmem:[#allocation15_spill] sm:$0xff] %v6225_v43  ;;  %3265 = vmatmul.f32.gmra.mxu2 %v6237_v62  ;;  %3352 = vmatmul.f32.gmra.mxu1 %v6237_v62  ;;  %v3048_v53 = vld [vmem:[#allocation3 + $0x60] sm:$0xf] }
 0x359   : > { %v6251_v26 = vadd.f32 %v2453_v60, %v6014_v1  ;;  %3294 = vmatmul.f32.gmra.mxu3 %v6248_v37  ;;  %3372 = vmatpush.msra.mxu2 %v3137_v5  ;;  %v3049_v60 = vld [vmem:[#allocation3 + $0x68] sm:$0xf]  ;;  %v3126_v29 = vld [vmem:[#allocation8 + $0x1450] sm:$0xff]  ;;  %v3121_v5 = vld [vmem:[#allocation8 + $0x1428] sm:$0xff] }
 0x35a   : > { %3430 = vmatpush.msrb.mxu0 %v3074_v52  ;;  %3507 = vmatpush.msrb.mxu3 %v3115_v4  ;;  %v2343_v52 = vadd.f32 %v6167_v11, %v6165_v42 }
 0x35b   : > { %v2368_v55 = vpop.f32.mrf.mxu2  ;;  %3459 = vmatpush.msrb.mxu1 %v3138_v31  ;;  %3373 = vmatpush.msra.mxu2 %v3133_v22  ;;  %v3224_v22 = vrot.slane %v3048_v53, 4 }
 0x35c   : > { %v2369_v1 = vadd.f32 %v2368_v55, %v2340_v21  ;;  %v2397_v28 = vpop.f32.mrf.mxu3  ;;  %v2429_v54 = vpop.f32.mrf.mxu0  ;;  %3431 = vmatpush.msrb.mxu0 %v3070_v18  ;;  %3508 = vmatpush.msrb.mxu3 %v3111_v0  ;;  %v3122_v21 = vld [vmem:[#allocation8 + $0x1430] sm:$0xff] }
 0x35d   : > { %v2427_v3 = vadd.f32 %v2426_v14, %v2397_v28  ;;  %v2458_v7 = vpop.f32.mrf.mxu1  ;;  %3460 = vmatpush.msrb.mxu1 %v3134_v38  ;;  %3374 = vmatpush.msra.mxu2 %v3129_v6  ;;  %v3050_v14 = vld [vmem:[#allocation3 + $0x70] sm:$0xf]  ;;  %v3226_v38 = vrot.slane %v3049_v60, 4  ;;  %v3095_v6 = vld [vmem:[#allocation8 + $0x1358] sm:$0xff]  ;;  %v3190_v60 = vld [vmem:[#allocation8 + $0x1650] sm:$0xff] }
 0x35e   : > { %v6260_v36 = vadd.f32 %v2369_v1, %v6024_v13  ;;  %v3130_v13 = vld [vmem:[#allocation8 + $0x1470] sm:$0xff]  ;;  %3509 = vmatpush.msrb.mxu3 %v3107_v44  ;;  %3432 = vmatpush.msrb.mxu0 %v3066_v51  ;;  %v3228_v4 = vrot.slane %v3050_v14, 4  ;;  %v6298_v51 = vsel %vm3202_vm15, %v3218_v20, %v3224_v22  ;;  %v3175_v20 = vld [vmem:[#allocation8 + $0x15d8] sm:$0xff] }
 0x35f   : > { %v2456_v46 = vadd.f32 %v2455_v45, %v2427_v3  ;;  %4889 = vmatmul.msk.f32.gmra.mxu0 %vm746_vm5, %v6265_v40  ;;  %v3062_v45 = vld [vmem:[#allocation8 + $0x1250] sm:$0xff]  ;;  %3461 = vmatpush.msrb.mxu1 %v3130_v13  ;;  %v3087_v14 = vld [vmem:[#allocation8 + $0x1318] sm:$0xff] }
 0x360   : > { %3268 = vmatmul.f32.gmra.mxu2 %v6270_v9  ;;  %3355 = vmatmul.f32.gmra.mxu1 %v6270_v9  ;;  %v6293_v28 = vsel %vm3202_vm15, %v3222_v47, %v3228_v4  ;;  %v3054_v44 = vld [vmem:[#allocation8 + $0x1210] sm:$0xff]  ;;  %v3091_v47 = vld [vmem:[#allocation8 + $0x1338] sm:$0xff] }
 0x361   : > { %v6284_v24 = vadd.f32 %v2456_v46, %v6061_v30  ;;  %3297 = vmatmul.f32.gmra.mxu3 %v6281_v58  ;;  %3375 = vmatpush.msra.mxu2 %v3125_v57  ;;  %v3117_v30 = vld [vmem:[#allocation8 + $0x1408] sm:$0xff]  ;;  %v3179_v46 = vld [vmem:[#allocation8 + $0x15f8] sm:$0xff]  ;;  %v3194_v13 = vld [vmem:[#allocation8 + $0x1670] sm:$0xff] }
 0x362   : > { %3433 = vmatpush.msrb.mxu0 %v3062_v45  ;;  %3510 = vmatpush.msrb.mxu3 %v3103_v8  ;;  %v3083_v8 = vld [vmem:[#allocation8 + $0x12f8] sm:$0xff]  ;;  %v3186_v22 = vld [vmem:[#allocation8 + $0x1630] sm:$0xff] }
 0x363   : > { %v2371_v31 = vpop.f32.mrf.mxu2  ;;  %3462 = vmatpush.msrb.mxu1 %v3126_v29  ;;  %3376 = vmatpush.msra.mxu2 %v3121_v5  ;;  %v3191_v29 = vld [vmem:[#allocation8 + $0x1658] sm:$0xff] }
 0x364   : > { %v2372_v18 = vadd.f32 %v2371_v31, %v2343_v52  ;;  %v2400_v0 = vpop.f32.mrf.mxu3  ;;  %v2432_v55 = vpop.f32.mrf.mxu0  ;;  %3434 = vmatpush.msrb.mxu0 %v3058_v17  ;;  %3511 = vmatpush.msrb.mxu3 %v3099_v12  ;;  %v3167_v52 = vld [vmem:[#allocation8 + $0x1598] sm:$0xff] }
 0x365   : > { %v2430_v1 = vadd.f32 %v2429_v54, %v2400_v0  ;;  %v2461_v42 = vpop.f32.mrf.mxu1  ;;  %3463 = vmatpush.msrb.mxu1 %v3122_v21  ;;  %3377 = vmatpush.msra.mxu2 %v3117_v30  ;;  %v3118_v54 = vld [vmem:[#allocation8 + $0x1410] sm:$0xff]  ;;  %v3079_v17 = vld [vmem:[#allocation8 + $0x12d8] sm:$0xff] }
 0x366   : > { %v6290_v11 = vadd.f32 %v2372_v18, %v6068_v25  ;;  %3512 = vmatpush.msrb.mxu3 %v3095_v6  ;;  %v6307_v25 = vsel %vm3202_vm15, %v3220_v41, %v3226_v38  ;;  %3435 = vmatpush.msrb.mxu0 %v3054_v44  ;;  %v3195_v41 = vld [vmem:[#allocation8 + $0x1678] sm:$0xff]  ;;  %v3182_v18 = vld [vmem:[#allocation8 + $0x1610] sm:$0xff] }
 0x367   : > { %v2459_v3 = vadd.f32 %v2458_v7, %v2430_v1  ;;  %4890 = vmatmul.msk.f32.gmra.mxu0 %vm746_vm5, %v6293_v28  ;;  %v2346_v7 = vadd.f32 %v6181_v63, %v6179_v50  ;;  %3464 = vmatpush.msrb.mxu1 %v3118_v54  ;;  %v3163_v12 = vld [vmem:[#allocation8 + $0x1578] sm:$0xff] }
 0x368   : > { %3271 = vmatmul.f32.gmra.mxu2 %v6298_v51  ;;  %3358 = vmatmul.f32.gmra.mxu1 %v6298_v51  ;;  %v3159_v21 = vld [vmem:[#allocation8 + $0x1558] sm:$0xff] }
 0x369   : > { %v6310_v27 = vadd.f32 %v2459_v3, %v6091_v19  ;;  %3300 = vmatmul.f32.gmra.mxu3 %v6307_v25  ;;  %3536 = vmatpush.msra.mxu0 %v3179_v46  ;;  %v3187_v30 = vld [vmem:[#allocation8 + $0x1638] sm:$0xff] }
 0x36a   : > { %3513 = vmatpush.msrb.mxu3 %v3091_v47  ;;  %3490 = vmatpush.msrb.mxu2 %v3194_v13  ;;  %v3183_v38 = vld [vmem:[#allocation8 + $0x1618] sm:$0xff] }
 0x36b   : > { %v2374_v57 = vpop.f32.mrf.mxu2  ;;  %3537 = vmatpush.msra.mxu0 %v3175_v20  ;;  %3577 = vmatpush.msra.mxu1 %v3195_v41  ;;  %v3067_v44 = vld [vmem:[#allocation8 + $0x1278] sm:$0xff] }
 0x36c   : > { %v2375_v53 = vadd.f32 %v2374_v57, %v2346_v7  ;;  %v2403_v45 = vpop.f32.mrf.mxu3  ;;  %v6315_v19 = vpop.f32.mrf.mxu0  ;;  %3514 = vmatpush.msrb.mxu3 %v3087_v14  ;;  %3491 = vmatpush.msrb.mxu2 %v3190_v60  ;;  %v3151_v3 = vld [vmem:[#allocation8 + $0x1518] sm:$0xff] }
 0x36d   : > { %v2433_v5 = vadd.f32 %v2432_v55, %v2403_v45  ;;  %v6317_v50 = vpop.f32.mrf.mxu1  ;;  %3538 = vmatpush.msra.mxu0 %v3171_v34  ;;  %3578 = vmatpush.msra.mxu1 %v3191_v29  ;;  %v3071_v55 = vld [vmem:[#allocation8 + $0x1298] sm:$0xff] }
 0x36e   : > { %v6320_v63 = vadd.f32 %v2375_v53, %v6095_v56  ;;  %3515 = vmatpush.msrb.mxu3 %v3083_v8  ;;  %v3075_v56 = vld [vmem:[#allocation8 + $0x12b8] sm:$0xff]  ;;  %3492 = vmatpush.msrb.mxu2 %v3186_v22 }
 0x36f   : > { %v2462_v4 = vadd.f32 %v2461_v42, %v2433_v5  ;;  %3436 = vmatmul.f32.vlgmr.msrb.gmra.mxu0 %v6204_v32  ;;  %3579 = vmatpush.msra.mxu1 %v3187_v30  ;;  %v3155_v42 = vld [vmem:[#allocation8 + $0x1538] sm:$0xff] }
 0x370   : > { %3378 = vmatmul.f32.vlgmr.msra.gmra.mxu2 %v6216_v35  ;;  %3465 = vmatmul.f32.vlgmr.msrb.gmra.mxu1 %v6216_v35  ;;  %v3063_v54 = vld [vmem:[#allocation8 + $0x1258] sm:$0xff] }
 0x371   : > { %v6326_v31 = vadd.f32 %v2462_v4, %v6103_v33  ;;  %4891 = vmatmul.msk.f32.vlgmr.msra.gmra.mxu3 %vm746_vm5, %v6199_v23  ;;  %3539 = vmatpush.msra.mxu0 %v3167_v52  ;;  %v3147_v46 = vld [vmem:[#allocation8 + $0x14f8] sm:$0xff] }
 0x372   : > { %3516 = vmatpush.msrb.mxu3 %v3079_v17  ;;  %3493 = vmatpush.msrb.mxu2 %v3182_v18  ;;  %v3059_v20 = vld [vmem:[#allocation8 + $0x1238] sm:$0xff] }
 0x373   : > { %v6330_v0 = vpop.f32.mrf.mxu2  ;;  %3540 = vmatpush.msra.mxu0 %v3163_v12  ;;  %3580 = vmatpush.msra.mxu1 %v3183_v38  ;;  %v3143_v57 = vld [vmem:[#allocation8 + $0x14d8] sm:$0xff] }
 0x374   : > { %v6332_v6 = vpop.f32.mrf.mxu3  ;;  %v6334_v33 = vpop.f32.mrf.mxu0  ;;  %3517 = vmatpush.msrb.mxu3 %v3075_v56  ;;  %v3055_v34 = vld [vmem:[#allocation8 + $0x1218] sm:$0xff] }
 0x375   : > { %v6336_v1 = vpop.f32.mrf.mxu1  ;;  %3541 = vmatpush.msra.mxu0 %v3159_v21  ;;  %v3139_v41 = vld [vmem:[#allocation8 + $0x14b8] sm:$0xff] }
 0x376   : > { %3518 = vmatpush.msrb.mxu3 %v3071_v55  ;;  %v3135_v53 = vld [vmem:[#allocation8 + $0x1498] sm:$0xff] }
 0x377   : > { %3439 = vmatmul.f32.gmra.mxu0 %v6237_v62  ;;  %v3131_v5 = vld [vmem:[#allocation8 + $0x1478] sm:$0xff] }
 0x378   : > { %3381 = vmatmul.f32.gmra.mxu2 %v6248_v37  ;;  %3468 = vmatmul.f32.gmra.mxu1 %v6248_v37  ;;  %v3127_v52 = vld [vmem:[#allocation8 + $0x1458] sm:$0xff] }
 0x379   : > { %4892 = vmatmul.msk.f32.gmra.mxu3 %vm746_vm5, %v6232_v16  ;;  %3542 = vmatpush.msra.mxu0 %v3155_v42  ;;  %v3123_v4 = vld [vmem:[#allocation8 + $0x1438] sm:$0xff] }
 0x37a   : > { %3519 = vmatpush.msrb.mxu3 %v3067_v44  ;;  %v3119_v22 = vld [vmem:[#allocation8 + $0x1418] sm:$0xff] }
 0x37b   : > { %v6343_v47 = vpop.f32.mrf.mxu2  ;;  %3543 = vmatpush.msra.mxu0 %v3151_v3 }
 0x37c   : > { %v6345_v7 = vpop.f32.mrf.mxu3  ;;  %v6347_v14 = vpop.f32.mrf.mxu0  ;;  %3520 = vmatpush.msrb.mxu3 %v3063_v54 }
 0x37d   : > { %v6349_v13 = vpop.f32.mrf.mxu1  ;;  %3544 = vmatpush.msra.mxu0 %v3147_v46 }
 0x37e   : > { %3521 = vmatpush.msrb.mxu3 %v3059_v20 }
 0x37f   : > { %3442 = vmatmul.f32.gmra.mxu0 %v6270_v9 }
 0x380   : > { %3384 = vmatmul.f32.gmra.mxu2 %v6281_v58  ;;  %3471 = vmatmul.f32.gmra.mxu1 %v6281_v58 }
 0x381   : > { %4893 = vmatmul.msk.f32.gmra.mxu3 %vm746_vm5, %v6265_v40  ;;  %3545 = vmatpush.msra.mxu0 %v3143_v57 }
 0x382   : > { %3522 = vmatpush.msrb.mxu3 %v3055_v34 }
 0x383   : > { %v6356_v45 = vpop.f32.mrf.mxu2  ;;  %3546 = vmatpush.msra.mxu0 %v3139_v41 }
 0x384   : > { %v6358_v8 = vpop.f32.mrf.mxu3  ;;  %v6360_v60 = vpop.f32.mrf.mxu0 }
 0x385   : > { %v6362_v29 = vpop.f32.mrf.mxu1  ;;  %3547 = vmatpush.msra.mxu0 %v3135_v53 }
 0x387   : > { %3445 = vmatmul.f32.gmra.mxu0 %v6298_v51 }
 0x388   : > { %3387 = vmatmul.f32.gmra.mxu2 %v6307_v25  ;;  %3474 = vmatmul.f32.gmra.mxu1 %v6307_v25 }
 0x389   : > { %4894 = vmatmul.msk.f32.gmra.mxu3 %vm746_vm5, %v6293_v28  ;;  %3548 = vmatpush.msra.mxu0 %v3131_v5 }
 0x38b   : > { %v6369_v17 = vpop.f32.mrf.mxu2  ;;  %3549 = vmatpush.msra.mxu0 %v3127_v52 }
 0x38c   : > { %v6371_v12 = vpop.f32.mrf.mxu3  ;;  %v6373_v56 = vpop.f32.mrf.mxu0 }
 0x38d   : > { %v6375_v21 = vpop.f32.mrf.mxu1  ;;  %3550 = vmatpush.msra.mxu0 %v3123_v4 }
 0x38f   : > { %3551 = vmatpush.msra.mxu0 %v3119_v22 }
 0x390   : > { %4895 = vmatmul.msk.f32.vlgmr.msrb.gmra.mxu2 %vm746_vm5, %v6199_v23  ;;  %3552 = vmatmul.f32.vlgmr.msra.gmra.mxu0 %v6216_v35 }
 0x391   : > { %4899 = vmatmul.msk.f32.vlgmr.msra.gmra.mxu1 %vm746_vm5, %v6199_v23  ;;  %3523 = vmatmul.f32.vlgmr.msrb.gmra.mxu3 %v6204_v32 }
 0x393   : > { %v6383_v30 = vpop.f32.mrf.mxu2 }
 0x394   : > { %v6385_v18 = vpop.f32.mrf.mxu3  ;;  %v2875_v55 = vpop.f32.mrf.mxu0 }
 0x395   : > { %v2904_v38 = vpop.f32.mrf.mxu1 }
 0x396   : > { %v2905_v5 = vadd.f32 %v2904_v38, %v2875_v55 }
 0x398   : > { %4896 = vmatmul.msk.f32.gmra.mxu2 %vm746_vm5, %v6232_v16  ;;  %3555 = vmatmul.f32.gmra.mxu0 %v6248_v37 }
 0x399   : > { %4900 = vmatmul.msk.f32.gmra.mxu1 %vm746_vm5, %v6232_v16  ;;  %3526 = vmatmul.f32.gmra.mxu3 %v6237_v62 }
 0x39b   : > { %v6393_v35 = vpop.f32.mrf.mxu2 }
 0x39c   : > { %v6395_v23 = vpop.f32.mrf.mxu3  ;;  %v2878_v32 = vpop.f32.mrf.mxu0 }
 0x39d   : > { %v2907_v42 = vpop.f32.mrf.mxu1 }
 0x3a0   : > { %4897 = vmatmul.msk.f32.gmra.mxu2 %vm746_vm5, %v6265_v40  ;;  %3558 = vmatmul.f32.gmra.mxu0 %v6281_v58 }
 0x3a1   : > { %4901 = vmatmul.msk.f32.gmra.mxu1 %vm746_vm5, %v6265_v40  ;;  %3529 = vmatmul.f32.gmra.mxu3 %v6270_v9 }
 0x3a3   : > { %v6403_v37 = vpop.f32.mrf.mxu2 }
 0x3a4   : > { %v6405_v16 = vpop.f32.mrf.mxu3  ;;  %v2881_v62 = vpop.f32.mrf.mxu0 }
 0x3a5   : > { %v2910_v44 = vpop.f32.mrf.mxu1 }
 0x3a6   : > { %v2911_v3 = vadd.f32 %v2910_v44, %v2881_v62 }
 0x3a8   : > { %4898 = vmatmul.msk.f32.gmra.mxu2 %vm746_vm5, %v6293_v28  ;;  %3561 = vmatmul.f32.gmra.mxu0 %v6307_v25 }
 0x3a9   : > { %4902 = vmatmul.msk.f32.gmra.mxu1 %vm746_vm5, %v6293_v28  ;;  %3532 = vmatmul.f32.gmra.mxu3 %v6298_v51  ;;  %vm4093_vm5 = vcmask 1041409  }
 0x3ab   : > { %v6413_v40 = vpop.f32.mrf.mxu2 }
 0x3ac   : > { %v6415_v9 = vpop.f32.mrf.mxu3  ;;  %v2988_v58 = vpop.f32.mrf.mxu0 }
 0x3ad   : > { %v3017_v54 = vpop.f32.mrf.mxu1 }
 0x3b3   : > { %v6417_v46 = vpop.f32.mrf.mxu2 }
 0x3b4   : > { %7053 = vst [vmem:[#allocation16_spill] sm:$0xff] %v6417_v46  ;;  %v2959_v20 = vpop.f32.mrf.mxu3  ;;  %v2991_v57 = vpop.f32.mrf.mxu0 }
 0x3b5   : > { %v2989_v34 = vadd.f32 %v2988_v58, %v2959_v20  ;;  %v3020_v41 = vpop.f32.mrf.mxu1  ;;  %v2908_v58 = vadd.f32 %v2907_v42, %v2878_v32  ;;  %v2728_v42 = vadd.f32 %v6332_v6, %v6330_v0 }
 0x3b7   : > { %v3018_v53 = vadd.f32 %v3017_v54, %v2989_v34 }
 0x3b9   : > { %v6420_v25 = vadd.f32 %v3018_v53, %v6251_v26 }
 0x3bb   : > { %v2933_v28 = vpop.f32.mrf.mxu2 }
 0x3bc   : > { %v2934_v52 = vadd.f32 %v2933_v28, %v2905_v5  ;;  %v2962_v51 = vpop.f32.mrf.mxu3  ;;  %v2994_v4 = vpop.f32.mrf.mxu0 }
 0x3bd   : > { %v2992_v22 = vadd.f32 %v2991_v57, %v2962_v51  ;;  %v3023_v62 = vpop.f32.mrf.mxu1 }
 0x3be   : > { %v6423_v44 = vadd.f32 %v2934_v52, %v6260_v36 }
 0x3bf   : > { %v3021_v43 = vadd.f32 %v3020_v41, %v2992_v22 }
 0x3c1   : > { %v6426_v46 = vadd.f32 %v3021_v43, %v6284_v24 }
 0x3c3   : > { %v2936_v20 = vpop.f32.mrf.mxu2 }
 0x3c4   : > { %v2937_v54 = vadd.f32 %v2936_v20, %v2908_v58  ;;  %v2965_v34 = vpop.f32.mrf.mxu3  ;;  %v2997_v26 = vpop.f32.mrf.mxu0 }
 0x3c5   : > { %v2995_v53 = vadd.f32 %v2994_v4, %v2965_v34  ;;  %v3026_v55 = vpop.f32.mrf.mxu1 }
 0x3c6   : > { %v6429_v38 = vadd.f32 %v2937_v54, %v6290_v11 }
 0x3c7   : > { %v3024_v5 = vadd.f32 %v3023_v62, %v2995_v53 }
 0x3c9   : > { %v6432_v57 = vadd.f32 %v3024_v5, %v6310_v27  ;;  %v2757_v27 = vadd.f32 %v6315_v19, %v2728_v42  ;;  %v2734_v5 = vadd.f32 %v6358_v8, %v6356_v45  ;;  %v4011_v42 = vld [vmem:[#allocation11 + $0x3f0] sm:$0xff]  ;;  %v3945_v45 = vld [vmem:[#allocation11 + $0x1e0] sm:$0xff] }
 0x3ca   : > { %4233 = vmatpush.msrb.mxu1 %v4011_v42  ;;  %v3977_v8 = vld [vmem:[#allocation11 + $0x2e0] sm:$0xff] }
 0x3cb   : > { %v2939_v36 = vpop.f32.mrf.mxu2  ;;  %v3029_v20 = vadd.f32 %v2757_v27, %v6113_v61  ;;  %v3937_v42 = vld [vmem:[#allocation11 + $0x1a0] sm:$0xff] }
 0x3cc   : > { %v2940_v28 = vadd.f32 %v2939_v36, %v2911_v3  ;;  %v2968_v41 = vpop.f32.mrf.mxu3  ;;  %v3321_v52 = vpop.f32.mrf.mxu0 }
 0x3cd   : > { %v2998_v43 = vadd.f32 %v2997_v26, %v2968_v41  ;;  %v6434_v24 = vpop.f32.mrf.mxu1  ;;  %v3947_v41 = vld [vmem:[#allocation11 + $0x1f0] sm:$0xff] }
 0x3ce   : > { %v6437_v32 = vadd.f32 %v2940_v28, %v6320_v63  ;;  %v2731_v63 = vadd.f32 %v6345_v7, %v6343_v47  ;;  %v2763_v47 = vadd.f32 %v6347_v14, %v2734_v5  ;;  %v3915_v28 = vld [vmem:[#allocation11 + $0xf0] sm:$0xff]  ;;  %4187 = vmatpush.msra.mxu3 %v3947_v41  ;;  %v4009_v14 = vld [vmem:[#allocation11 + $0x3e0] sm:$0xff]  ;;  %v2815_v41 = vadd.f32 %v6383_v30, %v6317_v50 }
 0x3cf   : > { %v3027_v51 = vadd.f32 %v3026_v55, %v2998_v43  ;;  %4164 = vmatpush.msra.mxu2 %v3915_v28  ;;  %4234 = vmatpush.msrb.mxu1 %v4009_v14  ;;  %v3939_v5 = vld [vmem:[#allocation11 + $0x1b0] sm:$0xff] }
 0x3d0   : > { %v2760_v0 = vadd.f32 %v6334_v33, %v2731_v63  ;;  %v3979_v33 = vld [vmem:[#allocation11 + $0x2f0] sm:$0xff]  ;;  %4188 = vmatpush.msra.mxu3 %v3945_v45  ;;  %v4001_v45 = vld [vmem:[#allocation11 + $0x3a0] sm:$0xff] }
 0x3d1   : > { %v6442_v11 = vadd.f32 %v3027_v51, %v6326_v31  ;;  %4210 = vmatpush.msrb.mxu0 %v3979_v33  ;;  %v3975_v63 = vld [vmem:[#allocation11 + $0x2d0] sm:$0xff] }
 0x3d2   : > { %v3033_v55 = vadd.f32 %v2760_v0, %v6123_v59  ;;  %v3913_v59 = vld [vmem:[#allocation11 + $0xe0] sm:$0xff]  ;;  %v4003_v28 = vld [vmem:[#allocation11 + $0x3b0] sm:$0xff] }
 0x3d3   : > { %v3263_v4 = vpop.f32.mrf.mxu2  ;;  %4165 = vmatpush.msra.mxu2 %v3913_v59  ;;  %4211 = vmatpush.msrb.mxu0 %v3977_v8  ;;  %v3935_v50 = vld [vmem:[#allocation11 + $0x190] sm:$0xff] }
 0x3d4   : > { %v3292_v22 = vpop.f32.mrf.mxu3  ;;  %v3324_v3 = vpop.f32.mrf.mxu0  ;;  %v3967_v30 = vld [vmem:[#allocation11 + $0x290] sm:$0xff] }
 0x3d5   : > { %v3293_v62 = vadd.f32 %v3292_v22, %v3263_v4  ;;  %v6445_v58 = vpop.f32.mrf.mxu1  ;;  %v3037_v4 = vadd.f32 %v2763_v47, %v6133_v49  ;;  %v2737_v22 = vadd.f32 %v6371_v12, %v6369_v17  ;;  %4212 = vmatpush.msrb.mxu0 %v3975_v63  ;;  %v6468_v49 = vld [vmem:[#allocation9] sm:$0x77]  ;;  %v4005_v17 = vld [vmem:[#allocation11 + $0x3c0] sm:$0xff] }
 0x3d6   : > { %v3614_v59 = vperm.slane %v6468_v49, 0  ;;  %v3933_v63 = vld [vmem:[#allocation11 + $0x180] sm:$0xff] }
 0x3d7   : > { %v3322_v54 = vadd.f32 %v3321_v52, %v3293_v62  ;;  %v3911_v62 = vld [vmem:[#allocation11 + $0xd0] sm:$0xff]  ;;  %v2766_v12 = vadd.f32 %v6360_v60, %v2737_v22  ;;  %v3905_v60 = vld [vmem:[#allocation11 + $0xa0] sm:$0xff] }
 0x3d8   : > { %4166 = vmatpush.msra.mxu2 %v3911_v62  ;;  %v3999_v22 = vld [vmem:[#allocation11 + $0x390] sm:$0xff] }
 0x3d9   : > { %v6450_v34 = vadd.f32 %v3322_v54, %v3029_v20  ;;  %v3943_v20 = vld [vmem:[#allocation11 + $0x1d0] sm:$0xff]  ;;  %v3041_v8 = vadd.f32 %v2766_v12, %v6147_v10  ;;  %v3615_v10 = vperm.slane %v6468_v49, 4 }
 0x3da   : > { %4189 = vmatpush.msra.mxu3 %v3943_v20  ;;  %v4007_v54 = vld [vmem:[#allocation11 + $0x3d0] sm:$0xff]  ;;  %v3901_v20 = vld [vmem:[#allocation11 + $0x80] sm:$0xff] }
 0x3db   : > { %v3266_v31 = vpop.f32.mrf.mxu2  ;;  %4235 = vmatpush.msrb.mxu1 %v4007_v54  ;;  %v3965_v54 = vld [vmem:[#allocation11 + $0x280] sm:$0xff] }
 0x3dc   : > { %v3295_v6 = vpop.f32.mrf.mxu3  ;;  %v3327_v26 = vpop.f32.mrf.mxu0 }
 0x3dd   : > { %v3296_v19 = vadd.f32 %v3295_v6, %v3266_v31  ;;  %v6453_v53 = vpop.f32.mrf.mxu1  ;;  %v3909_v31 = vld [vmem:[#allocation11 + $0xc0] sm:$0xff]  ;;  %4236 = vmatpush.msrb.mxu1 %v4005_v17  ;;  %v3931_v17 = vld [vmem:[#allocation11 + $0x170] sm:$0xff] }
 0x3de   : > { %v3941_v6 = vld [vmem:[#allocation11 + $0x1c0] sm:$0xff]  ;;  %4167 = vmatpush.msra.mxu2 %v3909_v31  ;;  %v6482_v31 = vperm.slane %v3614_v59, 0  ;;  %v6496_v59 = vperm.slane %v3615_v10, 0 }
 0x3df   : > { %v3325_v61 = vadd.f32 %v3324_v3, %v3296_v19  ;;  %v3973_v19 = vld [vmem:[#allocation11 + $0x2c0] sm:$0xff]  ;;  %4190 = vmatpush.msra.mxu3 %v3941_v6  ;;  %4237 = vmatpush.msrb.mxu1 %v4003_v28  ;;  %v3658_v28 = vperm.slane %v6468_v49, 1 }
 0x3e0   : > { %4213 = vmatpush.msrb.mxu0 %v3973_v19  ;;  %v3899_v19 = vld [vmem:[#allocation11 + $0x70] sm:$0xff] }
 0x3e1   : > { %v6458_v36 = vadd.f32 %v3325_v61, %v3033_v55  ;;  %v3907_v55 = vld [vmem:[#allocation11 + $0xb0] sm:$0xff]  ;;  %4191 = vmatpush.msra.mxu3 %v3939_v5  ;;  %4238 = vmatpush.msrb.mxu1 %v4001_v45 }
 0x3e2   : > { %v3971_v61 = vld [vmem:[#allocation11 + $0x2b0] sm:$0xff]  ;;  %4168 = vmatpush.msra.mxu2 %v3907_v55 }
 0x3e3   : > { %v3269_v7 = vpop.f32.mrf.mxu2  ;;  %4214 = vmatpush.msrb.mxu0 %v3971_v61  ;;  %4192 = vmatpush.msra.mxu3 %v3937_v42  ;;  %v3995_v5 = vld [vmem:[#allocation11 + $0x370] sm:$0xff]  ;;  %v3626_v42 = vadd.f32 %v6482_v31, %v6450_v34 }
 0x3e4   : > { %v3298_v52 = vpop.f32.mrf.mxu3  ;;  %v3330_v43 = vpop.f32.mrf.mxu0  ;;  %4169 = vmatpush.msra.mxu2 %v3905_v60  ;;  %4239 = vmatpush.msrb.mxu1 %v3999_v22  ;;  %v3929_v60 = vld [vmem:[#allocation11 + $0x160] sm:$0xff]  ;;  %v3927_v45 = vld [vmem:[#allocation11 + $0x150] sm:$0xff] }
 0x3e5   : > { %v3299_v51 = vadd.f32 %v3298_v52, %v3269_v7  ;;  %v6461_v27 = vpop.f32.mrf.mxu1  ;;  %4193 = vmatpush.msra.mxu3 %v3935_v50  ;;  %v3991_v50 = vld [vmem:[#allocation11 + $0x350] sm:$0xff]  ;;  %v3893_v22 = vld [vmem:[#allocation11 + $0x40] sm:$0xff] }
 0x3e7   : > { %v3328_v3 = vadd.f32 %v3327_v26, %v3299_v51  ;;  %v3969_v51 = vld [vmem:[#allocation11 + $0x2a0] sm:$0xff]  ;;  %4194 = vmatpush.msra.mxu3 %v3933_v63  ;;  %v3642_v63 = vmax.f32 %v3626_v42, 0.0 }
 0x3e8   : > { %4215 = vmatpush.msrb.mxu0 %v3969_v51  ;;  %v3921_v42 = vld [vmem:[#allocation11 + $0x120] sm:$0xff] }
 0x3e9   : > { %v6466_v0 = vadd.f32 %v3328_v3, %v3037_v4  ;;  %v3903_v4 = vld [vmem:[#allocation11 + $0x90] sm:$0xff]  ;;  %v2844_v3 = vadd.f32 %v6385_v18, %v2815_v41  ;;  %4195 = vmatpush.msra.mxu3 %v3931_v17 }
 0x3ea   : > { %4170 = vmatpush.msra.mxu2 %v3903_v4  ;;  %4216 = vmatpush.msrb.mxu0 %v3967_v30  ;;  %v3963_v18 = vld [vmem:[#allocation11 + $0x270] sm:$0xff]  ;;  %v3687_v4 = vperm.slane %v6468_v49, 6  ;;  %v6501_v30 = vperm.slane %v3658_v28, 1 }
 0x3eb   : > { %v3272_v26 = vpop.f32.mrf.mxu2  ;;  %v3030_v61 = vadd.f32 %v2844_v3, %v6157_v48  ;;  %v3659_v48 = vperm.slane %v6468_v49, 5  ;;  %4196 = vmatpush.msra.mxu3 %v3929_v60  ;;  %v3925_v3 = vld [vmem:[#allocation11 + $0x140] sm:$0xff]  ;;  %v3923_v17 = vld [vmem:[#allocation11 + $0x130] sm:$0xff] }
 0x3ec   : > { %v3301_v47 = vpop.f32.mrf.mxu3  ;;  %v6471_v7 = vpop.f32.mrf.mxu0  ;;  %4171 = vmatpush.msra.mxu2 %v3901_v20  ;;  %4217 = vmatpush.msrb.mxu0 %v3965_v54  ;;  %v3957_v20 = vld [vmem:[#allocation11 + $0x240] sm:$0xff]  ;;  %v3686_v54 = vperm.slane %v6468_v49, 2  ;;  %v3955_v49 = vld [vmem:[#allocation11 + $0x230] sm:$0xff] }
 0x3ed   : > { %v3302_v33 = vadd.f32 %v3301_v47, %v3272_v26  ;;  %v6475_v52 = vpop.f32.mrf.mxu1  ;;  %v2818_v47 = vadd.f32 %v6393_v35, %v6336_v1  ;;  %v3993_v1 = vld [vmem:[#allocation11 + $0x360] sm:$0xff]  ;;  %v3895_v35 = vld [vmem:[#allocation11 + $0x50] sm:$0xff]  ;;  %4197 = vmatpush.msra.mxu3 %v3927_v45 }
 0x3ee   : > { %4172 = vmatpush.msra.mxu2 %v3899_v19  ;;  %4218 = vmatpush.msrb.mxu0 %v3963_v18  ;;  %v3919_v45 = vld [vmem:[#allocation11 + $0x110] sm:$0xff] }
 0x3ef   : > { %v3331_v14 = vadd.f32 %v3330_v43, %v3302_v33  ;;  %v3997_v43 = vld [vmem:[#allocation11 + $0x380] sm:$0xff]  ;;  %v2847_v34 = vadd.f32 %v6395_v23, %v2818_v47  ;;  %4198 = vmatpush.msra.mxu3 %v3925_v3  ;;  %v3891_v23 = vld [vmem:[#allocation11 + $0x30] sm:$0xff] }
 0x3f0   : > { %4240 = vmatpush.msrb.mxu1 %v3997_v43  ;;  %v3897_v33 = vld [vmem:[#allocation11 + $0x60] sm:$0xff]  ;;  %v6505_v43 = vperm.slane %v3659_v48, 1  ;;  %v3987_v47 = vld [vmem:[#allocation11 + $0x330] sm:$0xff]  ;;  %v6518_v48 = vperm.slane %v3686_v54, 2 }
 0x3f1   : > { %v6480_v62 = vadd.f32 %v3331_v14, %v3041_v8  ;;  %4173 = vmatpush.msra.mxu2 %v3897_v33  ;;  %v3959_v8 = vld [vmem:[#allocation11 + $0x250] sm:$0xff]  ;;  %4199 = vmatpush.msra.mxu3 %v3923_v17  ;;  %v3034_v28 = vadd.f32 %v2847_v34, %v6171_v39  ;;  %v2821_v33 = vadd.f32 %v6403_v37, %v6349_v13  ;;  %v3985_v39 = vld [vmem:[#allocation11 + $0x320] sm:$0xff] }
 0x3f2   : > { %4241 = vmatpush.msrb.mxu1 %v3995_v5  ;;  %v3630_v13 = vadd.f32 %v6482_v31, %v6458_v36  ;;  %v3887_v37 = vld [vmem:[#allocation11 + $0x10] sm:$0xff]  ;;  %v3885_v34 = vld [vmem:[#allocation11] sm:$0xff] }
 0x3f3   : > { %v3379_v6 = vpop.f32.mrf.mxu2  ;;  %4174 = vmatpush.msra.mxu2 %v3895_v35  ;;  %4200 = vmatpush.msra.mxu3 %v3921_v42  ;;  %v3949_v3 = vld [vmem:[#allocation11 + $0x200] sm:$0xff]  ;;  %v2850_v36 = vadd.f32 %v6405_v16, %v2821_v33  ;;  %v3946_v42 = vld [vmem:[#allocation11 + $0x1e8] sm:$0xff] }
 0x3f4   : > { %v3380_v12 = vadd.f32 %v3379_v6, %v6434_v24  ;;  %v3408_v26 = vpop.f32.mrf.mxu3  ;;  %v6486_v55 = vpop.f32.mrf.mxu0  ;;  %v3961_v24 = vld [vmem:[#allocation11 + $0x260] sm:$0xff]  ;;  %4242 = vmatpush.msrb.mxu1 %v3993_v1 }
 0x3f5   : > { %v6492_v41 = vpop.f32.mrf.mxu1  ;;  %4219 = vmatpush.msrb.mxu0 %v3961_v24  ;;  %4175 = vmatpush.msra.mxu2 %v3893_v22  ;;  %v3989_v6 = vld [vmem:[#allocation11 + $0x340] sm:$0xff] }
 0x3f6   : > { %v3409_v51 = vadd.f32 %v3408_v26, %v3380_v12  ;;  %4243 = vmatpush.msrb.mxu1 %v3991_v50  ;;  %v6507_v12 = vperm.slane %v3687_v4, 2  ;;  %v3889_v24 = vld [vmem:[#allocation11 + $0x20] sm:$0xff]  ;;  %4201 = vmatpush.msra.mxu3 %v3919_v45  ;;  %v3983_v50 = vld [vmem:[#allocation11 + $0x310] sm:$0xff]  ;;  %v3944_v45 = vld [vmem:[#allocation11 + $0x1d8] sm:$0xff] }
 0x3f7   : > { %4220 = vmatpush.msrb.mxu0 %v3959_v8  ;;  %4176 = vmatpush.msra.mxu2 %v3891_v23  ;;  %v3951_v8 = vld [vmem:[#allocation11 + $0x210] sm:$0xff]  ;;  %v3917_v22 = vld [vmem:[#allocation11 + $0x100] sm:$0xff]  ;;  %v3646_v23 = vmax.f32 %v3630_v13, 0.0  ;;  %v2824_v13 = vadd.f32 %v6413_v40, %v6362_v29  ;;  %v3910_v29 = vld [vmem:[#allocation11 + $0xc8] sm:$0xff] }
 0x3f8   : > { %v3595_v14 = vadd.f32 %v3409_v51, %v3030_v61  ;;  %4244 = vmatpush.msrb.mxu1 %v3989_v6  ;;  %v3953_v51 = vld [vmem:[#allocation11 + $0x220] sm:$0xff]  ;;  %4202 = vmatpush.msra.mxu3 %v3917_v22  ;;  %v3916_v6 = vld [vmem:[#allocation11 + $0xf8] sm:$0xff]  ;;  %v3942_v40 = vld [vmem:[#allocation11 + $0x1c8] sm:$0xff] }
 0x3f9   : > { %4221 = vmatpush.msrb.mxu0 %v3957_v20  ;;  %4177 = vmatpush.msra.mxu2 %v3889_v24  ;;  %v3914_v24 = vld [vmem:[#allocation11 + $0xe8] sm:$0xff] }
 0x3fa   : > { %v3627_v10 = vadd.f32 %v6496_v59, %v3595_v14  ;;  %4245 = vmatpush.msrb.mxu1 %v3987_v47  ;;  %v3974_v22 = vld [vmem:[#allocation11 + $0x2c8] sm:$0xff] }
 0x3fb   : > { %v3382_v19 = vpop.f32.mrf.mxu2  ;;  %4222 = vmatpush.msrb.mxu0 %v3955_v49  ;;  %4178 = vmatpush.msra.mxu2 %v3887_v37  ;;  %v3912_v37 = vld [vmem:[#allocation11 + $0xd8] sm:$0xff] }
 0x3fc   : > { %v3643_v18 = vmax.f32 %v3627_v10, 0.0  ;;  %v3383_v26 = vadd.f32 %v3382_v19, %v6445_v58  ;;  %v3411_v5 = vpop.f32.mrf.mxu3  ;;  %v6510_v61 = vpop.f32.mrf.mxu0  ;;  %v3670_v58 = vmul.f32 %v6501_v30, %v3642_v63  ;;  %4246 = vmatpush.msrb.mxu1 %v3985_v39  ;;  %v3981_v10 = vld [vmem:[#allocation11 + $0x300] sm:$0xff]  ;;  %v3948_v19 = vld [vmem:[#allocation11 + $0x1f8] sm:$0xff]  ;;  %v3038_v39 = vadd.f32 %v2850_v36, %v6185_v15 }
 0x3fd   : > { %v6515_v60 = vpop.f32.mrf.mxu1  ;;  %4223 = vmatpush.msrb.mxu0 %v3953_v51  ;;  %4179 = vmatpush.msra.mxu2 %v3885_v34  ;;  %v3978_v51 = vld [vmem:[#allocation11 + $0x2e8] sm:$0xff]  ;;  %v3634_v15 = vadd.f32 %v6482_v31, %v6466_v0 }
 0x3fe   : > { %v3671_v1 = vmul.f32 %v6505_v43, %v3643_v18  ;;  %v3412_v35 = vadd.f32 %v3411_v5, %v3383_v26  ;;  %4247 = vmatpush.msrb.mxu1 %v3983_v50  ;;  %v3698_v20 = vadd.f32 %v6518_v48, %v3670_v58  ;;  %v3980_v18 = vld [vmem:[#allocation11 + $0x2f8] sm:$0xff]  ;;  %4279 = vmatpush.msrb.mxu3 %v3948_v19 }
 0x3ff   : > { %4224 = vmatpush.msrb.mxu0 %v3951_v8  ;;  %v4012_v26 = vld [vmem:[#allocation11 + $0x3f8] sm:$0xff]  ;;  %4256 = vmatpush.msrb.mxu2 %v3916_v6 }
 0x400   : > { %v3699_v14 = vadd.f32 %v6507_v12, %v3671_v1  ;;  %v3599_v4 = vadd.f32 %v3412_v35, %v3034_v28  ;;  %4248 = vmatpush.msrb.mxu1 %v3981_v10  ;;  %v4010_v35 = vld [vmem:[#allocation11 + $0x3e8] sm:$0xff]  ;;  %v3976_v8 = vld [vmem:[#allocation11 + $0x2d8] sm:$0xff]  ;;  %4280 = vmatpush.msrb.mxu3 %v3946_v42 }
 0x401   : > { %4225 = vmatpush.msrb.mxu0 %v3949_v3  ;;  %4257 = vmatpush.msrb.mxu2 %v3914_v24  ;;  %v3940_v10 = vld [vmem:[#allocation11 + $0x1b8] sm:$0xff] }
 0x402   : > { %v3730_v63 = vrot.slane %v3699_v14, 6  ;;  %v3631_v54 = vadd.f32 %v6496_v59, %v3599_v4  ;;  %4325 = vmatpush.msra.mxu1 %v4012_v26  ;;  %v3674_v14 = vmul.f32 %v6501_v30, %v3646_v23  ;;  %4281 = vmatpush.msrb.mxu3 %v3944_v45  ;;  %v2902_v26 = vadd.f32 %v6375_v21, %v6373_v56  ;;  %v6575_v45 = vld [vmem:[#allocation9 + $0x8] sm:$0x77] }
 0x403   : > { %v3385_v17 = vpop.f32.mrf.mxu2  ;;  %4302 = vmatpush.msra.mxu0 %v3980_v18  ;;  %4258 = vmatpush.msrb.mxu2 %v3912_v37  ;;  %v4004_v18 = vld [vmem:[#allocation11 + $0x3b8] sm:$0xff] }
 0x404   : > { %v6528_v5 = vsel %vm769_vm4, %v3698_v20, %v3730_v63  ;;  %v6531_v16 = vsel %vm3746_vm2, %v3698_v20, %v3730_v63  ;;  %v6534_v49 = vsel %vm3743_vm0, %v3698_v20, %v3730_v63  ;;  %v6537_v47 = vsel %vm436_vm1, %v3730_v63, %v3698_v20  ;;  %v3414_v28 = vpop.f32.mrf.mxu3  ;;  %v6539_v33 = vpop.f32.mrf.mxu0  ;;  %4326 = vmatpush.msra.mxu1 %v4010_v35  ;;  %v4006_v20 = vld [vmem:[#allocation11 + $0x3c8] sm:$0xff] }
 0x405   : > { %v3647_v58 = vmax.f32 %v3631_v54, 0.0  ;;  %v3386_v1 = vadd.f32 %v3385_v17, %v6453_v53  ;;  %v6547_v34 = vpop.f32.mrf.mxu1  ;;  %4303 = vmatpush.msra.mxu0 %v3978_v51  ;;  %v4008_v53 = vld [vmem:[#allocation11 + $0x3d8] sm:$0xff]  ;;  %v2853_v63 = vadd.f32 %v6415_v9, %v2824_v13  ;;  %4259 = vmatpush.msrb.mxu2 %v3910_v29  ;;  %v3702_v6 = vadd.f32 %v6518_v48, %v3674_v14  ;;  %v3906_v51 = vld [vmem:[#allocation11 + $0xa8] sm:$0xff] }
 0x406   : > { %4327 = vmatpush.msra.mxu1 %v4008_v53  ;;  %v3908_v54 = vld [vmem:[#allocation11 + $0xb8] sm:$0xff]  ;;  %4282 = vmatpush.msrb.mxu3 %v3942_v40  ;;  %v6559_v9 = vadd.f32 %v6482_v31, %v6480_v62  ;;  %v3970_v62 = vld [vmem:[#allocation11 + $0x2a8] sm:$0xff] }
 0x407   : > { %v3675_v4 = vmul.f32 %v6505_v43, %v3647_v58  ;;  %v3415_v50 = vadd.f32 %v3414_v28, %v3386_v1  ;;  %4304 = vmatpush.msra.mxu0 %v3976_v8  ;;  %v3972_v17 = vld [vmem:[#allocation11 + $0x2b8] sm:$0xff]  ;;  %v3650_v28 = vmax.f32 %v3634_v15, 0.0  ;;  %4260 = vmatpush.msrb.mxu2 %v3908_v54  ;;  %v3938_v58 = vld [vmem:[#allocation11 + $0x1a8] sm:$0xff]  ;;  %v3042_v31 = vadd.f32 %v2853_v63, %v6209_v2 }
 0x408   : > { %4328 = vmatpush.msra.mxu1 %v4006_v20  ;;  %4283 = vmatpush.msrb.mxu3 %v3940_v10  ;;  %v3904_v8 = vld [vmem:[#allocation11 + $0x98] sm:$0xff]  ;;  %v3616_v63 = vperm.slane %v6575_v45, 0  ;;  %v3966_v54 = vld [vmem:[#allocation11 + $0x288] sm:$0xff] }
 0x409   : > { %v3703_v3 = vadd.f32 %v6507_v12, %v3675_v4  ;;  %v3603_v36 = vadd.f32 %v3415_v50, %v3038_v39  ;;  %4305 = vmatpush.msra.mxu0 %v3974_v22  ;;  %v3936_v14 = vld [vmem:[#allocation11 + $0x198] sm:$0xff]  ;;  %v7054_v4 = vld [vmem:[#allocation16_spill] sm:$0xff]  ;;  %4261 = vmatpush.msrb.mxu2 %v3906_v51  ;;  %v3678_v29 = vmul.f32 %v6501_v30, %v3650_v28 }
 0x40a   : > { %4329 = vmatpush.msra.mxu1 %v4004_v18  ;;  %v2931_v50 = vadd.f32 %v7054_v4, %v2902_v26  ;;  %4284 = vmatpush.msrb.mxu3 %v3938_v58  ;;  %v3968_v53 = vld [vmem:[#allocation11 + $0x298] sm:$0xff]  ;;  %v3902_v22 = vld [vmem:[#allocation11 + $0x88] sm:$0xff]  ;;  %v7055_v18 = vld [vmem:[#allocation15_spill] sm:$0xff] }
 0x40b   : > { %v3733_v0 = vrot.slane %v3703_v3, 6  ;;  %v3635_v19 = vadd.f32 %v6496_v59, %v3603_v36  ;;  %v3388_v23 = vpop.f32.mrf.mxu2  ;;  %4306 = vmatpush.msra.mxu0 %v3972_v17  ;;  %v4000_v15 = vld [vmem:[#allocation11 + $0x398] sm:$0xff]  ;;  %v3934_v3 = vld [vmem:[#allocation11 + $0x188] sm:$0xff]  ;;  %v3654_v36 = vmax.f32 %v6559_v9, 0.0  ;;  %4262 = vmatpush.msrb.mxu2 %v3904_v8  ;;  %v3617_v9 = vperm.slane %v6575_v45, 4 }
 0x40c   : > { %v3389_v24 = vadd.f32 %v3388_v23, %v6461_v27  ;;  %v3417_v42 = vpop.f32.mrf.mxu3  ;;  %v4002_v27 = vld [vmem:[#allocation11 + $0x3a8] sm:$0xff]  ;;  %4285 = vmatpush.msrb.mxu3 %v3936_v14  ;;  %v3900_v23 = vld [vmem:[#allocation11 + $0x78] sm:$0xff]  ;;  %v3031_v26 = vadd.f32 %v2931_v50, %v7055_v18 }
 0x40d   : > { %v6563_v1 = vsel %vm769_vm4, %v3702_v6, %v3733_v0  ;;  %v6566_v35 = vsel %vm3746_vm2, %v3702_v6, %v3733_v0  ;;  %v6569_v56 = vsel %vm3743_vm0, %v3702_v6, %v3733_v0  ;;  %v6572_v21 = vsel %vm436_vm1, %v3733_v0, %v3702_v6  ;;  %v3553_v37 = vpop.f32.mrf.mxu0  ;;  %4307 = vmatpush.msra.mxu0 %v3970_v62  ;;  %v3998_v10 = vld [vmem:[#allocation11 + $0x388] sm:$0xff]  ;;  %v3932_v17 = vld [vmem:[#allocation11 + $0x178] sm:$0xff] }
 0x40e   : > { %v3651_v39 = vmax.f32 %v3635_v19, 0.0  ;;  %v3418_v13 = vadd.f32 %v3417_v42, %v3389_v24  ;;  %4330 = vmatpush.msra.mxu1 %v4002_v27  ;;  %v3582_v20 = vpop.f32.mrf.mxu1  ;;  %v3467_v6 = vadd.f32 %v6475_v52, %v6471_v7  ;;  %4263 = vmatpush.msrb.mxu2 %v3902_v22  ;;  %v3964_v24 = vld [vmem:[#allocation11 + $0x278] sm:$0xff]  ;;  %v3706_v42 = vadd.f32 %v6518_v48, %v3678_v29  ;;  %v3898_v62 = vld [vmem:[#allocation11 + $0x68] sm:$0xff] }
 0x40f   : > { %4308 = vmatpush.msra.mxu0 %v3968_v53  ;;  %4286 = vmatpush.msrb.mxu3 %v3934_v3  ;;  %v3682_v27 = vmul.f32 %v6501_v30, %v3654_v36  ;;  %v3930_v8 = vld [vmem:[#allocation11 + $0x168] sm:$0xff]  ;;  %v3896_v29 = vld [vmem:[#allocation11 + $0x58] sm:$0xff]  ;;  %v6606_v22 = vperm.slane %v3617_v9, 0 }
 0x410   : > { %v3679_v40 = vmul.f32 %v6505_v43, %v3651_v39  ;;  %v3607_v2 = vadd.f32 %v3418_v13, %v3042_v31  ;;  %4331 = vmatpush.msra.mxu1 %v4000_v15  ;;  %v6590_v31 = vperm.slane %v3616_v63, 0  ;;  %v3660_v39 = vperm.slane %v6575_v45, 1  ;;  %4264 = vmatpush.msrb.mxu2 %v3900_v23  ;;  %v3962_v14 = vld [vmem:[#allocation11 + $0x268] sm:$0xff]  ;;  %v3928_v3 = vld [vmem:[#allocation11 + $0x158] sm:$0xff] }
 0x411   : > { %4309 = vmatpush.msra.mxu0 %v3966_v54  ;;  %4287 = vmatpush.msrb.mxu3 %v3932_v17  ;;  %v3994_v15 = vld [vmem:[#allocation11 + $0x368] sm:$0xff]  ;;  %v3960_v36 = vld [vmem:[#allocation11 + $0x258] sm:$0xff]  ;;  %v3688_v63 = vperm.slane %v6575_v45, 2  ;;  %v3661_v54 = vperm.slane %v6575_v45, 5  ;;  %v3710_v9 = vadd.f32 %v6518_v48, %v3682_v27 }
 0x412   : > { %v3707_v0 = vadd.f32 %v6507_v12, %v3679_v40  ;;  %v3639_v19 = vadd.f32 %v6496_v59, %v3607_v2  ;;  %4332 = vmatpush.msra.mxu1 %v3998_v10  ;;  %v3996_v59 = vld [vmem:[#allocation11 + $0x378] sm:$0xff]  ;;  %4265 = vmatpush.msrb.mxu2 %v3898_v62  ;;  %v3689_v10 = vperm.slane %v6575_v45, 6  ;;  %v3926_v17 = vld [vmem:[#allocation11 + $0x148] sm:$0xff] }
 0x413   : > { %v3495_v28 = vpop.f32.mrf.mxu2  ;;  %4310 = vmatpush.msra.mxu0 %v3964_v24  ;;  %4288 = vmatpush.msrb.mxu3 %v3930_v8  ;;  %v3958_v18 = vld [vmem:[#allocation11 + $0x248] sm:$0xff]  ;;  %v3956_v48 = vld [vmem:[#allocation11 + $0x238] sm:$0xff] }
 0x414   : > { %v3736_v51 = vrot.slane %v3707_v0, 6  ;;  %v3655_v7 = vmax.f32 %v3639_v19, 0.0  ;;  %v3496_v52 = vadd.f32 %v3495_v28, %v3467_v6  ;;  %v3524_v58 = vpop.f32.mrf.mxu3  ;;  %4333 = vmatpush.msra.mxu1 %v3996_v59  ;;  %v3992_v0 = vld [vmem:[#allocation11 + $0x358] sm:$0xff]  ;;  %v3894_v19 = vld [vmem:[#allocation11 + $0x48] sm:$0xff]  ;;  %4266 = vmatpush.msrb.mxu2 %v3896_v29  ;;  %v6616_v28 = vperm.slane %v3660_v39, 1 }
 0x415   : > { %v3554_v13 = vadd.f32 %v3553_v37, %v3524_v58  ;;  %v3556_v6 = vpop.f32.mrf.mxu0  ;;  %4311 = vmatpush.msra.mxu0 %v3962_v14  ;;  %4289 = vmatpush.msrb.mxu3 %v3928_v3  ;;  %v3990_v45 = vld [vmem:[#allocation11 + $0x348] sm:$0xff]  ;;  %v6620_v58 = vperm.slane %v3688_v63, 2  ;;  %v3988_v27 = vld [vmem:[#allocation11 + $0x338] sm:$0xff] }
 0x416   : > { %v6594_v4 = vsel %vm769_vm4, %v3706_v42, %v3736_v51  ;;  %v6597_v50 = vsel %vm3746_vm2, %v3706_v42, %v3736_v51  ;;  %v6600_v53 = vsel %vm3743_vm0, %v3706_v42, %v3736_v51  ;;  %v6603_v30 = vsel %vm436_vm1, %v3736_v51, %v3706_v42  ;;  %4334 = vmatpush.msra.mxu1 %v3994_v15  ;;  %v3585_v51 = vpop.f32.mrf.mxu1  ;;  %v3890_v15 = vld [vmem:[#allocation11 + $0x28] sm:$0xff] }
 0x417   : > { %v3683_v37 = vmul.f32 %v6505_v43, %v3655_v7  ;;  %v3596_v40 = vadd.f32 %v3496_v52, %v3031_v26  ;;  %v3583_v2 = vadd.f32 %v3582_v20, %v3554_v13  ;;  %v3470_v26 = vadd.f32 %v6492_v41, %v6486_v55  ;;  %4312 = vmatpush.msra.mxu0 %v3960_v36  ;;  %v3892_v7 = vld [vmem:[#allocation11 + $0x38] sm:$0xff]  ;;  %v3922_v3 = vld [vmem:[#allocation11 + $0x128] sm:$0xff] }
 0x418   : > { %4335 = vmatpush.msra.mxu1 %v3992_v0  ;;  %4267 = vmatpush.msrb.mxu2 %v3894_v19  ;;  %v3924_v52 = vld [vmem:[#allocation11 + $0x138] sm:$0xff]  ;;  %v6622_v55 = vperm.slane %v3661_v54, 1  ;;  %v6624_v41 = vperm.slane %v3689_v10, 2  ;;  %v3954_v36 = vld [vmem:[#allocation11 + $0x228] sm:$0xff] }
 0x419   : > { %v3711_v43 = vadd.f32 %v6507_v12, %v3683_v37  ;;  %v3628_v20 = vadd.f32 %v6590_v31, %v3596_v40  ;;  %v3597_v23 = vadd.f32 %v3583_v2, %v6420_v25  ;;  %4290 = vmatpush.msrb.mxu3 %v3926_v17  ;;  %4313 = vmatpush.msra.mxu0 %v3958_v18  ;;  %v3986_v63 = vld [vmem:[#allocation11 + $0x328] sm:$0xff]  ;;  %v3888_v54 = vld [vmem:[#allocation11 + $0x18] sm:$0xff] }
 0x41a   : > { %4336 = vmatpush.msra.mxu1 %v3990_v45  ;;  %4268 = vmatpush.msrb.mxu2 %v3892_v7 }
 0x41b   : > { %v3739_v24 = vrot.slane %v3711_v43, 6  ;;  %v3644_v12 = vmax.f32 %v3628_v20, 0.0  ;;  %v3629_v42 = vadd.f32 %v6606_v22, %v3597_v23  ;;  %v3498_v25 = vpop.f32.mrf.mxu2  ;;  %4291 = vmatpush.msrb.mxu3 %v3924_v52  ;;  %4314 = vmatpush.msra.mxu0 %v3956_v48  ;;  %v3920_v20 = vld [vmem:[#allocation11 + $0x118] sm:$0xff] }
 0x41c   : > { %v3499_v59 = vadd.f32 %v3498_v25, %v3470_v26  ;;  %v3527_v62 = vpop.f32.mrf.mxu3  ;;  %4337 = vmatpush.msra.mxu1 %v3988_v27  ;;  %4269 = vmatpush.msrb.mxu2 %v3890_v15  ;;  %v3952_v23 = vld [vmem:[#allocation11 + $0x218] sm:$0xff]  ;;  %v3982_v25 = vld [vmem:[#allocation11 + $0x308] sm:$0xff] }
 0x41d   : > { %v6627_v39 = vsel %vm769_vm4, %v3710_v9, %v3739_v24  ;;  %v6630_v13 = vsel %vm3746_vm2, %v3710_v9, %v3739_v24  ;;  %v6633_v8 = vsel %vm3743_vm0, %v3710_v9, %v3739_v24  ;;  %v6636_v14 = vsel %vm436_vm1, %v3739_v24, %v3710_v9  ;;  %4292 = vmatpush.msrb.mxu3 %v3922_v3  ;;  %v3559_v45 = vpop.f32.mrf.mxu0  ;;  %v3918_v9 = vld [vmem:[#allocation11 + $0x108] sm:$0xff] }
 0x41e   : > { %v3672_v29 = vmul.f32 %v6616_v28, %v3644_v12  ;;  %v3645_v37 = vmax.f32 %v3629_v42, 0.0  ;;  %v3600_v40 = vadd.f32 %v3499_v59, %v6423_v44  ;;  %v3557_v2 = vadd.f32 %v3556_v6, %v3527_v62  ;;  %4315 = vmatpush.msra.mxu0 %v3954_v36  ;;  %v3984_v44 = vld [vmem:[#allocation11 + $0x318] sm:$0xff]  ;;  %v3886_v6 = vld [vmem:[#allocation11 + $0x8] sm:$0xff]  ;;  %4338 = vmatpush.msra.mxu1 %v3986_v63  ;;  %v3588_v48 = vpop.f32.mrf.mxu1 }
 0x41f   : > { %4270 = vmatpush.msrb.mxu2 %v3888_v54  ;;  %v3950_v24 = vld [vmem:[#allocation11 + $0x208] sm:$0xff]  ;;  %v3473_v12 = vadd.f32 %v6515_v60, %v6510_v61  ;;  %v3476_v42 = vadd.f32 %v6547_v34, %v6539_v33  ;;  %4293 = vmatpush.msrb.mxu3 %v3920_v20 }
 0x420   : > { %v3700_v10 = vadd.f32 %v6620_v58, %v3672_v29  ;;  %v3673_v0 = vmul.f32 %v6622_v55, %v3645_v37  ;;  %v3632_v19 = vadd.f32 %v6590_v31, %v3600_v40  ;;  %v3586_v43 = vadd.f32 %v3585_v51, %v3557_v2  ;;  %4316 = vmatpush.msra.mxu0 %v3952_v23 }
 0x421   : > { %4339 = vmatpush.msra.mxu1 %v3984_v44  ;;  %4271 = vmatpush.msrb.mxu2 %v3886_v6 }
 0x422   : > { %v3701_v17 = vadd.f32 %v6624_v41, %v3673_v0  ;;  %v3648_v18 = vmax.f32 %v3632_v19, 0.0  ;;  %v3601_v26 = vadd.f32 %v3586_v43, %v6426_v46  ;;  %v3731_v7 = vrot.slane %v3700_v10, 4  ;;  %4294 = vmatpush.msrb.mxu3 %v3918_v9  ;;  %4317 = vmatpush.msra.mxu0 %v3950_v24 }
 0x423   : > { %v3501_v51 = vpop.f32.mrf.mxu2  ;;  %4340 = vmatpush.msra.mxu1 %v3982_v25 }
 0x424   : > { %v3732_v52 = vrot.slane %v3701_v17, 2  ;;  %v3676_v46 = vmul.f32 %v6616_v28, %v3648_v18  ;;  %v3530_v59 = vpop.f32.mrf.mxu3  ;;  %v3633_v62 = vadd.f32 %v6606_v22, %v3601_v26  ;;  %v3502_v27 = vadd.f32 %v3501_v51, %v3473_v12 }
 0x425   : > { %v3560_v61 = vadd.f32 %v3559_v45, %v3530_v59 }
 0x426   : > { %v3744_v60 = vsel %vm3743_vm0, %v3731_v7, %v3732_v52  ;;  %v3748_v33 = vsel %vm436_vm1, %v3732_v52, %v3731_v7  ;;  %v3753_v34 = vsel %vm769_vm4, %v3731_v7, %v3732_v52  ;;  %v3757_v15 = vsel %vm3746_vm2, %v3731_v7, %v3732_v52 }
 0x427   : > { %v3745_v29 = vsel %vm3202_vm15, %v6528_v5, %v3744_v60  ;;  %v3750_v37 = vsel %vm3749_vm3, %v6531_v16, %v3748_v33  ;;  %v3754_v40 = vsel %vm3202_vm15, %v3753_v34, %v6534_v49  ;;  %v3758_v2 = vsel %vm3749_vm3, %v3757_v15, %v6537_v47 }
 0x428   : > { %v3751_v3 = vrot.slane %v3750_v37, 2  ;;  %v3755_v36 = vrot.slane %v3754_v40, 4  ;;  %v3759_v63 = vrot.slane %v3758_v2, 6  ;;  %v4903_v54 = vrot.slane %v3745_v29, 9 }
 0x429   : > { %v3704_v10 = vadd.f32 %v6620_v58, %v3676_v46  ;;  %v3649_v0 = vmax.f32 %v3633_v62, 0.0  ;;  %v3604_v19 = vadd.f32 %v3502_v27, %v6429_v38  ;;  %v3589_v43 = vadd.f32 %v3588_v48, %v3560_v61  ;;  %v3562_v38 = vpop.f32.mrf.mxu0 }
 0x42a   : > { %v4904_v5 = vrot.slane %v3751_v3, 9  ;;  %v4905_v20 = vrot.slane %v3755_v36, 9  ;;  %v4906_v23 = vrot.slane %v3759_v63, 9  ;;  %v6665_v16 = vmax.f32 %v3745_v29, %v4903_v54 }
 0x42b   : > { %v3677_v49 = vmul.f32 %v6622_v55, %v3649_v0  ;;  %v3636_v44 = vadd.f32 %v6590_v31, %v3604_v19  ;;  %v3605_v47 = vadd.f32 %v3589_v43, %v6432_v57  ;;  %v3504_v6 = vpop.f32.mrf.mxu2  ;;  %v3734_v7 = vrot.slane %v3704_v10, 4 }
 0x42c   : > { %v6670_v17 = vmax.f32 %v3751_v3, %v4904_v5  ;;  %v6672_v18 = vmax.f32 %v3755_v36, %v4905_v20  ;;  %v6674_v26 = vmax.f32 %v3759_v63, %v4906_v23  ;;  %v3505_v45 = vadd.f32 %v3504_v6, %v3476_v42  ;;  %v3533_v9 = vpop.f32.mrf.mxu3  ;;  %v3591_v42 = vpop.f32.mrf.mxu1 }
 0x42d   : > { %v3705_v24 = vadd.f32 %v6624_v41, %v3677_v49  ;;  %v3652_v12 = vmax.f32 %v3636_v44, 0.0  ;;  %v3637_v51 = vadd.f32 %v6606_v22, %v3605_v47  ;;  %v3563_v25 = vadd.f32 %v3562_v38, %v3533_v9 }
 0x42e   : > { %v3608_v57 = vadd.f32 %v3505_v45, %v6437_v32  ;;  %v4029_v52 = vperm.slane %v6665_v16, 0  ;;  %v4033_v46 = vperm.slane %v6670_v17, 0  ;;  %v4037_v27 = vperm.slane %v6672_v18, 0 }
 0x42f   : > { %v3735_v59 = vrot.slane %v3705_v24, 2  ;;  %v3680_v62 = vmul.f32 %v6616_v28, %v3652_v12  ;;  %v3653_v48 = vmax.f32 %v3637_v51, 0.0  ;;  %v3592_v60 = vadd.f32 %v3591_v42, %v3563_v25 }
 0x430   : > { %v3640_v61 = vadd.f32 %v6590_v31, %v3608_v57  ;;  %v4041_v33 = vperm.slane %v6674_v26, 0  ;;  %v4094_v34 = vsel %vm4093_vm5, %v4033_v46, %v4029_v52 }
 0x431   : > { %v3761_v32 = vsel %vm3743_vm0, %v3734_v7, %v3735_v59  ;;  %v3764_v15 = vsel %vm436_vm1, %v3735_v59, %v3734_v7  ;;  %v3768_v29 = vsel %vm769_vm4, %v3734_v7, %v3735_v59  ;;  %v3772_v37 = vsel %vm3746_vm2, %v3734_v7, %v3735_v59 }
 0x432   : > { %v3762_v40 = vsel %vm3202_vm15, %v6563_v1, %v3761_v32  ;;  %v3765_v2 = vsel %vm3749_vm3, %v6566_v35, %v3764_v15  ;;  %v3769_v31 = vsel %vm3202_vm15, %v3768_v29, %v6569_v56  ;;  %v3708_v3 = vadd.f32 %v6620_v58, %v3680_v62 }
 0x433   : > { %v3766_v36 = vrot.slane %v3765_v2, 2  ;;  %v3770_v63 = vrot.slane %v3769_v31, 4  ;;  %v4907_v54 = vrot.slane %v3762_v40, 9  ;;  %v3681_v10 = vmul.f32 %v6622_v55, %v3653_v48 }
 0x434   : > { %v3737_v0 = vrot.slane %v3708_v3, 4  ;;  %v3656_v19 = vmax.f32 %v3640_v61, 0.0  ;;  %v3609_v43 = vadd.f32 %v3592_v60, %v6442_v11  ;;  %v3773_v1 = vsel %vm3749_vm3, %v3772_v37, %v6572_v21 }
 0x435   : > { %v4908_v35 = vrot.slane %v3766_v36, 9  ;;  %v6701_v5 = vmax.f32 %v3762_v40, %v4907_v54  ;;  %v3709_v56 = vadd.f32 %v6624_v41, %v3681_v10  ;;  %v3774_v20 = vrot.slane %v3773_v1, 6 }
 0x436   : > { %v3684_v23 = vmul.f32 %v6616_v28, %v3656_v19  ;;  %v3641_v49 = vadd.f32 %v6606_v22, %v3609_v43  ;;  %v4909_v44 = vrot.slane %v3770_v63, 9  ;;  %v4096_v47 = vsel %vm4095_vm6, %v4037_v27, %v4094_v34 }
 0x437   : > { %v3738_v11 = vrot.slane %v3709_v56, 2  ;;  %v4910_v6 = vrot.slane %v3774_v20, 9  ;;  %v6707_v38 = vmax.f32 %v3766_v36, %v4908_v35  ;;  %v4045_v21 = vperm.slane %v6701_v5, 0  ;;  %v4377_v56 = vld [vmem:[#allocation11 + $0x4e0] sm:$0xff] }
 0x438   : > { %v3712_v45 = vadd.f32 %v6620_v58, %v3684_v23  ;;  %v3657_v9 = vmax.f32 %v3641_v49, 0.0  ;;  %v6711_v24 = vmax.f32 %v3770_v63, %v4909_v44  ;;  %v4098_v12 = vsel %vm4097_vm7, %v4041_v33, %v4096_v47 }
 0x439   : > { %v3776_v28 = vsel %vm3743_vm0, %v3737_v0, %v3738_v11  ;;  %v3779_v22 = vsel %vm436_vm1, %v3738_v11, %v3737_v0  ;;  %v3783_v51 = vsel %vm769_vm4, %v3737_v0, %v3738_v11  ;;  %v3787_v25 = vsel %vm3746_vm2, %v3737_v0, %v3738_v11 }
 0x43a   : > { %v3777_v7 = vsel %vm3202_vm15, %v6594_v4, %v3776_v28  ;;  %v3780_v57 = vsel %vm3749_vm3, %v6597_v50, %v3779_v22  ;;  %v3784_v58 = vsel %vm3202_vm15, %v3783_v51, %v6600_v53  ;;  %v3788_v52 = vsel %vm3749_vm3, %v3787_v25, %v6603_v30 }
 0x43b   : > { %v3781_v46 = vrot.slane %v3780_v57, 2  ;;  %v3785_v59 = vrot.slane %v3784_v58, 4  ;;  %v3789_v62 = vrot.slane %v3788_v52, 6  ;;  %v4911_v48 = vrot.slane %v3777_v7, 9 }
 0x43c   : > { %v3685_v42 = vmul.f32 %v6622_v55, %v3657_v9  ;;  %v6727_v27 = vmax.f32 %v3774_v20, %v4910_v6  ;;  %v4049_v61 = vperm.slane %v6707_v38, 0  ;;  %v4030_v4 = vperm.slane %v6665_v16, 2 }
 0x43d   : > { %v4912_v60 = vrot.slane %v3781_v46, 9  ;;  %v4913_v50 = vrot.slane %v3785_v59, 9  ;;  %v4914_v33 = vrot.slane %v3789_v62, 9  ;;  %v3740_v34 = vrot.slane %v3712_v45, 4  ;;  %v4375_v45 = vld [vmem:[#allocation11 + $0x4d0] sm:$0xff] }
 0x43e   : > { %v6731_v53 = vmax.f32 %v3777_v7, %v4911_v48  ;;  %v3713_v30 = vadd.f32 %v6624_v41, %v3685_v42  ;;  %v4053_v32 = vperm.slane %v6711_v24, 0  ;;  %v4100_v15 = vsel %vm4099_vm8, %v4045_v21, %v4098_v12  ;;  %v4379_v41 = vld [vmem:[#allocation11 + $0x4f0] sm:$0xff]  ;;  %v4373_v7 = vld [vmem:[#allocation11 + $0x4c0] sm:$0xff] }
 0x43f   : > { %v6736_v29 = vmax.f32 %v3781_v46, %v4912_v60  ;;  %v6738_v55 = vmax.f32 %v3785_v59, %v4913_v50  ;;  %v4057_v37 = vperm.slane %v6727_v27, 0  ;;  %v4102_v40 = vsel %vm4101_vm9, %v4049_v61, %v4100_v15  ;;  %v4371_v61 = vld [vmem:[#allocation11 + $0x4b0] sm:$0xff]  ;;  %v4369_v15 = vld [vmem:[#allocation11 + $0x4a0] sm:$0xff] }
 0x440   : > { %v6742_v2 = vmax.f32 %v3789_v62, %v4914_v33  ;;  %v3741_v31 = vrot.slane %v3713_v30, 2  ;;  %v4104_v3 = vsel %vm4103_vm10, %v4053_v32, %v4102_v40  ;;  %v4034_v36 = vperm.slane %v6670_v17, 2  ;;  %v4409_v40 = vld [vmem:[#allocation11 + $0x5e0] sm:$0xff] }
 0x441   : > { %v6747_v63 = vsel %vm4105_vm11, %v4057_v37, %v4104_v3  ;;  %v4038_v54 = vperm.slane %v6672_v18, 2  ;;  %v4042_v10 = vperm.slane %v6674_v26, 2  ;;  %v4046_v0 = vperm.slane %v6701_v5, 2 }
 0x442   : > { %v3791_v19 = vsel %vm3743_vm0, %v3740_v34, %v3741_v31  ;;  %v3794_v43 = vsel %vm436_vm1, %v3741_v31, %v3740_v34  ;;  %v3798_v1 = vsel %vm769_vm4, %v3740_v34, %v3741_v31  ;;  %v3802_v35 = vsel %vm3746_vm2, %v3740_v34, %v3741_v31  ;;  %4180 = vmatmul.f32.vlgmr.msra.gmra.mxu2 %v6747_v63  ;;  %v4411_v34 = vld [vmem:[#allocation11 + $0x5f0] sm:$0xff] }
 0x443   : > { %v6759_v20 = vsel %vm3202_vm15, %v6627_v39, %v3791_v19  ;;  %v6763_v23 = vsel %vm3749_vm3, %v6630_v13, %v3794_v43  ;;  %v4050_v49 = vperm.slane %v6707_v38, 2  ;;  %v4054_v44 = vperm.slane %v6711_v24, 2  ;;  %4477 = vmatpush.msra.mxu2 %v4379_v41 }
 0x444   : > { %v3796_v47 = vrot.slane %v6763_v23, 2  ;;  %v4915_v11 = vrot.slane %v6759_v20, 9  ;;  %v4058_v6 = vperm.slane %v6727_v27, 2  ;;  %v4107_v21 = vsel %vm4093_vm5, %v4034_v36, %v4030_v4  ;;  %v4367_v36 = vld [vmem:[#allocation11 + $0x490] sm:$0xff] }
 0x445   : > { %v4108_v39 = vsel %vm4095_vm6, %v4038_v54, %v4107_v21  ;;  %v4031_v9 = vperm.slane %v6665_v16, 4  ;;  %v4035_v13 = vperm.slane %v6670_v17, 4  ;;  %v4039_v12 = vperm.slane %v6672_v18, 4  ;;  %4478 = vmatpush.msra.mxu2 %v4377_v56  ;;  %v4441_v56 = vld [vmem:[#allocation11 + $0x6e0] sm:$0xff]  ;;  %v4403_v23 = vld [vmem:[#allocation11 + $0x5b0] sm:$0xff] }
 0x446   : > { %v4109_v28 = vsel %vm4097_vm7, %v4042_v10, %v4108_v39  ;;  %v4043_v22 = vperm.slane %v6674_v26, 4  ;;  %v4047_v51 = vperm.slane %v6701_v5, 4  ;;  %v4051_v25 = vperm.slane %v6707_v38, 4 }
 0x447   : > { %v4110_v57 = vsel %vm4099_vm8, %v4046_v0, %v4109_v28  ;;  %v4055_v58 = vperm.slane %v6711_v24, 4  ;;  %v4059_v52 = vperm.slane %v6727_v27, 4  ;;  %v4114_v46 = vsel %vm4093_vm5, %v4035_v13, %v4031_v9  ;;  %4479 = vmatpush.msra.mxu2 %v4375_v45  ;;  %v4407_v0 = vld [vmem:[#allocation11 + $0x5d0] sm:$0xff] }
 0x448   : > { %v4111_v59 = vsel %vm4101_vm9, %v4050_v49, %v4110_v57  ;;  %v4115_v62 = vsel %vm4095_vm6, %v4039_v12, %v4114_v46  ;;  %v4036_v48 = vperm.slane %v6670_v17, 6  ;;  %v4040_v42 = vperm.slane %v6672_v18, 6  ;;  %v4475_v9 = vld [vmem:[#allocation11 + $0x7f0] sm:$0xff] }
 0x449   : > { %v4112_v4 = vsel %vm4103_vm10, %v4054_v44, %v4111_v59  ;;  %v4116_v60 = vsel %vm4097_vm7, %v4043_v22, %v4115_v62  ;;  %v4032_v50 = vperm.slane %v6665_v16, 6  ;;  %v4044_v33 = vperm.slane %v6674_v26, 6  ;;  %4480 = vmatpush.msra.mxu2 %v4373_v7  ;;  %v4439_v13 = vld [vmem:[#allocation11 + $0x6d0] sm:$0xff]  ;;  %v4437_v7 = vld [vmem:[#allocation11 + $0x6c0] sm:$0xff] }
 0x44a   : > { %v6792_v30 = vsel %vm4105_vm11, %v4058_v6, %v4112_v4  ;;  %v4117_v32 = vsel %vm4099_vm8, %v4047_v51, %v4116_v60  ;;  %v4048_v17 = vperm.slane %v6701_v5, 6  ;;  %v4052_v18 = vperm.slane %v6707_v38, 6  ;;  %v4443_v38 = vld [vmem:[#allocation11 + $0x6f0] sm:$0xff]  ;;  %v4405_v6 = vld [vmem:[#allocation11 + $0x5c0] sm:$0xff] }
 0x44b   : > { %4203 = vmatmul.f32.vlgmr.msra.gmra.mxu3 %v6792_v30  ;;  %v4118_v37 = vsel %vm4101_vm9, %v4051_v25, %v4117_v32  ;;  %v4056_v16 = vperm.slane %v6711_v24, 6  ;;  %v4121_v26 = vsel %vm4093_vm5, %v4036_v48, %v4032_v50  ;;  %4481 = vmatpush.msra.mxu2 %v4371_v61  ;;  %v3799_v31 = vsel %vm3202_vm15, %v3798_v1, %v6633_v8  ;;  %v4363_v51 = vld [vmem:[#allocation11 + $0x470] sm:$0xff]  ;;  %v4473_v25 = vld [vmem:[#allocation11 + $0x7e0] sm:$0xff] }
 0x44c   : > { %v4119_v3 = vsel %vm4103_vm10, %v4055_v58, %v4118_v37  ;;  %v4122_v5 = vsel %vm4095_vm6, %v4040_v42, %v4121_v26  ;;  %4500 = vmatpush.msra.mxu3 %v4411_v34  ;;  %v3800_v41 = vrot.slane %v3799_v31, 4  ;;  %v3803_v54 = vsel %vm3749_vm3, %v3802_v35, %v6636_v14  ;;  %v4365_v14 = vld [vmem:[#allocation11 + $0x480] sm:$0xff]  ;;  %v4471_v60 = vld [vmem:[#allocation11 + $0x7d0] sm:$0xff] }
 0x44d   : > { %v6808_v24 = vsel %vm4105_vm11, %v4059_v52, %v4119_v3  ;;  %v4123_v10 = vsel %vm4097_vm7, %v4044_v33, %v4122_v5  ;;  %4482 = vmatpush.msra.mxu2 %v4369_v15  ;;  %v3804_v19 = vrot.slane %v3803_v54, 6  ;;  %v4916_v8 = vrot.slane %v3796_v47, 9  ;;  %v4401_v59 = vld [vmem:[#allocation11 + $0x5a0] sm:$0xff]  ;;  %v4435_v50 = vld [vmem:[#allocation11 + $0x6b0] sm:$0xff] }
 0x44e   : > { %4226 = vmatmul.f32.vlgmr.msrb.gmra.mxu0 %v6808_v24  ;;  %v4060_v43 = vperm.slane %v6727_v27, 6  ;;  %v4124_v1 = vsel %vm4099_vm8, %v4048_v17, %v4123_v10  ;;  %4501 = vmatpush.msra.mxu3 %v4409_v40  ;;  %v4917_v35 = vrot.slane %v3800_v41, 9  ;;  %v6817_v49 = vmax.f32 %v6759_v20, %v4915_v11  ;;  %v4361_v4 = vld [vmem:[#allocation11 + $0x460] sm:$0xff]  ;;  %v4359_v40 = vld [vmem:[#allocation11 + $0x450] sm:$0xff] }
 0x44f   : > { %v4125_v44 = vsel %vm4101_vm9, %v4052_v18, %v4124_v1  ;;  %4523 = vmatpush.msrb.mxu0 %v4443_v38  ;;  %4483 = vmatpush.msra.mxu2 %v4367_v36  ;;  %v4918_v21 = vrot.slane %v3804_v19, 9  ;;  %v6822_v45 = vmax.f32 %v3796_v47, %v4916_v8  ;;  %v4065_v27 = vperm.slane %v6736_v29, 0  ;;  %v4399_v18 = vld [vmem:[#allocation11 + $0x590] sm:$0xff]  ;;  %v4469_v31 = vld [vmem:[#allocation11 + $0x7c0] sm:$0xff] }
 0x450   : > { %v4126_v39 = vsel %vm4103_vm10, %v4056_v16, %v4125_v44  ;;  %4502 = vmatpush.msra.mxu3 %v4407_v0  ;;  %v6826_v12 = vmax.f32 %v3800_v41, %v4917_v35  ;;  %v4061_v20 = vperm.slane %v6731_v53, 0  ;;  %v4069_v11 = vperm.slane %v6738_v55, 0  ;;  %v4433_v3 = vld [vmem:[#allocation11 + $0x6a0] sm:$0xff]  ;;  %v4431_v1 = vld [vmem:[#allocation11 + $0x690] sm:$0xff] }
 0x451   : > { %v6831_v28 = vsel %vm4105_vm11, %v4060_v43, %v4126_v39  ;;  %4524 = vmatpush.msrb.mxu0 %v4441_v56  ;;  %4484 = vmatpush.msra.mxu2 %v4365_v14  ;;  %v6833_v47 = vmax.f32 %v3804_v19, %v4918_v21  ;;  %v4077_v22 = vperm.slane %v6817_v49, 0  ;;  %v4073_v57 = vperm.slane %v6742_v2, 0  ;;  %v4397_v54 = vld [vmem:[#allocation11 + $0x580] sm:$0xff]  ;;  %v4467_v43 = vld [vmem:[#allocation11 + $0x7b0] sm:$0xff] }
 0x452   : > { %4249 = vmatmul.f32.vlgmr.msrb.gmra.mxu1 %v6831_v28  ;;  %4503 = vmatpush.msra.mxu3 %v4405_v6  ;;  %v4081_v58 = vperm.slane %v6822_v45, 0  ;;  %v4128_v52 = vsel %vm4093_vm5, %v4065_v27, %v4061_v20  ;;  %v4066_v46 = vperm.slane %v6736_v29, 2  ;;  %v4085_v62 = vperm.slane %v6826_v12, 0  ;;  %v4429_v20 = vld [vmem:[#allocation11 + $0x680] sm:$0xff] }
 0x453   : > { %4546 = vmatpush.msrb.mxu1 %v4475_v9  ;;  %4525 = vmatpush.msrb.mxu0 %v4439_v13  ;;  %v4129_v48 = vsel %vm4095_vm6, %v4069_v11, %v4128_v52  ;;  %v4062_v42 = vperm.slane %v6731_v53, 2  ;;  %v4070_v61 = vperm.slane %v6738_v55, 2  ;;  %v4089_v33 = vperm.slane %v6833_v47, 0  ;;  %v4357_v9 = vld [vmem:[#allocation11 + $0x440] sm:$0xff]  ;;  %v4355_v52 = vld [vmem:[#allocation11 + $0x430] sm:$0xff] }
 0x454   : > { %4504 = vmatpush.msra.mxu3 %v4403_v23  ;;  %v4130_v34 = vsel %vm4097_vm7, %v4073_v57, %v4129_v48  ;;  %v4074_v32 = vperm.slane %v6742_v2, 2  ;;  %v4078_v17 = vperm.slane %v6817_v49, 2  ;;  %4485 = vmatpush.msra.mxu2 %v4363_v51  ;;  %v4082_v37 = vperm.slane %v6822_v45, 2  ;;  %v4465_v13 = vld [vmem:[#allocation11 + $0x7a0] sm:$0xff] }
 0x455   : > { %4547 = vmatpush.msrb.mxu1 %v4473_v25  ;;  %4526 = vmatpush.msrb.mxu0 %v4437_v7  ;;  %v4131_v15 = vsel %vm4099_vm8, %v4077_v22, %v4130_v34  ;;  %v4086_v16 = vperm.slane %v6826_v12, 2  ;;  %v4135_v26 = vsel %vm4093_vm5, %v4066_v46, %v4062_v42  ;;  %v4067_v36 = vperm.slane %v6736_v29, 4  ;;  %v4463_v46 = vld [vmem:[#allocation11 + $0x790] sm:$0xff]  ;;  %v4425_v34 = vld [vmem:[#allocation11 + $0x660] sm:$0xff] }
 0x456   : > { %4505 = vmatpush.msra.mxu3 %v4401_v59  ;;  %v4132_v5 = vsel %vm4101_vm9, %v4081_v58, %v4131_v15  ;;  %v4136_v38 = vsel %vm4095_vm6, %v4070_v61, %v4135_v26  ;;  %v4071_v41 = vperm.slane %v6738_v55, 4  ;;  %4486 = vmatpush.msra.mxu2 %v4361_v4  ;;  %v4090_v0 = vperm.slane %v6833_v47, 2  ;;  %v4395_v58 = vld [vmem:[#allocation11 + $0x570] sm:$0xff]  ;;  %v4393_v4 = vld [vmem:[#allocation11 + $0x560] sm:$0xff] }
 0x457   : > { %4548 = vmatpush.msrb.mxu1 %v4471_v60  ;;  %4527 = vmatpush.msrb.mxu0 %v4435_v50  ;;  %v4133_v10 = vsel %vm4103_vm10, %v4085_v62, %v4132_v5  ;;  %v4137_v19 = vsel %vm4097_vm7, %v4074_v32, %v4136_v38  ;;  %v4063_v8 = vperm.slane %v6731_v53, 4  ;;  %v4075_v35 = vperm.slane %v6742_v2, 4  ;;  %v4427_v62 = vld [vmem:[#allocation11 + $0x670] sm:$0xff]  ;;  %v4461_v60 = vld [vmem:[#allocation11 + $0x780] sm:$0xff] }
 0x458   : > { %4506 = vmatpush.msra.mxu3 %v4399_v18  ;;  %v6862_v56 = vsel %vm4105_vm11, %v4089_v33, %v4133_v10  ;;  %v4138_v14 = vsel %vm4099_vm8, %v4078_v17, %v4137_v19  ;;  %v4079_v44 = vperm.slane %v6817_v49, 4  ;;  %4487 = vmatpush.msra.mxu2 %v4359_v40  ;;  %v4083_v21 = vperm.slane %v6822_v45, 4  ;;  %v4459_v18 = vld [vmem:[#allocation11 + $0x770] sm:$0xff]  ;;  %v4457_v40 = vld [vmem:[#allocation11 + $0x760] sm:$0xff] }
 0x459   : > { %4549 = vmatpush.msrb.mxu1 %v4469_v31  ;;  %4528 = vmatpush.msrb.mxu0 %v4433_v3  ;;  %v4139_v6 = vsel %vm4101_vm9, %v4082_v37, %v4138_v14  ;;  %v4087_v27 = vperm.slane %v6826_v12, 4  ;;  %v4142_v39 = vsel %vm4093_vm5, %v4067_v36, %v4063_v8  ;;  %v4068_v22 = vperm.slane %v6736_v29, 6  ;;  %v4421_v31 = vld [vmem:[#allocation11 + $0x640] sm:$0xff]  ;;  %v4387_v38 = vld [vmem:[#allocation11 + $0x530] sm:$0xff] }
 0x45a   : > { %4507 = vmatpush.msra.mxu3 %v4397_v54  ;;  %4183 = vmatmul.f32.gmra.mxu2 %v6862_v56  ;;  %v4140_v11 = vsel %vm4103_vm10, %v4086_v16, %v4139_v6  ;;  %v4143_v23 = vsel %vm4095_vm6, %v4071_v41, %v4142_v39  ;;  %v4072_v51 = vperm.slane %v6738_v55, 6  ;;  %v4064_v57 = vperm.slane %v6731_v53, 6  ;;  %v4389_v16 = vld [vmem:[#allocation11 + $0x540] sm:$0xff]  ;;  %v4351_v36 = vld [vmem:[#allocation11 + $0x410] sm:$0xff]  ;;  %v6909_v39 = vld [vmem:[#allocation11 + $0x6f8] sm:$0xff] }
 0x45b   : > { %4550 = vmatpush.msrb.mxu1 %v4467_v43  ;;  %4529 = vmatpush.msrb.mxu0 %v4431_v1  ;;  %v6877_v25 = vsel %vm4105_vm11, %v4090_v0, %v4140_v11  ;;  %v4144_v7 = vsel %vm4097_vm7, %v4075_v35, %v4143_v23  ;;  %v4091_v59 = vperm.slane %v6833_v47, 4  ;;  %v4080_v55 = vperm.slane %v6817_v49, 6  ;;  %v4353_v5 = vld [vmem:[#allocation11 + $0x420] sm:$0xff]  ;;  %v4419_v54 = vld [vmem:[#allocation11 + $0x630] sm:$0xff]  ;;  %v4410_v11 = vld [vmem:[#allocation11 + $0x5e8] sm:$0xff] }
 0x45c   : > { %4206 = vmatmul.f32.gmra.mxu3 %v6877_v25  ;;  %v4145_v29 = vsel %vm4099_vm8, %v4079_v44, %v4144_v7  ;;  %4488 = vmatpush.msra.mxu2 %v4357_v9  ;;  %v4076_v42 = vperm.slane %v6742_v2, 6  ;;  %v4084_v53 = vperm.slane %v6822_v45, 6  ;;  %v4149_v61 = vsel %vm4093_vm5, %v4068_v22, %v4064_v57  ;;  %v4391_v45 = vld [vmem:[#allocation11 + $0x550] sm:$0xff]  ;;  %v4453_v41 = vld [vmem:[#allocation11 + $0x740] sm:$0xff]  ;;  %v4380_v44 = vld [vmem:[#allocation11 + $0x4f8] sm:$0xff] }
 0x45d   : > { %4551 = vmatpush.msrb.mxu1 %v4465_v13  ;;  %4530 = vmatpush.msrb.mxu0 %v4429_v20  ;;  %v4146_v48 = vsel %vm4101_vm9, %v4083_v21, %v4145_v29  ;;  %v4088_v33 = vperm.slane %v6826_v12, 6  ;;  %v4150_v49 = vsel %vm4095_vm6, %v4072_v51, %v4149_v61  ;;  %v4423_v12 = vld [vmem:[#allocation11 + $0x650] sm:$0xff]  ;;  %v4092_v15 = vperm.slane %v6833_v47, 6  ;;  %v4385_v10 = vld [vmem:[#allocation11 + $0x520] sm:$0xff]  ;;  %v6911_v13 = vld [vmem:[#allocation11 + $0x7f8] sm:$0xff] }
 0x45e   : > { %v4147_v50 = vsel %vm4103_vm10, %v4087_v27, %v4146_v48  ;;  %4508 = vmatpush.msra.mxu3 %v4395_v58  ;;  %4489 = vmatpush.msra.mxu2 %v4355_v52  ;;  %v4151_v2 = vsel %vm4097_vm7, %v4076_v42, %v4150_v49  ;;  %v4455_v47 = vld [vmem:[#allocation11 + $0x750] sm:$0xff]  ;;  %v4349_v0 = vld [vmem:[#allocation11 + $0x400] sm:$0xff]  ;;  %v4412_v27 = vld [vmem:[#allocation11 + $0x5f8] sm:$0xff] }
 0x45f   : > { %4552 = vmatpush.msrb.mxu1 %v4463_v46  ;;  %v6893_v32 = vsel %vm4105_vm11, %v4091_v59, %v4147_v50  ;;  %4531 = vmatpush.msrb.mxu0 %v4427_v62  ;;  %v4152_v17 = vsel %vm4099_vm8, %v4080_v55, %v4151_v2  ;;  %v4451_v19 = vld [vmem:[#allocation11 + $0x730] sm:$0xff]  ;;  %v4417_v8 = vld [vmem:[#allocation11 + $0x620] sm:$0xff]  ;;  %v4378_v20 = vld [vmem:[#allocation11 + $0x4e8] sm:$0xff] }
 0x460   : > { %4229 = vmatmul.f32.gmra.mxu0 %v6893_v32  ;;  %4509 = vmatpush.msra.mxu3 %v4393_v4  ;;  %v4153_v37 = vsel %vm4101_vm9, %v4084_v53, %v4152_v17  ;;  %v4383_v43 = vld [vmem:[#allocation11 + $0x510] sm:$0xff]  ;;  %v4449_v1 = vld [vmem:[#allocation11 + $0x720] sm:$0xff]  ;;  %v6917_v23 = vld [vmem:[#allocation11 + $0x6e8] sm:$0xff] }
 0x461   : > { %4553 = vmatpush.msrb.mxu1 %v4461_v60  ;;  %4532 = vmatpush.msrb.mxu0 %v4425_v34  ;;  %v4154_v26 = vsel %vm4103_vm10, %v4088_v33, %v4153_v37  ;;  %v4415_v14 = vld [vmem:[#allocation11 + $0x610] sm:$0xff]  ;;  %v4381_v35 = vld [vmem:[#allocation11 + $0x500] sm:$0xff]  ;;  %v6919_v22 = vld [vmem:[#allocation11 + $0x7e8] sm:$0xff] }
 0x462   : > { %4510 = vmatpush.msra.mxu3 %v4391_v45  ;;  %4272 = vmatmul.f32.vlgmr.msrb.gmra.mxu2 %v6747_v63  ;;  %v6903_v3 = vsel %vm4105_vm11, %v4092_v15, %v4154_v26  ;;  %v4447_v6 = vld [vmem:[#allocation11 + $0x710] sm:$0xff]  ;;  %v4413_v21 = vld [vmem:[#allocation11 + $0x600] sm:$0xff]  ;;  %v4376_v51 = vld [vmem:[#allocation11 + $0x4d8] sm:$0xff] }
 0x463   : > { %4554 = vmatpush.msrb.mxu1 %v4459_v18  ;;  %4533 = vmatpush.msrb.mxu0 %v4423_v12  ;;  %v4445_v9 = vld [vmem:[#allocation11 + $0x700] sm:$0xff]  ;;  %v4408_v7 = vld [vmem:[#allocation11 + $0x5d8] sm:$0xff]  ;;  %v4374_v52 = vld [vmem:[#allocation11 + $0x4c8] sm:$0xff] }
 0x464   : > { %4252 = vmatmul.f32.gmra.mxu1 %v6903_v3  ;;  %4511 = vmatpush.msra.mxu3 %v4389_v16  ;;  %v6923_v57 = vld [vmem:[#allocation11 + $0x6d8] sm:$0xff]  ;;  %v4406_v46 = vld [vmem:[#allocation11 + $0x5c8] sm:$0xff] }
 0x465   : > { %4555 = vmatpush.msrb.mxu1 %v4457_v40  ;;  %4534 = vmatpush.msrb.mxu0 %v4421_v31  ;;  %v6925_v58 = vld [vmem:[#allocation11 + $0x7d8] sm:$0xff]  ;;  %v6929_v59 = vld [vmem:[#allocation11 + $0x6c8] sm:$0xff] }
 0x466   : > { %4295 = vmatmul.f32.vlgmr.msrb.gmra.mxu3 %v6792_v30  ;;  %4490 = vmatpush.msra.mxu2 %v4353_v5  ;;  %v6931_v29 = vld [vmem:[#allocation11 + $0x7c8] sm:$0xff]  ;;  %v4372_v55 = vld [vmem:[#allocation11 + $0x4b8] sm:$0xff] }
 0x467   : > { %4556 = vmatpush.msrb.mxu1 %v4455_v47  ;;  %4512 = vmatpush.msra.mxu3 %v4387_v38  ;;  %v4404_v62 = vld [vmem:[#allocation11 + $0x5b8] sm:$0xff]  ;;  %v4370_v53 = vld [vmem:[#allocation11 + $0x4a8] sm:$0xff] }
 0x468   : > { %4318 = vmatmul.f32.vlgmr.msra.gmra.mxu0 %v6808_v24  ;;  %4491 = vmatpush.msra.mxu2 %v4351_v36  ;;  %v6935_v48 = vld [vmem:[#allocation11 + $0x6b8] sm:$0xff]  ;;  %v4402_v61 = vld [vmem:[#allocation11 + $0x5a8] sm:$0xff] }
 0x469   : > { %4557 = vmatpush.msrb.mxu1 %v4453_v41  ;;  %4535 = vmatpush.msrb.mxu0 %v4419_v54  ;;  %v6937_v42 = vld [vmem:[#allocation11 + $0x7b8] sm:$0xff]  ;;  %v6945_v4 = vld [vmem:[#allocation11 + $0x6a8] sm:$0xff] }
 0x46a   : > { %4513 = vmatpush.msra.mxu3 %v4385_v10  ;;  %4492 = vmatpush.msra.mxu2 %v4349_v0  ;;  %v6947_v60 = vld [vmem:[#allocation11 + $0x7a8] sm:$0xff]  ;;  %v4368_v50 = vld [vmem:[#allocation11 + $0x498] sm:$0xff] }
 0x46b   : > { %4558 = vmatpush.msrb.mxu1 %v4451_v19  ;;  %4536 = vmatpush.msrb.mxu0 %v4417_v8  ;;  %v4400_v33 = vld [vmem:[#allocation11 + $0x598] sm:$0xff]  ;;  %v4366_v2 = vld [vmem:[#allocation11 + $0x488] sm:$0xff] }
 0x46c   : > { %4341 = vmatmul.f32.vlgmr.msra.gmra.mxu1 %v6831_v28  ;;  %4514 = vmatpush.msra.mxu3 %v4383_v43  ;;  %v6951_v49 = vld [vmem:[#allocation11 + $0x698] sm:$0xff]  ;;  %v4398_v45 = vld [vmem:[#allocation11 + $0x588] sm:$0xff] }
 0x46d   : > { %4559 = vmatpush.msrb.mxu1 %v4449_v1  ;;  %4537 = vmatpush.msrb.mxu0 %v4415_v14  ;;  %v6953_v34 = vld [vmem:[#allocation11 + $0x798] sm:$0xff]  ;;  %v6957_v17 = vld [vmem:[#allocation11 + $0x688] sm:$0xff] }
 0x46e   : > { %4515 = vmatpush.msra.mxu3 %v4381_v35  ;;  %4569 = vmatpush.msrb.mxu2 %v4380_v44  ;;  %v6959_v18 = vld [vmem:[#allocation11 + $0x788] sm:$0xff]  ;;  %v4364_v12 = vld [vmem:[#allocation11 + $0x478] sm:$0xff] }
 0x46f   : > { %4560 = vmatpush.msrb.mxu1 %v4447_v6  ;;  %4538 = vmatpush.msrb.mxu0 %v4413_v21  ;;  %v4396_v15 = vld [vmem:[#allocation11 + $0x578] sm:$0xff]  ;;  %v4362_v26 = vld [vmem:[#allocation11 + $0x468] sm:$0xff] }
 0x470   : > { %4592 = vmatpush.msrb.mxu3 %v4412_v27  ;;  %4275 = vmatmul.f32.gmra.mxu2 %v6862_v56  ;;  %v6963_v37 = vld [vmem:[#allocation11 + $0x678] sm:$0xff]  ;;  %v4394_v40 = vld [vmem:[#allocation11 + $0x568] sm:$0xff] }
 0x471   : > { %4615 = vmatpush.msra.mxu0 %v6909_v39  ;;  %4561 = vmatpush.msrb.mxu1 %v4445_v9  ;;  %v6965_v16 = vld [vmem:[#allocation11 + $0x778] sm:$0xff]  ;;  %v6973_v31 = vld [vmem:[#allocation11 + $0x668] sm:$0xff] }
 0x472   : > { %4298 = vmatmul.f32.gmra.mxu3 %v6877_v25  ;;  %4321 = vmatmul.f32.gmra.mxu0 %v6893_v32  ;;  %v6975_v5 = vld [vmem:[#allocation11 + $0x768] sm:$0xff]  ;;  %v4360_v47 = vld [vmem:[#allocation11 + $0x458] sm:$0xff] }
 0x473   : > { %4638 = vmatpush.msra.mxu1 %v6911_v13  ;;  %4570 = vmatpush.msrb.mxu2 %v4378_v20  ;;  %v4392_v38 = vld [vmem:[#allocation11 + $0x558] sm:$0xff]  ;;  %v4358_v54 = vld [vmem:[#allocation11 + $0x448] sm:$0xff] }
 0x474   : > { %4344 = vmatmul.f32.gmra.mxu1 %v6903_v3  ;;  %4593 = vmatpush.msrb.mxu3 %v4410_v11  ;;  %v6979_v36 = vld [vmem:[#allocation11 + $0x658] sm:$0xff]  ;;  %v4390_v10 = vld [vmem:[#allocation11 + $0x548] sm:$0xff] }
 0x475   : > { %4616 = vmatpush.msra.mxu0 %v6917_v23  ;;  %4639 = vmatpush.msra.mxu1 %v6919_v22  ;;  %v6981_v41 = vld [vmem:[#allocation11 + $0x758] sm:$0xff]  ;;  %v6985_v0 = vld [vmem:[#allocation11 + $0x648] sm:$0xff] }
 0x476   : > { %4571 = vmatpush.msrb.mxu2 %v4376_v51  ;;  %4594 = vmatpush.msrb.mxu3 %v4408_v7  ;;  %v6987_v19 = vld [vmem:[#allocation11 + $0x748] sm:$0xff]  ;;  %v4356_v8 = vld [vmem:[#allocation11 + $0x438] sm:$0xff] }
 0x477   : > { %4617 = vmatpush.msra.mxu0 %v6923_v57  ;;  %4640 = vmatpush.msra.mxu1 %v6925_v58  ;;  %v4388_v43 = vld [vmem:[#allocation11 + $0x538] sm:$0xff]  ;;  %v4354_v35 = vld [vmem:[#allocation11 + $0x428] sm:$0xff] }
 0x478   : > { %4572 = vmatpush.msrb.mxu2 %v4374_v52  ;;  %4595 = vmatpush.msrb.mxu3 %v4406_v46  ;;  %v4420_v1 = vld [vmem:[#allocation11 + $0x638] sm:$0xff]  ;;  %v4386_v44 = vld [vmem:[#allocation11 + $0x528] sm:$0xff] }
 0x479   : > { %4618 = vmatpush.msra.mxu0 %v6929_v59  ;;  %4641 = vmatpush.msra.mxu1 %v6931_v29  ;;  %v4452_v14 = vld [vmem:[#allocation11 + $0x738] sm:$0xff]  ;;  %v4418_v6 = vld [vmem:[#allocation11 + $0x628] sm:$0xff] }
 0x47a   : > { %4573 = vmatpush.msrb.mxu2 %v4372_v55  ;;  %4596 = vmatpush.msrb.mxu3 %v4404_v62  ;;  %v4450_v21 = vld [vmem:[#allocation11 + $0x728] sm:$0xff]  ;;  %v4352_v27 = vld [vmem:[#allocation11 + $0x418] sm:$0xff] }
 0x47b   : > { %4619 = vmatpush.msra.mxu0 %v6935_v48  ;;  %4642 = vmatpush.msra.mxu1 %v6937_v42  ;;  %v4384_v9 = vld [vmem:[#allocation11 + $0x518] sm:$0xff]  ;;  %v4350_v51 = vld [vmem:[#allocation11 + $0x408] sm:$0xff] }
 0x47c   : > { %4493 = vmatmul.f32.vlgmr.msra.gmra.mxu2 %v6747_v63  ;;  %4516 = vmatmul.f32.vlgmr.msra.gmra.mxu3 %v6792_v30  ;;  %v4416_v20 = vld [vmem:[#allocation11 + $0x618] sm:$0xff]  ;;  %v4382_v7 = vld [vmem:[#allocation11 + $0x508] sm:$0xff] }
 0x47d   : > { %4539 = vmatmul.f32.vlgmr.msrb.gmra.mxu0 %v6808_v24  ;;  %4562 = vmatmul.f32.vlgmr.msrb.gmra.mxu1 %v6831_v28  ;;  %v4448_v11 = vld [vmem:[#allocation11 + $0x718] sm:$0xff]  ;;  %v4414_v52 = vld [vmem:[#allocation11 + $0x608] sm:$0xff] }
 0x47e   : > { %4574 = vmatpush.msrb.mxu2 %v4370_v53  ;;  %4597 = vmatpush.msrb.mxu3 %v4402_v61  ;;  %v4446_v46 = vld [vmem:[#allocation11 + $0x708] sm:$0xff] }
 0x47f   : > { %4620 = vmatpush.msra.mxu0 %v6945_v4  ;;  %4643 = vmatpush.msra.mxu1 %v6947_v60 }
 0x480   : > { %4575 = vmatpush.msrb.mxu2 %v4368_v50  ;;  %4598 = vmatpush.msrb.mxu3 %v4400_v33 }
 0x481   : > { %4621 = vmatpush.msra.mxu0 %v6951_v49  ;;  %4644 = vmatpush.msra.mxu1 %v6953_v34 }
 0x482   : > { %4576 = vmatpush.msrb.mxu2 %v4366_v2  ;;  %4599 = vmatpush.msrb.mxu3 %v4398_v45 }
 0x483   : > { %4622 = vmatpush.msra.mxu0 %v6957_v17  ;;  %4645 = vmatpush.msra.mxu1 %v6959_v18 }
 0x484   : > { %4577 = vmatpush.msrb.mxu2 %v4364_v12  ;;  %4600 = vmatpush.msrb.mxu3 %v4396_v15 }
 0x485   : > { %4623 = vmatpush.msra.mxu0 %v6963_v37  ;;  %4646 = vmatpush.msra.mxu1 %v6965_v16 }
 0x486   : > { %4496 = vmatmul.f32.gmra.mxu2 %v6862_v56  ;;  %4519 = vmatmul.f32.gmra.mxu3 %v6877_v25 }
 0x487   : > { %4542 = vmatmul.f32.gmra.mxu0 %v6893_v32  ;;  %4565 = vmatmul.f32.gmra.mxu1 %v6903_v3 }
 0x488   : > { %4578 = vmatpush.msrb.mxu2 %v4362_v26  ;;  %4601 = vmatpush.msrb.mxu3 %v4394_v40 }
 0x489   : > { %4624 = vmatpush.msra.mxu0 %v6973_v31  ;;  %4647 = vmatpush.msra.mxu1 %v6975_v5 }
 0x48a   : > { %4579 = vmatpush.msrb.mxu2 %v4360_v47  ;;  %4602 = vmatpush.msrb.mxu3 %v4392_v38 }
 0x48b   : > { %4625 = vmatpush.msra.mxu0 %v6979_v36  ;;  %4648 = vmatpush.msra.mxu1 %v6981_v41 }
 0x48c   : > { %4580 = vmatpush.msrb.mxu2 %v4358_v54  ;;  %4603 = vmatpush.msrb.mxu3 %v4390_v10 }
 0x48d   : > { %4626 = vmatpush.msra.mxu0 %v6985_v0  ;;  %4649 = vmatpush.msra.mxu1 %v6987_v19 }
 0x48e   : > { %4581 = vmatpush.msrb.mxu2 %v4356_v8  ;;  %4604 = vmatpush.msrb.mxu3 %v4388_v43 }
 0x48f   : > { %4627 = vmatpush.msra.mxu0 %v4420_v1  ;;  %4650 = vmatpush.msra.mxu1 %v4452_v14 }
 0x490   : > { %4582 = vmatpush.msrb.mxu2 %v4354_v35  ;;  %4605 = vmatpush.msrb.mxu3 %v4386_v44 }
 0x491   : > { %4628 = vmatpush.msra.mxu0 %v4418_v6  ;;  %4651 = vmatpush.msra.mxu1 %v4450_v21 }
 0x492   : > { %4583 = vmatpush.msrb.mxu2 %v4352_v27  ;;  %4606 = vmatpush.msrb.mxu3 %v4384_v9 }
 0x493   : > { %4629 = vmatpush.msra.mxu0 %v4416_v20  ;;  %4652 = vmatpush.msra.mxu1 %v4448_v11 }
 0x494   : > { %4584 = vmatpush.msrb.mxu2 %v4350_v51  ;;  %4607 = vmatpush.msrb.mxu3 %v4382_v7 }
 0x495   : > { %4630 = vmatpush.msra.mxu0 %v4414_v52  ;;  %4653 = vmatpush.msra.mxu1 %v4446_v46 }
 0x496   : > { %4585 = vmatmul.f32.vlgmr.msrb.gmra.mxu2 %v6747_v63  ;;  %4608 = vmatmul.f32.vlgmr.msrb.gmra.mxu3 %v6792_v30 }
 0x497   : > { %4923 = vmatpush.msra.mxu2 %v6909_v39  ;;  %4631 = vmatmul.f32.vlgmr.msra.gmra.mxu0 %v6808_v24 }
 0x498   : > { %4939 = vmatpush.msra.mxu3 %v6911_v13  ;;  %4654 = vmatmul.f32.vlgmr.msra.gmra.mxu1 %v6831_v28 }
 0x499   : > { %4924 = vmatpush.msra.mxu2 %v6917_v23 }
 0x49a   : > { %4940 = vmatpush.msra.mxu3 %v6919_v22 }
 0x49b   : > { %4925 = vmatpush.msra.mxu2 %v6923_v57 }
 0x49c   : > { %4941 = vmatpush.msra.mxu3 %v6925_v58 }
 0x49d   : > { %4926 = vmatpush.msra.mxu2 %v6929_v59 }
 0x49e   : > { %4942 = vmatpush.msra.mxu3 %v6931_v29  ;;  %4588 = vmatmul.f32.gmra.mxu2 %v6862_v56 }
 0x49f   : > { %4611 = vmatmul.f32.gmra.mxu3 %v6877_v25  ;;  %4927 = vmatpush.msra.mxu2 %v6935_v48 }
 0x4a0   : > { %4943 = vmatpush.msra.mxu3 %v6937_v42 }
 0x4a1   : > { %4928 = vmatpush.msra.mxu2 %v6945_v4 }
 0x4a2   : > { %4944 = vmatpush.msra.mxu3 %v6947_v60 }
 0x4a3   : > { %4929 = vmatpush.msra.mxu2 %v6951_v49 }
 0x4a4   : > { %4945 = vmatpush.msra.mxu3 %v6953_v34 }
 0x4a5   : > { %4930 = vmatpush.msra.mxu2 %v6957_v17 }
 0x4a6   : > { %4946 = vmatpush.msra.mxu3 %v6959_v18 }
 0x4a7   : > { %4931 = vmatpush.msra.mxu2 %v6963_v37 }
 0x4a8   : > { %4947 = vmatpush.msra.mxu3 %v6965_v16 }
 0x4a9   : > { %4932 = vmatpush.msra.mxu2 %v6973_v31 }
 0x4aa   : > { %4948 = vmatpush.msra.mxu3 %v6975_v5 }
 0x4ab   : > { %4933 = vmatpush.msra.mxu2 %v6979_v36 }
 0x4ac   : > { %4949 = vmatpush.msra.mxu3 %v6981_v41 }
 0x4ad   : > { %4934 = vmatpush.msra.mxu2 %v6985_v0 }
 0x4ae   : > { %4950 = vmatpush.msra.mxu3 %v6987_v19 }
 0x4af   : > { %4935 = vmatpush.msra.mxu2 %v4420_v1 }
 0x4b0   : > { %4951 = vmatpush.msra.mxu3 %v4452_v14 }
 0x4b1   : > { %4936 = vmatpush.msra.mxu2 %v4418_v6 }
 0x4b2   : > { %4952 = vmatpush.msra.mxu3 %v4450_v21 }
 0x4b3   : > { %4937 = vmatpush.msra.mxu2 %v4416_v20 }
 0x4b4   : > { %4953 = vmatpush.msra.mxu3 %v4448_v11 }
 0x4b5   : > { %4938 = vmatpush.msra.mxu2 %v4414_v52 }
 0x4b6   : > { %4954 = vmatpush.msra.mxu3 %v4446_v46  ;;  %4634 = vmatmul.f32.vlgmr.msra.gmra.mxu2 %v6893_v32 }
 0x4b7   : > { %4657 = vmatmul.f32.vlgmr.msra.gmra.mxu3 %v6903_v3 }
 0x4c5   : > { %v4181_v63 = vpop.f32.mrf.mxu2 }
 0x4cb   : > { %v4227_v24 = vpop.f32.mrf.mxu0 }
 0x4ce   : > { %v4204_v30 = vpop.f32.mrf.mxu3 }
 0x4cf   : > { %v4250_v28 = vpop.f32.mrf.mxu1  ;;  %v4205_v42 = vadd.f32 %v4204_v30, %v4181_v63 }
 0x4d1   : > { %v4228_v4 = vadd.f32 %v4227_v24, %v4205_v42 }
 0x4d3   : > { %v4251_v34 = vadd.f32 %v4250_v28, %v4228_v4 }
 0x4dd   : > { %v4184_v56 = vpop.f32.mrf.mxu2  ;;  %v4230_v39 = vpop.f32.mrf.mxu0 }
 0x4df   : > { %v4207_v25 = vpop.f32.mrf.mxu3 }
 0x4e0   : > { %v4208_v45 = vadd.f32 %v4207_v25, %v4184_v56 }
 0x4e1   : > { %v4253_v13 = vpop.f32.mrf.mxu1 }
 0x4e2   : > { %v4231_v15 = vadd.f32 %v4230_v39, %v4208_v45 }
 0x4e4   : > { %v4254_v31 = vadd.f32 %v4253_v13, %v4231_v15 }
 0x4e5   : > { %v4273_v23 = vpop.f32.mrf.mxu2  ;;  %v4319_v57 = vpop.f32.mrf.mxu0 }
 0x4e9   : > { %v4296_v22 = vpop.f32.mrf.mxu3  ;;  %v4342_v58 = vpop.f32.mrf.mxu1 }
 0x4ea   : > { %v4297_v38 = vadd.f32 %v4296_v22, %v4273_v23 }
 0x4ec   : > { %v4320_v54 = vadd.f32 %v4319_v57, %v4297_v38 }
 0x4ee   : > { %v4343_v43 = vadd.f32 %v4342_v58, %v4320_v54 }
 0x4ef   : > { %v4322_v62 = vpop.f32.mrf.mxu0 }
 0x4f1   : > { %v4345_v48 = vpop.f32.mrf.mxu1 }
 0x4f3   : > { %v4276_v59 = vpop.f32.mrf.mxu2 }
 0x4f5   : > { %v4299_v29 = vpop.f32.mrf.mxu3 }
 0x4f6   : > { %v4300_v55 = vadd.f32 %v4299_v29, %v4276_v59 }
 0x4f8   : > { %v4323_v32 = vadd.f32 %v4322_v62, %v4300_v55 }
 0x4fa   : > { %v4346_v3 = vadd.f32 %v4345_v48, %v4323_v32  ;;  %v4540_v50 = vpop.f32.mrf.mxu0  ;;  %v4563_v49 = vpop.f32.mrf.mxu1 }
 0x4ff   : > { %v4494_v53 = vpop.f32.mrf.mxu2  ;;  %v4517_v61 = vpop.f32.mrf.mxu3 }
 0x500   : > { %v4518_v60 = vadd.f32 %v4517_v61, %v4494_v53 }
 0x502   : > { %v4541_v33 = vadd.f32 %v4540_v50, %v4518_v60 }
 0x504   : > { %v4564_v2 = vadd.f32 %v4563_v49, %v4541_v33  ;;  %v4543_v16 = vpop.f32.mrf.mxu0  ;;  %v4566_v40 = vpop.f32.mrf.mxu1 }
 0x506   : > { %v4661_v17 = vmax.f32 %v4251_v34, %v4564_v2 }
 0x508   : > { %4665 = vst [vmem:[%s7030_s16] sm:$0xff] %v4661_v17 }
 0x509   : > { %v4497_v18 = vpop.f32.mrf.mxu2  ;;  %v4520_v12 = vpop.f32.mrf.mxu3 }
 0x50a   : > { %v4521_v37 = vadd.f32 %v4520_v12, %v4497_v18 }
 0x50c   : > { %v4544_v26 = vadd.f32 %v4543_v16, %v4521_v37 }
 0x50e   : > { %v4567_v5 = vadd.f32 %v4566_v40, %v4544_v26 }
 0x510   : > { %v4663_v47 = vmax.f32 %v4254_v31, %v4567_v5 }
 0x512   : > { %4667 = vst [vmem:[%s7030_s16 + $0x10] sm:$0xff] %v4663_v47 }
 0x514   : > { %v4632_v0 = vpop.f32.mrf.mxu0 }
 0x515   : > { %v4655_v8 = vpop.f32.mrf.mxu1 }
 0x519   : > { %v4586_v36 = vpop.f32.mrf.mxu2  ;;  %v4609_v41 = vpop.f32.mrf.mxu3 }
 0x51a   : > { %v4610_v10 = vadd.f32 %v4609_v41, %v4586_v36 }
 0x51c   : > { %v4633_v19 = vadd.f32 %v4632_v0, %v4610_v10 }
 0x51e   : > { %v4656_v1 = vadd.f32 %v4655_v8, %v4633_v19 }
 0x520   : > { %v4662_v14 = vmax.f32 %v4343_v43, %v4656_v1 }
 0x521   : > { %v4589_v35 = vpop.f32.mrf.mxu2 }
 0x522   : > { %4666 = vst [vmem:[%s7030_s16 + $0x8] sm:$0xff] %v4662_v14  ;;  %v4612_v44 = vpop.f32.mrf.mxu3 }
 0x523   : > { %v4613_v6 = vadd.f32 %v4612_v44, %v4589_v35 }
 0x539   : > { %v4635_v21 = vpop.f32.mrf.mxu2 }
 0x53a   : > { %v4636_v27 = vadd.f32 %v4635_v21, %v4613_v6  ;;  %v4658_v9 = vpop.f32.mrf.mxu3 }
 0x53c   : > { %v4659_v20 = vadd.f32 %v4658_v9, %v4636_v27 }
 0x53e   : > { %v4664_v11 = vmax.f32 %v4346_v3, %v4659_v20 }
 0x540   : > { %4668 = vst [vmem:[%s7030_s16 + $0x18] sm:$0xff] %v4664_v11 }
 0x541 PF: > { %s19_s21 = sadd.s32 1, %s5207_s21  }
 0x542   : > { %p16_p7 = scmp.ge.s32.totalorder %s19_s21, 4  }
 0x544   :  { %18 = sbr.rel (!%p16_p7) target bundleno = 3 (0x3), region = 102 }
 0x549   :  { %4690 = vsyncpa [#allocation5], 1 }
 0x54a   :  { %4692 = vsyncpa [#allocation5 + $0x1], 1 }
 0x54b   :  { %4693 = vsyncpa [#allocation7], 1 }
 0x54c   :  { %4694 = vsyncpa [#allocation10], 1 }

</bundles_post_ra>
